<compile_context>
chip_gen: v6e
topology: v6e:2x2x1
jax: 0.10.0
libtpu: 0.0.40
codegen_flags: <defaults>
</compile_context>

<pallas_src>
import functools

import jax
import jax.numpy as jnp
from jax.experimental import pallas as pl
from jax.experimental.pallas import tpu as pltpu

# ---------------- small synthetic ELMo configuration ----------------
BATCH = 2
TIMESTEPS = 8
MAX_CHARS = 50                    # char ids per token (ELMo convention)
CHAR_VOCAB = 262                  # ELMo char vocab size
D_CHAR = 8                        # char embedding dim   (real ELMo: 16)
FILTERS = [(1, 8), (2, 8), (3, 16)]   # (width, n_filters) (real ELMo: 7 filters -> 2048)
N_FILTERS = sum(f for _, f in FILTERS)
MAX_W = max(w for w, _ in FILTERS)
N_HIGHWAY = 2
PROJ_DIM = 32                     # real ELMo: 512
HIDDEN = 64                       # LSTM cell size       (real ELMo: 4096)
N_LSTM_LAYERS = 2
CELL_CLIP = 3.0
PROJ_CLIP = 3.0

BOS_CHAR = 1
EOS_CHAR = 2

TOK_BLOCK = 8                     # tokens per char-CNN grid step
NEG_INF = -1e30


# =====================================================================
# Kernel 1: char CNN + highway + projection  (TOK_BLOCK tokens per step)
# =====================================================================
def _char_cnn_kernel(x_ref, wconv_ref, bmask_ref, wh1_ref, bh1_ref,
                     wh2_ref, bh2_ref, wp_ref, bp_ref, out_ref):
    """x_ref: (TB, MAX_CHARS, D_CHAR) f32; out_ref: (TB, PROJ_DIM) f32."""
    tb = x_ref.shape[0]
    x = x_ref[...]                                            # (TB, C, D)

    # Unfold: u[:, l, j*D:(j+1)*D] = x[:, l+j, :]  (zero padded past the end).
    pad = jnp.zeros((tb, MAX_W - 1, D_CHAR), jnp.float32)
    xp = jnp.concatenate([x, pad], axis=1)                    # (TB, C+MAX_W-1, D)
    u = jnp.concatenate(
        [xp[:, j:j + MAX_CHARS, :] for j in range(MAX_W)], axis=-1)   # (TB, C, MAX_W*D)
    u2 = u.reshape(tb * MAX_CHARS, MAX_W * D_CHAR).astype(jnp.bfloat16)

    # One packed conv matmul for all filter widths; bias + (-inf) position mask
    # for narrower filters are folded into bmask, then maxpool over positions.
    conv = jnp.dot(u2, wconv_ref[...], preferred_element_type=jnp.float32)
    conv = conv.reshape(tb, MAX_CHARS, N_FILTERS) + bmask_ref[...]     # (TB, C, NF)
    h = jax.nn.relu(jnp.max(conv, axis=1))                             # (TB, NF)

    # 2 highway layers (AllenNLP gating), then projection.
    for wh_r, bh_r in ((wh1_ref, bh1_ref), (wh2_ref, bh2_ref)):
        proj = (jnp.dot(h.astype(jnp.bfloat16), wh_r[...],
                        preferred_element_type=jnp.float32) + bh_r[...])
        nonlin = jax.nn.relu(proj[:, :N_FILTERS])
        gate = jax.nn.sigmoid(proj[:, N_FILTERS:])
        h = gate * h + (1.0 - gate) * nonlin

    out_ref[...] = (jnp.dot(h.astype(jnp.bfloat16), wp_ref[...],
                            preferred_element_type=jnp.float32) + bp_ref[...])


def char_cnn(char_emb, cnn_packed):
    """char_emb: (N_tokens, MAX_CHARS, D_CHAR) f32 -> (N_tokens, PROJ_DIM) f32."""
    n_tok = char_emb.shape[0]
    n_pad = pl.cdiv(n_tok, TOK_BLOCK) * TOK_BLOCK
    if n_pad != n_tok:
        char_emb = jnp.pad(char_emb, ((0, n_pad - n_tok), (0, 0), (0, 0)))

    # Invariant weights: whole array resident in VMEM, no per-step pipelining.
    w_spec = pl.BlockSpec(memory_space=pltpu.MemorySpace.VMEM)

    out = pl.pallas_call(
        _char_cnn_kernel,
        out_shape=jax.ShapeDtypeStruct((n_pad, PROJ_DIM), jnp.float32),
        grid=(n_pad // TOK_BLOCK,),
        in_specs=[pl.BlockSpec((TOK_BLOCK, MAX_CHARS, D_CHAR), lambda n: (n, 0, 0))]
                 + [w_spec] * len(cnn_packed),
        out_specs=pl.BlockSpec((TOK_BLOCK, PROJ_DIM), lambda n: (n, 0)),
        compiler_params=pltpu.CompilerParams(
            dimension_semantics=("parallel",)),
    )(char_emb, *cnn_packed)
    return out[:n_tok]


# =====================================================================
# Kernel 2: fused BiLSTM (both directions + both layers, one call)
#
# Layout: x_ref (T2, B_PAD, 2P) with [:, :, :P] = fwd input at loop step t and
# [:, :, P:] = bwd input (time-reversed) at loop step t.  Direction fusion uses
# gate-grouped block-diagonal weights: gate columns are ordered
#   [i_f i_b | f_f f_b | g_f g_b | o_f o_b]   (each group 2H = 128 lanes wide)
# so every gate slice and the (B, 2H) cell state are 128-lane aligned.
# =====================================================================
def _bilstm_kernel(x_ref, wx1_ref, wh1_ref, b1_ref, wp1_ref,
                   w2_ref, b2_ref, wp2_ref, out1_ref, out2_ref, gx_ref):
    T2, BP, P2 = x_ref.shape            # (time, padded batch, 2*PROJ_DIM)
    H2 = 2 * HIDDEN
    G = 4 * H2                          # 8H gate width (fwd+bwd)

    # --- hoist layer-1 input projection out of the recurrence (one wide matmul) ---
    x2 = x_ref[...].reshape(T2 * BP, P2)
    gx = (jnp.dot(x2.astype(jnp.bfloat16), wx1_ref[...],
                  preferred_element_type=jnp.float32) + b1_ref[...])
    gx_ref[...] = gx.reshape(T2, BP, G)

    wh1 = wh1_ref[...]
    wp1 = wp1_ref[...]
    w2 = w2_ref[...]
    b2 = b2_ref[...]
    wp2 = wp2_ref[...]

    def gate_math(gates, c):
        i_g = jax.nn.sigmoid(gates[:, 0 * H2:1 * H2])
        f_g = jax.nn.sigmoid(gates[:, 1 * H2:2 * H2])
        g_g = jnp.tanh(gates[:, 2 * H2:3 * H2])
        o_g = jax.nn.sigmoid(gates[:, 3 * H2:4 * H2])
        c_new = jnp.clip(f_g * c + i_g * g_g, -CELL_CLIP, CELL_CLIP)
        h_raw = o_g * jnp.tanh(c_new)
        return h_raw, c_new

    h1 = jnp.zeros((BP, P2), jnp.float32)
    c1 = jnp.zeros((BP, H2), jnp.float32)
    h2 = jnp.zeros((BP, P2), jnp.float32)
    c2 = jnp.zeros((BP, H2), jnp.float32)

    # Fully unrolled static time loop (T2 is small); only h@Wh / proj / layer-2
    # [x;h]@W stay on the serial critical path.
    for t in range(T2):
        # ----- layer 1 (both directions) -----
        gates1 = gx_ref[t] + jnp.dot(h1.astype(jnp.bfloat16), wh1,
                                     preferred_element_type=jnp.float32)
        h1_raw, c1 = gate_math(gates1, c1)
        h1 = jnp.clip(jnp.dot(h1_raw.astype(jnp.bfloat16), wp1,
                              preferred_element_type=jnp.float32),
                      -PROJ_CLIP, PROJ_CLIP)
        # ----- layer 2 (stacked [x; h] weight -> single MXU op for the gates) -----
        xh = jnp.concatenate([h1, h2], axis=-1)               # (BP, 4P)
        gates2 = (jnp.dot(xh.astype(jnp.bfloat16), w2,
                          preferred_element_type=jnp.float32) + b2)
        h2_raw, c2 = gate_math(gates2, c2)
        h2 = jnp.clip(jnp.dot(h2_raw.astype(jnp.bfloat16), wp2,
                              preferred_element_type=jnp.float32),
                      -PROJ_CLIP, PROJ_CLIP)

        out1_ref[t] = h1
        out2_ref[t] = h2 + h1                                 # residual on layer >= 1


def bilstm(tok_btp, lstm_packed):
    """tok_btp: (B, T2, PROJ_DIM) -> (fwd1, bwd1, fwd2_res, bwd2_res), each (B, T2, P)."""
    B, T2, P = tok_btp.shape
    b_pad = max(8, ((B + 7) // 8) * 8)           # >= 8 sublanes per matmul / store

    x_f = jnp.transpose(tok_btp, (1, 0, 2))      # time-major (T2, B, P)
    x_b = x_f[::-1]                              # reversed time for the bwd direction
    x_cat = jnp.concatenate([x_f, x_b], axis=-1)             # (T2, B, 2P)
    x_cat = jnp.pad(x_cat, ((0, 0), (0, b_pad - B), (0, 0)))  # (T2, b_pad, 2P)

    wx1, wh1, b1, wp1, w2, b2, wp2 = lstm_packed

    out1, out2 = pl.pallas_call(
        _bilstm_kernel,
        out_shape=(jax.ShapeDtypeStruct((T2, b_pad, 2 * PROJ_DIM), jnp.float32),
                   jax.ShapeDtypeStruct((T2, b_pad, 2 * PROJ_DIM), jnp.float32)),
        scratch_shapes=[pltpu.VMEM((T2, b_pad, 8 * HIDDEN), jnp.float32)],
    )(x_cat, wx1, wh1, b1, wp1, w2, b2, wp2)

    def split(o):
        o = o[:, :B]
        fwd = jnp.transpose(o[:, :, :P], (1, 0, 2))
        bwd = jnp.transpose(o[::-1, :, P:], (1, 0, 2))        # un-reverse bwd stream
        return fwd, bwd

    fwd1, bwd1 = split(out1)
    fwd2, bwd2 = split(out2)
    return fwd1, bwd1, fwd2, bwd2


# =====================================================================
# Full forward (glue)
# =====================================================================
def elmo_layer_embedder_forward(char_ids, packed, layer):
    assert layer < 3
    B, T, C = char_ids.shape

    # add sentence boundaries (BOS/EOS char-id rows); full-length sequences assumed
    bos = jnp.full((B, 1, C), BOS_CHAR, jnp.int32)
    eos = jnp.full((B, 1, C), EOS_CHAR, jnp.int32)
    ids = jnp.concatenate([bos, char_ids.astype(jnp.int32), eos], axis=1)   # (B, T+2, C)
    T2 = T + 2

    # char embedding lookup (glue; table is tiny)
    emb = jnp.take(packed['char_embedding'], ids.reshape(-1), axis=0)
    emb = emb.reshape(B * T2, C, D_CHAR).astype(jnp.float32)

    # token embedding via blocked char-CNN kernel
    tok = char_cnn(emb, packed['cnn']).reshape(B, T2, PROJ_DIM)

    # fused 2-layer BiLSTM kernel (residual already applied to layer-2 outputs)
    fwd1, bwd1, fwd2, bwd2 = bilstm(tok, packed['lstm'])

    act0 = jnp.concatenate([tok, tok], axis=-1)
    act1 = jnp.concatenate([fwd1, bwd1], axis=-1)
    act2 = jnp.concatenate([fwd2, bwd2], axis=-1)
    activations = [a[:, 1:-1, :] for a in (act0, act1, act2)]   # strip BOS/EOS
    return {'embeddings': activations[layer]}


# =====================================================================
# Deterministic parameter init (same structure as the reference version)
# =====================================================================
def init_params(key):
    keys = list(jax.random.split(key, 40))
    it = iter(keys)

    def nrm(shape, scale=0.1):
        return scale * jax.random.normal(next(it), shape, jnp.float32)

    params = {'char_embedding': nrm((CHAR_VOCAB, D_CHAR), 1.0)}

    cnn = []
    for (w, f) in FILTERS:
        cnn.append(nrm((w * D_CHAR, f)))       # conv weight (flattened over width)
        cnn.append(nrm((1, f)))                # conv bias
    for _ in range(N_HIGHWAY):
        cnn.append(nrm((N_FILTERS, 2 * N_FILTERS)))
        cnn.append(nrm((1, 2 * N_FILTERS)))
    cnn.append(nrm((N_FILTERS, PROJ_DIM)))     # projection
    cnn.append(nrm((1, PROJ_DIM)))
    params['cnn'] = cnn

    def lstm_layer():
        return (nrm((PROJ_DIM, 4 * HIDDEN)),   # input linearity
                nrm((PROJ_DIM, 4 * HIDDEN)),   # state linearity
                nrm((1, 4 * HIDDEN)),          # bias
                nrm((HIDDEN, PROJ_DIM)))       # state projection

    params['lstm_fwd'] = [lstm_layer() for _ in range(N_LSTM_LAYERS)]
    params['lstm_bwd'] = [lstm_layer() for _ in range(N_LSTM_LAYERS)]
    return params


# =====================================================================
# Pack parameters into kernel-friendly layouts (done once, outside kernels)
# =====================================================================
def pack_params(params):
    H = HIDDEN
    P = PROJ_DIM

    # ---------------- char CNN ----------------
    cnn = params['cnn']
    idx = 0
    wcols, bmask_cols = [], []
    pos = jnp.arange(MAX_CHARS, dtype=jnp.int32)[:, None]
    for (w, f) in FILTERS:
        W = cnn[idx]
        b = cnn[idx + 1]
        idx += 2
        # pad weight rows of narrower filters with zeros to width MAX_W
        wcols.append(jnp.concatenate(
            [W, jnp.zeros(((MAX_W - w) * D_CHAR, f), jnp.float32)], axis=0))
        # bias + (-inf) mask for positions invalid for this filter width
        L = MAX_CHARS - w + 1
        bmask_cols.append(jnp.where(pos < L, b, NEG_INF))     # (MAX_CHARS, f)
    w_conv = jnp.concatenate(wcols, axis=1).astype(jnp.bfloat16)   # (MAX_W*D, NF)
    b_mask = jnp.concatenate(bmask_cols, axis=1)                   # (MAX_CHARS, NF)

    wh1 = cnn[idx].astype(jnp.bfloat16); bh1 = cnn[idx + 1]; idx += 2
    wh2 = cnn[idx].astype(jnp.bfloat16); bh2 = cnn[idx + 1]; idx += 2
    wp = cnn[idx].astype(jnp.bfloat16); bp = cnn[idx + 1]
    cnn_packed = (w_conv, b_mask, wh1, bh1, wh2, bh2, wp, bp)

    # ---------------- BiLSTM ----------------
    def pack_gates(wf, wb):
        """(R,4H) fwd + (R,4H) bwd -> (2R, 8H), gate-grouped block-diagonal."""
        R = wf.shape[0]
        blocks = []
        for k in range(4):
            top = jnp.concatenate(
                [wf[:, k * H:(k + 1) * H], jnp.zeros((R, H), jnp.float32)], axis=1)
            bot = jnp.concatenate(
                [jnp.zeros((R, H), jnp.float32), wb[:, k * H:(k + 1) * H]], axis=1)
            blocks.append(jnp.concatenate([top, bot], axis=0))      # (2R, 2H)
        return jnp.concatenate(blocks, axis=1)                       # (2R, 8H)

    def pack_bias(bf, bb):
        return jnp.concatenate(
            [jnp.concatenate([bf[:, k * H:(k + 1) * H],
                              bb[:, k * H:(k + 1) * H]], axis=1) for k in range(4)],
            axis=1)                                                  # (1, 8H)

    def pack_proj(pf, pb):
        top = jnp.concatenate([pf, jnp.zeros((H, P), jnp.float32)], axis=1)
        bot = jnp.concatenate([jnp.zeros((H, P), jnp.float32), pb], axis=1)
        return jnp.concatenate([top, bot], axis=0)                   # (2H, 2P)

    wx_f1, whh_f1, b_f1, wp_f1 = params['lstm_fwd'][0]
    wx_b1, whh_b1, b_b1, wp_b1 = params['lstm_bwd'][0]
    wx_f2, whh_f2, b_f2, wp_f2 = params['lstm_fwd'][1]
    wx_b2, whh_b2, b_b2, wp_b2 = params['lstm_bwd'][1]

    wx1 = pack_gates(wx_f1, wx_b1).astype(jnp.bfloat16)              # (2P, 8H)
    wh1 = pack_gates(whh_f1, whh_b1).astype(jnp.bfloat16)            # (2P, 8H)
    b1 = pack_bias(b_f1, b_b1)                                       # (1, 8H)
    wp1 = pack_proj(wp_f1, wp_b1).astype(jnp.bfloat16)               # (2H, 2P)
    w2 = jnp.concatenate([pack_gates(wx_f2, wx_b2),
                          pack_gates(whh_f2, whh_b2)],
                         axis=0).astype(jnp.bfloat16)                # (4P, 8H)
    b2 = pack_bias(b_f2, b_b2)
    wp2 = pack_proj(wp_f2, wp_b2).astype(jnp.bfloat16)

    return {'char_embedding': params['char_embedding'],
            'cnn': cnn_packed,
            'lstm': (wx1, wh1, b1, wp1, w2, b2, wp2)}


if __name__ == "__main__":
    root = jax.random.PRNGKey(0)
    pkey, dkey = jax.random.split(root)
    params = init_params(pkey)
    packed = pack_params(params)

    # synthetic character ids, shape (batch, timesteps, 50) like batch_to_ids output
    char_ids = jax.random.randint(
        dkey, (BATCH, TIMESTEPS, MAX_CHARS), 3, CHAR_VOCAB, dtype=jnp.int32)

    fwd_fn = jax.jit(functools.partial(elmo_layer_embedder_forward, layer=2))
    out = fwd_fn(char_ids, packed)
    emb = jax.block_until_ready(out['embeddings'])

    assert emb.shape == (BATCH, TIMESTEPS, 2 * PROJ_DIM), emb.shape
    assert emb.dtype == jnp.float32
    print("KERNEL_OK")
</pallas_src>

<mosaic_0001>
module attributes {stable_mosaic.version = 11 : i64} {
  func.func @_char_cnn_kernel(%arg0: i32, %arg1: memref<8x50x8xf32, #tpu.memory_space<vmem>>, %arg2: memref<24x32xbf16, #tpu.memory_space<vmem>>, %arg3: memref<50x32xf32, #tpu.memory_space<vmem>>, %arg4: memref<32x64xbf16, #tpu.memory_space<vmem>>, %arg5: memref<1x64xf32, #tpu.memory_space<vmem>>, %arg6: memref<32x64xbf16, #tpu.memory_space<vmem>>, %arg7: memref<1x64xf32, #tpu.memory_space<vmem>>, %arg8: memref<32x32xbf16, #tpu.memory_space<vmem>>, %arg9: memref<1x32xf32, #tpu.memory_space<vmem>>, %arg10: memref<8x32xf32, #tpu.memory_space<vmem>>) attributes {dimension_semantics = [#tpu.dimension_semantics<parallel>], iteration_bounds = array<i64: 3>, scalar_prefetch = 0 : i64, scratch_operands = 0 : i64, tpu.core_type = #tpu.core_type<tc>, window_params = [{transform_indices = @transform_0, window_bounds = array<i64: 8, 50, 8>}, {pipeline_mode = #tpu.pipeline_mode<synchronous>, transform_indices = @transform_1, window_bounds = array<i64: 24, 32>}, {pipeline_mode = #tpu.pipeline_mode<synchronous>, transform_indices = @transform_2, window_bounds = array<i64: 50, 32>}, {pipeline_mode = #tpu.pipeline_mode<synchronous>, transform_indices = @transform_3, window_bounds = array<i64: 32, 64>}, {pipeline_mode = #tpu.pipeline_mode<synchronous>, transform_indices = @transform_4, window_bounds = array<i64: 1, 64>}, {pipeline_mode = #tpu.pipeline_mode<synchronous>, transform_indices = @transform_5, window_bounds = array<i64: 32, 64>}, {pipeline_mode = #tpu.pipeline_mode<synchronous>, transform_indices = @transform_6, window_bounds = array<i64: 1, 64>}, {pipeline_mode = #tpu.pipeline_mode<synchronous>, transform_indices = @transform_7, window_bounds = array<i64: 32, 32>}, {pipeline_mode = #tpu.pipeline_mode<synchronous>, transform_indices = @transform_8, window_bounds = array<i64: 1, 32>}, {transform_indices = @transform_9, window_bounds = array<i64: 8, 32>}]} {
    %c0 = arith.constant 0 : index
    %c0_0 = arith.constant 0 : index
    %c0_1 = arith.constant 0 : index
    %0 = vector.load %arg1[%c0, %c0_0, %c0_1] : memref<8x50x8xf32, #tpu.memory_space<vmem>>, vector<8x50x8xf32>
    %cst = arith.constant 0.000000e+00 : f32
    %1 = vector.broadcast %cst : f32 to vector<8x2x8xf32>
    %2 = tpu.concatenate %0, %1 in 1 : vector<8x50x8xf32>, vector<8x2x8xf32> -> vector<8x52x8xf32>
    %3 = vector.extract_strided_slice %2 {offsets = [0, 0, 0], sizes = [8, 50, 8], strides = [1, 1, 1]} : vector<8x52x8xf32> to vector<8x50x8xf32>
    %4 = vector.extract_strided_slice %2 {offsets = [0, 1, 0], sizes = [8, 50, 8], strides = [1, 1, 1]} : vector<8x52x8xf32> to vector<8x50x8xf32>
    %5 = vector.extract_strided_slice %2 {offsets = [0, 2, 0], sizes = [8, 50, 8], strides = [1, 1, 1]} : vector<8x52x8xf32> to vector<8x50x8xf32>
    %6 = tpu.concatenate %3, %4, %5 in 2 : vector<8x50x8xf32>, vector<8x50x8xf32>, vector<8x50x8xf32> -> vector<8x50x24xf32>
    %7 = vector.shape_cast %6 : vector<8x50x24xf32> to vector<400x24xf32>
    %8 = arith.truncf %7 : vector<400x24xf32> to vector<400x24xbf16>
    %c0_2 = arith.constant 0 : index
    %c0_3 = arith.constant 0 : index
    %9 = vector.load %arg2[%c0_2, %c0_3] : memref<24x32xbf16, #tpu.memory_space<vmem>>, vector<24x32xbf16>
    %cst_4 = arith.constant dense<0.000000e+00> : vector<400x32xf32>
    %10 = tpu.matmul %8, %9, %cst_4 {dimension_numbers = #tpu.dot_dimension_numbers<[1], [0], [0], [1], [0, 0, 1, 1], [], []>} : vector<400x24xbf16>, vector<24x32xbf16>, vector<400x32xf32> -> vector<400x32xf32>
    %11 = vector.shape_cast %10 : vector<400x32xf32> to vector<8x50x32xf32>
    %c0_5 = arith.constant 0 : index
    %c0_6 = arith.constant 0 : index
    %12 = vector.load %arg3[%c0_5, %c0_6] : memref<50x32xf32, #tpu.memory_space<vmem>>, vector<50x32xf32>
    %13 = vector.shape_cast %12 : vector<50x32xf32> to vector<1x50x32xf32>
    %14 = vector.broadcast %13 : vector<1x50x32xf32> to vector<8x50x32xf32>
    %15 = arith.addf %11, %14 : vector<8x50x32xf32>
    %cst_7 = arith.constant dense<0xFF800000> : vector<8x32xf32>
    %16 = vector.multi_reduction <maximumf>, %15, %cst_7 [1] : vector<8x50x32xf32> to vector<8x32xf32>
    %cst_8 = arith.constant 0.000000e+00 : f32
    %17 = vector.broadcast %cst_8 : f32 to vector<8x32xf32>
    %18 = arith.maximumf %16, %17 : vector<8x32xf32>
    %19 = arith.truncf %18 : vector<8x32xf32> to vector<8x32xbf16>
    %c0_9 = arith.constant 0 : index
    %c0_10 = arith.constant 0 : index
    %20 = vector.load %arg4[%c0_9, %c0_10] : memref<32x64xbf16, #tpu.memory_space<vmem>>, vector<32x64xbf16>
    %cst_11 = arith.constant dense<0.000000e+00> : vector<8x64xf32>
    %21 = tpu.matmul %19, %20, %cst_11 {dimension_numbers = #tpu.dot_dimension_numbers<[1], [0], [0], [1], [0, 0, 1, 1], [], []>} : vector<8x32xbf16>, vector<32x64xbf16>, vector<8x64xf32> -> vector<8x64xf32>
    %c0_12 = arith.constant 0 : index
    %c0_13 = arith.constant 0 : index
    %22 = vector.load %arg5[%c0_12, %c0_13] : memref<1x64xf32, #tpu.memory_space<vmem>>, vector<1x64xf32>
    %23 = vector.broadcast %22 : vector<1x64xf32> to vector<8x64xf32>
    %24 = arith.addf %21, %23 : vector<8x64xf32>
    %25 = vector.extract_strided_slice %24 {offsets = [0, 0], sizes = [8, 32], strides = [1, 1]} : vector<8x64xf32> to vector<8x32xf32>
    %cst_14 = arith.constant 0.000000e+00 : f32
    %26 = vector.broadcast %cst_14 : f32 to vector<8x32xf32>
    %27 = arith.maximumf %25, %26 : vector<8x32xf32>
    %28 = vector.extract_strided_slice %24 {offsets = [0, 32], sizes = [8, 32], strides = [1, 1]} : vector<8x64xf32> to vector<8x32xf32>
    %29 = arith.negf %28 : vector<8x32xf32>
    %30 = math.exp %29 : vector<8x32xf32>
    %cst_15 = arith.constant 1.000000e+00 : f32
    %31 = vector.broadcast %cst_15 : f32 to vector<8x32xf32>
    %32 = arith.addf %31, %30 : vector<8x32xf32>
    %33 = arith.divf %31, %32 : vector<8x32xf32>
    %34 = arith.mulf %33, %18 : vector<8x32xf32>
    %cst_16 = arith.constant 1.000000e+00 : f32
    %35 = vector.broadcast %cst_16 : f32 to vector<8x32xf32>
    %36 = arith.subf %35, %33 : vector<8x32xf32>
    %37 = arith.mulf %36, %27 : vector<8x32xf32>
    %38 = arith.addf %34, %37 : vector<8x32xf32>
    %39 = arith.truncf %38 : vector<8x32xf32> to vector<8x32xbf16>
    %c0_17 = arith.constant 0 : index
    %c0_18 = arith.constant 0 : index
    %40 = vector.load %arg6[%c0_17, %c0_18] : memref<32x64xbf16, #tpu.memory_space<vmem>>, vector<32x64xbf16>
    %cst_19 = arith.constant dense<0.000000e+00> : vector<8x64xf32>
    %41 = tpu.matmul %39, %40, %cst_19 {dimension_numbers = #tpu.dot_dimension_numbers<[1], [0], [0], [1], [0, 0, 1, 1], [], []>} : vector<8x32xbf16>, vector<32x64xbf16>, vector<8x64xf32> -> vector<8x64xf32>
    %c0_20 = arith.constant 0 : index
    %c0_21 = arith.constant 0 : index
    %42 = vector.load %arg7[%c0_20, %c0_21] : memref<1x64xf32, #tpu.memory_space<vmem>>, vector<1x64xf32>
    %43 = vector.broadcast %42 : vector<1x64xf32> to vector<8x64xf32>
    %44 = arith.addf %41, %43 : vector<8x64xf32>
    %45 = vector.extract_strided_slice %44 {offsets = [0, 0], sizes = [8, 32], strides = [1, 1]} : vector<8x64xf32> to vector<8x32xf32>
    %cst_22 = arith.constant 0.000000e+00 : f32
    %46 = vector.broadcast %cst_22 : f32 to vector<8x32xf32>
    %47 = arith.maximumf %45, %46 : vector<8x32xf32>
    %48 = vector.extract_strided_slice %44 {offsets = [0, 32], sizes = [8, 32], strides = [1, 1]} : vector<8x64xf32> to vector<8x32xf32>
    %49 = arith.negf %48 : vector<8x32xf32>
    %50 = math.exp %49 : vector<8x32xf32>
    %cst_23 = arith.constant 1.000000e+00 : f32
    %51 = vector.broadcast %cst_23 : f32 to vector<8x32xf32>
    %52 = arith.addf %51, %50 : vector<8x32xf32>
    %53 = arith.divf %51, %52 : vector<8x32xf32>
    %54 = arith.mulf %53, %38 : vector<8x32xf32>
    %cst_24 = arith.constant 1.000000e+00 : f32
    %55 = vector.broadcast %cst_24 : f32 to vector<8x32xf32>
    %56 = arith.subf %55, %53 : vector<8x32xf32>
    %57 = arith.mulf %56, %47 : vector<8x32xf32>
    %58 = arith.addf %54, %57 : vector<8x32xf32>
    %59 = arith.truncf %58 : vector<8x32xf32> to vector<8x32xbf16>
    %c0_25 = arith.constant 0 : index
    %c0_26 = arith.constant 0 : index
    %60 = vector.load %arg8[%c0_25, %c0_26] : memref<32x32xbf16, #tpu.memory_space<vmem>>, vector<32x32xbf16>
    %cst_27 = arith.constant dense<0.000000e+00> : vector<8x32xf32>
    %61 = tpu.matmul %59, %60, %cst_27 {dimension_numbers = #tpu.dot_dimension_numbers<[1], [0], [0], [1], [0, 0, 1, 1], [], []>} : vector<8x32xbf16>, vector<32x32xbf16>, vector<8x32xf32> -> vector<8x32xf32>
    %c0_28 = arith.constant 0 : index
    %c0_29 = arith.constant 0 : index
    %62 = vector.load %arg9[%c0_28, %c0_29] : memref<1x32xf32, #tpu.memory_space<vmem>>, vector<1x32xf32>
    %63 = vector.broadcast %62 : vector<1x32xf32> to vector<8x32xf32>
    %64 = arith.addf %61, %63 : vector<8x32xf32>
    %c0_30 = arith.constant 0 : index
    %c0_31 = arith.constant 0 : index
    %65 = vector.load %arg10[%c0_30, %c0_31] : memref<8x32xf32, #tpu.memory_space<vmem>>, vector<8x32xf32>
    tpu.vector_store %arg10[%c0_30, %c0_31], %64 {strides = array<i32>} : memref<8x32xf32, #tpu.memory_space<vmem>>, vector<8x32xf32>,
    return
  }
  func.func @transform_0(%arg0: i32) -> (i32, i32, i32) {
    %c0_i32 = arith.constant 0 : i32
    %c0_i32_0 = arith.constant 0 : i32
    %c0_i32_1 = arith.constant 0 : i32
    return %arg0, %c0_i32, %c0_i32_0 : i32, i32, i32
  }
  func.func @transform_1(%arg0: i32) -> (i32, i32) {
    %c0_i32 = arith.constant 0 : i32
    %c0_i32_0 = arith.constant 0 : i32
    %c0_i32_1 = arith.constant 0 : i32
    return %c0_i32, %c0_i32_0 : i32, i32
  }
  func.func @transform_2(%arg0: i32) -> (i32, i32) {
    %c0_i32 = arith.constant 0 : i32
    %c0_i32_0 = arith.constant 0 : i32
    %c0_i32_1 = arith.constant 0 : i32
    return %c0_i32, %c0_i32_0 : i32, i32
  }
  func.func @transform_3(%arg0: i32) -> (i32, i32) {
    %c0_i32 = arith.constant 0 : i32
    %c0_i32_0 = arith.constant 0 : i32
    %c0_i32_1 = arith.constant 0 : i32
    return %c0_i32, %c0_i32_0 : i32, i32
  }
  func.func @transform_4(%arg0: i32) -> (i32, i32) {
    %c0_i32 = arith.constant 0 : i32
    %c0_i32_0 = arith.constant 0 : i32
    %c0_i32_1 = arith.constant 0 : i32
    return %c0_i32, %c0_i32_0 : i32, i32
  }
  func.func @transform_5(%arg0: i32) -> (i32, i32) {
    %c0_i32 = arith.constant 0 : i32
    %c0_i32_0 = arith.constant 0 : i32
    %c0_i32_1 = arith.constant 0 : i32
    return %c0_i32, %c0_i32_0 : i32, i32
  }
  func.func @transform_6(%arg0: i32) -> (i32, i32) {
    %c0_i32 = arith.constant 0 : i32
    %c0_i32_0 = arith.constant 0 : i32
    %c0_i32_1 = arith.constant 0 : i32
    return %c0_i32, %c0_i32_0 : i32, i32
  }
  func.func @transform_7(%arg0: i32) -> (i32, i32) {
    %c0_i32 = arith.constant 0 : i32
    %c0_i32_0 = arith.constant 0 : i32
    %c0_i32_1 = arith.constant 0 : i32
    return %c0_i32, %c0_i32_0 : i32, i32
  }
  func.func @transform_8(%arg0: i32) -> (i32, i32) {
    %c0_i32 = arith.constant 0 : i32
    %c0_i32_0 = arith.constant 0 : i32
    %c0_i32_1 = arith.constant 0 : i32
    return %c0_i32, %c0_i32_0 : i32, i32
  }
  func.func @transform_9(%arg0: i32) -> (i32, i32) {
    %c0_i32 = arith.constant 0 : i32
    %c0_i32_0 = arith.constant 0 : i32
    return %arg0, %c0_i32 : i32, i32
  }
}

module attributes {stable_mosaic.version = 11 : i64} {
  func.func @_bilstm_kernel(%arg0: memref<10x8x64xf32, #tpu.memory_space<vmem>>, %arg1: memref<64x512xbf16, #tpu.memory_space<vmem>>, %arg2: memref<64x512xbf16, #tpu.memory_space<vmem>>, %arg3: memref<1x512xf32, #tpu.memory_space<vmem>>, %arg4: memref<128x64xbf16, #tpu.memory_space<vmem>>, %arg5: memref<128x512xbf16, #tpu.memory_space<vmem>>, %arg6: memref<1x512xf32, #tpu.memory_space<vmem>>, %arg7: memref<128x64xbf16, #tpu.memory_space<vmem>>, %arg8: memref<10x8x64xf32, #tpu.memory_space<vmem>>, %arg9: memref<10x8x64xf32, #tpu.memory_space<vmem>>, %arg10: memref<10x8x512xf32, #tpu.memory_space<vmem>>) attributes {dimension_semantics = [], scalar_prefetch = 0 : i64, scratch_operands = 1 : i64, tpu.core_type = #tpu.core_type<tc>} {
    %c0 = arith.constant 0 : index
    %c0_0 = arith.constant 0 : index
    %c0_1 = arith.constant 0 : index
    %0 = vector.load %arg0[%c0, %c0_0, %c0_1] : memref<10x8x64xf32, #tpu.memory_space<vmem>>, vector<10x8x64xf32>
    %1 = vector.shape_cast %0 : vector<10x8x64xf32> to vector<80x64xf32>
    %2 = arith.truncf %1 : vector<80x64xf32> to vector<80x64xbf16>
    %c0_2 = arith.constant 0 : index
    %c0_3 = arith.constant 0 : index
    %3 = vector.load %arg1[%c0_2, %c0_3] : memref<64x512xbf16, #tpu.memory_space<vmem>>, vector<64x512xbf16>
    %cst = arith.constant dense<0.000000e+00> : vector<80x512xf32>
    %4 = tpu.matmul %2, %3, %cst {dimension_numbers = #tpu.dot_dimension_numbers<[1], [0], [0], [1], [0, 0, 1, 1], [], []>} : vector<80x64xbf16>, vector<64x512xbf16>, vector<80x512xf32> -> vector<80x512xf32>
    %c0_4 = arith.constant 0 : index
    %c0_5 = arith.constant 0 : index
    %5 = vector.load %arg3[%c0_4, %c0_5] : memref<1x512xf32, #tpu.memory_space<vmem>>, vector<1x512xf32>
    %6 = vector.broadcast %5 : vector<1x512xf32> to vector<80x512xf32>
    %7 = arith.addf %4, %6 : vector<80x512xf32>
    %8 = vector.shape_cast %7 : vector<80x512xf32> to vector<10x8x512xf32>
    %c0_6 = arith.constant 0 : index
    %c0_7 = arith.constant 0 : index
    %c0_8 = arith.constant 0 : index
    %9 = vector.load %arg10[%c0_6, %c0_7, %c0_8] : memref<10x8x512xf32, #tpu.memory_space<vmem>>, vector<10x8x512xf32>
    tpu.vector_store %arg10[%c0_6, %c0_7, %c0_8], %8 {strides = array<i32>} : memref<10x8x512xf32, #tpu.memory_space<vmem>>, vector<10x8x512xf32>,
    %c0_9 = arith.constant 0 : index
    %c0_10 = arith.constant 0 : index
    %10 = vector.load %arg2[%c0_9, %c0_10] : memref<64x512xbf16, #tpu.memory_space<vmem>>, vector<64x512xbf16>
    %c0_11 = arith.constant 0 : index
    %c0_12 = arith.constant 0 : index
    %11 = vector.load %arg4[%c0_11, %c0_12] : memref<128x64xbf16, #tpu.memory_space<vmem>>, vector<128x64xbf16>
    %c0_13 = arith.constant 0 : index
    %c0_14 = arith.constant 0 : index
    %12 = vector.load %arg5[%c0_13, %c0_14] : memref<128x512xbf16, #tpu.memory_space<vmem>>, vector<128x512xbf16>
    %c0_15 = arith.constant 0 : index
    %c0_16 = arith.constant 0 : index
    %13 = vector.load %arg6[%c0_15, %c0_16] : memref<1x512xf32, #tpu.memory_space<vmem>>, vector<1x512xf32>
    %c0_17 = arith.constant 0 : index
    %c0_18 = arith.constant 0 : index
    %14 = vector.load %arg7[%c0_17, %c0_18] : memref<128x64xbf16, #tpu.memory_space<vmem>>, vector<128x64xbf16>
    %cst_19 = arith.constant 0.000000e+00 : f32
    %15 = vector.broadcast %cst_19 : f32 to vector<8x64xf32>
    %cst_20 = arith.constant 0.000000e+00 : f32
    %16 = vector.broadcast %cst_20 : f32 to vector<8x128xf32>
    %cst_21 = arith.constant 0.000000e+00 : f32
    %17 = vector.broadcast %cst_21 : f32 to vector<8x64xf32>
    %cst_22 = arith.constant 0.000000e+00 : f32
    %18 = vector.broadcast %cst_22 : f32 to vector<8x128xf32>
    %c0_23 = arith.constant 0 : index
    %c0_24 = arith.constant 0 : index
    %c0_25 = arith.constant 0 : index
    %19 = vector.load %arg10[%c0_23, %c0_24, %c0_25] : memref<10x8x512xf32, #tpu.memory_space<vmem>>, vector<1x8x512xf32>
    %20 = vector.shape_cast %19 : vector<1x8x512xf32> to vector<8x512xf32>
    %21 = arith.truncf %15 : vector<8x64xf32> to vector<8x64xbf16>
    %cst_26 = arith.constant dense<0.000000e+00> : vector<8x512xf32>
    %22 = tpu.matmul %21, %10, %cst_26 {dimension_numbers = #tpu.dot_dimension_numbers<[1], [0], [0], [1], [0, 0, 1, 1], [], []>} : vector<8x64xbf16>, vector<64x512xbf16>, vector<8x512xf32> -> vector<8x512xf32>
    %23 = arith.addf %20, %22 : vector<8x512xf32>
    %24 = vector.extract_strided_slice %23 {offsets = [0, 0], sizes = [8, 128], strides = [1, 1]} : vector<8x512xf32> to vector<8x128xf32>
    %25 = arith.negf %24 : vector<8x128xf32>
    %26 = math.exp %25 : vector<8x128xf32>
    %cst_27 = arith.constant 1.000000e+00 : f32
    %27 = vector.broadcast %cst_27 : f32 to vector<8x128xf32>
    %28 = arith.addf %27, %26 : vector<8x128xf32>
    %29 = arith.divf %27, %28 : vector<8x128xf32>
    %30 = vector.extract_strided_slice %23 {offsets = [0, 128], sizes = [8, 128], strides = [1, 1]} : vector<8x512xf32> to vector<8x128xf32>
    %31 = arith.negf %30 : vector<8x128xf32>
    %32 = math.exp %31 : vector<8x128xf32>
    %cst_28 = arith.constant 1.000000e+00 : f32
    %33 = vector.broadcast %cst_28 : f32 to vector<8x128xf32>
    %34 = arith.addf %33, %32 : vector<8x128xf32>
    %35 = arith.divf %33, %34 : vector<8x128xf32>
    %36 = vector.extract_strided_slice %23 {offsets = [0, 256], sizes = [8, 128], strides = [1, 1]} : vector<8x512xf32> to vector<8x128xf32>
    %37 = math.tanh %36 : vector<8x128xf32>
    %38 = vector.extract_strided_slice %23 {offsets = [0, 384], sizes = [8, 128], strides = [1, 1]} : vector<8x512xf32> to vector<8x128xf32>
    %39 = arith.negf %38 : vector<8x128xf32>
    %40 = math.exp %39 : vector<8x128xf32>
    %cst_29 = arith.constant 1.000000e+00 : f32
    %41 = vector.broadcast %cst_29 : f32 to vector<8x128xf32>
    %42 = arith.addf %41, %40 : vector<8x128xf32>
    %43 = arith.divf %41, %42 : vector<8x128xf32>
    %44 = arith.mulf %35, %16 : vector<8x128xf32>
    %45 = arith.mulf %29, %37 : vector<8x128xf32>
    %46 = arith.addf %44, %45 : vector<8x128xf32>
    %cst_30 = arith.constant -3.000000e+00 : f32
    %cst_31 = arith.constant 3.000000e+00 : f32
    %47 = vector.broadcast %cst_30 : f32 to vector<8x128xf32>
    %48 = arith.maximumf %47, %46 : vector<8x128xf32>
    %49 = vector.broadcast %cst_31 : f32 to vector<8x128xf32>
    %50 = arith.minimumf %49, %48 : vector<8x128xf32>
    %51 = math.tanh %50 : vector<8x128xf32>
    %52 = arith.mulf %43, %51 : vector<8x128xf32>
    %53 = arith.truncf %52 : vector<8x128xf32> to vector<8x128xbf16>
    %cst_32 = arith.constant dense<0.000000e+00> : vector<8x64xf32>
    %54 = tpu.matmul %53, %11, %cst_32 {dimension_numbers = #tpu.dot_dimension_numbers<[1], [0], [0], [1], [0, 0, 1, 1], [], []>} : vector<8x128xbf16>, vector<128x64xbf16>, vector<8x64xf32> -> vector<8x64xf32>
    %cst_33 = arith.constant -3.000000e+00 : f32
    %cst_34 = arith.constant 3.000000e+00 : f32
    %55 = vector.broadcast %cst_33 : f32 to vector<8x64xf32>
    %56 = arith.maximumf %55, %54 : vector<8x64xf32>
    %57 = vector.broadcast %cst_34 : f32 to vector<8x64xf32>
    %58 = arith.minimumf %57, %56 : vector<8x64xf32>
    %59 = tpu.concatenate %58, %17 in 1 : vector<8x64xf32>, vector<8x64xf32> -> vector<8x128xf32>
    %60 = arith.truncf %59 : vector<8x128xf32> to vector<8x128xbf16>
    %cst_35 = arith.constant dense<0.000000e+00> : vector<8x512xf32>
    %61 = tpu.matmul %60, %12, %cst_35 {dimension_numbers = #tpu.dot_dimension_numbers<[1], [0], [0], [1], [0, 0, 1, 1], [], []>} : vector<8x128xbf16>, vector<128x512xbf16>, vector<8x512xf32> -> vector<8x512xf32>
    %62 = vector.broadcast %13 : vector<1x512xf32> to vector<8x512xf32>
    %63 = arith.addf %61, %62 : vector<8x512xf32>
    %64 = vector.extract_strided_slice %63 {offsets = [0, 0], sizes = [8, 128], strides = [1, 1]} : vector<8x512xf32> to vector<8x128xf32>
    %65 = arith.negf %64 : vector<8x128xf32>
    %66 = math.exp %65 : vector<8x128xf32>
    %cst_36 = arith.constant 1.000000e+00 : f32
    %67 = vector.broadcast %cst_36 : f32 to vector<8x128xf32>
    %68 = arith.addf %67, %66 : vector<8x128xf32>
    %69 = arith.divf %67, %68 : vector<8x128xf32>
    %70 = vector.extract_strided_slice %63 {offsets = [0, 128], sizes = [8, 128], strides = [1, 1]} : vector<8x512xf32> to vector<8x128xf32>
    %71 = arith.negf %70 : vector<8x128xf32>
    %72 = math.exp %71 : vector<8x128xf32>
    %cst_37 = arith.constant 1.000000e+00 : f32
    %73 = vector.broadcast %cst_37 : f32 to vector<8x128xf32>
    %74 = arith.addf %73, %72 : vector<8x128xf32>
    %75 = arith.divf %73, %74 : vector<8x128xf32>
    %76 = vector.extract_strided_slice %63 {offsets = [0, 256], sizes = [8, 128], strides = [1, 1]} : vector<8x512xf32> to vector<8x128xf32>
    %77 = math.tanh %76 : vector<8x128xf32>
    %78 = vector.extract_strided_slice %63 {offsets = [0, 384], sizes = [8, 128], strides = [1, 1]} : vector<8x512xf32> to vector<8x128xf32>
    %79 = arith.negf %78 : vector<8x128xf32>
    %80 = math.exp %79 : vector<8x128xf32>
    %cst_38 = arith.constant 1.000000e+00 : f32
    %81 = vector.broadcast %cst_38 : f32 to vector<8x128xf32>
    %82 = arith.addf %81, %80 : vector<8x128xf32>
    %83 = arith.divf %81, %82 : vector<8x128xf32>
    %84 = arith.mulf %75, %18 : vector<8x128xf32>
    %85 = arith.mulf %69, %77 : vector<8x128xf32>
    %86 = arith.addf %84, %85 : vector<8x128xf32>
    %cst_39 = arith.constant -3.000000e+00 : f32
    %cst_40 = arith.constant 3.000000e+00 : f32
    %87 = vector.broadcast %cst_39 : f32 to vector<8x128xf32>
    %88 = arith.maximumf %87, %86 : vector<8x128xf32>
    %89 = vector.broadcast %cst_40 : f32 to vector<8x128xf32>
    %90 = arith.minimumf %89, %88 : vector<8x128xf32>
    %91 = math.tanh %90 : vector<8x128xf32>
    %92 = arith.mulf %83, %91 : vector<8x128xf32>
    %93 = arith.truncf %92 : vector<8x128xf32> to vector<8x128xbf16>
    %cst_41 = arith.constant dense<0.000000e+00> : vector<8x64xf32>
    %94 = tpu.matmul %93, %14, %cst_41 {dimension_numbers = #tpu.dot_dimension_numbers<[1], [0], [0], [1], [0, 0, 1, 1], [], []>} : vector<8x128xbf16>, vector<128x64xbf16>, vector<8x64xf32> -> vector<8x64xf32>
    %cst_42 = arith.constant -3.000000e+00 : f32
    %cst_43 = arith.constant 3.000000e+00 : f32
    %95 = vector.broadcast %cst_42 : f32 to vector<8x64xf32>
    %96 = arith.maximumf %95, %94 : vector<8x64xf32>
    %97 = vector.broadcast %cst_43 : f32 to vector<8x64xf32>
    %98 = arith.minimumf %97, %96 : vector<8x64xf32>
    %c0_44 = arith.constant 0 : index
    %c0_45 = arith.constant 0 : index
    %c0_46 = arith.constant 0 : index
    %99 = vector.load %arg8[%c0_44, %c0_45, %c0_46] : memref<10x8x64xf32, #tpu.memory_space<vmem>>, vector<1x8x64xf32>
    %100 = vector.shape_cast %99 : vector<1x8x64xf32> to vector<8x64xf32>
    %101 = vector.shape_cast %58 : vector<8x64xf32> to vector<1x8x64xf32>
    tpu.vector_store %arg8[%c0_44, %c0_45, %c0_46], %101 {strides = array<i32>} : memref<10x8x64xf32, #tpu.memory_space<vmem>>, vector<1x8x64xf32>,
    %102 = arith.addf %98, %58 : vector<8x64xf32>
    %c0_47 = arith.constant 0 : index
    %c0_48 = arith.constant 0 : index
    %c0_49 = arith.constant 0 : index
    %103 = vector.load %arg9[%c0_47, %c0_48, %c0_49] : memref<10x8x64xf32, #tpu.memory_space<vmem>>, vector<1x8x64xf32>
    %104 = vector.shape_cast %103 : vector<1x8x64xf32> to vector<8x64xf32>
    %105 = vector.shape_cast %102 : vector<8x64xf32> to vector<1x8x64xf32>
    tpu.vector_store %arg9[%c0_47, %c0_48, %c0_49], %105 {strides = array<i32>} : memref<10x8x64xf32, #tpu.memory_space<vmem>>, vector<1x8x64xf32>,
    %c1 = arith.constant 1 : index
    %c0_50 = arith.constant 0 : index
    %c0_51 = arith.constant 0 : index
    %106 = vector.load %arg10[%c1, %c0_50, %c0_51] : memref<10x8x512xf32, #tpu.memory_space<vmem>>, vector<1x8x512xf32>
    %107 = vector.shape_cast %106 : vector<1x8x512xf32> to vector<8x512xf32>
    %108 = arith.truncf %58 : vector<8x64xf32> to vector<8x64xbf16>
    %cst_52 = arith.constant dense<0.000000e+00> : vector<8x512xf32>
    %109 = tpu.matmul %108, %10, %cst_52 {dimension_numbers = #tpu.dot_dimension_numbers<[1], [0], [0], [1], [0, 0, 1, 1], [], []>} : vector<8x64xbf16>, vector<64x512xbf16>, vector<8x512xf32> -> vector<8x512xf32>
    %110 = arith.addf %107, %109 : vector<8x512xf32>
    %111 = vector.extract_strided_slice %110 {offsets = [0, 0], sizes = [8, 128], strides = [1, 1]} : vector<8x512xf32> to vector<8x128xf32>
    %112 = arith.negf %111 : vector<8x128xf32>
    %113 = math.exp %112 : vector<8x128xf32>
    %cst_53 = arith.constant 1.000000e+00 : f32
    %114 = vector.broadcast %cst_53 : f32 to vector<8x128xf32>
    %115 = arith.addf %114, %113 : vector<8x128xf32>
    %116 = arith.divf %114, %115 : vector<8x128xf32>
    %117 = vector.extract_strided_slice %110 {offsets = [0, 128], sizes = [8, 128], strides = [1, 1]} : vector<8x512xf32> to vector<8x128xf32>
    %118 = arith.negf %117 : vector<8x128xf32>
    %119 = math.exp %118 : vector<8x128xf32>
    %cst_54 = arith.constant 1.000000e+00 : f32
    %120 = vector.broadcast %cst_54 : f32 to vector<8x128xf32>
    %121 = arith.addf %120, %119 : vector<8x128xf32>
    %122 = arith.divf %120, %121 : vector<8x128xf32>
    %123 = vector.extract_strided_slice %110 {offsets = [0, 256], sizes = [8, 128], strides = [1, 1]} : vector<8x512xf32> to vector<8x128xf32>
    %124 = math.tanh %123 : vector<8x128xf32>
    %125 = vector.extract_strided_slice %110 {offsets = [0, 384], sizes = [8, 128], strides = [1, 1]} : vector<8x512xf32> to vector<8x128xf32>
    %126 = arith.negf %125 : vector<8x128xf32>
    %127 = math.exp %126 : vector<8x128xf32>
    %cst_55 = arith.constant 1.000000e+00 : f32
    %128 = vector.broadcast %cst_55 : f32 to vector<8x128xf32>
    %129 = arith.addf %128, %127 : vector<8x128xf32>
    %130 = arith.divf %128, %129 : vector<8x128xf32>
    %131 = arith.mulf %122, %50 : vector<8x128xf32>
    %132 = arith.mulf %116, %124 : vector<8x128xf32>
    %133 = arith.addf %131, %132 : vector<8x128xf32>
    %cst_56 = arith.constant -3.000000e+00 : f32
    %cst_57 = arith.constant 3.000000e+00 : f32
    %134 = vector.broadcast %cst_56 : f32 to vector<8x128xf32>
    %135 = arith.maximumf %134, %133 : vector<8x128xf32>
    %136 = vector.broadcast %cst_57 : f32 to vector<8x128xf32>
    %137 = arith.minimumf %136, %135 : vector<8x128xf32>
    %138 = math.tanh %137 : vector<8x128xf32>
    %139 = arith.mulf %130, %138 : vector<8x128xf32>
    %140 = arith.truncf %139 : vector<8x128xf32> to vector<8x128xbf16>
    %cst_58 = arith.constant dense<0.000000e+00> : vector<8x64xf32>
    %141 = tpu.matmul %140, %11, %cst_58 {dimension_numbers = #tpu.dot_dimension_numbers<[1], [0], [0], [1], [0, 0, 1, 1], [], []>} : vector<8x128xbf16>, vector<128x64xbf16>, vector<8x64xf32> -> vector<8x64xf32>
    %cst_59 = arith.constant -3.000000e+00 : f32
    %cst_60 = arith.constant 3.000000e+00 : f32
    %142 = vector.broadcast %cst_59 : f32 to vector<8x64xf32>
    %143 = arith.maximumf %142, %141 : vector<8x64xf32>
    %144 = vector.broadcast %cst_60 : f32 to vector<8x64xf32>
    %145 = arith.minimumf %144, %143 : vector<8x64xf32>
    %146 = tpu.concatenate %145, %98 in 1 : vector<8x64xf32>, vector<8x64xf32> -> vector<8x128xf32>
    %147 = arith.truncf %146 : vector<8x128xf32> to vector<8x128xbf16>
    %cst_61 = arith.constant dense<0.000000e+00> : vector<8x512xf32>
    %148 = tpu.matmul %147, %12, %cst_61 {dimension_numbers = #tpu.dot_dimension_numbers<[1], [0], [0], [1], [0, 0, 1, 1], [], []>} : vector<8x128xbf16>, vector<128x512xbf16>, vector<8x512xf32> -> vector<8x512xf32>
    %149 = vector.broadcast %13 : vector<1x512xf32> to vector<8x512xf32>
    %150 = arith.addf %148, %149 : vector<8x512xf32>
    %151 = vector.extract_strided_slice %150 {offsets = [0, 0], sizes = [8, 128], strides = [1, 1]} : vector<8x512xf32> to vector<8x128xf32>
    %152 = arith.negf %151 : vector<8x128xf32>
    %153 = math.exp %152 : vector<8x128xf32>
    %cst_62 = arith.constant 1.000000e+00 : f32
    %154 = vector.broadcast %cst_62 : f32 to vector<8x128xf32>
    %155 = arith.addf %154, %153 : vector<8x128xf32>
    %156 = arith.divf %154, %155 : vector<8x128xf32>
    %157 = vector.extract_strided_slice %150 {offsets = [0, 128], sizes = [8, 128], strides = [1, 1]} : vector<8x512xf32> to vector<8x128xf32>
    %158 = arith.negf %157 : vector<8x128xf32>
    %159 = math.exp %158 : vector<8x128xf32>
    %cst_63 = arith.constant 1.000000e+00 : f32
    %160 = vector.broadcast %cst_63 : f32 to vector<8x128xf32>
    %161 = arith.addf %160, %159 : vector<8x128xf32>
    %162 = arith.divf %160, %161 : vector<8x128xf32>
    %163 = vector.extract_strided_slice %150 {offsets = [0, 256], sizes = [8, 128], strides = [1, 1]} : vector<8x512xf32> to vector<8x128xf32>
    %164 = math.tanh %163 : vector<8x128xf32>
    %165 = vector.extract_strided_slice %150 {offsets = [0, 384], sizes = [8, 128], strides = [1, 1]} : vector<8x512xf32> to vector<8x128xf32>
    %166 = arith.negf %165 : vector<8x128xf32>
    %167 = math.exp %166 : vector<8x128xf32>
    %cst_64 = arith.constant 1.000000e+00 : f32
    %168 = vector.broadcast %cst_64 : f32 to vector<8x128xf32>
    %169 = arith.addf %168, %167 : vector<8x128xf32>
    %170 = arith.divf %168, %169 : vector<8x128xf32>
    %171 = arith.mulf %162, %90 : vector<8x128xf32>
    %172 = arith.mulf %156, %164 : vector<8x128xf32>
    %173 = arith.addf %171, %172 : vector<8x128xf32>
    %cst_65 = arith.constant -3.000000e+00 : f32
    %cst_66 = arith.constant 3.000000e+00 : f32
    %174 = vector.broadcast %cst_65 : f32 to vector<8x128xf32>
    %175 = arith.maximumf %174, %173 : vector<8x128xf32>
    %176 = vector.broadcast %cst_66 : f32 to vector<8x128xf32>
    %177 = arith.minimumf %176, %175 : vector<8x128xf32>
    %178 = math.tanh %177 : vector<8x128xf32>
    %179 = arith.mulf %170, %178 : vector<8x128xf32>
    %180 = arith.truncf %179 : vector<8x128xf32> to vector<8x128xbf16>
    %cst_67 = arith.constant dense<0.000000e+00> : vector<8x64xf32>
    %181 = tpu.matmul %180, %14, %cst_67 {dimension_numbers = #tpu.dot_dimension_numbers<[1], [0], [0], [1], [0, 0, 1, 1], [], []>} : vector<8x128xbf16>, vector<128x64xbf16>, vector<8x64xf32> -> vector<8x64xf32>
    %cst_68 = arith.constant -3.000000e+00 : f32
    %cst_69 = arith.constant 3.000000e+00 : f32
    %182 = vector.broadcast %cst_68 : f32 to vector<8x64xf32>
    %183 = arith.maximumf %182, %181 : vector<8x64xf32>
    %184 = vector.broadcast %cst_69 : f32 to vector<8x64xf32>
    %185 = arith.minimumf %184, %183 : vector<8x64xf32>
    %c1_70 = arith.constant 1 : index
    %c0_71 = arith.constant 0 : index
    %c0_72 = arith.constant 0 : index
    %186 = vector.load %arg8[%c1_70, %c0_71, %c0_72] : memref<10x8x64xf32, #tpu.memory_space<vmem>>, vector<1x8x64xf32>
    %187 = vector.shape_cast %186 : vector<1x8x64xf32> to vector<8x64xf32>
    %188 = vector.shape_cast %145 : vector<8x64xf32> to vector<1x8x64xf32>
    tpu.vector_store %arg8[%c1_70, %c0_71, %c0_72], %188 {strides = array<i32>} : memref<10x8x64xf32, #tpu.memory_space<vmem>>, vector<1x8x64xf32>,
    %189 = arith.addf %185, %145 : vector<8x64xf32>
    %c1_73 = arith.constant 1 : index
    %c0_74 = arith.constant 0 : index
    %c0_75 = arith.constant 0 : index
    %190 = vector.load %arg9[%c1_73, %c0_74, %c0_75] : memref<10x8x64xf32, #tpu.memory_space<vmem>>, vector<1x8x64xf32>
    %191 = vector.shape_cast %190 : vector<1x8x64xf32> to vector<8x64xf32>
    %192 = vector.shape_cast %189 : vector<8x64xf32> to vector<1x8x64xf32>
    tpu.vector_store %arg9[%c1_73, %c0_74, %c0_75], %192 {strides = array<i32>} : memref<10x8x64xf32, #tpu.memory_space<vmem>>, vector<1x8x64xf32>,
    %c2 = arith.constant 2 : index
    %c0_76 = arith.constant 0 : index
    %c0_77 = arith.constant 0 : index
    %193 = vector.load %arg10[%c2, %c0_76, %c0_77] : memref<10x8x512xf32, #tpu.memory_space<vmem>>, vector<1x8x512xf32>
    %194 = vector.shape_cast %193 : vector<1x8x512xf32> to vector<8x512xf32>
    %195 = arith.truncf %145 : vector<8x64xf32> to vector<8x64xbf16>
    %cst_78 = arith.constant dense<0.000000e+00> : vector<8x512xf32>
    %196 = tpu.matmul %195, %10, %cst_78 {dimension_numbers = #tpu.dot_dimension_numbers<[1], [0], [0], [1], [0, 0, 1, 1], [], []>} : vector<8x64xbf16>, vector<64x512xbf16>, vector<8x512xf32> -> vector<8x512xf32>
    %197 = arith.addf %194, %196 : vector<8x512xf32>
    %198 = vector.extract_strided_slice %197 {offsets = [0, 0], sizes = [8, 128], strides = [1, 1]} : vector<8x512xf32> to vector<8x128xf32>
    %199 = arith.negf %198 : vector<8x128xf32>
    %200 = math.exp %199 : vector<8x128xf32>
    %cst_79 = arith.constant 1.000000e+00 : f32
    %201 = vector.broadcast %cst_79 : f32 to vector<8x128xf32>
    %202 = arith.addf %201, %200 : vector<8x128xf32>
    %203 = arith.divf %201, %202 : vector<8x128xf32>
    %204 = vector.extract_strided_slice %197 {offsets = [0, 128], sizes = [8, 128], strides = [1, 1]} : vector<8x512xf32> to vector<8x128xf32>
    %205 = arith.negf %204 : vector<8x128xf32>
    %206 = math.exp %205 : vector<8x128xf32>
    %cst_80 = arith.constant 1.000000e+00 : f32
    %207 = vector.broadcast %cst_80 : f32 to vector<8x128xf32>
    %208 = arith.addf %207, %206 : vector<8x128xf32>
    %209 = arith.divf %207, %208 : vector<8x128xf32>
    %210 = vector.extract_strided_slice %197 {offsets = [0, 256], sizes = [8, 128], strides = [1, 1]} : vector<8x512xf32> to vector<8x128xf32>
    %211 = math.tanh %210 : vector<8x128xf32>
    %212 = vector.extract_strided_slice %197 {offsets = [0, 384], sizes = [8, 128], strides = [1, 1]} : vector<8x512xf32> to vector<8x128xf32>
    %213 = arith.negf %212 : vector<8x128xf32>
    %214 = math.exp %213 : vector<8x128xf32>
    %cst_81 = arith.constant 1.000000e+00 : f32
    %215 = vector.broadcast %cst_81 : f32 to vector<8x128xf32>
    %216 = arith.addf %215, %214 : vector<8x128xf32>
    %217 = arith.divf %215, %216 : vector<8x128xf32>
    %218 = arith.mulf %209, %137 : vector<8x128xf32>
    %219 = arith.mulf %203, %211 : vector<8x128xf32>
    %220 = arith.addf %218, %219 : vector<8x128xf32>
    %cst_82 = arith.constant -3.000000e+00 : f32
    %cst_83 = arith.constant 3.000000e+00 : f32
    %221 = vector.broadcast %cst_82 : f32 to vector<8x128xf32>
    %222 = arith.maximumf %221, %220 : vector<8x128xf32>
    %223 = vector.broadcast %cst_83 : f32 to vector<8x128xf32>
    %224 = arith.minimumf %223, %222 : vector<8x128xf32>
    %225 = math.tanh %224 : vector<8x128xf32>
    %226 = arith.mulf %217, %225 : vector<8x128xf32>
    %227 = arith.truncf %226 : vector<8x128xf32> to vector<8x128xbf16>
    %cst_84 = arith.constant dense<0.000000e+00> : vector<8x64xf32>
    %228 = tpu.matmul %227, %11, %cst_84 {dimension_numbers = #tpu.dot_dimension_numbers<[1], [0], [0], [1], [0, 0, 1, 1], [], []>} : vector<8x128xbf16>, vector<128x64xbf16>, vector<8x64xf32> -> vector<8x64xf32>
    %cst_85 = arith.constant -3.000000e+00 : f32
    %cst_86 = arith.constant 3.000000e+00 : f32
    %229 = vector.broadcast %cst_85 : f32 to vector<8x64xf32>
    %230 = arith.maximumf %229, %228 : vector<8x64xf32>
    %231 = vector.broadcast %cst_86 : f32 to vector<8x64xf32>
    %232 = arith.minimumf %231, %230 : vector<8x64xf32>
    %233 = tpu.concatenate %232, %185 in 1 : vector<8x64xf32>, vector<8x64xf32> -> vector<8x128xf32>
    %234 = arith.truncf %233 : vector<8x128xf32> to vector<8x128xbf16>
    %cst_87 = arith.constant dense<0.000000e+00> : vector<8x512xf32>
    %235 = tpu.matmul %234, %12, %cst_87 {dimension_numbers = #tpu.dot_dimension_numbers<[1], [0], [0], [1], [0, 0, 1, 1], [], []>} : vector<8x128xbf16>, vector<128x512xbf16>, vector<8x512xf32> -> vector<8x512xf32>
    %236 = vector.broadcast %13 : vector<1x512xf32> to vector<8x512xf32>
    %237 = arith.addf %235, %236 : vector<8x512xf32>
    %238 = vector.extract_strided_slice %237 {offsets = [0, 0], sizes = [8, 128], strides = [1, 1]} : vector<8x512xf32> to vector<8x128xf32>
    %239 = arith.negf %238 : vector<8x128xf32>
    %240 = math.exp %239 : vector<8x128xf32>
    %cst_88 = arith.constant 1.000000e+00 : f32
    %241 = vector.broadcast %cst_88 : f32 to vector<8x128xf32>
    %242 = arith.addf %241, %240 : vector<8x128xf32>
    %243 = arith.divf %241, %242 : vector<8x128xf32>
    %244 = vector.extract_strided_slice %237 {offsets = [0, 128], sizes = [8, 128], strides = [1, 1]} : vector<8x512xf32> to vector<8x128xf32>
    %245 = arith.negf %244 : vector<8x128xf32>
    %246 = math.exp %245 : vector<8x128xf32>
    %cst_89 = arith.constant 1.000000e+00 : f32
    %247 = vector.broadcast %cst_89 : f32 to vector<8x128xf32>
    %248 = arith.addf %247, %246 : vector<8x128xf32>
    %249 = arith.divf %247, %248 : vector<8x128xf32>
    %250 = vector.extract_strided_slice %237 {offsets = [0, 256], sizes = [8, 128], strides = [1, 1]} : vector<8x512xf32> to vector<8x128xf32>
    %251 = math.tanh %250 : vector<8x128xf32>
    %252 = vector.extract_strided_slice %237 {offsets = [0, 384], sizes = [8, 128], strides = [1, 1]} : vector<8x512xf32> to vector<8x128xf32>
    %253 = arith.negf %252 : vector<8x128xf32>
    %254 = math.exp %253 : vector<8x128xf32>
    %cst_90 = arith.constant 1.000000e+00 : f32
    %255 = vector.broadcast %cst_90 : f32 to vector<8x128xf32>
    %256 = arith.addf %255, %254 : vector<8x128xf32>
    %257 = arith.divf %255, %256 : vector<8x128xf32>
    %258 = arith.mulf %249, %177 : vector<8x128xf32>
    %259 = arith.mulf %243, %251 : vector<8x128xf32>
    %260 = arith.addf %258, %259 : vector<8x128xf32>
    %cst_91 = arith.constant -3.000000e+00 : f32
    %cst_92 = arith.constant 3.000000e+00 : f32
    %261 = vector.broadcast %cst_91 : f32 to vector<8x128xf32>
    %262 = arith.maximumf %261, %260 : vector<8x128xf32>
    %263 = vector.broadcast %cst_92 : f32 to vector<8x128xf32>
    %264 = arith.minimumf %263, %262 : vector<8x128xf32>
    %265 = math.tanh %264 : vector<8x128xf32>
    %266 = arith.mulf %257, %265 : vector<8x128xf32>
    %267 = arith.truncf %266 : vector<8x128xf32> to vector<8x128xbf16>
    %cst_93 = arith.constant dense<0.000000e+00> : vector<8x64xf32>
    %268 = tpu.matmul %267, %14, %cst_93 {dimension_numbers = #tpu.dot_dimension_numbers<[1], [0], [0], [1], [0, 0, 1, 1], [], []>} : vector<8x128xbf16>, vector<128x64xbf16>, vector<8x64xf32> -> vector<8x64xf32>
    %cst_94 = arith.constant -3.000000e+00 : f32
    %cst_95 = arith.constant 3.000000e+00 : f32
    %269 = vector.broadcast %cst_94 : f32 to vector<8x64xf32>
    %270 = arith.maximumf %269, %268 : vector<8x64xf32>
    %271 = vector.broadcast %cst_95 : f32 to vector<8x64xf32>
    %272 = arith.minimumf %271, %270 : vector<8x64xf32>
    %c2_96 = arith.constant 2 : index
    %c0_97 = arith.constant 0 : index
    %c0_98 = arith.constant 0 : index
    %273 = vector.load %arg8[%c2_96, %c0_97, %c0_98] : memref<10x8x64xf32, #tpu.memory_space<vmem>>, vector<1x8x64xf32>
    %274 = vector.shape_cast %273 : vector<1x8x64xf32> to vector<8x64xf32>
    %275 = vector.shape_cast %232 : vector<8x64xf32> to vector<1x8x64xf32>
    tpu.vector_store %arg8[%c2_96, %c0_97, %c0_98], %275 {strides = array<i32>} : memref<10x8x64xf32, #tpu.memory_space<vmem>>, vector<1x8x64xf32>,
    %276 = arith.addf %272, %232 : vector<8x64xf32>
    %c2_99 = arith.constant 2 : index
    %c0_100 = arith.constant 0 : index
    %c0_101 = arith.constant 0 : index
    %277 = vector.load %arg9[%c2_99, %c0_100, %c0_101] : memref<10x8x64xf32, #tpu.memory_space<vmem>>, vector<1x8x64xf32>
    %278 = vector.shape_cast %277 : vector<1x8x64xf32> to vector<8x64xf32>
    %279 = vector.shape_cast %276 : vector<8x64xf32> to vector<1x8x64xf32>
    tpu.vector_store %arg9[%c2_99, %c0_100, %c0_101], %279 {strides = array<i32>} : memref<10x8x64xf32, #tpu.memory_space<vmem>>, vector<1x8x64xf32>,
    %c3 = arith.constant 3 : index
    %c0_102 = arith.constant 0 : index
    %c0_103 = arith.constant 0 : index
    %280 = vector.load %arg10[%c3, %c0_102, %c0_103] : memref<10x8x512xf32, #tpu.memory_space<vmem>>, vector<1x8x512xf32>
    %281 = vector.shape_cast %280 : vector<1x8x512xf32> to vector<8x512xf32>
    %282 = arith.truncf %232 : vector<8x64xf32> to vector<8x64xbf16>
    %cst_104 = arith.constant dense<0.000000e+00> : vector<8x512xf32>
    %283 = tpu.matmul %282, %10, %cst_104 {dimension_numbers = #tpu.dot_dimension_numbers<[1], [0], [0], [1], [0, 0, 1, 1], [], []>} : vector<8x64xbf16>, vector<64x512xbf16>, vector<8x512xf32> -> vector<8x512xf32>
    %284 = arith.addf %281, %283 : vector<8x512xf32>
    %285 = vector.extract_strided_slice %284 {offsets = [0, 0], sizes = [8, 128], strides = [1, 1]} : vector<8x512xf32> to vector<8x128xf32>
    %286 = arith.negf %285 : vector<8x128xf32>
    %287 = math.exp %286 : vector<8x128xf32>
    %cst_105 = arith.constant 1.000000e+00 : f32
    %288 = vector.broadcast %cst_105 : f32 to vector<8x128xf32>
    %289 = arith.addf %288, %287 : vector<8x128xf32>
    %290 = arith.divf %288, %289 : vector<8x128xf32>
    %291 = vector.extract_strided_slice %284 {offsets = [0, 128], sizes = [8, 128], strides = [1, 1]} : vector<8x512xf32> to vector<8x128xf32>
    %292 = arith.negf %291 : vector<8x128xf32>
    %293 = math.exp %292 : vector<8x128xf32>
    %cst_106 = arith.constant 1.000000e+00 : f32
    %294 = vector.broadcast %cst_106 : f32 to vector<8x128xf32>
    %295 = arith.addf %294, %293 : vector<8x128xf32>
    %296 = arith.divf %294, %295 : vector<8x128xf32>
    %297 = vector.extract_strided_slice %284 {offsets = [0, 256], sizes = [8, 128], strides = [1, 1]} : vector<8x512xf32> to vector<8x128xf32>
    %298 = math.tanh %297 : vector<8x128xf32>
    %299 = vector.extract_strided_slice %284 {offsets = [0, 384], sizes = [8, 128], strides = [1, 1]} : vector<8x512xf32> to vector<8x128xf32>
    %300 = arith.negf %299 : vector<8x128xf32>
    %301 = math.exp %300 : vector<8x128xf32>
    %cst_107 = arith.constant 1.000000e+00 : f32
    %302 = vector.broadcast %cst_107 : f32 to vector<8x128xf32>
    %303 = arith.addf %302, %301 : vector<8x128xf32>
    %304 = arith.divf %302, %303 : vector<8x128xf32>
    %305 = arith.mulf %296, %224 : vector<8x128xf32>
    %306 = arith.mulf %290, %298 : vector<8x128xf32>
    %307 = arith.addf %305, %306 : vector<8x128xf32>
    %cst_108 = arith.constant -3.000000e+00 : f32
    %cst_109 = arith.constant 3.000000e+00 : f32
    %308 = vector.broadcast %cst_108 : f32 to vector<8x128xf32>
    %309 = arith.maximumf %308, %307 : vector<8x128xf32>
    %310 = vector.broadcast %cst_109 : f32 to vector<8x128xf32>
    %311 = arith.minimumf %310, %309 : vector<8x128xf32>
    %312 = math.tanh %311 : vector<8x128xf32>
    %313 = arith.mulf %304, %312 : vector<8x128xf32>
    %314 = arith.truncf %313 : vector<8x128xf32> to vector<8x128xbf16>
    %cst_110 = arith.constant dense<0.000000e+00> : vector<8x64xf32>
    %315 = tpu.matmul %314, %11, %cst_110 {dimension_numbers = #tpu.dot_dimension_numbers<[1], [0], [0], [1], [0, 0, 1, 1], [], []>} : vector<8x128xbf16>, vector<128x64xbf16>, vector<8x64xf32> -> vector<8x64xf32>
    %cst_111 = arith.constant -3.000000e+00 : f32
    %cst_112 = arith.constant 3.000000e+00 : f32
    %316 = vector.broadcast %cst_111 : f32 to vector<8x64xf32>
    %317 = arith.maximumf %316, %315 : vector<8x64xf32>
    %318 = vector.broadcast %cst_112 : f32 to vector<8x64xf32>
    %319 = arith.minimumf %318, %317 : vector<8x64xf32>
    %320 = tpu.concatenate %319, %272 in 1 : vector<8x64xf32>, vector<8x64xf32> -> vector<8x128xf32>
    %321 = arith.truncf %320 : vector<8x128xf32> to vector<8x128xbf16>
    %cst_113 = arith.constant dense<0.000000e+00> : vector<8x512xf32>
    %322 = tpu.matmul %321, %12, %cst_113 {dimension_numbers = #tpu.dot_dimension_numbers<[1], [0], [0], [1], [0, 0, 1, 1], [], []>} : vector<8x128xbf16>, vector<128x512xbf16>, vector<8x512xf32> -> vector<8x512xf32>
    %323 = vector.broadcast %13 : vector<1x512xf32> to vector<8x512xf32>
    %324 = arith.addf %322, %323 : vector<8x512xf32>
    %325 = vector.extract_strided_slice %324 {offsets = [0, 0], sizes = [8, 128], strides = [1, 1]} : vector<8x512xf32> to vector<8x128xf32>
    %326 = arith.negf %325 : vector<8x128xf32>
    %327 = math.exp %326 : vector<8x128xf32>
    %cst_114 = arith.constant 1.000000e+00 : f32
    %328 = vector.broadcast %cst_114 : f32 to vector<8x128xf32>
    %329 = arith.addf %328, %327 : vector<8x128xf32>
    %330 = arith.divf %328, %329 : vector<8x128xf32>
    %331 = vector.extract_strided_slice %324 {offsets = [0, 128], sizes = [8, 128], strides = [1, 1]} : vector<8x512xf32> to vector<8x128xf32>
    %332 = arith.negf %331 : vector<8x128xf32>
    %333 = math.exp %332 : vector<8x128xf32>
    %cst_115 = arith.constant 1.000000e+00 : f32
    %334 = vector.broadcast %cst_115 : f32 to vector<8x128xf32>
    %335 = arith.addf %334, %333 : vector<8x128xf32>
    %336 = arith.divf %334, %335 : vector<8x128xf32>
    %337 = vector.extract_strided_slice %324 {offsets = [0, 256], sizes = [8, 128], strides = [1, 1]} : vector<8x512xf32> to vector<8x128xf32>
    %338 = math.tanh %337 : vector<8x128xf32>
    %339 = vector.extract_strided_slice %324 {offsets = [0, 384], sizes = [8, 128], strides = [1, 1]} : vector<8x512xf32> to vector<8x128xf32>
    %340 = arith.negf %339 : vector<8x128xf32>
    %341 = math.exp %340 : vector<8x128xf32>
    %cst_116 = arith.constant 1.000000e+00 : f32
    %342 = vector.broadcast %cst_116 : f32 to vector<8x128xf32>
    %343 = arith.addf %342, %341 : vector<8x128xf32>
    %344 = arith.divf %342, %343 : vector<8x128xf32>
    %345 = arith.mulf %336, %264 : vector<8x128xf32>
    %346 = arith.mulf %330, %338 : vector<8x128xf32>
    %347 = arith.addf %345, %346 : vector<8x128xf32>
    %cst_117 = arith.constant -3.000000e+00 : f32
    %cst_118 = arith.constant 3.000000e+00 : f32
    %348 = vector.broadcast %cst_117 : f32 to vector<8x128xf32>
    %349 = arith.maximumf %348, %347 : vector<8x128xf32>
    %350 = vector.broadcast %cst_118 : f32 to vector<8x128xf32>
    %351 = arith.minimumf %350, %349 : vector<8x128xf32>
    %352 = math.tanh %351 : vector<8x128xf32>
    %353 = arith.mulf %344, %352 : vector<8x128xf32>
    %354 = arith.truncf %353 : vector<8x128xf32> to vector<8x128xbf16>
    %cst_119 = arith.constant dense<0.000000e+00> : vector<8x64xf32>
    %355 = tpu.matmul %354, %14, %cst_119 {dimension_numbers = #tpu.dot_dimension_numbers<[1], [0], [0], [1], [0, 0, 1, 1], [], []>} : vector<8x128xbf16>, vector<128x64xbf16>, vector<8x64xf32> -> vector<8x64xf32>
    %cst_120 = arith.constant -3.000000e+00 : f32
    %cst_121 = arith.constant 3.000000e+00 : f32
    %356 = vector.broadcast %cst_120 : f32 to vector<8x64xf32>
    %357 = arith.maximumf %356, %355 : vector<8x64xf32>
    %358 = vector.broadcast %cst_121 : f32 to vector<8x64xf32>
    %359 = arith.minimumf %358, %357 : vector<8x64xf32>
    %c3_122 = arith.constant 3 : index
    %c0_123 = arith.constant 0 : index
    %c0_124 = arith.constant 0 : index
    %360 = vector.load %arg8[%c3_122, %c0_123, %c0_124] : memref<10x8x64xf32, #tpu.memory_space<vmem>>, vector<1x8x64xf32>
    %361 = vector.shape_cast %360 : vector<1x8x64xf32> to vector<8x64xf32>
    %362 = vector.shape_cast %319 : vector<8x64xf32> to vector<1x8x64xf32>
    tpu.vector_store %arg8[%c3_122, %c0_123, %c0_124], %362 {strides = array<i32>} : memref<10x8x64xf32, #tpu.memory_space<vmem>>, vector<1x8x64xf32>,
    %363 = arith.addf %359, %319 : vector<8x64xf32>
    %c3_125 = arith.constant 3 : index
    %c0_126 = arith.constant 0 : index
    %c0_127 = arith.constant 0 : index
    %364 = vector.load %arg9[%c3_125, %c0_126, %c0_127] : memref<10x8x64xf32, #tpu.memory_space<vmem>>, vector<1x8x64xf32>
    %365 = vector.shape_cast %364 : vector<1x8x64xf32> to vector<8x64xf32>
    %366 = vector.shape_cast %363 : vector<8x64xf32> to vector<1x8x64xf32>
    tpu.vector_store %arg9[%c3_125, %c0_126, %c0_127], %366 {strides = array<i32>} : memref<10x8x64xf32, #tpu.memory_space<vmem>>, vector<1x8x64xf32>,
    %c4 = arith.constant 4 : index
    %c0_128 = arith.constant 0 : index
    %c0_129 = arith.constant 0 : index
    %367 = vector.load %arg10[%c4, %c0_128, %c0_129] : memref<10x8x512xf32, #tpu.memory_space<vmem>>, vector<1x8x512xf32>
    %368 = vector.shape_cast %367 : vector<1x8x512xf32> to vector<8x512xf32>
    %369 = arith.truncf %319 : vector<8x64xf32> to vector<8x64xbf16>
    %cst_130 = arith.constant dense<0.000000e+00> : vector<8x512xf32>
    %370 = tpu.matmul %369, %10, %cst_130 {dimension_numbers = #tpu.dot_dimension_numbers<[1], [0], [0], [1], [0, 0, 1, 1], [], []>} : vector<8x64xbf16>, vector<64x512xbf16>, vector<8x512xf32> -> vector<8x512xf32>
    %371 = arith.addf %368, %370 : vector<8x512xf32>
    %372 = vector.extract_strided_slice %371 {offsets = [0, 0], sizes = [8, 128], strides = [1, 1]} : vector<8x512xf32> to vector<8x128xf32>
    %373 = arith.negf %372 : vector<8x128xf32>
    %374 = math.exp %373 : vector<8x128xf32>
    %cst_131 = arith.constant 1.000000e+00 : f32
    %375 = vector.broadcast %cst_131 : f32 to vector<8x128xf32>
    %376 = arith.addf %375, %374 : vector<8x128xf32>
    %377 = arith.divf %375, %376 : vector<8x128xf32>
    %378 = vector.extract_strided_slice %371 {offsets = [0, 128], sizes = [8, 128], strides = [1, 1]} : vector<8x512xf32> to vector<8x128xf32>
    %379 = arith.negf %378 : vector<8x128xf32>
    %380 = math.exp %379 : vector<8x128xf32>
    %cst_132 = arith.constant 1.000000e+00 : f32
    %381 = vector.broadcast %cst_132 : f32 to vector<8x128xf32>
    %382 = arith.addf %381, %380 : vector<8x128xf32>
    %383 = arith.divf %381, %382 : vector<8x128xf32>
    %384 = vector.extract_strided_slice %371 {offsets = [0, 256], sizes = [8, 128], strides = [1, 1]} : vector<8x512xf32> to vector<8x128xf32>
    %385 = math.tanh %384 : vector<8x128xf32>
    %386 = vector.extract_strided_slice %371 {offsets = [0, 384], sizes = [8, 128], strides = [1, 1]} : vector<8x512xf32> to vector<8x128xf32>
    %387 = arith.negf %386 : vector<8x128xf32>
    %388 = math.exp %387 : vector<8x128xf32>
    %cst_133 = arith.constant 1.000000e+00 : f32
    %389 = vector.broadcast %cst_133 : f32 to vector<8x128xf32>
    %390 = arith.addf %389, %388 : vector<8x128xf32>
    %391 = arith.divf %389, %390 : vector<8x128xf32>
    %392 = arith.mulf %383, %311 : vector<8x128xf32>
    %393 = arith.mulf %377, %385 : vector<8x128xf32>
    %394 = arith.addf %392, %393 : vector<8x128xf32>
    %cst_134 = arith.constant -3.000000e+00 : f32
    %cst_135 = arith.constant 3.000000e+00 : f32
    %395 = vector.broadcast %cst_134 : f32 to vector<8x128xf32>
    %396 = arith.maximumf %395, %394 : vector<8x128xf32>
    %397 = vector.broadcast %cst_135 : f32 to vector<8x128xf32>
    %398 = arith.minimumf %397, %396 : vector<8x128xf32>
    %399 = math.tanh %398 : vector<8x128xf32>
    %400 = arith.mulf %391, %399 : vector<8x128xf32>
    %401 = arith.truncf %400 : vector<8x128xf32> to vector<8x128xbf16>
    %cst_136 = arith.constant dense<0.000000e+00> : vector<8x64xf32>
    %402 = tpu.matmul %401, %11, %cst_136 {dimension_numbers = #tpu.dot_dimension_numbers<[1], [0], [0], [1], [0, 0, 1, 1], [], []>} : vector<8x128xbf16>, vector<128x64xbf16>, vector<8x64xf32> -> vector<8x64xf32>
    %cst_137 = arith.constant -3.000000e+00 : f32
    %cst_138 = arith.constant 3.000000e+00 : f32
    %403 = vector.broadcast %cst_137 : f32 to vector<8x64xf32>
    %404 = arith.maximumf %403, %402 : vector<8x64xf32>
    %405 = vector.broadcast %cst_138 : f32 to vector<8x64xf32>
    %406 = arith.minimumf %405, %404 : vector<8x64xf32>
    %407 = tpu.concatenate %406, %359 in 1 : vector<8x64xf32>, vector<8x64xf32> -> vector<8x128xf32>
    %408 = arith.truncf %407 : vector<8x128xf32> to vector<8x128xbf16>
    %cst_139 = arith.constant dense<0.000000e+00> : vector<8x512xf32>
    %409 = tpu.matmul %408, %12, %cst_139 {dimension_numbers = #tpu.dot_dimension_numbers<[1], [0], [0], [1], [0, 0, 1, 1], [], []>} : vector<8x128xbf16>, vector<128x512xbf16>, vector<8x512xf32> -> vector<8x512xf32>
    %410 = vector.broadcast %13 : vector<1x512xf32> to vector<8x512xf32>
    %411 = arith.addf %409, %410 : vector<8x512xf32>
    %412 = vector.extract_strided_slice %411 {offsets = [0, 0], sizes = [8, 128], strides = [1, 1]} : vector<8x512xf32> to vector<8x128xf32>
    %413 = arith.negf %412 : vector<8x128xf32>
    %414 = math.exp %413 : vector<8x128xf32>
    %cst_140 = arith.constant 1.000000e+00 : f32
    %415 = vector.broadcast %cst_140 : f32 to vector<8x128xf32>
    %416 = arith.addf %415, %414 : vector<8x128xf32>
    %417 = arith.divf %415, %416 : vector<8x128xf32>
    %418 = vector.extract_strided_slice %411 {offsets = [0, 128], sizes = [8, 128], strides = [1, 1]} : vector<8x512xf32> to vector<8x128xf32>
    %419 = arith.negf %418 : vector<8x128xf32>
    %420 = math.exp %419 : vector<8x128xf32>
    %cst_141 = arith.constant 1.000000e+00 : f32
    %421 = vector.broadcast %cst_141 : f32 to vector<8x128xf32>
    %422 = arith.addf %421, %420 : vector<8x128xf32>
    %423 = arith.divf %421, %422 : vector<8x128xf32>
    %424 = vector.extract_strided_slice %411 {offsets = [0, 256], sizes = [8, 128], strides = [1, 1]} : vector<8x512xf32> to vector<8x128xf32>
    %425 = math.tanh %424 : vector<8x128xf32>
    %426 = vector.extract_strided_slice %411 {offsets = [0, 384], sizes = [8, 128], strides = [1, 1]} : vector<8x512xf32> to vector<8x128xf32>
    %427 = arith.negf %426 : vector<8x128xf32>
    %428 = math.exp %427 : vector<8x128xf32>
    %cst_142 = arith.constant 1.000000e+00 : f32
    %429 = vector.broadcast %cst_142 : f32 to vector<8x128xf32>
    %430 = arith.addf %429, %428 : vector<8x128xf32>
    %431 = arith.divf %429, %430 : vector<8x128xf32>
    %432 = arith.mulf %423, %351 : vector<8x128xf32>
    %433 = arith.mulf %417, %425 : vector<8x128xf32>
    %434 = arith.addf %432, %433 : vector<8x128xf32>
    %cst_143 = arith.constant -3.000000e+00 : f32
    %cst_144 = arith.constant 3.000000e+00 : f32
    %435 = vector.broadcast %cst_143 : f32 to vector<8x128xf32>
    %436 = arith.maximumf %435, %434 : vector<8x128xf32>
    %437 = vector.broadcast %cst_144 : f32 to vector<8x128xf32>
    %438 = arith.minimumf %437, %436 : vector<8x128xf32>
    %439 = math.tanh %438 : vector<8x128xf32>
    %440 = arith.mulf %431, %439 : vector<8x128xf32>
    %441 = arith.truncf %440 : vector<8x128xf32> to vector<8x128xbf16>
    %cst_145 = arith.constant dense<0.000000e+00> : vector<8x64xf32>
    %442 = tpu.matmul %441, %14, %cst_145 {dimension_numbers = #tpu.dot_dimension_numbers<[1], [0], [0], [1], [0, 0, 1, 1], [], []>} : vector<8x128xbf16>, vector<128x64xbf16>, vector<8x64xf32> -> vector<8x64xf32>
    %cst_146 = arith.constant -3.000000e+00 : f32
    %cst_147 = arith.constant 3.000000e+00 : f32
    %443 = vector.broadcast %cst_146 : f32 to vector<8x64xf32>
    %444 = arith.maximumf %443, %442 : vector<8x64xf32>
    %445 = vector.broadcast %cst_147 : f32 to vector<8x64xf32>
    %446 = arith.minimumf %445, %444 : vector<8x64xf32>
    %c4_148 = arith.constant 4 : index
    %c0_149 = arith.constant 0 : index
    %c0_150 = arith.constant 0 : index
    %447 = vector.load %arg8[%c4_148, %c0_149, %c0_150] : memref<10x8x64xf32, #tpu.memory_space<vmem>>, vector<1x8x64xf32>
    %448 = vector.shape_cast %447 : vector<1x8x64xf32> to vector<8x64xf32>
    %449 = vector.shape_cast %406 : vector<8x64xf32> to vector<1x8x64xf32>
    tpu.vector_store %arg8[%c4_148, %c0_149, %c0_150], %449 {strides = array<i32>} : memref<10x8x64xf32, #tpu.memory_space<vmem>>, vector<1x8x64xf32>,
    %450 = arith.addf %446, %406 : vector<8x64xf32>
    %c4_151 = arith.constant 4 : index
    %c0_152 = arith.constant 0 : index
    %c0_153 = arith.constant 0 : index
    %451 = vector.load %arg9[%c4_151, %c0_152, %c0_153] : memref<10x8x64xf32, #tpu.memory_space<vmem>>, vector<1x8x64xf32>
    %452 = vector.shape_cast %451 : vector<1x8x64xf32> to vector<8x64xf32>
    %453 = vector.shape_cast %450 : vector<8x64xf32> to vector<1x8x64xf32>
    tpu.vector_store %arg9[%c4_151, %c0_152, %c0_153], %453 {strides = array<i32>} : memref<10x8x64xf32, #tpu.memory_space<vmem>>, vector<1x8x64xf32>,
    %c5 = arith.constant 5 : index
    %c0_154 = arith.constant 0 : index
    %c0_155 = arith.constant 0 : index
    %454 = vector.load %arg10[%c5, %c0_154, %c0_155] : memref<10x8x512xf32, #tpu.memory_space<vmem>>, vector<1x8x512xf32>
    %455 = vector.shape_cast %454 : vector<1x8x512xf32> to vector<8x512xf32>
    %456 = arith.truncf %406 : vector<8x64xf32> to vector<8x64xbf16>
    %cst_156 = arith.constant dense<0.000000e+00> : vector<8x512xf32>
    %457 = tpu.matmul %456, %10, %cst_156 {dimension_numbers = #tpu.dot_dimension_numbers<[1], [0], [0], [1], [0, 0, 1, 1], [], []>} : vector<8x64xbf16>, vector<64x512xbf16>, vector<8x512xf32> -> vector<8x512xf32>
    %458 = arith.addf %455, %457 : vector<8x512xf32>
    %459 = vector.extract_strided_slice %458 {offsets = [0, 0], sizes = [8, 128], strides = [1, 1]} : vector<8x512xf32> to vector<8x128xf32>
    %460 = arith.negf %459 : vector<8x128xf32>
    %461 = math.exp %460 : vector<8x128xf32>
    %cst_157 = arith.constant 1.000000e+00 : f32
    %462 = vector.broadcast %cst_157 : f32 to vector<8x128xf32>
    %463 = arith.addf %462, %461 : vector<8x128xf32>
    %464 = arith.divf %462, %463 : vector<8x128xf32>
    %465 = vector.extract_strided_slice %458 {offsets = [0, 128], sizes = [8, 128], strides = [1, 1]} : vector<8x512xf32> to vector<8x128xf32>
    %466 = arith.negf %465 : vector<8x128xf32>
    %467 = math.exp %466 : vector<8x128xf32>
    %cst_158 = arith.constant 1.000000e+00 : f32
    %468 = vector.broadcast %cst_158 : f32 to vector<8x128xf32>
    %469 = arith.addf %468, %467 : vector<8x128xf32>
    %470 = arith.divf %468, %469 : vector<8x128xf32>
    %471 = vector.extract_strided_slice %458 {offsets = [0, 256], sizes = [8, 128], strides = [1, 1]} : vector<8x512xf32> to vector<8x128xf32>
    %472 = math.tanh %471 : vector<8x128xf32>
    %473 = vector.extract_strided_slice %458 {offsets = [0, 384], sizes = [8, 128], strides = [1, 1]} : vector<8x512xf32> to vector<8x128xf32>
    %474 = arith.negf %473 : vector<8x128xf32>
    %475 = math.exp %474 : vector<8x128xf32>
    %cst_159 = arith.constant 1.000000e+00 : f32
    %476 = vector.broadcast %cst_159 : f32 to vector<8x128xf32>
    %477 = arith.addf %476, %475 : vector<8x128xf32>
    %478 = arith.divf %476, %477 : vector<8x128xf32>
    %479 = arith.mulf %470, %398 : vector<8x128xf32>
    %480 = arith.mulf %464, %472 : vector<8x128xf32>
    %481 = arith.addf %479, %480 : vector<8x128xf32>
    %cst_160 = arith.constant -3.000000e+00 : f32
    %cst_161 = arith.constant 3.000000e+00 : f32
    %482 = vector.broadcast %cst_160 : f32 to vector<8x128xf32>
    %483 = arith.maximumf %482, %481 : vector<8x128xf32>
    %484 = vector.broadcast %cst_161 : f32 to vector<8x128xf32>
    %485 = arith.minimumf %484, %483 : vector<8x128xf32>
    %486 = math.tanh %485 : vector<8x128xf32>
    %487 = arith.mulf %478, %486 : vector<8x128xf32>
    %488 = arith.truncf %487 : vector<8x128xf32> to vector<8x128xbf16>
    %cst_162 = arith.constant dense<0.000000e+00> : vector<8x64xf32>
    %489 = tpu.matmul %488, %11, %cst_162 {dimension_numbers = #tpu.dot_dimension_numbers<[1], [0], [0], [1], [0, 0, 1, 1], [], []>} : vector<8x128xbf16>, vector<128x64xbf16>, vector<8x64xf32> -> vector<8x64xf32>
    %cst_163 = arith.constant -3.000000e+00 : f32
    %cst_164 = arith.constant 3.000000e+00 : f32
    %490 = vector.broadcast %cst_163 : f32 to vector<8x64xf32>
    %491 = arith.maximumf %490, %489 : vector<8x64xf32>
    %492 = vector.broadcast %cst_164 : f32 to vector<8x64xf32>
    %493 = arith.minimumf %492, %491 : vector<8x64xf32>
    %494 = tpu.concatenate %493, %446 in 1 : vector<8x64xf32>, vector<8x64xf32> -> vector<8x128xf32>
    %495 = arith.truncf %494 : vector<8x128xf32> to vector<8x128xbf16>
    %cst_165 = arith.constant dense<0.000000e+00> : vector<8x512xf32>
    %496 = tpu.matmul %495, %12, %cst_165 {dimension_numbers = #tpu.dot_dimension_numbers<[1], [0], [0], [1], [0, 0, 1, 1], [], []>} : vector<8x128xbf16>, vector<128x512xbf16>, vector<8x512xf32> -> vector<8x512xf32>
    %497 = vector.broadcast %13 : vector<1x512xf32> to vector<8x512xf32>
    %498 = arith.addf %496, %497 : vector<8x512xf32>
    %499 = vector.extract_strided_slice %498 {offsets = [0, 0], sizes = [8, 128], strides = [1, 1]} : vector<8x512xf32> to vector<8x128xf32>
    %500 = arith.negf %499 : vector<8x128xf32>
    %501 = math.exp %500 : vector<8x128xf32>
    %cst_166 = arith.constant 1.000000e+00 : f32
    %502 = vector.broadcast %cst_166 : f32 to vector<8x128xf32>
    %503 = arith.addf %502, %501 : vector<8x128xf32>
    %504 = arith.divf %502, %503 : vector<8x128xf32>
    %505 = vector.extract_strided_slice %498 {offsets = [0, 128], sizes = [8, 128], strides = [1, 1]} : vector<8x512xf32> to vector<8x128xf32>
    %506 = arith.negf %505 : vector<8x128xf32>
    %507 = math.exp %506 : vector<8x128xf32>
    %cst_167 = arith.constant 1.000000e+00 : f32
    %508 = vector.broadcast %cst_167 : f32 to vector<8x128xf32>
    %509 = arith.addf %508, %507 : vector<8x128xf32>
    %510 = arith.divf %508, %509 : vector<8x128xf32>
    %511 = vector.extract_strided_slice %498 {offsets = [0, 256], sizes = [8, 128], strides = [1, 1]} : vector<8x512xf32> to vector<8x128xf32>
    %512 = math.tanh %511 : vector<8x128xf32>
    %513 = vector.extract_strided_slice %498 {offsets = [0, 384], sizes = [8, 128], strides = [1, 1]} : vector<8x512xf32> to vector<8x128xf32>
    %514 = arith.negf %513 : vector<8x128xf32>
    %515 = math.exp %514 : vector<8x128xf32>
    %cst_168 = arith.constant 1.000000e+00 : f32
    %516 = vector.broadcast %cst_168 : f32 to vector<8x128xf32>
    %517 = arith.addf %516, %515 : vector<8x128xf32>
    %518 = arith.divf %516, %517 : vector<8x128xf32>
    %519 = arith.mulf %510, %438 : vector<8x128xf32>
    %520 = arith.mulf %504, %512 : vector<8x128xf32>
    %521 = arith.addf %519, %520 : vector<8x128xf32>
    %cst_169 = arith.constant -3.000000e+00 : f32
    %cst_170 = arith.constant 3.000000e+00 : f32
    %522 = vector.broadcast %cst_169 : f32 to vector<8x128xf32>
    %523 = arith.maximumf %522, %521 : vector<8x128xf32>
    %524 = vector.broadcast %cst_170 : f32 to vector<8x128xf32>
    %525 = arith.minimumf %524, %523 : vector<8x128xf32>
    %526 = math.tanh %525 : vector<8x128xf32>
    %527 = arith.mulf %518, %526 : vector<8x128xf32>
    %528 = arith.truncf %527 : vector<8x128xf32> to vector<8x128xbf16>
    %cst_171 = arith.constant dense<0.000000e+00> : vector<8x64xf32>
    %529 = tpu.matmul %528, %14, %cst_171 {dimension_numbers = #tpu.dot_dimension_numbers<[1], [0], [0], [1], [0, 0, 1, 1], [], []>} : vector<8x128xbf16>, vector<128x64xbf16>, vector<8x64xf32> -> vector<8x64xf32>
    %cst_172 = arith.constant -3.000000e+00 : f32
    %cst_173 = arith.constant 3.000000e+00 : f32
    %530 = vector.broadcast %cst_172 : f32 to vector<8x64xf32>
    %531 = arith.maximumf %530, %529 : vector<8x64xf32>
    %532 = vector.broadcast %cst_173 : f32 to vector<8x64xf32>
    %533 = arith.minimumf %532, %531 : vector<8x64xf32>
    %c5_174 = arith.constant 5 : index
    %c0_175 = arith.constant 0 : index
    %c0_176 = arith.constant 0 : index
    %534 = vector.load %arg8[%c5_174, %c0_175, %c0_176] : memref<10x8x64xf32, #tpu.memory_space<vmem>>, vector<1x8x64xf32>
    %535 = vector.shape_cast %534 : vector<1x8x64xf32> to vector<8x64xf32>
    %536 = vector.shape_cast %493 : vector<8x64xf32> to vector<1x8x64xf32>
    tpu.vector_store %arg8[%c5_174, %c0_175, %c0_176], %536 {strides = array<i32>} : memref<10x8x64xf32, #tpu.memory_space<vmem>>, vector<1x8x64xf32>,
    %537 = arith.addf %533, %493 : vector<8x64xf32>
    %c5_177 = arith.constant 5 : index
    %c0_178 = arith.constant 0 : index
    %c0_179 = arith.constant 0 : index
    %538 = vector.load %arg9[%c5_177, %c0_178, %c0_179] : memref<10x8x64xf32, #tpu.memory_space<vmem>>, vector<1x8x64xf32>
    %539 = vector.shape_cast %538 : vector<1x8x64xf32> to vector<8x64xf32>
    %540 = vector.shape_cast %537 : vector<8x64xf32> to vector<1x8x64xf32>
    tpu.vector_store %arg9[%c5_177, %c0_178, %c0_179], %540 {strides = array<i32>} : memref<10x8x64xf32, #tpu.memory_space<vmem>>, vector<1x8x64xf32>,
    %c6 = arith.constant 6 : index
    %c0_180 = arith.constant 0 : index
    %c0_181 = arith.constant 0 : index
    %541 = vector.load %arg10[%c6, %c0_180, %c0_181] : memref<10x8x512xf32, #tpu.memory_space<vmem>>, vector<1x8x512xf32>
    %542 = vector.shape_cast %541 : vector<1x8x512xf32> to vector<8x512xf32>
    %543 = arith.truncf %493 : vector<8x64xf32> to vector<8x64xbf16>
    %cst_182 = arith.constant dense<0.000000e+00> : vector<8x512xf32>
    %544 = tpu.matmul %543, %10, %cst_182 {dimension_numbers = #tpu.dot_dimension_numbers<[1], [0], [0], [1], [0, 0, 1, 1], [], []>} : vector<8x64xbf16>, vector<64x512xbf16>, vector<8x512xf32> -> vector<8x512xf32>
    %545 = arith.addf %542, %544 : vector<8x512xf32>
    %546 = vector.extract_strided_slice %545 {offsets = [0, 0], sizes = [8, 128], strides = [1, 1]} : vector<8x512xf32> to vector<8x128xf32>
    %547 = arith.negf %546 : vector<8x128xf32>
    %548 = math.exp %547 : vector<8x128xf32>
    %cst_183 = arith.constant 1.000000e+00 : f32
    %549 = vector.broadcast %cst_183 : f32 to vector<8x128xf32>
    %550 = arith.addf %549, %548 : vector<8x128xf32>
    %551 = arith.divf %549, %550 : vector<8x128xf32>
    %552 = vector.extract_strided_slice %545 {offsets = [0, 128], sizes = [8, 128], strides = [1, 1]} : vector<8x512xf32> to vector<8x128xf32>
    %553 = arith.negf %552 : vector<8x128xf32>
    %554 = math.exp %553 : vector<8x128xf32>
    %cst_184 = arith.constant 1.000000e+00 : f32
    %555 = vector.broadcast %cst_184 : f32 to vector<8x128xf32>
    %556 = arith.addf %555, %554 : vector<8x128xf32>
    %557 = arith.divf %555, %556 : vector<8x128xf32>
    %558 = vector.extract_strided_slice %545 {offsets = [0, 256], sizes = [8, 128], strides = [1, 1]} : vector<8x512xf32> to vector<8x128xf32>
    %559 = math.tanh %558 : vector<8x128xf32>
    %560 = vector.extract_strided_slice %545 {offsets = [0, 384], sizes = [8, 128], strides = [1, 1]} : vector<8x512xf32> to vector<8x128xf32>
    %561 = arith.negf %560 : vector<8x128xf32>
    %562 = math.exp %561 : vector<8x128xf32>
    %cst_185 = arith.constant 1.000000e+00 : f32
    %563 = vector.broadcast %cst_185 : f32 to vector<8x128xf32>
    %564 = arith.addf %563, %562 : vector<8x128xf32>
    %565 = arith.divf %563, %564 : vector<8x128xf32>
    %566 = arith.mulf %557, %485 : vector<8x128xf32>
    %567 = arith.mulf %551, %559 : vector<8x128xf32>
    %568 = arith.addf %566, %567 : vector<8x128xf32>
    %cst_186 = arith.constant -3.000000e+00 : f32
    %cst_187 = arith.constant 3.000000e+00 : f32
    %569 = vector.broadcast %cst_186 : f32 to vector<8x128xf32>
    %570 = arith.maximumf %569, %568 : vector<8x128xf32>
    %571 = vector.broadcast %cst_187 : f32 to vector<8x128xf32>
    %572 = arith.minimumf %571, %570 : vector<8x128xf32>
    %573 = math.tanh %572 : vector<8x128xf32>
    %574 = arith.mulf %565, %573 : vector<8x128xf32>
    %575 = arith.truncf %574 : vector<8x128xf32> to vector<8x128xbf16>
    %cst_188 = arith.constant dense<0.000000e+00> : vector<8x64xf32>
    %576 = tpu.matmul %575, %11, %cst_188 {dimension_numbers = #tpu.dot_dimension_numbers<[1], [0], [0], [1], [0, 0, 1, 1], [], []>} : vector<8x128xbf16>, vector<128x64xbf16>, vector<8x64xf32> -> vector<8x64xf32>
    %cst_189 = arith.constant -3.000000e+00 : f32
    %cst_190 = arith.constant 3.000000e+00 : f32
    %577 = vector.broadcast %cst_189 : f32 to vector<8x64xf32>
    %578 = arith.maximumf %577, %576 : vector<8x64xf32>
    %579 = vector.broadcast %cst_190 : f32 to vector<8x64xf32>
    %580 = arith.minimumf %579, %578 : vector<8x64xf32>
    %581 = tpu.concatenate %580, %533 in 1 : vector<8x64xf32>, vector<8x64xf32> -> vector<8x128xf32>
    %582 = arith.truncf %581 : vector<8x128xf32> to vector<8x128xbf16>
    %cst_191 = arith.constant dense<0.000000e+00> : vector<8x512xf32>
    %583 = tpu.matmul %582, %12, %cst_191 {dimension_numbers = #tpu.dot_dimension_numbers<[1], [0], [0], [1], [0, 0, 1, 1], [], []>} : vector<8x128xbf16>, vector<128x512xbf16>, vector<8x512xf32> -> vector<8x512xf32>
    %584 = vector.broadcast %13 : vector<1x512xf32> to vector<8x512xf32>
    %585 = arith.addf %583, %584 : vector<8x512xf32>
    %586 = vector.extract_strided_slice %585 {offsets = [0, 0], sizes = [8, 128], strides = [1, 1]} : vector<8x512xf32> to vector<8x128xf32>
    %587 = arith.negf %586 : vector<8x128xf32>
    %588 = math.exp %587 : vector<8x128xf32>
    %cst_192 = arith.constant 1.000000e+00 : f32
    %589 = vector.broadcast %cst_192 : f32 to vector<8x128xf32>
    %590 = arith.addf %589, %588 : vector<8x128xf32>
    %591 = arith.divf %589, %590 : vector<8x128xf32>
    %592 = vector.extract_strided_slice %585 {offsets = [0, 128], sizes = [8, 128], strides = [1, 1]} : vector<8x512xf32> to vector<8x128xf32>
    %593 = arith.negf %592 : vector<8x128xf32>
    %594 = math.exp %593 : vector<8x128xf32>
    %cst_193 = arith.constant 1.000000e+00 : f32
    %595 = vector.broadcast %cst_193 : f32 to vector<8x128xf32>
    %596 = arith.addf %595, %594 : vector<8x128xf32>
    %597 = arith.divf %595, %596 : vector<8x128xf32>
    %598 = vector.extract_strided_slice %585 {offsets = [0, 256], sizes = [8, 128], strides = [1, 1]} : vector<8x512xf32> to vector<8x128xf32>
    %599 = math.tanh %598 : vector<8x128xf32>
    %600 = vector.extract_strided_slice %585 {offsets = [0, 384], sizes = [8, 128], strides = [1, 1]} : vector<8x512xf32> to vector<8x128xf32>
    %601 = arith.negf %600 : vector<8x128xf32>
    %602 = math.exp %601 : vector<8x128xf32>
    %cst_194 = arith.constant 1.000000e+00 : f32
    %603 = vector.broadcast %cst_194 : f32 to vector<8x128xf32>
    %604 = arith.addf %603, %602 : vector<8x128xf32>
    %605 = arith.divf %603, %604 : vector<8x128xf32>
    %606 = arith.mulf %597, %525 : vector<8x128xf32>
    %607 = arith.mulf %591, %599 : vector<8x128xf32>
    %608 = arith.addf %606, %607 : vector<8x128xf32>
    %cst_195 = arith.constant -3.000000e+00 : f32
    %cst_196 = arith.constant 3.000000e+00 : f32
    %609 = vector.broadcast %cst_195 : f32 to vector<8x128xf32>
    %610 = arith.maximumf %609, %608 : vector<8x128xf32>
    %611 = vector.broadcast %cst_196 : f32 to vector<8x128xf32>
    %612 = arith.minimumf %611, %610 : vector<8x128xf32>
    %613 = math.tanh %612 : vector<8x128xf32>
    %614 = arith.mulf %605, %613 : vector<8x128xf32>
    %615 = arith.truncf %614 : vector<8x128xf32> to vector<8x128xbf16>
    %cst_197 = arith.constant dense<0.000000e+00> : vector<8x64xf32>
    %616 = tpu.matmul %615, %14, %cst_197 {dimension_numbers = #tpu.dot_dimension_numbers<[1], [0], [0], [1], [0, 0, 1, 1], [], []>} : vector<8x128xbf16>, vector<128x64xbf16>, vector<8x64xf32> -> vector<8x64xf32>
    %cst_198 = arith.constant -3.000000e+00 : f32
    %cst_199 = arith.constant 3.000000e+00 : f32
    %617 = vector.broadcast %cst_198 : f32 to vector<8x64xf32>
    %618 = arith.maximumf %617, %616 : vector<8x64xf32>
    %619 = vector.broadcast %cst_199 : f32 to vector<8x64xf32>
    %620 = arith.minimumf %619, %618 : vector<8x64xf32>
    %c6_200 = arith.constant 6 : index
    %c0_201 = arith.constant 0 : index
    %c0_202 = arith.constant 0 : index
    %621 = vector.load %arg8[%c6_200, %c0_201, %c0_202] : memref<10x8x64xf32, #tpu.memory_space<vmem>>, vector<1x8x64xf32>
    %622 = vector.shape_cast %621 : vector<1x8x64xf32> to vector<8x64xf32>
    %623 = vector.shape_cast %580 : vector<8x64xf32> to vector<1x8x64xf32>
    tpu.vector_store %arg8[%c6_200, %c0_201, %c0_202], %623 {strides = array<i32>} : memref<10x8x64xf32, #tpu.memory_space<vmem>>, vector<1x8x64xf32>,
    %624 = arith.addf %620, %580 : vector<8x64xf32>
    %c6_203 = arith.constant 6 : index
    %c0_204 = arith.constant 0 : index
    %c0_205 = arith.constant 0 : index
    %625 = vector.load %arg9[%c6_203, %c0_204, %c0_205] : memref<10x8x64xf32, #tpu.memory_space<vmem>>, vector<1x8x64xf32>
    %626 = vector.shape_cast %625 : vector<1x8x64xf32> to vector<8x64xf32>
    %627 = vector.shape_cast %624 : vector<8x64xf32> to vector<1x8x64xf32>
    tpu.vector_store %arg9[%c6_203, %c0_204, %c0_205], %627 {strides = array<i32>} : memref<10x8x64xf32, #tpu.memory_space<vmem>>, vector<1x8x64xf32>,
    %c7 = arith.constant 7 : index
    %c0_206 = arith.constant 0 : index
    %c0_207 = arith.constant 0 : index
    %628 = vector.load %arg10[%c7, %c0_206, %c0_207] : memref<10x8x512xf32, #tpu.memory_space<vmem>>, vector<1x8x512xf32>
    %629 = vector.shape_cast %628 : vector<1x8x512xf32> to vector<8x512xf32>
    %630 = arith.truncf %580 : vector<8x64xf32> to vector<8x64xbf16>
    %cst_208 = arith.constant dense<0.000000e+00> : vector<8x512xf32>
    %631 = tpu.matmul %630, %10, %cst_208 {dimension_numbers = #tpu.dot_dimension_numbers<[1], [0], [0], [1], [0, 0, 1, 1], [], []>} : vector<8x64xbf16>, vector<64x512xbf16>, vector<8x512xf32> -> vector<8x512xf32>
    %632 = arith.addf %629, %631 : vector<8x512xf32>
    %633 = vector.extract_strided_slice %632 {offsets = [0, 0], sizes = [8, 128], strides = [1, 1]} : vector<8x512xf32> to vector<8x128xf32>
    %634 = arith.negf %633 : vector<8x128xf32>
    %635 = math.exp %634 : vector<8x128xf32>
    %cst_209 = arith.constant 1.000000e+00 : f32
    %636 = vector.broadcast %cst_209 : f32 to vector<8x128xf32>
    %637 = arith.addf %636, %635 : vector<8x128xf32>
    %638 = arith.divf %636, %637 : vector<8x128xf32>
    %639 = vector.extract_strided_slice %632 {offsets = [0, 128], sizes = [8, 128], strides = [1, 1]} : vector<8x512xf32> to vector<8x128xf32>
    %640 = arith.negf %639 : vector<8x128xf32>
    %641 = math.exp %640 : vector<8x128xf32>
    %cst_210 = arith.constant 1.000000e+00 : f32
    %642 = vector.broadcast %cst_210 : f32 to vector<8x128xf32>
    %643 = arith.addf %642, %641 : vector<8x128xf32>
    %644 = arith.divf %642, %643 : vector<8x128xf32>
    %645 = vector.extract_strided_slice %632 {offsets = [0, 256], sizes = [8, 128], strides = [1, 1]} : vector<8x512xf32> to vector<8x128xf32>
    %646 = math.tanh %645 : vector<8x128xf32>
    %647 = vector.extract_strided_slice %632 {offsets = [0, 384], sizes = [8, 128], strides = [1, 1]} : vector<8x512xf32> to vector<8x128xf32>
    %648 = arith.negf %647 : vector<8x128xf32>
    %649 = math.exp %648 : vector<8x128xf32>
    %cst_211 = arith.constant 1.000000e+00 : f32
    %650 = vector.broadcast %cst_211 : f32 to vector<8x128xf32>
    %651 = arith.addf %650, %649 : vector<8x128xf32>
    %652 = arith.divf %650, %651 : vector<8x128xf32>
    %653 = arith.mulf %644, %572 : vector<8x128xf32>
    %654 = arith.mulf %638, %646 : vector<8x128xf32>
    %655 = arith.addf %653, %654 : vector<8x128xf32>
    %cst_212 = arith.constant -3.000000e+00 : f32
    %cst_213 = arith.constant 3.000000e+00 : f32
    %656 = vector.broadcast %cst_212 : f32 to vector<8x128xf32>
    %657 = arith.maximumf %656, %655 : vector<8x128xf32>
    %658 = vector.broadcast %cst_213 : f32 to vector<8x128xf32>
    %659 = arith.minimumf %658, %657 : vector<8x128xf32>
    %660 = math.tanh %659 : vector<8x128xf32>
    %661 = arith.mulf %652, %660 : vector<8x128xf32>
    %662 = arith.truncf %661 : vector<8x128xf32> to vector<8x128xbf16>
    %cst_214 = arith.constant dense<0.000000e+00> : vector<8x64xf32>
    %663 = tpu.matmul %662, %11, %cst_214 {dimension_numbers = #tpu.dot_dimension_numbers<[1], [0], [0], [1], [0, 0, 1, 1], [], []>} : vector<8x128xbf16>, vector<128x64xbf16>, vector<8x64xf32> -> vector<8x64xf32>
    %cst_215 = arith.constant -3.000000e+00 : f32
    %cst_216 = arith.constant 3.000000e+00 : f32
    %664 = vector.broadcast %cst_215 : f32 to vector<8x64xf32>
    %665 = arith.maximumf %664, %663 : vector<8x64xf32>
    %666 = vector.broadcast %cst_216 : f32 to vector<8x64xf32>
    %667 = arith.minimumf %666, %665 : vector<8x64xf32>
    %668 = tpu.concatenate %667, %620 in 1 : vector<8x64xf32>, vector<8x64xf32> -> vector<8x128xf32>
    %669 = arith.truncf %668 : vector<8x128xf32> to vector<8x128xbf16>
    %cst_217 = arith.constant dense<0.000000e+00> : vector<8x512xf32>
    %670 = tpu.matmul %669, %12, %cst_217 {dimension_numbers = #tpu.dot_dimension_numbers<[1], [0], [0], [1], [0, 0, 1, 1], [], []>} : vector<8x128xbf16>, vector<128x512xbf16>, vector<8x512xf32> -> vector<8x512xf32>
    %671 = vector.broadcast %13 : vector<1x512xf32> to vector<8x512xf32>
    %672 = arith.addf %670, %671 : vector<8x512xf32>
    %673 = vector.extract_strided_slice %672 {offsets = [0, 0], sizes = [8, 128], strides = [1, 1]} : vector<8x512xf32> to vector<8x128xf32>
    %674 = arith.negf %673 : vector<8x128xf32>
    %675 = math.exp %674 : vector<8x128xf32>
    %cst_218 = arith.constant 1.000000e+00 : f32
    %676 = vector.broadcast %cst_218 : f32 to vector<8x128xf32>
    %677 = arith.addf %676, %675 : vector<8x128xf32>
    %678 = arith.divf %676, %677 : vector<8x128xf32>
    %679 = vector.extract_strided_slice %672 {offsets = [0, 128], sizes = [8, 128], strides = [1, 1]} : vector<8x512xf32> to vector<8x128xf32>
    %680 = arith.negf %679 : vector<8x128xf32>
    %681 = math.exp %680 : vector<8x128xf32>
    %cst_219 = arith.constant 1.000000e+00 : f32
    %682 = vector.broadcast %cst_219 : f32 to vector<8x128xf32>
    %683 = arith.addf %682, %681 : vector<8x128xf32>
    %684 = arith.divf %682, %683 : vector<8x128xf32>
    %685 = vector.extract_strided_slice %672 {offsets = [0, 256], sizes = [8, 128], strides = [1, 1]} : vector<8x512xf32> to vector<8x128xf32>
    %686 = math.tanh %685 : vector<8x128xf32>
    %687 = vector.extract_strided_slice %672 {offsets = [0, 384], sizes = [8, 128], strides = [1, 1]} : vector<8x512xf32> to vector<8x128xf32>
    %688 = arith.negf %687 : vector<8x128xf32>
    %689 = math.exp %688 : vector<8x128xf32>
    %cst_220 = arith.constant 1.000000e+00 : f32
    %690 = vector.broadcast %cst_220 : f32 to vector<8x128xf32>
    %691 = arith.addf %690, %689 : vector<8x128xf32>
    %692 = arith.divf %690, %691 : vector<8x128xf32>
    %693 = arith.mulf %684, %612 : vector<8x128xf32>
    %694 = arith.mulf %678, %686 : vector<8x128xf32>
    %695 = arith.addf %693, %694 : vector<8x128xf32>
    %cst_221 = arith.constant -3.000000e+00 : f32
    %cst_222 = arith.constant 3.000000e+00 : f32
    %696 = vector.broadcast %cst_221 : f32 to vector<8x128xf32>
    %697 = arith.maximumf %696, %695 : vector<8x128xf32>
    %698 = vector.broadcast %cst_222 : f32 to vector<8x128xf32>
    %699 = arith.minimumf %698, %697 : vector<8x128xf32>
    %700 = math.tanh %699 : vector<8x128xf32>
    %701 = arith.mulf %692, %700 : vector<8x128xf32>
    %702 = arith.truncf %701 : vector<8x128xf32> to vector<8x128xbf16>
    %cst_223 = arith.constant dense<0.000000e+00> : vector<8x64xf32>
    %703 = tpu.matmul %702, %14, %cst_223 {dimension_numbers = #tpu.dot_dimension_numbers<[1], [0], [0], [1], [0, 0, 1, 1], [], []>} : vector<8x128xbf16>, vector<128x64xbf16>, vector<8x64xf32> -> vector<8x64xf32>
    %cst_224 = arith.constant -3.000000e+00 : f32
    %cst_225 = arith.constant 3.000000e+00 : f32
    %704 = vector.broadcast %cst_224 : f32 to vector<8x64xf32>
    %705 = arith.maximumf %704, %703 : vector<8x64xf32>
    %706 = vector.broadcast %cst_225 : f32 to vector<8x64xf32>
    %707 = arith.minimumf %706, %705 : vector<8x64xf32>
    %c7_226 = arith.constant 7 : index
    %c0_227 = arith.constant 0 : index
    %c0_228 = arith.constant 0 : index
    %708 = vector.load %arg8[%c7_226, %c0_227, %c0_228] : memref<10x8x64xf32, #tpu.memory_space<vmem>>, vector<1x8x64xf32>
    %709 = vector.shape_cast %708 : vector<1x8x64xf32> to vector<8x64xf32>
    %710 = vector.shape_cast %667 : vector<8x64xf32> to vector<1x8x64xf32>
    tpu.vector_store %arg8[%c7_226, %c0_227, %c0_228], %710 {strides = array<i32>} : memref<10x8x64xf32, #tpu.memory_space<vmem>>, vector<1x8x64xf32>,
    %711 = arith.addf %707, %667 : vector<8x64xf32>
    %c7_229 = arith.constant 7 : index
    %c0_230 = arith.constant 0 : index
    %c0_231 = arith.constant 0 : index
    %712 = vector.load %arg9[%c7_229, %c0_230, %c0_231] : memref<10x8x64xf32, #tpu.memory_space<vmem>>, vector<1x8x64xf32>
    %713 = vector.shape_cast %712 : vector<1x8x64xf32> to vector<8x64xf32>
    %714 = vector.shape_cast %711 : vector<8x64xf32> to vector<1x8x64xf32>
    tpu.vector_store %arg9[%c7_229, %c0_230, %c0_231], %714 {strides = array<i32>} : memref<10x8x64xf32, #tpu.memory_space<vmem>>, vector<1x8x64xf32>,
    %c8 = arith.constant 8 : index
    %c0_232 = arith.constant 0 : index
    %c0_233 = arith.constant 0 : index
    %715 = vector.load %arg10[%c8, %c0_232, %c0_233] : memref<10x8x512xf32, #tpu.memory_space<vmem>>, vector<1x8x512xf32>
    %716 = vector.shape_cast %715 : vector<1x8x512xf32> to vector<8x512xf32>
    %717 = arith.truncf %667 : vector<8x64xf32> to vector<8x64xbf16>
    %cst_234 = arith.constant dense<0.000000e+00> : vector<8x512xf32>
    %718 = tpu.matmul %717, %10, %cst_234 {dimension_numbers = #tpu.dot_dimension_numbers<[1], [0], [0], [1], [0, 0, 1, 1], [], []>} : vector<8x64xbf16>, vector<64x512xbf16>, vector<8x512xf32> -> vector<8x512xf32>
    %719 = arith.addf %716, %718 : vector<8x512xf32>
    %720 = vector.extract_strided_slice %719 {offsets = [0, 0], sizes = [8, 128], strides = [1, 1]} : vector<8x512xf32> to vector<8x128xf32>
    %721 = arith.negf %720 : vector<8x128xf32>
    %722 = math.exp %721 : vector<8x128xf32>
    %cst_235 = arith.constant 1.000000e+00 : f32
    %723 = vector.broadcast %cst_235 : f32 to vector<8x128xf32>
    %724 = arith.addf %723, %722 : vector<8x128xf32>
    %725 = arith.divf %723, %724 : vector<8x128xf32>
    %726 = vector.extract_strided_slice %719 {offsets = [0, 128], sizes = [8, 128], strides = [1, 1]} : vector<8x512xf32> to vector<8x128xf32>
    %727 = arith.negf %726 : vector<8x128xf32>
    %728 = math.exp %727 : vector<8x128xf32>
    %cst_236 = arith.constant 1.000000e+00 : f32
    %729 = vector.broadcast %cst_236 : f32 to vector<8x128xf32>
    %730 = arith.addf %729, %728 : vector<8x128xf32>
    %731 = arith.divf %729, %730 : vector<8x128xf32>
    %732 = vector.extract_strided_slice %719 {offsets = [0, 256], sizes = [8, 128], strides = [1, 1]} : vector<8x512xf32> to vector<8x128xf32>
    %733 = math.tanh %732 : vector<8x128xf32>
    %734 = vector.extract_strided_slice %719 {offsets = [0, 384], sizes = [8, 128], strides = [1, 1]} : vector<8x512xf32> to vector<8x128xf32>
    %735 = arith.negf %734 : vector<8x128xf32>
    %736 = math.exp %735 : vector<8x128xf32>
    %cst_237 = arith.constant 1.000000e+00 : f32
    %737 = vector.broadcast %cst_237 : f32 to vector<8x128xf32>
    %738 = arith.addf %737, %736 : vector<8x128xf32>
    %739 = arith.divf %737, %738 : vector<8x128xf32>
    %740 = arith.mulf %731, %659 : vector<8x128xf32>
    %741 = arith.mulf %725, %733 : vector<8x128xf32>
    %742 = arith.addf %740, %741 : vector<8x128xf32>
    %cst_238 = arith.constant -3.000000e+00 : f32
    %cst_239 = arith.constant 3.000000e+00 : f32
    %743 = vector.broadcast %cst_238 : f32 to vector<8x128xf32>
    %744 = arith.maximumf %743, %742 : vector<8x128xf32>
    %745 = vector.broadcast %cst_239 : f32 to vector<8x128xf32>
    %746 = arith.minimumf %745, %744 : vector<8x128xf32>
    %747 = math.tanh %746 : vector<8x128xf32>
    %748 = arith.mulf %739, %747 : vector<8x128xf32>
    %749 = arith.truncf %748 : vector<8x128xf32> to vector<8x128xbf16>
    %cst_240 = arith.constant dense<0.000000e+00> : vector<8x64xf32>
    %750 = tpu.matmul %749, %11, %cst_240 {dimension_numbers = #tpu.dot_dimension_numbers<[1], [0], [0], [1], [0, 0, 1, 1], [], []>} : vector<8x128xbf16>, vector<128x64xbf16>, vector<8x64xf32> -> vector<8x64xf32>
    %cst_241 = arith.constant -3.000000e+00 : f32
    %cst_242 = arith.constant 3.000000e+00 : f32
    %751 = vector.broadcast %cst_241 : f32 to vector<8x64xf32>
    %752 = arith.maximumf %751, %750 : vector<8x64xf32>
    %753 = vector.broadcast %cst_242 : f32 to vector<8x64xf32>
    %754 = arith.minimumf %753, %752 : vector<8x64xf32>
    %755 = tpu.concatenate %754, %707 in 1 : vector<8x64xf32>, vector<8x64xf32> -> vector<8x128xf32>
    %756 = arith.truncf %755 : vector<8x128xf32> to vector<8x128xbf16>
    %cst_243 = arith.constant dense<0.000000e+00> : vector<8x512xf32>
    %757 = tpu.matmul %756, %12, %cst_243 {dimension_numbers = #tpu.dot_dimension_numbers<[1], [0], [0], [1], [0, 0, 1, 1], [], []>} : vector<8x128xbf16>, vector<128x512xbf16>, vector<8x512xf32> -> vector<8x512xf32>
    %758 = vector.broadcast %13 : vector<1x512xf32> to vector<8x512xf32>
    %759 = arith.addf %757, %758 : vector<8x512xf32>
    %760 = vector.extract_strided_slice %759 {offsets = [0, 0], sizes = [8, 128], strides = [1, 1]} : vector<8x512xf32> to vector<8x128xf32>
    %761 = arith.negf %760 : vector<8x128xf32>
    %762 = math.exp %761 : vector<8x128xf32>
    %cst_244 = arith.constant 1.000000e+00 : f32
    %763 = vector.broadcast %cst_244 : f32 to vector<8x128xf32>
    %764 = arith.addf %763, %762 : vector<8x128xf32>
    %765 = arith.divf %763, %764 : vector<8x128xf32>
    %766 = vector.extract_strided_slice %759 {offsets = [0, 128], sizes = [8, 128], strides = [1, 1]} : vector<8x512xf32> to vector<8x128xf32>
    %767 = arith.negf %766 : vector<8x128xf32>
    %768 = math.exp %767 : vector<8x128xf32>
    %cst_245 = arith.constant 1.000000e+00 : f32
    %769 = vector.broadcast %cst_245 : f32 to vector<8x128xf32>
    %770 = arith.addf %769, %768 : vector<8x128xf32>
    %771 = arith.divf %769, %770 : vector<8x128xf32>
    %772 = vector.extract_strided_slice %759 {offsets = [0, 256], sizes = [8, 128], strides = [1, 1]} : vector<8x512xf32> to vector<8x128xf32>
    %773 = math.tanh %772 : vector<8x128xf32>
    %774 = vector.extract_strided_slice %759 {offsets = [0, 384], sizes = [8, 128], strides = [1, 1]} : vector<8x512xf32> to vector<8x128xf32>
    %775 = arith.negf %774 : vector<8x128xf32>
    %776 = math.exp %775 : vector<8x128xf32>
    %cst_246 = arith.constant 1.000000e+00 : f32
    %777 = vector.broadcast %cst_246 : f32 to vector<8x128xf32>
    %778 = arith.addf %777, %776 : vector<8x128xf32>
    %779 = arith.divf %777, %778 : vector<8x128xf32>
    %780 = arith.mulf %771, %699 : vector<8x128xf32>
    %781 = arith.mulf %765, %773 : vector<8x128xf32>
    %782 = arith.addf %780, %781 : vector<8x128xf32>
    %cst_247 = arith.constant -3.000000e+00 : f32
    %cst_248 = arith.constant 3.000000e+00 : f32
    %783 = vector.broadcast %cst_247 : f32 to vector<8x128xf32>
    %784 = arith.maximumf %783, %782 : vector<8x128xf32>
    %785 = vector.broadcast %cst_248 : f32 to vector<8x128xf32>
    %786 = arith.minimumf %785, %784 : vector<8x128xf32>
    %787 = math.tanh %786 : vector<8x128xf32>
    %788 = arith.mulf %779, %787 : vector<8x128xf32>
    %789 = arith.truncf %788 : vector<8x128xf32> to vector<8x128xbf16>
    %cst_249 = arith.constant dense<0.000000e+00> : vector<8x64xf32>
    %790 = tpu.matmul %789, %14, %cst_249 {dimension_numbers = #tpu.dot_dimension_numbers<[1], [0], [0], [1], [0, 0, 1, 1], [], []>} : vector<8x128xbf16>, vector<128x64xbf16>, vector<8x64xf32> -> vector<8x64xf32>
    %cst_250 = arith.constant -3.000000e+00 : f32
    %cst_251 = arith.constant 3.000000e+00 : f32
    %791 = vector.broadcast %cst_250 : f32 to vector<8x64xf32>
    %792 = arith.maximumf %791, %790 : vector<8x64xf32>
    %793 = vector.broadcast %cst_251 : f32 to vector<8x64xf32>
    %794 = arith.minimumf %793, %792 : vector<8x64xf32>
    %c8_252 = arith.constant 8 : index
    %c0_253 = arith.constant 0 : index
    %c0_254 = arith.constant 0 : index
    %795 = vector.load %arg8[%c8_252, %c0_253, %c0_254] : memref<10x8x64xf32, #tpu.memory_space<vmem>>, vector<1x8x64xf32>
    %796 = vector.shape_cast %795 : vector<1x8x64xf32> to vector<8x64xf32>
    %797 = vector.shape_cast %754 : vector<8x64xf32> to vector<1x8x64xf32>
    tpu.vector_store %arg8[%c8_252, %c0_253, %c0_254], %797 {strides = array<i32>} : memref<10x8x64xf32, #tpu.memory_space<vmem>>, vector<1x8x64xf32>,
    %798 = arith.addf %794, %754 : vector<8x64xf32>
    %c8_255 = arith.constant 8 : index
    %c0_256 = arith.constant 0 : index
    %c0_257 = arith.constant 0 : index
    %799 = vector.load %arg9[%c8_255, %c0_256, %c0_257] : memref<10x8x64xf32, #tpu.memory_space<vmem>>, vector<1x8x64xf32>
    %800 = vector.shape_cast %799 : vector<1x8x64xf32> to vector<8x64xf32>
    %801 = vector.shape_cast %798 : vector<8x64xf32> to vector<1x8x64xf32>
    tpu.vector_store %arg9[%c8_255, %c0_256, %c0_257], %801 {strides = array<i32>} : memref<10x8x64xf32, #tpu.memory_space<vmem>>, vector<1x8x64xf32>,
    %c9 = arith.constant 9 : index
    %c0_258 = arith.constant 0 : index
    %c0_259 = arith.constant 0 : index
    %802 = vector.load %arg10[%c9, %c0_258, %c0_259] : memref<10x8x512xf32, #tpu.memory_space<vmem>>, vector<1x8x512xf32>
    %803 = vector.shape_cast %802 : vector<1x8x512xf32> to vector<8x512xf32>
    %804 = arith.truncf %754 : vector<8x64xf32> to vector<8x64xbf16>
    %cst_260 = arith.constant dense<0.000000e+00> : vector<8x512xf32>
    %805 = tpu.matmul %804, %10, %cst_260 {dimension_numbers = #tpu.dot_dimension_numbers<[1], [0], [0], [1], [0, 0, 1, 1], [], []>} : vector<8x64xbf16>, vector<64x512xbf16>, vector<8x512xf32> -> vector<8x512xf32>
    %806 = arith.addf %803, %805 : vector<8x512xf32>
    %807 = vector.extract_strided_slice %806 {offsets = [0, 0], sizes = [8, 128], strides = [1, 1]} : vector<8x512xf32> to vector<8x128xf32>
    %808 = arith.negf %807 : vector<8x128xf32>
    %809 = math.exp %808 : vector<8x128xf32>
    %cst_261 = arith.constant 1.000000e+00 : f32
    %810 = vector.broadcast %cst_261 : f32 to vector<8x128xf32>
    %811 = arith.addf %810, %809 : vector<8x128xf32>
    %812 = arith.divf %810, %811 : vector<8x128xf32>
    %813 = vector.extract_strided_slice %806 {offsets = [0, 128], sizes = [8, 128], strides = [1, 1]} : vector<8x512xf32> to vector<8x128xf32>
    %814 = arith.negf %813 : vector<8x128xf32>
    %815 = math.exp %814 : vector<8x128xf32>
    %cst_262 = arith.constant 1.000000e+00 : f32
    %816 = vector.broadcast %cst_262 : f32 to vector<8x128xf32>
    %817 = arith.addf %816, %815 : vector<8x128xf32>
    %818 = arith.divf %816, %817 : vector<8x128xf32>
    %819 = vector.extract_strided_slice %806 {offsets = [0, 256], sizes = [8, 128], strides = [1, 1]} : vector<8x512xf32> to vector<8x128xf32>
    %820 = math.tanh %819 : vector<8x128xf32>
    %821 = vector.extract_strided_slice %806 {offsets = [0, 384], sizes = [8, 128], strides = [1, 1]} : vector<8x512xf32> to vector<8x128xf32>
    %822 = arith.negf %821 : vector<8x128xf32>
    %823 = math.exp %822 : vector<8x128xf32>
    %cst_263 = arith.constant 1.000000e+00 : f32
    %824 = vector.broadcast %cst_263 : f32 to vector<8x128xf32>
    %825 = arith.addf %824, %823 : vector<8x128xf32>
    %826 = arith.divf %824, %825 : vector<8x128xf32>
    %827 = arith.mulf %818, %746 : vector<8x128xf32>
    %828 = arith.mulf %812, %820 : vector<8x128xf32>
    %829 = arith.addf %827, %828 : vector<8x128xf32>
    %cst_264 = arith.constant -3.000000e+00 : f32
    %cst_265 = arith.constant 3.000000e+00 : f32
    %830 = vector.broadcast %cst_264 : f32 to vector<8x128xf32>
    %831 = arith.maximumf %830, %829 : vector<8x128xf32>
    %832 = vector.broadcast %cst_265 : f32 to vector<8x128xf32>
    %833 = arith.minimumf %832, %831 : vector<8x128xf32>
    %834 = math.tanh %833 : vector<8x128xf32>
    %835 = arith.mulf %826, %834 : vector<8x128xf32>
    %836 = arith.truncf %835 : vector<8x128xf32> to vector<8x128xbf16>
    %cst_266 = arith.constant dense<0.000000e+00> : vector<8x64xf32>
    %837 = tpu.matmul %836, %11, %cst_266 {dimension_numbers = #tpu.dot_dimension_numbers<[1], [0], [0], [1], [0, 0, 1, 1], [], []>} : vector<8x128xbf16>, vector<128x64xbf16>, vector<8x64xf32> -> vector<8x64xf32>
    %cst_267 = arith.constant -3.000000e+00 : f32
    %cst_268 = arith.constant 3.000000e+00 : f32
    %838 = vector.broadcast %cst_267 : f32 to vector<8x64xf32>
    %839 = arith.maximumf %838, %837 : vector<8x64xf32>
    %840 = vector.broadcast %cst_268 : f32 to vector<8x64xf32>
    %841 = arith.minimumf %840, %839 : vector<8x64xf32>
    %842 = tpu.concatenate %841, %794 in 1 : vector<8x64xf32>, vector<8x64xf32> -> vector<8x128xf32>
    %843 = arith.truncf %842 : vector<8x128xf32> to vector<8x128xbf16>
    %cst_269 = arith.constant dense<0.000000e+00> : vector<8x512xf32>
    %844 = tpu.matmul %843, %12, %cst_269 {dimension_numbers = #tpu.dot_dimension_numbers<[1], [0], [0], [1], [0, 0, 1, 1], [], []>} : vector<8x128xbf16>, vector<128x512xbf16>, vector<8x512xf32> -> vector<8x512xf32>
    %845 = vector.broadcast %13 : vector<1x512xf32> to vector<8x512xf32>
    %846 = arith.addf %844, %845 : vector<8x512xf32>
    %847 = vector.extract_strided_slice %846 {offsets = [0, 0], sizes = [8, 128], strides = [1, 1]} : vector<8x512xf32> to vector<8x128xf32>
    %848 = arith.negf %847 : vector<8x128xf32>
    %849 = math.exp %848 : vector<8x128xf32>
    %cst_270 = arith.constant 1.000000e+00 : f32
    %850 = vector.broadcast %cst_270 : f32 to vector<8x128xf32>
    %851 = arith.addf %850, %849 : vector<8x128xf32>
    %852 = arith.divf %850, %851 : vector<8x128xf32>
    %853 = vector.extract_strided_slice %846 {offsets = [0, 128], sizes = [8, 128], strides = [1, 1]} : vector<8x512xf32> to vector<8x128xf32>
    %854 = arith.negf %853 : vector<8x128xf32>
    %855 = math.exp %854 : vector<8x128xf32>
    %cst_271 = arith.constant 1.000000e+00 : f32
    %856 = vector.broadcast %cst_271 : f32 to vector<8x128xf32>
    %857 = arith.addf %856, %855 : vector<8x128xf32>
    %858 = arith.divf %856, %857 : vector<8x128xf32>
    %859 = vector.extract_strided_slice %846 {offsets = [0, 256], sizes = [8, 128], strides = [1, 1]} : vector<8x512xf32> to vector<8x128xf32>
    %860 = math.tanh %859 : vector<8x128xf32>
    %861 = vector.extract_strided_slice %846 {offsets = [0, 384], sizes = [8, 128], strides = [1, 1]} : vector<8x512xf32> to vector<8x128xf32>
    %862 = arith.negf %861 : vector<8x128xf32>
    %863 = math.exp %862 : vector<8x128xf32>
    %cst_272 = arith.constant 1.000000e+00 : f32
    %864 = vector.broadcast %cst_272 : f32 to vector<8x128xf32>
    %865 = arith.addf %864, %863 : vector<8x128xf32>
    %866 = arith.divf %864, %865 : vector<8x128xf32>
    %867 = arith.mulf %858, %786 : vector<8x128xf32>
    %868 = arith.mulf %852, %860 : vector<8x128xf32>
    %869 = arith.addf %867, %868 : vector<8x128xf32>
    %cst_273 = arith.constant -3.000000e+00 : f32
    %cst_274 = arith.constant 3.000000e+00 : f32
    %870 = vector.broadcast %cst_273 : f32 to vector<8x128xf32>
    %871 = arith.maximumf %870, %869 : vector<8x128xf32>
    %872 = vector.broadcast %cst_274 : f32 to vector<8x128xf32>
    %873 = arith.minimumf %872, %871 : vector<8x128xf32>
    %874 = math.tanh %873 : vector<8x128xf32>
    %875 = arith.mulf %866, %874 : vector<8x128xf32>
    %876 = arith.truncf %875 : vector<8x128xf32> to vector<8x128xbf16>
    %cst_275 = arith.constant dense<0.000000e+00> : vector<8x64xf32>
    %877 = tpu.matmul %876, %14, %cst_275 {dimension_numbers = #tpu.dot_dimension_numbers<[1], [0], [0], [1], [0, 0, 1, 1], [], []>} : vector<8x128xbf16>, vector<128x64xbf16>, vector<8x64xf32> -> vector<8x64xf32>
    %cst_276 = arith.constant -3.000000e+00 : f32
    %cst_277 = arith.constant 3.000000e+00 : f32
    %878 = vector.broadcast %cst_276 : f32 to vector<8x64xf32>
    %879 = arith.maximumf %878, %877 : vector<8x64xf32>
    %880 = vector.broadcast %cst_277 : f32 to vector<8x64xf32>
    %881 = arith.minimumf %880, %879 : vector<8x64xf32>
    %c9_278 = arith.constant 9 : index
    %c0_279 = arith.constant 0 : index
    %c0_280 = arith.constant 0 : index
    %882 = vector.load %arg8[%c9_278, %c0_279, %c0_280] : memref<10x8x64xf32, #tpu.memory_space<vmem>>, vector<1x8x64xf32>
    %883 = vector.shape_cast %882 : vector<1x8x64xf32> to vector<8x64xf32>
    %884 = vector.shape_cast %841 : vector<8x64xf32> to vector<1x8x64xf32>
    tpu.vector_store %arg8[%c9_278, %c0_279, %c0_280], %884 {strides = array<i32>} : memref<10x8x64xf32, #tpu.memory_space<vmem>>, vector<1x8x64xf32>,
    %885 = arith.addf %881, %841 : vector<8x64xf32>
    %c9_281 = arith.constant 9 : index
    %c0_282 = arith.constant 0 : index
    %c0_283 = arith.constant 0 : index
    %886 = vector.load %arg9[%c9_281, %c0_282, %c0_283] : memref<10x8x64xf32, #tpu.memory_space<vmem>>, vector<1x8x64xf32>
    %887 = vector.shape_cast %886 : vector<1x8x64xf32> to vector<8x64xf32>
    %888 = vector.shape_cast %885 : vector<8x64xf32> to vector<1x8x64xf32>
    tpu.vector_store %arg9[%c9_281, %c0_282, %c0_283], %888 {strides = array<i32>} : memref<10x8x64xf32, #tpu.memory_space<vmem>>, vector<1x8x64xf32>,
    return
  }
}

</mosaic_0001>

<bundles_post_ra>
// kernel: elmo_layer_embedder_forward.2
= control target key start
LH: loop header
LB: loop body
LE: loop exit
PB: predicated region body
PF: predicated region fallthrough
CT: control target
= control target key end

     0   :  { %s6735_s30 = smov 0   ;;  %s8642_s0 = inlined_call_operand.vmem [shape: f32[24,50,8], index: 0, kind: input, shape index: {}]   ;;  %s8643_s1 = inlined_call_operand.vmem [shape: bf16[24,32], index: 1, kind: input, shape index: {}]   ;;  %s8644_s2 = inlined_call_operand.vmem [shape: f32[50,32], index: 2, kind: input, shape index: {}]   ;;  %s8645_s3 = inlined_call_operand.vmem [shape: bf16[32,64], index: 3, kind: input, shape index: {}]   ;;  %s8646_s4 = inlined_call_operand.vmem [shape: f32[1,64], index: 4, kind: input, shape index: {}]   ;;  %s8647_s5 = inlined_call_operand.vmem [shape: bf16[32,64], index: 5, kind: input, shape index: {}]   ;;  %s8648_s6 = inlined_call_operand.vmem [shape: f32[1,64], index: 6, kind: input, shape index: {}]   ;;  %s8649_s7 = inlined_call_operand.vmem [shape: bf16[32,32], index: 7, kind: input, shape index: {}]   ;;  %s8650_s8 = inlined_call_operand.vmem [shape: f32[1,32], index: 8, kind: input, shape index: {}]   ;;  %s8651_s9 = inlined_call_operand.vmem [shape: f32[24,32], index: 9, kind: output, shape index: {}]  }
   0x1 LB: > { %s6741_s10 = sadd.s32 4294967295, %s6676_s30   ;;  %p6385_p0 = scmp.ge.s32.totalorder %s6676_s30, 1  ;;  %s6676_s30 = sphi %s6735_s30, %s19_s30  }
   0x2   : > { %p289_p1 = scmp.lt.s32.totalorder %s6676_s30, 4 }
   0x4   : > { %p290_p2 = pnand %p6385_p0, %p289_p1 }
   0x6   : > { %293 = sbr.rel (%p290_p2) target bundleno = 1683 (0x693), region = 56 }
   0xb   : > { %s6386_s11 = sshll.u32 %s6741_s10, 3  ;;  %vm731_vm0 = vcmask 1045504   ;;  %vm458_vm1 = vcmask 1046528   ;;  %s6678_s16 = smov 16   ;;  %vm393_vm2 = vcmask 1041408   ;;  %vm3059_vm3 = vcmask 1043456  }
   0xc   : > { %p326_p3 = scmp.lt.s32.totalorder %s6386_s11, 23  ;;  %s6679_s17 = smov 8   ;;  %v6617_v48 = vld [vmem:[%s8643_s1 + $0x8] ss:$0 sps:$4 sm:$0xff]   ;;  %v8652_v54 = vmov 0.0   ;;  %v6618_v56 = vld [vmem:[%s8643_s1] sm:$0xff]  }
   0xd   : > { %6469 = vmatprep.subr.bf16.mxu0 %v8652_v54  ;;  %v3061_v55 = vsel %vm3059_vm3, %v6617_v48, 0  ;;  %6597 = vmatprep.subr.bf16.mxu1 %v8652_v54  ;;  %vm6681_vm4 = vmmov 0   ;;  %vm1004_vm5 = vcmask 64512   ;;  %vm1061_vm6 = vcmask 130048   ;;  %s6683_s23 = smov 32   ;;  %p332_p4 = scmp.lt.s32.totalorder %s6741_s10, 2 }
   0xe   : > { %s8687_s11 = smov (!%p326_p3, %s6386_s11), 23  ;;  %6470 = vmatpush3.bf16.msra.mxu0 %v3061_v55  ;;  %6599 = vmatpush3.bf16.msra.mxu1 %v3061_v55  ;;  %vm2983_vm7 = vcmask 195584   ;;  %vm5872_vm8 = vcmask 261120   ;;  %vm5884_vm9 = vcmask 254976   ;;  %vm6069_vm10 = vcmask 1041409  }
   0xf   : > { %s6601_s12 = smul.u32 56, %s8687_s11  ;;  %6471 = vmatprep.subr.bf16.mxu0 %v8652_v54  ;;  %6473 = vmatprep.mubr.msk.bf16.mxu0 %vm6681_vm4, %v8652_v54  ;;  %vm6071_vm11 = vcmask 1042434   ;;  %vm6073_vm12 = vcmask 1043459   ;;  %vm6075_vm13 = vcmask 1044484   ;;  %vm6077_vm14 = vcmask 1045509   ;;  %s6684_s11 = smov 96  }
  0x10   : > { %6598 = vmatprep.subr.bf16.mxu1 %v8652_v54  ;;  %6529 = vmatprep.mubr.msk.bf16.mxu1 %vm6681_vm4, %v8652_v54  ;;  %vm6079_vm15 = vcmask 1046534   ;;  %s8689_s10 = smov (!%p332_p4, %s6741_s10), 2 }
  0x11   : > { %s6749_s15 = scalar_lea.vmem %s8642_s0, %s6601_s12  ;;  %s6388_s18 = sshll.u32 %s8689_s10, 3 }
  0x12   : > { %v6752_v0 = vld [vmem:[%s6749_s15] sm:$0xff]  ;;  %v6755_v1 = vld [vmem:[%s6749_s15 + $0x8] sm:$0xff]  ;;  %v6758_v2 = vld [vmem:[%s6749_s15 + $0x10] sm:$0xff]  ;;  %6472 = vmatpush3.bf16.msra.mxu0 %v6618_v56  ;;  %6600 = vmatpush3.bf16.msra.mxu1 %v6618_v56 }
  0x13   : > { %v732_v3 = vrot.slane %v6752_v0, 2  ;;  %v733_v4 = vrot.slane %v6755_v1, 2  ;;  %v459_v5 = vrot.slane %v6752_v0, 1  ;;  %v460_v6 = vrot.slane %v6755_v1, 1  ;;  %v6767_v9 = vld [vmem:[%s6749_s15 + $0x18] sm:$0xff]  ;;  %v6770_v10 = vld [vmem:[%s6749_s15 + $0x20] sm:$0xff]  ;;  %6573 = vmatprep.subr.bf16.mxu1 %v8652_v54 }
  0x14   : > { %v735_v7 = vrot.slane %v6758_v2, 2  ;;  %v462_v8 = vrot.slane %v6758_v2, 1  ;;  %v464_v15 = vrot.slane %v6767_v9, 1  ;;  %v466_v16 = vrot.slane %v6770_v10, 1  ;;  %v343_v17 = vld [vmem:[%s6749_s15 + $0x30] sm:$0x3] }
  0x15   : > { %v734_v11 = vsel %vm731_vm0, %v732_v3, %v733_v4  ;;  %v461_v12 = vsel %vm458_vm1, %v459_v5, %v460_v6  ;;  %v737_v20 = vrot.slane %v6767_v9, 2  ;;  %v739_v21 = vrot.slane %v6770_v10, 2  ;;  %v6788_v22 = vld [vmem:[%s6749_s15 + $0x28] sm:$0xff]  ;;  %v6806_v32 = vld [vmem:[%s6749_s15 + $0x38] sm:$0xff]  ;;  %v6809_v33 = vld [vmem:[%s6749_s15 + $0x40] sm:$0xff] }
  0x16   : > { %836 = vrot.lane.b32.xlu1 %v734_v11, %s6678_s16  ;;  %563 = vrot.lane.b32.xlu0 %v461_v12, %s6679_s17  ;;  %v736_v13 = vsel %vm731_vm0, %v733_v4, %v735_v7  ;;  %v463_v14 = vsel %vm458_vm1, %v460_v6, %v462_v8  ;;  %v467_v18 = vsel %vm458_vm1, %v464_v15, %v466_v16  ;;  %v6791_v23 = vsel %vm393_vm2, %v343_v17, 0.0  ;;  %v6820_v40 = vld [vmem:[%s6749_s15 + $0x48] sm:$0xff]  ;;  %v6833_v47 = vld [vmem:[%s6749_s15 + $0x50] sm:$0xff] }
  0x17   : > { %v465_v19 = vsel %vm458_vm1, %v462_v8, %v464_v15  ;;  %v740_v24 = vsel %vm731_vm0, %v737_v20, %v739_v21  ;;  %v738_v25 = vsel %vm731_vm0, %v735_v7, %v737_v20  ;;  %v468_v26 = vrot.slane %v6788_v22, 1  ;;  %v6843_v51 = vld [vmem:[%s6749_s15 + $0xf8] sm:$0xff]  ;;  %v6846_v52 = vld [vmem:[%s6749_s15 + $0x100] sm:$0xff]  ;;  %v6867_v62 = vld [vmem:[%s6749_s15 + $0x108] sm:$0xff] }
  0x18   : > { %v470_v27 = vrot.slane %v6791_v23, 1  ;;  %v741_v30 = vrot.slane %v6788_v22, 2  ;;  %v743_v31 = vrot.slane %v6791_v23, 2  ;;  %v745_v34 = vrot.slane %v6806_v32, 2  ;;  %v6849_v53 = vld [vmem:[%s6749_s15 + $0x58] sm:$0xff] }
  0x19   : > { %v469_v29 = vsel %vm458_vm1, %v466_v16, %v468_v26  ;;  %v746_v35 = vrot.slane %v6809_v33, 2  ;;  %v472_v38 = vrot.slane %v6806_v32, 1  ;;  %v473_v39 = vrot.slane %v6809_v33, 1  ;;  %v350_v15 = vld [vmem:[%s6749_s15 + $0x68] sm:$0x3] }
  0x1a   : > { %838 = vrot.lane.b32.xlu1 %v736_v13, %s6678_s16  ;;  %565 = vrot.lane.b32.xlu0 %v463_v14, %s6679_s17  ;;  %v471_v28 = vsel %vm458_vm1, %v468_v26, %v470_v27  ;;  %v744_v36 = vsel %vm731_vm0, %v741_v30, %v743_v31  ;;  %v742_v37 = vsel %vm731_vm0, %v739_v21, %v741_v30  ;;  %v748_v43 = vrot.slane %v6820_v40, 2  ;;  %v6889_v13 = vld [vmem:[%s6749_s15 + $0x60] sm:$0xff]  ;;  %v371_v14 = vld [vmem:[%s6749_s15 + $0x110] sm:$0x3] }
  0x1b   : > { %v747_v41 = vsel %vm731_vm0, %v745_v34, %v746_v35  ;;  %v474_v42 = vsel %vm458_vm1, %v472_v38, %v473_v39  ;;  %v475_v44 = vrot.slane %v6820_v40, 1  ;;  %v750_v49 = vrot.slane %v6833_v47, 2  ;;  %v6920_v34 = vld [vmem:[%s6749_s15 + $0x118] sm:$0xff] }
  0x1c   : > { %v749_v45 = vsel %vm731_vm0, %v746_v35, %v748_v43  ;;  %v477_v50 = vrot.slane %v6833_v47, 1  ;;  %v516_v57 = vrot.slane %v6843_v51, 1  ;;  %v518_v60 = vrot.slane %v6846_v52, 1  ;;  %v373_v35 = vld [vmem:[%s6749_s15 + $0x120] sm:$0xff] }
  0x1d   : > { %v476_v46 = vsel %vm458_vm1, %v473_v39, %v475_v44  ;;  %v751_v58 = vsel %vm731_vm0, %v748_v43, %v750_v49  ;;  %v479_v61 = vrot.slane %v6849_v53, 1  ;;  %v752_v4 = vrot.slane %v6849_v53, 2  ;;  %v6930_v43 = vld [vmem:[%s6749_s15 + $0x70] sm:$0xff] }
  0x1e   : > { %569 = vrot.lane.b32.xlu1 %v467_v18, %s6679_s17  ;;  %567 = vrot.lane.b32.xlu0 %v465_v19, %s6679_s17  ;;  %v478_v59 = vsel %vm458_vm1, %v475_v44, %v477_v50  ;;  %v519_v63 = vsel %vm458_vm1, %v516_v57, %v518_v60  ;;  %v520_v5 = vrot.slane %v6867_v62, 1  ;;  %v791_v6 = vrot.slane %v6846_v52, 2  ;;  %v6933_v44 = vld [vmem:[%s6749_s15 + $0x78] sm:$0xff] }
  0x1f   : > { %v480_v3 = vsel %vm458_vm1, %v477_v50, %v479_v61  ;;  %v753_v7 = vsel %vm731_vm0, %v750_v49, %v752_v4  ;;  %v793_v11 = vrot.slane %v6867_v62, 2  ;;  %v789_v12 = vrot.slane %v6843_v51, 2 }
  0x20   : > { %v521_v8 = vsel %vm458_vm1, %v518_v60, %v520_v5  ;;  %v754_v18 = vrot.slane %v6889_v13, 2  ;;  %v481_v19 = vrot.slane %v6889_v13, 1  ;;  %v6902_v20 = vsel %vm393_vm2, %v371_v14, 0.0 }
  0x21   : > { %v794_v16 = vsel %vm731_vm0, %v791_v6, %v793_v11  ;;  %v792_v17 = vsel %vm731_vm0, %v789_v12, %v791_v6  ;;  %v6905_v21 = vsel %vm393_vm2, %v350_v15, 0.0  ;;  %v522_v26 = vrot.slane %v6902_v20, 1  ;;  %v375_v6 = vld [vmem:[%s6749_s15 + $0x130] sm:$0xff] }
  0x22   : > { %842 = vrot.lane.b32.xlu1 %v740_v24, %s6678_s16  ;;  %840 = vrot.lane.b32.xlu0 %v738_v25, %s6678_s16  ;;  %v755_v24 = vsel %vm731_vm0, %v752_v4, %v754_v18  ;;  %v482_v25 = vsel %vm458_vm1, %v479_v61, %v481_v19  ;;  %v795_v30 = vrot.slane %v6902_v20, 2  ;;  %v485_v48 = vrot.slane %v6930_v43, 1 }
  0x23   : > { %v486_v49 = vrot.slane %v6933_v44, 1  ;;  %v758_v55 = vrot.slane %v6930_v43, 2  ;;  %v759_v56 = vrot.slane %v6933_v44, 2 }
  0x24   : > { %v796_v38 = vsel %vm731_vm0, %v793_v11, %v795_v30 }
  0x25   : > { %v487_v50 = vsel %vm458_vm1, %v485_v48, %v486_v49  ;;  %v760_v60 = vsel %vm731_vm0, %v758_v55, %v759_v56  ;;  %v378_v48 = vld [vmem:[%s6749_s15 + $0x148] sm:$0x3] }
  0x26   : > { %573 = vrot.lane.b32.xlu1 %v471_v28, %s6679_s17  ;;  %571 = vrot.lane.b32.xlu0 %v469_v29, %s6679_s17  ;;  %v523_v28 = vsel %vm458_vm1, %v520_v5, %v522_v26 }
  0x2a   : > { %846 = vrot.lane.b32.xlu1 %v744_v36, %s6678_s16  ;;  %844 = vrot.lane.b32.xlu0 %v742_v37, %s6678_s16  ;;  %v797_v36 = vrot.slane %v6920_v34, 2  ;;  %v798_v37 = vrot.slane %v373_v35, 2 }
  0x2e   : > { %850 = vrot.lane.b32.xlu1 %v747_v41, %s6678_s16  ;;  %577 = vrot.lane.b32.xlu0 %v474_v42, %s6679_s17  ;;  %v524_v41 = vrot.slane %v6920_v34, 1  ;;  %v525_v42 = vrot.slane %v373_v35, 1 }
  0x32   : > { %852 = vrot.lane.b32.xlu1 %v749_v45, %s6678_s16  ;;  %579 = vrot.lane.b32.xlu0 %v476_v46, %s6679_s17  ;;  %v799_v45 = vsel %vm731_vm0, %v797_v36, %v798_v37  ;;  %v526_v46 = vsel %vm458_vm1, %v524_v41, %v525_v42 }
  0x36   : > { %848 = vrot.lane.b32.xlu1 %v743_v31, %s6678_s16  ;;  %575 = vrot.lane.b32.xlu0 %v470_v27, %s6679_s17  ;;  %v483_v27 = vrot.slane %v6905_v21, 1  ;;  %v756_v31 = vrot.slane %v6905_v21, 2 }
  0x38   : > { %v484_v29 = vsel %vm458_vm1, %v481_v19, %v483_v27  ;;  %v757_v39 = vsel %vm731_vm0, %v754_v18, %v756_v31 }
  0x3a   : > { %854 = vrot.lane.b32.xlu1 %v751_v58, %s6678_s16  ;;  %581 = vrot.lane.b32.xlu0 %v478_v59, %s6679_s17  ;;  %v374_v58 = vld [vmem:[%s6749_s15 + $0x128] sm:$0xff]  ;;  %v353_v59 = vld [vmem:[%s6749_s15 + $0x80] sm:$0xff] }
  0x3b   : > { %v527_v61 = vrot.slane %v374_v58, 1  ;;  %v761_v5 = vrot.slane %v353_v59, 2  ;;  %v800_v11 = vrot.slane %v374_v58, 2 }
  0x3d   : > { %v801_v15 = vsel %vm731_vm0, %v798_v37, %v800_v11 }
  0x3e   : > { %625 = vrot.lane.b32.xlu1 %v519_v63, %s6679_s17  ;;  %583 = vrot.lane.b32.xlu0 %v480_v3, %s6679_s17  ;;  %v488_v63 = vrot.slane %v353_v59, 1  ;;  %v528_v3 = vsel %vm458_vm1, %v525_v42, %v527_v61  ;;  %v6990_v59 = vsel %vm393_vm2, %v378_v48, 0.0 }
  0x40   : > { %v489_v4 = vsel %vm458_vm1, %v486_v49, %v488_v63  ;;  %v357_v49 = vld [vmem:[%s6749_s15 + $0xa0] sm:$0x3] }
  0x42   : > { %856 = vrot.lane.b32.xlu1 %v753_v7, %s6678_s16  ;;  %627 = vrot.lane.b32.xlu0 %v521_v8, %s6679_s17  ;;  %v762_v7 = vsel %vm731_vm0, %v759_v56, %v761_v5  ;;  %v529_v8 = vrot.slane %v375_v6, 1 }
  0x44   : > { %v530_v14 = vsel %vm458_vm1, %v527_v61, %v529_v8  ;;  %v6682_v61 = vmov 1983009808  }
  0x46   : > { %900 = vrot.lane.b32.xlu1 %v794_v16, %s6678_s16  ;;  %898 = vrot.lane.b32.xlu0 %v792_v17, %s6678_s16  ;;  %v802_v16 = vrot.slane %v375_v6, 2  ;;  %v354_v17 = vld [vmem:[%s6749_s15 + $0x88] sm:$0xff]  ;;  %v535_v6 = vrot.slane %v6990_v59, 1 }
  0x47   : > { %v763_v19 = vrot.slane %v354_v17, 2 }
  0x48   : > { %v803_v18 = vsel %vm731_vm0, %v800_v11, %v802_v16 }
  0x4a   : > { %858 = vrot.lane.b32.xlu1 %v755_v24, %s6678_s16  ;;  %585 = vrot.lane.b32.xlu0 %v482_v25, %s6679_s17  ;;  %v490_v24 = vrot.slane %v354_v17, 1  ;;  %v376_v25 = vld [vmem:[%s6749_s15 + $0x138] sm:$0xff] }
  0x4b   : > { %v804_v37 = vrot.slane %v376_v25, 2 }
  0x4e   : > { %629 = vrot.lane.b32.xlu1 %v523_v28, %s6679_s17  ;;  %587 = vrot.lane.b32.xlu0 %v484_v29, %s6679_s17  ;;  %v491_v28 = vsel %vm458_vm1, %v488_v63, %v490_v24  ;;  %v531_v29 = vrot.slane %v376_v25, 1  ;;  %v1176_v63 = vunpack.c.l.s4 %v6682_v61 }
  0x50   : > { %v532_v35 = vsel %vm458_vm1, %v529_v8, %v531_v29  ;;  %v1177_v8 = vunpack.c.0.s8 %v1176_v63 }
  0x52   : > { %902 = vrot.lane.b32.xlu1 %v796_v38, %s6678_s16  ;;  %860 = vrot.lane.b32.xlu0 %v757_v39, %s6678_s16  ;;  %v805_v39 = vsel %vm731_vm0, %v802_v16, %v804_v37 }
  0x56   : > { %906 = vrot.lane.b32.xlu1 %v799_v45, %s6678_s16  ;;  %633 = vrot.lane.b32.xlu0 %v526_v46, %s6679_s17  ;;  %v356_v46 = vld [vmem:[%s6749_s15 + $0x98] sm:$0xff] }
  0x57   : > { %v767_v56 = vrot.slane %v356_v46, 2  ;;  %v494_v58 = vrot.slane %v356_v46, 1 }
  0x5a   : > { %591 = vrot.lane.b32.xlu1 %v487_v50, %s6679_s17  ;;  %631 = vrot.lane.b32.xlu0 %v522_v26, %s6679_s17  ;;  %v355_v26 = vld [vmem:[%s6749_s15 + $0x90] sm:$0xff] }
  0x5b   : > { %v765_v38 = vrot.slane %v355_v26, 2 }
  0x5d   : > { %v766_v41 = vsel %vm731_vm0, %v763_v19, %v765_v38 }
  0x5e   : > { %864 = vrot.lane.b32.xlu1 %v760_v60, %s6678_s16  ;;  %904 = vrot.lane.b32.xlu0 %v795_v30, %s6678_s16  ;;  %v492_v30 = vrot.slane %v355_v26, 1  ;;  %v6993_v60 = vsel %vm393_vm2, %v357_v49, 0.0 }
  0x5f   : > { %v769_v17 = vrot.slane %v6993_v60, 2 }
  0x60   : > { %v493_v36 = vsel %vm458_vm1, %v490_v24, %v492_v30 }
  0x62   : > { %635 = vrot.lane.b32.xlu1 %v528_v3, %s6679_s17  ;;  %593 = vrot.lane.b32.xlu0 %v489_v4, %s6679_s17  ;;  %v1178_v3 = vlaneseq  ;;  %v768_v4 = vsel %vm731_vm0, %v765_v38, %v767_v56 }
  0x64   : > { %v1179_v11 = vshrl.u32 %v1178_v3, 7 }
  0x66   : > { %589 = vrot.lane.b32.xlu1 %v483_v27, %s6679_s17  ;;  %866 = vrot.lane.b32.xlu0 %v762_v7, %s6678_s16  ;;  %v764_v27 = vsel %vm731_vm0, %v761_v5, %v763_v19  ;;  %v495_v5 = vsel %vm458_vm1, %v492_v30, %v494_v58  ;;  %v496_v7 = vrot.slane %v6993_v60, 1  ;;  %v7011_v19 = vld [vmem:[%s6749_s15 + $0x158] sm:$0xff]  ;;  %v7015_v24 = vsub.s32 %v1177_v8, %v1179_v11  ;;  %v7054_v11 = vld [vmem:[%s6749_s15 + $0x160] sm:$0xff] }
  0x67   : > { %v538_v30 = vrot.slane %v7011_v19, 1 }
  0x68   : > { %v497_v16 = vsel %vm458_vm1, %v494_v58, %v496_v7 }
  0x6a   : > { %637 = vrot.lane.b32.xlu1 %v530_v14, %s6679_s17  ;;  %908 = vrot.lane.b32.xlu0 %v801_v15, %s6678_s16  ;;  %v808_v14 = vrot.slane %v6990_v59, 2 }
  0x6e   : > { %910 = vrot.lane.b32.xlu1 %v803_v18, %s6678_s16  ;;  %862 = vrot.lane.b32.xlu0 %v756_v31, %s6678_s16  ;;  %v377_v31 = vld [vmem:[%s6749_s15 + $0x140] sm:$0xff]  ;;  %v379_v18 = vld [vmem:[%s6749_s15 + $0x150] sm:$0xff] }
  0x6f   : > { %v806_v42 = vrot.slane %v377_v31, 2  ;;  %v533_v45 = vrot.slane %v377_v31, 1  ;;  %v810_v26 = vrot.slane %v379_v18, 2 }
  0x71   : > { %v807_v50 = vsel %vm731_vm0, %v804_v37, %v806_v42  ;;  %v534_v55 = vsel %vm458_vm1, %v531_v29, %v533_v45  ;;  %v536_v15 = vsel %vm458_vm1, %v533_v45, %v535_v6  ;;  %v809_v25 = vsel %vm731_vm0, %v806_v42, %v808_v14 }
  0x72   : > { %868 = vrot.lane.b32.xlu1 %v764_v27, %s6678_s16  ;;  %595 = vrot.lane.b32.xlu0 %v491_v28, %s6679_s17  ;;  %v770_v27 = vsel %vm731_vm0, %v767_v56, %v769_v17  ;;  %v811_v28 = vrot.slane %v7011_v19, 2  ;;  %v537_v29 = vrot.slane %v379_v18, 1 }
  0x74   : > { %v812_v48 = vsel %vm731_vm0, %v810_v26, %v811_v28 }
  0x76   : > { %639 = vrot.lane.b32.xlu1 %v532_v35, %s6679_s17  ;;  %597 = vrot.lane.b32.xlu0 %v493_v36, %s6679_s17  ;;  %v358_v35 = vld [vmem:[%s6749_s15 + $0xa8] sm:$0xff]  ;;  %v7027_v36 = vld [vmem:[%s6749_s15 + $0xb0] sm:$0xff] }
  0x77   : > { %v499_v42 = vrot.slane %v7027_v36, 1  ;;  %v771_v63 = vrot.slane %v358_v35, 2  ;;  %v772_v3 = vrot.slane %v7027_v36, 2 }
  0x7a   : > { %912 = vrot.lane.b32.xlu1 %v805_v39, %s6678_s16  ;;  %870 = vrot.lane.b32.xlu0 %v766_v41, %s6678_s16  ;;  %v498_v41 = vrot.slane %v358_v35, 1  ;;  %v773_v35 = vsel %vm731_vm0, %v771_v63, %v772_v3 }
  0x7c   : > { %v500_v61 = vsel %vm458_vm1, %v498_v41, %v499_v42  ;;  %v813_v41 = vrot.slane %v7054_v11, 2 }
  0x7e   : > { %914 = vrot.lane.b32.xlu1 %v807_v50, %s6678_s16  ;;  %641 = vrot.lane.b32.xlu0 %v534_v55, %s6679_s17 }
  0x82   : > { %872 = vrot.lane.b32.xlu1 %v768_v4, %s6678_s16  ;;  %599 = vrot.lane.b32.xlu0 %v495_v5, %s6679_s17 }
  0x86   : > { %643 = vrot.lane.b32.xlu1 %v536_v15, %s6679_s17  ;;  %601 = vrot.lane.b32.xlu0 %v497_v16, %s6679_s17 }
  0x88   : > { %v837_v37 = vpop.permute.xlu1 %836  ;;  %v564_v38 = vpop.permute.xlu0 %563 }
  0x89   : > { %v1005_v31 = vsel %vm1004_vm5, %v6752_v0, %v564_v38  ;;  %v539_v0 = vsel %vm458_vm1, %v537_v29, %v538_v30  ;;  %v7061_v29 = vld [vmem:[%s6749_s15 + $0x168] sm:$0xff] }
  0x8a   : > { %v1062_v39 = vsel %vm1061_vm6, %v1005_v31, %v837_v37  ;;  %916 = vrot.lane.b32.xlu1 %v809_v25, %s6678_s16  ;;  %874 = vrot.lane.b32.xlu0 %v770_v27, %s6678_s16  ;;  %v7058_v27 = vld [vmem:[%s6749_s15 + $0xb8] sm:$0xff]  ;;  %v540_v37 = vrot.slane %v7054_v11, 1 }
  0x8b   : > { %v1174_v45 = vcombine.high %v1062_v39, %v1062_v39  ;;  %v1181_v46 = vrot.slane %v1062_v39, %v7015_v24 }
  0x8c   : > { %v839_v49 = vpop.permute.xlu1 %838  ;;  %v566_v50 = vpop.permute.xlu0 %565 }
  0x8d   : > { %v1188_v55 = vrot.slane %v1174_v45, %v7015_v24  ;;  %v1006_v56 = vsel %vm1004_vm5, %v6755_v1, %v566_v50  ;;  %v1189_v4 = vcombine.high %v1181_v46, %v1181_v46  ;;  %v542_v50 = vrot.slane %v7061_v29, 1 }
  0x8e   : > { %v1063_v58 = vsel %vm1061_vm6, %v1006_v56, %v839_v49  ;;  %920 = vrot.lane.b32.xlu1 %v812_v48, %s6678_s16  ;;  %647 = vrot.lane.b32.xlu0 %v539_v0, %s6679_s17  ;;  %v501_v49 = vrot.slane %v7058_v27, 1 }
  0x8f   : > { %v1190_v5 = vcombine.high %v1188_v55, %v1188_v55  ;;  %v1191_v8 = vcombine.high %v1063_v58, %v1063_v58  ;;  %v1198_v1 = vrot.slane %v1063_v58, %v7015_v24  ;;  %v2046_v38 = vcombine.low %v1181_v46, %v1189_v4 }
  0x90   : > { %v570_v15 = vpop.permute.xlu1 %569  ;;  %v568_v16 = vpop.permute.xlu0 %567 }
  0x91   : > { %v2047_v18 = vcombine.low %v1188_v55, %v1190_v5  ;;  %v1205_v25 = vrot.slane %v1191_v8, %v7015_v24  ;;  %v1206_v26 = vcombine.high %v1198_v1, %v1198_v1  ;;  %v1008_v45 = vsel %vm1004_vm5, %v6767_v9, %v570_v15 }
  0x92   : > { %605 = vrot.lane.b32.xlu1 %v500_v61, %s6679_s17  ;;  %645 = vrot.lane.b32.xlu0 %v535_v6, %s6679_s17  ;;  %v1007_v48 = vsel %vm1004_vm5, %v6758_v2, %v568_v16  ;;  %v2054_v4 = vrot.slane %v2046_v38, %v7015_v24  ;;  %v7096_v38 = vld [vmem:[%s6749_s15 + $0xc0] sm:$0xff] }
  0x93   : > { %v1207_v31 = vcombine.high %v1205_v25, %v1205_v25  ;;  %v2063_v39 = vcombine.low %v1198_v1, %v1206_v26  ;;  %v2061_v55 = vrot.slane %v2047_v18, %v7015_v24  ;;  %v541_v1 = vsel %vm458_vm1, %v538_v30, %v540_v37 }
  0x94   : > { %v843_v0 = vpop.permute.xlu1 %842  ;;  %v841_v6 = vpop.permute.xlu0 %840 }
  0x95   : > { %v2064_v56 = vcombine.low %v1205_v25, %v1207_v31  ;;  %v1065_v46 = vsel %vm1061_vm6, %v1008_v45, %v843_v0  ;;  %v1064_v58 = vsel %vm1061_vm6, %v1007_v48, %v841_v6  ;;  %v2071_v5 = vrot.slane %v2063_v39, %v7015_v24 }
  0x96   : > { %v1225_v61 = vcombine.high %v1065_v46, %v1065_v46  ;;  %v1232_v9 = vrot.slane %v1065_v46, %v7015_v24  ;;  %v1208_v63 = vcombine.high %v1064_v58, %v1064_v58  ;;  %v1215_v2 = vrot.slane %v1064_v58, %v7015_v24  ;;  %878 = vrot.lane.b32.xlu1 %v773_v35, %s6678_s16 }
  0x97   : > { %v2078_v8 = vrot.slane %v2064_v56, %v7015_v24  ;;  %918 = vrot.lane.b32.xlu0 %v808_v14, %s6678_s16  ;;  %v2062_v31 = vcombine.low %v2054_v4, %v2061_v55  ;;  %v815_v14 = vrot.slane %v7061_v29, 2  ;;  %v774_v45 = vrot.slane %v7058_v27, 2 }
  0x98   : > { %v1239_v15 = vrot.slane %v1225_v61, %v7015_v24  ;;  %v1240_v16 = vcombine.high %v1232_v9, %v1232_v9  ;;  %v1222_v18 = vrot.slane %v1208_v63, %v7015_v24  ;;  %v1223_v25 = vcombine.high %v1215_v2, %v1215_v2  ;;  %v574_v26 = vpop.permute.xlu1 %573  ;;  %v572_v35 = vpop.permute.xlu0 %571 }
  0x99   : > { %v2079_v39 = vcombine.low %v2071_v5, %v2078_v8  ;;  %v814_v55 = vsel %vm731_vm0, %v811_v28, %v813_v41  ;;  %v502_v46 = vsel %vm458_vm1, %v499_v42, %v501_v49  ;;  %v776_v58 = vrot.slane %v7096_v38, 2 }
  0x9a   : > { %v1241_v48 = vcombine.high %v1239_v15, %v1239_v15  ;;  %v2097_v0 = vcombine.low %v1232_v9, %v1240_v16  ;;  %v1224_v6 = vcombine.high %v1222_v18, %v1222_v18  ;;  %v2080_v30 = vcombine.low %v1215_v2, %v1223_v25  ;;  %603 = vrot.lane.b32.xlu1 %v496_v7, %s6679_s17 }
  0x9b   : > { %649 = vrot.lane.b32.xlu0 %v541_v1, %s6679_s17  ;;  %v2946_v56 = vpack.c.bf16 %v2079_v39, %v2062_v31  ;;  %v1010_v7 = vsel %vm1004_vm5, %v6788_v22, %v574_v26  ;;  %v1009_v63 = vsel %vm1004_vm5, %v6770_v10, %v572_v35  ;;  %v503_v25 = vrot.slane %v7096_v38, 1 }
  0x9c   : > { %v2098_v61 = vcombine.low %v1239_v15, %v1241_v48  ;;  %v2081_v9 = vcombine.low %v1222_v18, %v1224_v6  ;;  %v847_v2 = vpop.permute.xlu1 %846  ;;  %v845_v19 = vpop.permute.xlu0 %844  ;;  %v2105_v28 = vrot.slane %v2097_v0, %v7015_v24  ;;  %v2088_v4 = vrot.slane %v2080_v30, %v7015_v24 }
  0x9d   : > { %v1067_v5 = vsel %vm1061_vm6, %v1010_v7, %v847_v2  ;;  %v1066_v42 = vsel %vm1061_vm6, %v1009_v63, %v845_v19  ;;  %6474 = vmatmul.mubr.msk.bf16.vlgmr.msra.gmra.mxu0 %vm2983_vm7, %v2946_v56  ;;  %v543_v18 = vsel %vm458_vm1, %v540_v37, %v542_v50  ;;  %v816_v56 = vsel %vm731_vm0, %v813_v41, %v815_v14  ;;  %v7155_v63 = vld [vmem:[%s6749_s15 + $0x170] sm:$0xff]  ;;  %v7160_v41 = vld [vmem:[%s6749_s15 + $0x178] sm:$0xff] }
  0x9e   : > { %v2112_v8 = vrot.slane %v2098_v61, %v7015_v24  ;;  %v2095_v1 = vrot.slane %v2081_v9, %v7015_v24  ;;  %v1259_v22 = vcombine.high %v1067_v5, %v1067_v5  ;;  %v1266_v15 = vrot.slane %v1067_v5, %v7015_v24  ;;  %922 = vrot.lane.b32.xlu1 %v814_v55, %s6678_s16  ;;  %v7148_v55 = vld [vmem:[%s6749_s15 + $0xc8] sm:$0xff] }
  0x9f   : > { %v1242_v10 = vcombine.high %v1066_v42, %v1066_v42  ;;  %v1249_v16 = vrot.slane %v1066_v42, %v7015_v24  ;;  %607 = vrot.lane.b32.xlu0 %v502_v46, %s6679_s17  ;;  %6477 = vmatprep.mubr.msk.bf16.mxu0 %vm6681_vm4, %v8652_v54  ;;  %v775_v42 = vsel %vm731_vm0, %v772_v3, %v774_v45 }
  0xa0   : > { %v2113_v26 = vcombine.low %v2105_v28, %v2112_v8  ;;  %v2096_v35 = vcombine.low %v2088_v4, %v2095_v1  ;;  %v1273_v31 = vrot.slane %v1259_v22, %v7015_v24  ;;  %v1274_v39 = vcombine.high %v1266_v15, %v1266_v15  ;;  %v851_v48 = vpop.permute.xlu1 %850  ;;  %v578_v0 = vpop.permute.xlu0 %577 }
  0xa1   : > { %v1256_v6 = vrot.slane %v1242_v10, %v7015_v24  ;;  %v1257_v30 = vcombine.high %v1249_v16, %v1249_v16  ;;  %v1012_v37 = vsel %vm1004_vm5, %v6806_v32, %v578_v0  ;;  %v505_v8 = vrot.slane %v7148_v55, 1 }
  0xa2   : > { %v1275_v46 = vcombine.high %v1273_v31, %v1273_v31  ;;  %v2131_v61 = vcombine.low %v1266_v15, %v1274_v39  ;;  %v1069_v9 = vsel %vm1061_vm6, %v1012_v37, %v851_v48  ;;  %876 = vrot.lane.b32.xlu1 %v769_v17, %s6678_s16  ;;  %v2947_v7 = vpack.c.bf16 %v2113_v26, %v2096_v35 }
  0xa3   : > { %v1258_v32 = vcombine.high %v1256_v6, %v1256_v6  ;;  %v2114_v2 = vcombine.low %v1249_v16, %v1257_v30  ;;  %v1283_v19 = vcombine.high %v1069_v9, %v1069_v9  ;;  %v1290_v11 = vrot.slane %v1069_v9, %v7015_v24  ;;  %651 = vrot.lane.b32.xlu0 %v543_v18, %s6679_s17 }
  0xa4   : > { %v2132_v28 = vcombine.low %v1273_v31, %v1275_v46  ;;  %v853_v4 = vpop.permute.xlu1 %852  ;;  %v580_v5 = vpop.permute.xlu0 %579  ;;  %v777_v17 = vsel %vm731_vm0, %v774_v45, %v776_v58  ;;  %v504_v15 = vsel %vm458_vm1, %v501_v49, %v503_v25  ;;  %v544_v10 = vrot.slane %v7155_v63, 1 }
  0xa5   : > { %v2115_v1 = vcombine.low %v1256_v6, %v1258_v32  ;;  %v1297_v22 = vrot.slane %v1283_v19, %v7015_v24  ;;  %6478 = vmatmul.mubr.msk.bf16.gmra.mxu0 %vm2983_vm7, %v2947_v7  ;;  %v2139_v36 = vrot.slane %v2131_v61, %v7015_v24  ;;  %v1013_v45 = vsel %vm1004_vm5, %v6809_v33, %v580_v5  ;;  %v364_v32 = vld [vmem:[%s6749_s15 + $0xd8] sm:$0x3] }
  0xa6   : > { %v2146_v3 = vrot.slane %v2132_v28, %v7015_v24  ;;  %924 = vrot.lane.b32.xlu1 %v816_v56, %s6678_s16  ;;  %6481 = vmatprep.mubr.msk.bf16.mxu0 %vm6681_vm4, %v8652_v54  ;;  %v546_v16 = vrot.slane %v7160_v41, 1  ;;  %v2122_v27 = vrot.slane %v2114_v2, %v7015_v24  ;;  %v1298_v18 = vcombine.high %v1290_v11, %v1290_v11  ;;  %v385_v2 = vld [vmem:[%s6749_s15 + $0x180] sm:$0x3]  ;;  %v363_v28 = vld [vmem:[%s6749_s15 + $0xd0] sm:$0xff] }
  0xa7   : > { %v2129_v49 = vrot.slane %v2115_v1, %v7015_v24  ;;  %v1070_v26 = vsel %vm1061_vm6, %v1013_v45, %v853_v4  ;;  %880 = vrot.lane.b32.xlu0 %v775_v42, %s6678_s16  ;;  %v1299_v33 = vcombine.high %v1297_v22, %v1297_v22  ;;  %v506_v37 = vsel %vm458_vm1, %v503_v25, %v505_v8 }
  0xa8   : > { %v2147_v35 = vcombine.low %v2139_v36, %v2146_v3  ;;  %v1300_v31 = vcombine.high %v1070_v26, %v1070_v26  ;;  %v1307_v39 = vrot.slane %v1070_v26, %v7015_v24  ;;  %v849_v48 = vpop.permute.xlu1 %848  ;;  %v576_v0 = vpop.permute.xlu0 %575  ;;  %v817_v56 = vrot.slane %v7155_v63, 2 }
  0xa9   : > { %v2130_v6 = vcombine.low %v2122_v27, %v2129_v49  ;;  %v1011_v30 = vsel %vm1004_vm5, %v6791_v23, %v576_v0  ;;  %v819_v7 = vrot.slane %v7160_v41, 2  ;;  %v545_v25 = vsel %vm458_vm1, %v542_v50, %v544_v10 }
  0xaa   : > { %v7195_v46 = vrot.slane %v1300_v31, %v7015_v24  ;;  %v1315_v61 = vcombine.high %v1307_v39, %v1307_v39  ;;  %v1068_v9 = vsel %vm1061_vm6, %v1011_v30, %v849_v48  ;;  %882 = vrot.lane.b32.xlu1 %v777_v17, %s6678_s16  ;;  %v778_v63 = vrot.slane %v7148_v55, 2 }
  0xab   : > { %v1282_v23 = vrot.slane %v1068_v9, %v7015_v24  ;;  %609 = vrot.lane.b32.xlu0 %v504_v15, %s6679_s17  ;;  %v2948_v19 = vpack.c.bf16 %v2147_v35, %v2130_v6  ;;  %v2149_v4 = vcombine.low %v1298_v18, %v1297_v22  ;;  %v2165_v5 = vcombine.low %v1299_v33, %v1307_v39 }
  0xac   : > { %v2166_v42 = vcombine.low %v1315_v61, %v7195_v46  ;;  %v855_v17 = vpop.permute.xlu1 %854  ;;  %v582_v1 = vpop.permute.xlu0 %581  ;;  %v547_v36 = vsel %vm458_vm1, %v544_v10, %v546_v16  ;;  %v7217_v50 = vsel %vm393_vm2, %v364_v32, 0.0  ;;  %v7220_v22 = vsel %vm393_vm2, %v385_v2, 0.0 }
  0xad   : > { %v2148_v3 = vcombine.low %v1282_v23, %v1290_v11  ;;  %v1014_v15 = vsel %vm1004_vm5, %v6820_v40, %v582_v1  ;;  %6482 = vmatmul.mubr.msk.bf16.gmra.mxu0 %vm2983_vm7, %v2948_v19  ;;  %v818_v11 = vsel %vm731_vm0, %v815_v14, %v817_v56  ;;  %v780_v40 = vrot.slane %v363_v28, 2  ;;  %v7280_v1 = vld [vmem:[%s6749_s15 + $0x190] sm:$0xff] }
  0xae   : > { %v2180_v45 = vrot.slane %v2166_v42, %v7015_v24  ;;  %v1071_v27 = vsel %vm1061_vm6, %v1014_v15, %v855_v17  ;;  %611 = vrot.lane.b32.xlu1 %v506_v37, %s6679_s17  ;;  %6485 = vmatprep.mubr.msk.bf16.mxu0 %vm6681_vm4, %v8652_v54  ;;  %v507_v26 = vrot.slane %v363_v28, 1  ;;  %v2163_v35 = vrot.slane %v2149_v4, %v7015_v24  ;;  %v7269_v42 = vld [vmem:[%s6749_s15 + $0x188] sm:$0xff] }
  0xaf   : > { %v2156_v10 = vrot.slane %v2148_v3, %v7015_v24  ;;  %v1317_v49 = vcombine.high %v1071_v27, %v1071_v27  ;;  %v1324_v18 = vrot.slane %v1071_v27, %v7015_v24  ;;  %653 = vrot.lane.b32.xlu0 %v545_v25, %s6679_s17  ;;  %v2173_v33 = vrot.slane %v2165_v5, %v7015_v24 }
  0xb0   : > { %v626_v31 = vpop.permute.xlu1 %625  ;;  %v584_v29 = vpop.permute.xlu0 %583  ;;  %v509_v14 = vrot.slane %v7217_v50, 1  ;;  %v548_v39 = vrot.slane %v7220_v22, 1  ;;  %v820_v37 = vsel %vm731_vm0, %v817_v56, %v819_v7  ;;  %v779_v61 = vsel %vm731_vm0, %v776_v58, %v778_v63 }
  0xb1   : > { %v1331_v48 = vrot.slane %v1317_v49, %v7015_v24  ;;  %v1332_v0 = vcombine.high %v1324_v18, %v1324_v18  ;;  %v2164_v6 = vcombine.low %v2156_v10, %v2163_v35  ;;  %v2181_v30 = vcombine.low %v2173_v33, %v2180_v45  ;;  %v7288_v10 = vld [vmem:[%s6749_s15 + $0xe0] sm:$0xff] }
  0xb2   : > { %655 = vrot.lane.b32.xlu1 %v547_v36, %s6679_s17  ;;  %v781_v9 = vsel %vm731_vm0, %v778_v63, %v780_v40  ;;  %v508_v32 = vsel %vm458_vm1, %v505_v8, %v507_v26  ;;  %v782_v2 = vrot.slane %v7217_v50, 2  ;;  %v1015_v23 = vsel %vm1004_vm5, %v6833_v47, %v584_v29 }
  0xb3   : > { %926 = vrot.lane.b32.xlu0 %v818_v11, %s6678_s16  ;;  %v2949_v25 = vpack.c.bf16 %v2181_v30, %v2164_v6  ;;  %v510_v38 = vsel %vm458_vm1, %v507_v26, %v509_v14  ;;  %v549_v58 = vsel %vm458_vm1, %v546_v16, %v548_v39  ;;  %v1316_v55 = vcombine.high %v7195_v46, %v7195_v46 }
  0xb4   : > { %v857_v19 = vpop.permute.xlu1 %856  ;;  %v628_v56 = vpop.permute.xlu0 %627  ;;  %v2183_v8 = vcombine.low %v1332_v0, %v1331_v48  ;;  %v821_v63 = vrot.slane %v7220_v22, 2  ;;  %v1333_v28 = vcombine.high %v1331_v48, %v1331_v48  ;;  %v1036_v46 = vsel %vm1004_vm5, %v6843_v51, %v626_v31  ;;  %v392_v51 = vld [vmem:[%s6749_s15 + $0x1b8] sm:$0x3] }
  0xb5   : > { %v1072_v47 = vsel %vm1061_vm6, %v1015_v23, %v857_v19  ;;  %6486 = vmatmul.mubr.msk.bf16.gmra.mxu0 %vm2983_vm7, %v2949_v25  ;;  %v2182_v16 = vcombine.low %v1316_v55, %v1324_v18  ;;  %v783_v17 = vsel %vm731_vm0, %v780_v40, %v782_v2  ;;  %v1037_v45 = vsel %vm1004_vm5, %v6846_v52, %v628_v56 }
  0xb6   : > { %v1334_v4 = vcombine.high %v1072_v47, %v1072_v47  ;;  %v1341_v5 = vrot.slane %v1072_v47, %v7015_v24  ;;  %928 = vrot.lane.b32.xlu1 %v820_v37, %s6678_s16  ;;  %6489 = vmatprep.mubr.msk.bf16.mxu0 %vm6681_vm4, %v8652_v54  ;;  %v822_v40 = vsel %vm731_vm0, %v819_v7, %v821_v63  ;;  %v550_v26 = vrot.slane %v7269_v42, 1 }
  0xb7   : > { %884 = vrot.lane.b32.xlu0 %v779_v61, %s6678_s16  ;;  %v2197_v35 = vrot.slane %v2183_v8, %v7015_v24  ;;  %v551_v31 = vrot.slane %v7280_v1, 1  ;;  %v511_v41 = vrot.slane %v7288_v10, 1  ;;  %v2190_v7 = vrot.slane %v2182_v16, %v7015_v24 }
  0xb8   : > { %v7283_v36 = vrot.slane %v1334_v4, %v7015_v24  ;;  %v1349_v3 = vcombine.high %v1341_v5, %v1341_v5  ;;  %v2199_v15 = vcombine.low %v1333_v28, %v1341_v5  ;;  %v901_v27 = vpop.permute.xlu1 %900  ;;  %v899_v11 = vpop.permute.xlu0 %898 }
  0xb9   : > { %v1094_v49 = vsel %vm1061_vm6, %v1037_v45, %v901_v27  ;;  %v1093_v18 = vsel %vm1061_vm6, %v1036_v46, %v899_v11  ;;  %v2198_v28 = vcombine.low %v2190_v7, %v2197_v35 }
  0xba   : > { %v2200_v52 = vcombine.low %v1349_v3, %v7283_v36  ;;  %v1678_v33 = vcombine.high %v1094_v49, %v1094_v49  ;;  %886 = vrot.lane.b32.xlu1 %v781_v9, %s6678_s16  ;;  %v1685_v29 = vrot.slane %v1094_v49, %v7015_v24  ;;  %v1661_v48 = vcombine.high %v1093_v18, %v1093_v18 }
  0xbb   : > { %v1668_v0 = vrot.slane %v1093_v18, %v7015_v24  ;;  %613 = vrot.lane.b32.xlu0 %v508_v32, %s6679_s17  ;;  %v2207_v6 = vrot.slane %v2199_v15, %v7015_v24  ;;  %v7314_v32 = vld [vmem:[%s6749_s15 + $0xe8] sm:$0xff] }
  0xbc   : > { %v2214_v30 = vrot.slane %v2200_v52, %v7015_v24  ;;  %v1692_v37 = vrot.slane %v1678_v33, %v7015_v24  ;;  %v859_v61 = vpop.permute.xlu1 %858  ;;  %v586_v9 = vpop.permute.xlu0 %585  ;;  %v1693_v23 = vcombine.high %v1685_v29, %v1685_v29  ;;  %v1675_v19 = vrot.slane %v1661_v48, %v7015_v24 }
  0xbd   : > { %v1676_v56 = vcombine.high %v1668_v0, %v1668_v0  ;;  %v1016_v25 = vsel %vm1004_vm5, %v6849_v53, %v586_v9  ;;  %v512_v11 = vrot.slane %v7314_v32, 1 }
  0xbe   : > { %v2215_v55 = vcombine.low %v2207_v6, %v2214_v30  ;;  %v1694_v8 = vcombine.high %v1692_v37, %v1692_v37  ;;  %v1073_v47 = vsel %vm1061_vm6, %v1016_v25, %v859_v61  ;;  %615 = vrot.lane.b32.xlu1 %v510_v38, %s6679_s17  ;;  %v2539_v4 = vcombine.low %v1685_v29, %v1693_v23 }
  0xbf   : > { %v1677_v5 = vcombine.high %v1675_v19, %v1675_v19  ;;  %v2522_v16 = vcombine.low %v1668_v0, %v1676_v56  ;;  %v1351_v46 = vcombine.high %v1073_v47, %v1073_v47  ;;  %657 = vrot.lane.b32.xlu0 %v549_v58, %s6679_s17  ;;  %v1358_v15 = vrot.slane %v1073_v47, %v7015_v24 }
  0xc0   : > { %v2540_v3 = vcombine.low %v1692_v37, %v1694_v8  ;;  %v630_v45 = vpop.permute.xlu1 %629  ;;  %v588_v53 = vpop.permute.xlu0 %587  ;;  %v2950_v27 = vpack.c.bf16 %v2215_v55, %v2198_v28  ;;  %v2547_v18 = vrot.slane %v2539_v4, %v7015_v24  ;;  %v552_v58 = vsel %vm458_vm1, %v550_v26, %v551_v31 }
  0xc1   : > { %v2523_v49 = vcombine.low %v1675_v19, %v1677_v5  ;;  %v2530_v35 = vrot.slane %v2522_v16, %v7015_v24  ;;  %v1365_v33 = vrot.slane %v1351_v46, %v7015_v24  ;;  %v1366_v29 = vcombine.high %v1358_v15, %v1358_v15  ;;  %v7362_v46 = vld [vmem:[%s6749_s15 + $0x198] sm:$0xff] }
  0xc2   : > { %v2554_v38 = vrot.slane %v2540_v3, %v7015_v24  ;;  %888 = vrot.lane.b32.xlu1 %v783_v17, %s6678_s16  ;;  %6490 = vmatmul.mubr.msk.bf16.gmra.mxu0 %vm2983_vm7, %v2950_v27  ;;  %v1038_v0 = vsel %vm1004_vm5, %v6867_v62, %v630_v45  ;;  %v1017_v17 = vsel %vm1004_vm5, %v6889_v13, %v588_v53  ;;  %v784_v61 = vrot.slane %v7288_v10, 2 }
  0xc3   : > { %v2537_v52 = vrot.slane %v2523_v49, %v7015_v24  ;;  %930 = vrot.lane.b32.xlu0 %v822_v40, %s6678_s16  ;;  %v513_v26 = vsel %vm458_vm1, %v511_v41, %v512_v11  ;;  %6493 = vmatprep.mubr.msk.bf16.mxu0 %vm6681_vm4, %v8652_v54  ;;  %v1350_v62 = vcombine.high %v7283_v36, %v7283_v36  ;;  %v785_v23 = vrot.slane %v7314_v32, 2 }
  0xc4   : > { %v2555_v48 = vcombine.low %v2547_v18, %v2554_v38  ;;  %v903_v7 = vpop.permute.xlu1 %902  ;;  %v861_v6 = vpop.permute.xlu0 %860  ;;  %v2217_v41 = vcombine.low %v1366_v29, %v1365_v33  ;;  %v1367_v19 = vcombine.high %v1365_v33, %v1365_v33  ;;  %v823_v47 = vrot.slane %v7269_v42, 2 }
  0xc5   : > { %v2538_v30 = vcombine.low %v2530_v35, %v2537_v52  ;;  %v1095_v40 = vsel %vm1061_vm6, %v1038_v0, %v903_v7  ;;  %v1074_v37 = vsel %vm1061_vm6, %v1017_v17, %v861_v6  ;;  %v824_v28 = vrot.slane %v7280_v1, 2 }
  0xc6   : > { %v1695_v13 = vcombine.high %v1095_v40, %v1095_v40  ;;  %v1368_v9 = vcombine.high %v1074_v37, %v1074_v37  ;;  %661 = vrot.lane.b32.xlu1 %v552_v58, %s6679_s17  ;;  %v1375_v56 = vrot.slane %v1074_v37, %v7015_v24  ;;  %v2216_v4 = vcombine.low %v1350_v62, %v1358_v15  ;;  %v367_v62 = vld [vmem:[%s6749_s15 + $0xf0] sm:$0xff] }
  0xc7   : > { %659 = vrot.lane.b32.xlu0 %v548_v39, %s6679_s17  ;;  %v2960_v25 = vpack.c.bf16 %v2555_v48, %v2538_v30  ;;  %v1702_v3 = vrot.slane %v1095_v40, %v7015_v24  ;;  %v786_v42 = vsel %vm731_vm0, %v784_v61, %v785_v23  ;;  %v2231_v15 = vrot.slane %v2217_v41, %v7015_v24  ;;  %v7397_v41 = vld [vmem:[%s6749_s15 + $0x1a0] sm:$0xff] }
  0xc8   : > { %v1709_v10 = vrot.slane %v1695_v13, %v7015_v24  ;;  %v7354_v36 = vrot.slane %v1368_v9, %v7015_v24  ;;  %v907_v55 = vpop.permute.xlu1 %906  ;;  %v634_v8 = vpop.permute.xlu0 %633  ;;  %v1383_v5 = vcombine.high %v1375_v56, %v1375_v56  ;;  %v2233_v16 = vcombine.low %v1367_v19, %v1375_v56 }
  0xc9   : > { %6530 = vmatmul.mubr.msk.bf16.vlgmr.msra.gmra.mxu1 %vm2983_vm7, %v2960_v25  ;;  %v1040_v39 = vsel %vm1004_vm5, %v6920_v34, %v634_v8  ;;  %v553_v35 = vrot.slane %v7362_v46, 1  ;;  %v2224_v58 = vrot.slane %v2216_v4, %v7015_v24  ;;  %v1710_v29 = vcombine.high %v1702_v3, %v1702_v3 }
  0xca   : > { %v1097_v45 = vsel %vm1061_vm6, %v1040_v39, %v907_v55  ;;  %932 = vrot.lane.b32.xlu1 %v821_v63, %s6678_s16  ;;  %6533 = vmatprep.mubr.msk.bf16.mxu1 %vm6681_vm4, %v8652_v54  ;;  %v2234_v34 = vcombine.low %v1383_v5, %v7354_v36  ;;  %v1711_v49 = vcombine.high %v1709_v10, %v1709_v10  ;;  %v826_v61 = vrot.slane %v7362_v46, 2  ;;  %v390_v46 = vld [vmem:[%s6749_s15 + $0x1a8] sm:$0xff] }
  0xcb   : > { %v1719_v53 = vcombine.high %v1097_v45, %v1097_v45  ;;  %v1726_v27 = vrot.slane %v1097_v45, %v7015_v24  ;;  %619 = vrot.lane.b32.xlu0 %v513_v26, %s6679_s17  ;;  %v825_v63 = vsel %vm731_vm0, %v823_v47, %v824_v28  ;;  %v2241_v52 = vrot.slane %v2233_v16, %v7015_v24 }
  0xcc   : > { %v592_v18 = vpop.permute.xlu1 %591  ;;  %v632_v38 = vpop.permute.xlu0 %631  ;;  %v2248_v33 = vrot.slane %v2234_v34, %v7015_v24  ;;  %v2232_v7 = vcombine.low %v2224_v58, %v2231_v15  ;;  %v2557_v6 = vcombine.low %v1709_v10, %v1711_v49  ;;  %v554_v37 = vsel %vm458_vm1, %v551_v31, %v553_v35 }
  0xcd   : > { %v7384_v48 = vrot.slane %v1719_v53, %v7015_v24  ;;  %v1734_v0 = vcombine.high %v1726_v27, %v1726_v27  ;;  %v1039_v26 = vsel %vm1004_vm5, %v6902_v20, %v632_v38  ;;  %v2556_v19 = vcombine.low %v1702_v3, %v1710_v29 }
  0xce   : > { %892 = vrot.lane.b32.xlu1 %v786_v42, %s6678_s16  ;;  %v2249_v17 = vcombine.low %v2241_v52, %v2248_v33  ;;  %v1019_v20 = vsel %vm1004_vm5, %v6930_v43, %v592_v18  ;;  %v514_v31 = vrot.slane %v367_v62, 1  ;;  %v2571_v10 = vrot.slane %v2557_v6, %v7015_v24 }
  0xcf   : > { %934 = vrot.lane.b32.xlu0 %v825_v63, %s6678_s16  ;;  %v2574_v56 = vcombine.low %v1734_v0, %v7384_v48  ;;  %v827_v43 = vsel %vm731_vm0, %v824_v28, %v826_v61  ;;  %v555_v4 = vrot.slane %v7397_v41, 1  ;;  %v828_v3 = vrot.slane %v7397_v41, 2  ;;  %v6639_v0 = vld [vmem:[%s6749_s15 + $0x120] sm:$0xff] }
  0xd0   : > { %v865_v30 = vpop.permute.xlu1 %864  ;;  %v905_v40 = vpop.permute.xlu0 %904  ;;  %v2951_v9 = vpack.c.bf16 %v2249_v17, %v2232_v7  ;;  %v515_v28 = vsel %vm458_vm1, %v512_v11, %v514_v31  ;;  %v787_v18 = vrot.slane %v367_v62, 2  ;;  %v557_v38 = vrot.slane %v390_v46, 1 }
  0xd1   : > { %v1096_v13 = vsel %vm1061_vm6, %v1039_v26, %v905_v40  ;;  %v1076_v1 = vsel %vm1061_vm6, %v1019_v20, %v865_v30  ;;  %v2588_v16 = vrot.slane %v2574_v56, %v7015_v24  ;;  %v830_v52 = vrot.slane %v390_v46, 2  ;;  %v6640_v20 = vld [vmem:[%s6749_s15 + $0x128] sm:$0xff] }
  0xd2   : > { %v1718_v25 = vrot.slane %v1096_v13, %v7015_v24  ;;  %617 = vrot.lane.b32.xlu1 %v509_v14, %s6679_s17  ;;  %6494 = vmatmul.mubr.msk.bf16.gmra.mxu0 %vm2983_vm7, %v2951_v9  ;;  %v2564_v14 = vrot.slane %v2556_v19, %v7015_v24  ;;  %v1392_v5 = vcombine.high %v1076_v1, %v1076_v1 }
  0xd3   : > { %663 = vrot.lane.b32.xlu0 %v554_v37, %s6679_s17  ;;  %6497 = vmatprep.mubr.msk.bf16.mxu0 %vm6681_vm4, %v8652_v54  ;;  %v1399_v11 = vrot.slane %v1076_v1, %v7015_v24  ;;  %v517_v30 = vsel %vm458_vm1, %v514_v31, %v516_v57  ;;  %v790_v37 = vsel %vm731_vm0, %v787_v18, %v789_v12 }
  0xd4   : > { %v2573_v55 = vcombine.low %v1718_v25, %v1726_v27  ;;  %v636_v8 = vpop.permute.xlu1 %635  ;;  %v594_v47 = vpop.permute.xlu0 %593  ;;  %v2572_v45 = vcombine.low %v2564_v14, %v2571_v10  ;;  %v556_v27 = vsel %vm458_vm1, %v553_v35, %v555_v4  ;;  %v1406_v63 = vrot.slane %v1392_v5, %v7015_v24 }
  0xd5   : > { %v1020_v15 = vsel %vm1004_vm5, %v6933_v44, %v594_v47  ;;  %v829_v35 = vsel %vm731_vm0, %v826_v61, %v828_v3  ;;  %v1041_v17 = vsel %vm1004_vm5, %v6639_v0, %v636_v8  ;;  %v788_v61 = vsel %vm731_vm0, %v785_v23, %v787_v18 }
  0xd6   : > { %v2581_v39 = vrot.slane %v2573_v55, %v7015_v24  ;;  %890 = vrot.lane.b32.xlu1 %v782_v2, %s6678_s16  ;;  %v7430_v2 = vld [vmem:[%s6749_s15 + $0x1b0] sm:$0xff]  ;;  %v558_v62 = vsel %vm458_vm1, %v555_v4, %v557_v38  ;;  %v1407_v13 = vcombine.high %v1399_v11, %v1399_v11  ;;  %v1408_v9 = vcombine.high %v1406_v63, %v1406_v63 }
  0xd7   : > { %936 = vrot.lane.b32.xlu0 %v827_v43, %s6678_s16  ;;  %v559_v33 = vrot.slane %v7430_v2, 1  ;;  %v832_v29 = vrot.slane %v7430_v2, 2  ;;  %v831_v32 = vsel %vm731_vm0, %v828_v3, %v830_v52  ;;  %v1384_v8 = vcombine.high %v7354_v36, %v7354_v36 }
  0xd8   : > { %v2589_v42 = vcombine.low %v2581_v39, %v2588_v16  ;;  %v590_v34 = vpop.permute.xlu1 %589  ;;  %v867_v53 = vpop.permute.xlu0 %866  ;;  %v7481_v43 = vsel %vm393_vm2, %v392_v51, 0.0  ;;  %v2251_v4 = vcombine.low %v1399_v11, %v1407_v13  ;;  %v2267_v14 = vcombine.low %v1406_v63, %v1408_v9 }
  0xd9   : > { %v7433_v49 = vsel %vm1061_vm6, %v1020_v15, %v867_v53  ;;  %v1018_v12 = vsel %vm1004_vm5, %v6905_v21, %v590_v34  ;;  %v560_v23 = vsel %vm458_vm1, %v557_v38, %v559_v33  ;;  %v833_v19 = vsel %vm731_vm0, %v830_v52, %v832_v29 }
  0xda   : > { %v1416_v58 = vrot.slane %v7433_v49, %v7015_v24  ;;  %621 = vrot.lane.b32.xlu1 %v515_v28, %s6679_s17  ;;  %v2961_v44 = vpack.c.bf16 %v2589_v42, %v2572_v45  ;;  %v1735_v5 = vcombine.high %v7384_v48, %v7384_v48  ;;  %v1409_v3 = vcombine.high %v7433_v49, %v7433_v49 }
  0xdb   : > { %665 = vrot.lane.b32.xlu0 %v556_v27, %s6679_s17  ;;  %v561_v34 = vrot.slane %v7481_v43, 1  ;;  %v2265_v11 = vrot.slane %v2251_v4, %v7015_v24  ;;  %v2275_v63 = vrot.slane %v2267_v14, %v7015_v24 }
  0xdc   : > { %v1424_v7 = vcombine.high %v1416_v58, %v1416_v58  ;;  %v638_v6 = vpop.permute.xlu1 %637  ;;  %6534 = vmatmul.mubr.msk.bf16.gmra.mxu1 %vm2983_vm7, %v2961_v44  ;;  %v909_v26 = vpop.permute.xlu0 %908  ;;  %v834_v44 = vrot.slane %v7481_v43, 2 }
  0xdd   : > { %v1098_v40 = vsel %vm1061_vm6, %v1041_v17, %v909_v26  ;;  %6537 = vmatprep.mubr.msk.bf16.mxu1 %vm6681_vm4, %v8652_v54  ;;  %v1042_v25 = vsel %vm1004_vm5, %v6640_v20, %v638_v6 }
  0xde   : > { %v1736_v41 = vcombine.high %v1098_v40, %v1098_v40  ;;  %v1743_v57 = vrot.slane %v1098_v40, %v7015_v24  ;;  %938 = vrot.lane.b32.xlu1 %v829_v35, %s6678_s16  ;;  %v2268_v56 = vcombine.low %v1416_v58, %v1424_v7  ;;  %v6641_v58 = vld [vmem:[%s6749_s15 + $0x80] sm:$0xff]  ;;  %v1423_v7 = vrot.slane %v1409_v3, %v7015_v24 }
  0xdf   : > { %623 = vrot.lane.b32.xlu0 %v517_v30, %s6679_s17 }
  0xe0   : > { %v1750_v1 = vrot.slane %v1736_v41, %v7015_v24  ;;  %v1751_v31 = vcombine.high %v1743_v57, %v1743_v57  ;;  %v911_v21 = vpop.permute.xlu1 %910  ;;  %v863_v10 = vpop.permute.xlu0 %862  ;;  %v2282_v45 = vrot.slane %v2268_v56, %v7015_v24  ;;  %v2590_v42 = vcombine.low %v1735_v5, %v1743_v57 }
  0xe1   : > { %v1099_v55 = vsel %vm1061_vm6, %v1042_v25, %v911_v21  ;;  %v1075_v47 = vsel %vm1061_vm6, %v1018_v12, %v863_v10  ;;  %v835_v56 = vsel %vm731_vm0, %v832_v29, %v834_v44  ;;  %v1425_v20 = vcombine.high %v1423_v7, %v1423_v7  ;;  %v6642_v25 = vld [vmem:[%s6749_s15 + $0x130] sm:$0xff] }
  0xe2   : > { %v1752_v16 = vcombine.high %v1750_v1, %v1750_v1  ;;  %896 = vrot.lane.b32.xlu1 %v790_v37, %s6678_s16  ;;  %v2591_v39 = vcombine.low %v1751_v31, %v1750_v1  ;;  %v1753_v46 = vcombine.high %v1099_v55, %v1099_v55  ;;  %v1760_v28 = vrot.slane %v1099_v55, %v7015_v24  ;;  %v6643_v31 = vld [vmem:[%s6749_s15 + $0x88] sm:$0xff] }
  0xe3   : > { %v1391_v36 = vrot.slane %v1075_v47, %v7015_v24  ;;  %894 = vrot.lane.b32.xlu0 %v788_v61, %s6678_s16  ;;  %v2283_v6 = vcombine.low %v2275_v63, %v2282_v45  ;;  %v2598_v61 = vrot.slane %v2590_v42, %v7015_v24  ;;  %v2284_v2 = vcombine.low %v1423_v7, %v1425_v20  ;;  %v6644_v45 = vld [vmem:[%s6749_s15 + $0x138] sm:$0xff] }
  0xe4   : > { %v869_v15 = vpop.permute.xlu1 %868  ;;  %v596_v48 = vpop.permute.xlu0 %595  ;;  %v7494_v53 = vrot.slane %v1753_v46, %v7015_v24  ;;  %v1768_v27 = vcombine.high %v1760_v28, %v1760_v28  ;;  %v2607_v18 = vcombine.low %v1752_v16, %v1760_v28  ;;  %v2605_v35 = vrot.slane %v2591_v39, %v7015_v24 }
  0xe5   : > { %v2250_v38 = vcombine.low %v1384_v8, %v1391_v36  ;;  %v1021_v49 = vsel %vm1004_vm5, %v6641_v58, %v596_v48  ;;  %vm6081_vm0 = vcmask 1047559  }
  0xe6   : > { %940 = vrot.lane.b32.xlu1 %v831_v32, %s6678_s16  ;;  %v2608_v52 = vcombine.low %v1768_v27, %v7494_v53  ;;  %v1078_v17 = vsel %vm1061_vm6, %v1021_v49, %v869_v15  ;;  %v2615_v13 = vrot.slane %v2607_v18, %v7015_v24  ;;  %v2606_v51 = vcombine.low %v2598_v61, %v2605_v35 }
  0xe7   : > { %v2258_v0 = vrot.slane %v2250_v38, %v7015_v24  ;;  %667 = vrot.lane.b32.xlu0 %v558_v62, %s6679_s17  ;;  %v1426_v26 = vcombine.high %v1078_v17, %v1078_v17  ;;  %v1433_v30 = vrot.slane %v1078_v17, %v7015_v24  ;;  %v1769_v48 = vcombine.high %v7494_v53, %v7494_v53 }
  0xe8   : > { %v640_v40 = vpop.permute.xlu1 %639  ;;  %v598_v37 = vpop.permute.xlu0 %597  ;;  %v2622_v9 = vrot.slane %v2608_v52, %v7015_v24  ;;  %v2292_v49 = vrot.slane %v2284_v2, %v7015_v24 }
  0xe9   : > { %v2266_v41 = vcombine.low %v2258_v0, %v2265_v11  ;;  %v1440_v57 = vrot.slane %v1426_v26, %v7015_v24  ;;  %v1441_v62 = vcombine.high %v1433_v30, %v1433_v30  ;;  %v1043_v1 = vsel %vm1004_vm5, %v6642_v25, %v640_v40 }
  0xea   : > { %942 = vrot.lane.b32.xlu1 %v833_v19, %s6678_s16  ;;  %v2623_v12 = vcombine.low %v2615_v13, %v2622_v9  ;;  %v1022_v21 = vsel %vm1004_vm5, %v6643_v31, %v598_v37 }
  0xeb   : > { %669 = vrot.lane.b32.xlu0 %v560_v23, %s6679_s17  ;;  %v2952_v32 = vpack.c.bf16 %v2283_v6, %v2266_v41  ;;  %v562_v23 = vsel %vm458_vm1, %v559_v33, %v561_v34  ;;  %v1442_v19 = vcombine.high %v1440_v57, %v1440_v57  ;;  %v2285_v4 = vcombine.low %v1433_v30, %v1441_v62  ;;  %v6645_v30 = vld [vmem:[%s6749_s15 + $0x90] sm:$0xff] }
  0xec   : > { %v913_v10 = vpop.permute.xlu1 %912  ;;  %v871_v55 = vpop.permute.xlu0 %870  ;;  %v2962_v47 = vpack.c.bf16 %v2623_v12, %v2606_v51 }
  0xed   : > { %v1100_v8 = vsel %vm1061_vm6, %v1043_v1, %v913_v10  ;;  %6498 = vmatmul.mubr.msk.bf16.gmra.mxu0 %vm2983_vm7, %v2952_v32  ;;  %v1079_v29 = vsel %vm1061_vm6, %v1022_v21, %v871_v55  ;;  %v2301_v36 = vcombine.low %v1440_v57, %v1442_v19  ;;  %v2299_v15 = vrot.slane %v2285_v4, %v7015_v24  ;;  %v6646_v19 = vld [vmem:[%s6749_s15 + $0x98] sm:$0xff]  ;;  %v6647_v4 = vld [vmem:[%s6749_s15 + $0x140] sm:$0xff] }
  0xee   : > { %v1770_v14 = vcombine.high %v1100_v8, %v1100_v8  ;;  %v1777_v5 = vrot.slane %v1100_v8, %v7015_v24  ;;  %944 = vrot.lane.b32.xlu1 %v835_v56, %s6678_s16  ;;  %v1450_v16 = vrot.slane %v1079_v29, %v7015_v24  ;;  %6538 = vmatmul.mubr.msk.bf16.gmra.mxu1 %vm2983_vm7, %v2962_v47 }
  0xef   : > { %671 = vrot.lane.b32.xlu0 %v562_v23, %s6679_s17  ;;  %6501 = vmatprep.mubr.msk.bf16.mxu0 %vm6681_vm4, %v8652_v54  ;;  %v1443_v52 = vcombine.high %v1079_v29, %v1079_v29  ;;  %v2309_v17 = vrot.slane %v2301_v36, %v7015_v24  ;;  %v2300_v37 = vcombine.low %v2292_v49, %v2299_v15 }
  0xf0   : > { %v1784_v33 = vrot.slane %v1770_v14, %v7015_v24  ;;  %v1785_v39 = vcombine.high %v1777_v5, %v1777_v5  ;;  %v915_v46 = vpop.permute.xlu1 %914  ;;  %v642_v28 = vpop.permute.xlu0 %641  ;;  %v1458_v3 = vcombine.high %v1450_v16, %v1450_v16  ;;  %6541 = vmatprep.mubr.msk.bf16.mxu1 %vm6681_vm4, %v8652_v54  ;;  %v2624_v35 = vcombine.low %v1769_v48, %v1777_v5  ;;  %v6648_v48 = vld [vmem:[%s6749_s15 + $0x150] sm:$0xff] }
  0xf1   : > { %v1044_v42 = vsel %vm1004_vm5, %v6644_v45, %v642_v28  ;;  %v1457_v41 = vrot.slane %v1443_v52, %v7015_v24 }
  0xf2   : > { %v1786_v27 = vcombine.high %v1784_v33, %v1784_v33  ;;  %v1101_v18 = vsel %vm1061_vm6, %v1044_v42, %v915_v46  ;;  %946 = vrot.lane.b32.xlu1 %v834_v44, %s6678_s16  ;;  %v2625_v38 = vcombine.low %v1785_v39, %v1784_v33  ;;  %v2302_v11 = vcombine.low %v1450_v16, %v1458_v3 }
  0xf3   : > { %v1787_v63 = vcombine.high %v1101_v18, %v1101_v18  ;;  %v1794_v58 = vrot.slane %v1101_v18, %v7015_v24  ;;  %673 = vrot.lane.b32.xlu0 %v561_v34, %s6679_s17  ;;  %v2632_v32 = vrot.slane %v2624_v35, %v7015_v24  ;;  %v1459_v55 = vcombine.high %v1457_v41, %v1457_v41 }
  0xf4   : > { %v873_v53 = vpop.permute.xlu1 %872  ;;  %v600_v0 = vpop.permute.xlu0 %599  ;;  %v2316_v44 = vrot.slane %v2302_v11, %v7015_v24  ;;  %v2639_v34 = vrot.slane %v2625_v38, %v7015_v24 }
  0xf5   : > { %v7555_v7 = vrot.slane %v1787_v63, %v7015_v24  ;;  %v1802_v6 = vcombine.high %v1794_v58, %v1794_v58  ;;  %v2641_v26 = vcombine.low %v1786_v27, %v1794_v58  ;;  %v1023_v40 = vsel %vm1004_vm5, %v6645_v30, %v600_v0 }
  0xf6   : > { %v2317_v61 = vcombine.low %v2309_v17, %v2316_v44  ;;  %v1080_v9 = vsel %vm1061_vm6, %v1023_v40, %v873_v53  ;;  %v2640_v31 = vcombine.low %v2632_v32, %v2639_v34  ;;  %v2318_v46 = vcombine.low %v1457_v41, %v1459_v55  ;;  %v6650_v55 = vld [vmem:[%s6749_s15 + $0x158] sm:$0xff] }
  0xf7   : > { %v2642_v13 = vcombine.low %v1802_v6, %v7555_v7  ;;  %v1460_v57 = vcombine.high %v1080_v9, %v1080_v9  ;;  %v1467_v62 = vrot.slane %v1080_v9, %v7015_v24  ;;  %v2649_v56 = vrot.slane %v2641_v26, %v7015_v24 }
  0xf8   : > { %v644_v51 = vpop.permute.xlu1 %643  ;;  %v602_v12 = vpop.permute.xlu0 %601  ;;  %v2953_v25 = vpack.c.bf16 %v2317_v61, %v2300_v37  ;;  %v2326_v58 = vrot.slane %v2318_v46, %v7015_v24  ;;  %v1803_v40 = vcombine.high %v7555_v7, %v7555_v7 }
  0xf9   : > { %v2656_v20 = vrot.slane %v2642_v13, %v7015_v24  ;;  %v1474_v1 = vrot.slane %v1460_v57, %v7015_v24  ;;  %v1475_v21 = vcombine.high %v1467_v62, %v1467_v62  ;;  %v1024_v8 = vsel %vm1004_vm5, %v6646_v19, %v602_v12 }
  0xfa   : > { %6502 = vmatmul.mubr.msk.bf16.gmra.mxu0 %vm2983_vm7, %v2953_v25  ;;  %v1045_v14 = vsel %vm1004_vm5, %v6647_v4, %v644_v51 }
  0xfb   : > { %v2657_v10 = vcombine.low %v2649_v56, %v2656_v20  ;;  %v1476_v23 = vcombine.high %v1474_v1, %v1474_v1  ;;  %6505 = vmatprep.mubr.msk.bf16.mxu0 %vm6681_vm4, %v8652_v54  ;;  %v2319_v33 = vcombine.low %v1467_v62, %v1475_v21  ;;  %v6649_v21 = vld [vmem:[%s6749_s15 + $0xa8] sm:$0xff] }
  0xfc   : > { %v917_v29 = vpop.permute.xlu1 %916  ;;  %v875_v47 = vpop.permute.xlu0 %874 }
  0xfd   : > { %v7576_v5 = vsel %vm1061_vm6, %v1024_v8, %v875_v47  ;;  %v2963_v16 = vpack.c.bf16 %v2657_v10, %v2640_v31  ;;  %v1102_v2 = vsel %vm1061_vm6, %v1045_v14, %v917_v29  ;;  %v2335_v28 = vcombine.low %v1474_v1, %v1476_v23 }
  0xfe   : > { %v1484_v39 = vrot.slane %v7576_v5, %v7015_v24  ;;  %v1804_v45 = vcombine.high %v1102_v2, %v1102_v2  ;;  %v1811_v42 = vrot.slane %v1102_v2, %v7015_v24  ;;  %v2333_v38 = vrot.slane %v2319_v33, %v7015_v24 }
  0xff   : > { %6542 = vmatmul.mubr.msk.bf16.gmra.mxu1 %vm2983_vm7, %v2963_v16  ;;  %v2343_v0 = vrot.slane %v2335_v28, %v7015_v24  ;;  %v1477_v56 = vcombine.high %v7576_v5, %v7576_v5 }
 0x100   : > { %v921_v36 = vpop.permute.xlu1 %920  ;;  %v648_v3 = vpop.permute.xlu0 %647  ;;  %6545 = vmatprep.mubr.msk.bf16.mxu1 %vm6681_vm4, %v8652_v54  ;;  %v1492_v15 = vcombine.high %v1484_v39, %v1484_v39  ;;  %v1818_v52 = vrot.slane %v1804_v45, %v7015_v24  ;;  %v1819_v53 = vcombine.high %v1811_v42, %v1811_v42  ;;  %v2334_v26 = vcombine.low %v2326_v58, %v2333_v38 }
 0x101   : > { %v1047_v27 = vsel %vm1004_vm5, %v6648_v48, %v648_v3  ;;  %v2658_v41 = vcombine.low %v1803_v40, %v1811_v42  ;;  %v1491_v5 = vrot.slane %v1477_v56, %v7015_v24 }
 0x102   : > { %v1104_v18 = vsel %vm1061_vm6, %v1047_v27, %v921_v36  ;;  %v2336_v11 = vcombine.low %v1484_v39, %v1492_v15  ;;  %v2659_v37 = vcombine.low %v1819_v53, %v1818_v52  ;;  %v1820_v62 = vcombine.high %v1818_v52, %v1818_v52 }
 0x103   : > { %v1835_v63 = vrot.slane %v1104_v18, %v7015_v24  ;;  %v2666_v20 = vrot.slane %v2658_v41, %v7015_v24  ;;  %v1828_v25 = vcombine.high %v1104_v18, %v1104_v18  ;;  %v1493_v48 = vcombine.high %v1491_v5, %v1491_v5 }
 0x104   : > { %v606_v49 = vpop.permute.xlu1 %605  ;;  %v646_v35 = vpop.permute.xlu0 %645  ;;  %v2350_v17 = vrot.slane %v2336_v11, %v7015_v24  ;;  %v2673_v7 = vrot.slane %v2659_v37, %v7015_v24 }
 0x105   : > { %v1843_v6 = vcombine.high %v1835_v63, %v1835_v63  ;;  %v1046_v34 = vsel %vm1004_vm5, %v6990_v59, %v646_v35  ;;  %v1026_v10 = vsel %vm1004_vm5, %v6649_v21, %v606_v49  ;;  %v1842_v2 = vrot.slane %v1828_v25, %v7015_v24  ;;  %v6653_v25 = vld [vmem:[%s6749_s15 + $0xb8] sm:$0xff] }
 0x106   : > { %v2351_v44 = vcombine.low %v2343_v0, %v2350_v17  ;;  %v2674_v8 = vcombine.low %v2666_v20, %v2673_v7  ;;  %v2352_v0 = vcombine.low %v1491_v5, %v1493_v48  ;;  %v6652_v17 = vld [vmem:[%s6749_s15 + $0xb0] sm:$0xff] }
 0x107   : > { %v2676_v57 = vcombine.low %v1835_v63, %v1843_v6  ;;  %v1844_v18 = vcombine.high %v1842_v2, %v1842_v2  ;;  %v6651_v63 = vld [vmem:[%s6749_s15 + $0x160] sm:$0xff] }
 0x108   : > { %v879_v30 = vpop.permute.xlu1 %878  ;;  %v2954_v13 = vpack.c.bf16 %v2351_v44, %v2334_v26 }
 0x109   : > { %v919_v61 = vpop.permute.xlu0 %918  ;;  %v2690_v1 = vrot.slane %v2676_v57, %v7015_v24  ;;  %v1083_v29 = vsel %vm1061_vm6, %v1026_v10, %v879_v30  ;;  %v2692_v26 = vcombine.low %v1842_v2, %v1844_v18 }
 0x10a   : > { %v1103_v9 = vsel %vm1061_vm6, %v1046_v34, %v919_v61  ;;  %6506 = vmatmul.mubr.msk.bf16.gmra.mxu0 %vm2983_vm7, %v2954_v13  ;;  %v1501_v46 = vcombine.high %v1083_v29, %v1083_v29  ;;  %v1508_v28 = vrot.slane %v1083_v29, %v7015_v24 }
 0x10b   : > { %v1827_v51 = vrot.slane %v1103_v9, %v7015_v24  ;;  %6509 = vmatprep.mubr.msk.bf16.mxu0 %vm6681_vm4, %v8652_v54  ;;  %v2700_v21 = vrot.slane %v2692_v26, %v7015_v24 }
 0x10c   : > { %v604_v12 = vpop.permute.xlu1 %603  ;;  %v1515_v11 = vrot.slane %v1501_v46, %v7015_v24 }
 0x10d   : > { %v2675_v59 = vcombine.low %v1820_v62, %v1827_v51  ;;  %v650_v32 = vpop.permute.xlu0 %649  ;;  %v1025_v36 = vsel %vm1004_vm5, %v6993_v60, %v604_v12  ;;  %v1516_v60 = vcombine.high %v1508_v28, %v1508_v28 }
 0x10e   : > { %v1048_v23 = vsel %vm1004_vm5, %v6650_v55, %v650_v32  ;;  %v1517_v13 = vcombine.high %v1515_v11, %v1515_v11  ;;  %v2360_v32 = vrot.slane %v2352_v0, %v7015_v24 }
 0x10f   : > { %v2683_v31 = vrot.slane %v2675_v59, %v7015_v24  ;;  %v2369_v34 = vcombine.low %v1516_v60, %v1515_v11 }
 0x110   : > { %v923_v19 = vpop.permute.xlu1 %922 }
 0x111   : > { %v2691_v47 = vcombine.low %v2683_v31, %v2690_v1  ;;  %v1105_v4 = vsel %vm1061_vm6, %v1048_v23, %v923_v19  ;;  %v608_v14 = vpop.permute.xlu0 %607  ;;  %v2377_v31 = vrot.slane %v2369_v34, %v7015_v24 }
 0x112   : > { %v1845_v16 = vcombine.high %v1105_v4, %v1105_v4  ;;  %v1852_v33 = vrot.slane %v1105_v4, %v7015_v24  ;;  %v1027_v44 = vsel %vm1004_vm5, %v6652_v17, %v608_v14 }
 0x113   : > { %v2964_v39 = vpack.c.bf16 %v2691_v47, %v2674_v8 }
 0x114   : > { %v877_v3 = vpop.permute.xlu1 %876  ;;  %v1859_v45 = vrot.slane %v1845_v16, %v7015_v24  ;;  %v1860_v38 = vcombine.high %v1852_v33, %v1852_v33 }
 0x115   : > { %v1082_v42 = vsel %vm1061_vm6, %v1025_v36, %v877_v3  ;;  %6546 = vmatmul.mubr.msk.bf16.gmra.mxu1 %vm2983_vm7, %v2964_v39  ;;  %v652_v15 = vpop.permute.xlu0 %651 }
 0x116   : > { %v1500_v27 = vrot.slane %v1082_v42, %v7015_v24  ;;  %6549 = vmatprep.mubr.msk.bf16.mxu1 %vm6681_vm4, %v8652_v54  ;;  %v1049_v58 = vsel %vm1004_vm5, %v6651_v63, %v652_v15  ;;  %v1861_v35 = vcombine.high %v1859_v45, %v1859_v45  ;;  %v2693_v30 = vcombine.low %v1852_v33, %v1860_v38 }
 0x118   : > { %v925_v49 = vpop.permute.xlu1 %924  ;;  %v2353_v6 = vcombine.low %v1500_v27, %v1508_v28  ;;  %v2709_v57 = vcombine.low %v1859_v45, %v1861_v35  ;;  %v2707_v56 = vrot.slane %v2693_v30, %v7015_v24  ;;  %v6654_v45 = vld [vmem:[%s6749_s15 + $0x168] sm:$0xff] }
 0x119   : > { %v1106_v52 = vsel %vm1061_vm6, %v1049_v58, %v925_v49  ;;  %v881_v53 = vpop.permute.xlu0 %880  ;;  %v6655_v49 = vld [vmem:[%s6749_s15 + $0xc0] sm:$0xff] }
 0x11a   : > { %v1869_v40 = vrot.slane %v1106_v52, %v7015_v24  ;;  %v1084_v37 = vsel %vm1061_vm6, %v1027_v44, %v881_v53  ;;  %v1862_v61 = vcombine.high %v1106_v52, %v1106_v52  ;;  %v2367_v7 = vrot.slane %v2353_v6, %v7015_v24  ;;  %v6656_v52 = vld [vmem:[%s6749_s15 + $0x170] sm:$0xff] }
 0x11b   : > { %v1525_v9 = vrot.slane %v1084_v37, %v7015_v24  ;;  %v1518_v51 = vcombine.high %v1084_v37, %v1084_v37  ;;  %v2717_v19 = vrot.slane %v2709_v57, %v7015_v24  ;;  %v2708_v2 = vcombine.low %v2700_v21, %v2707_v56 }
 0x11c   : > { %v883_v41 = vpop.permute.xlu1 %882  ;;  %v1877_v62 = vcombine.high %v1869_v40, %v1869_v40  ;;  %v1876_v10 = vrot.slane %v1862_v61, %v7015_v24  ;;  %v2368_v14 = vcombine.low %v2360_v32, %v2367_v7 }
 0x11d   : > { %v610_v12 = vpop.permute.xlu0 %609  ;;  %v2370_v59 = vcombine.low %v1517_v13, %v1525_v9  ;;  %v1532_v29 = vrot.slane %v1518_v51, %v7015_v24  ;;  %v1533_v27 = vcombine.high %v1525_v9, %v1525_v9 }
 0x11e   : > { %v2710_v20 = vcombine.low %v1869_v40, %v1877_v62  ;;  %v1028_v1 = vsel %vm1004_vm5, %v6653_v25, %v610_v12  ;;  %v1878_v46 = vcombine.high %v1876_v10, %v1876_v10 }
 0x11f   : > { %v2384_v55 = vrot.slane %v2370_v59, %v7015_v24  ;;  %v1085_v47 = vsel %vm1061_vm6, %v1028_v1, %v883_v41  ;;  %v1534_v3 = vcombine.high %v1532_v29, %v1532_v29  ;;  %v2386_v40 = vcombine.low %v1533_v27, %v1532_v29 }
 0x120   : > { %v612_v23 = vpop.permute.xlu1 %611  ;;  %v2724_v8 = vrot.slane %v2710_v20, %v7015_v24  ;;  %v1535_v16 = vcombine.high %v1085_v47, %v1085_v47  ;;  %v1542_v39 = vrot.slane %v1085_v47, %v7015_v24  ;;  %v2726_v58 = vcombine.low %v1876_v10, %v1878_v46 }
 0x121   : > { %v654_v4 = vpop.permute.xlu0 %653  ;;  %v2385_v5 = vcombine.low %v2377_v31, %v2384_v55  ;;  %v1029_v35 = vsel %vm1004_vm5, %v6655_v49, %v612_v23  ;;  %v6657_v31 = vld [vmem:[%s6749_s15 + $0xc8] sm:$0xff]  ;;  %v2394_v55 = vrot.slane %v2386_v40, %v7015_v24 }
 0x122   : > { %v2725_v33 = vcombine.low %v2717_v19, %v2724_v8  ;;  %v1050_v42 = vsel %vm1004_vm5, %v6654_v45, %v654_v4  ;;  %v1549_v18 = vrot.slane %v1535_v16, %v7015_v24  ;;  %v1550_v38 = vcombine.high %v1542_v39, %v1542_v39 }
 0x123   : > { %v2955_v36 = vpack.c.bf16 %v2385_v5, %v2368_v14  ;;  %v2387_v17 = vcombine.low %v1534_v3, %v1542_v39  ;;  %v2734_v10 = vrot.slane %v2726_v58, %v7015_v24 }
 0x124   : > { %v656_v28 = vpop.permute.xlu1 %655  ;;  %v2965_v48 = vpack.c.bf16 %v2725_v33, %v2708_v2  ;;  %v2403_v37 = vcombine.low %v1550_v38, %v1549_v18  ;;  %v1551_v51 = vcombine.high %v1549_v18, %v1549_v18 }
 0x125   : > { %v927_v15 = vpop.permute.xlu0 %926  ;;  %6510 = vmatmul.mubr.msk.bf16.gmra.mxu0 %vm2983_vm7, %v2955_v36  ;;  %v1051_v53 = vsel %vm1004_vm5, %v6656_v52, %v656_v28  ;;  %v2401_v7 = vrot.slane %v2387_v17, %v7015_v24  ;;  %v4396_v52 = vld [vmem:[%s8644_s2] sm:$0xff] }
 0x126   : > { %v1107_v11 = vsel %vm1061_vm6, %v1050_v42, %v927_v15  ;;  %6550 = vmatmul.mubr.msk.bf16.gmra.mxu1 %vm2983_vm7, %v2965_v48  ;;  %6513 = vmatprep.mubr.msk.bf16.mxu0 %vm6681_vm4, %v8652_v54  ;;  %v2411_v19 = vrot.slane %v2403_v37, %v7015_v24  ;;  %v6658_v15 = vld [vmem:[%s6749_s15 + $0xd0] sm:$0xff] }
 0x127   : > { %v1879_v60 = vcombine.high %v1107_v11, %v1107_v11  ;;  %v1886_v63 = vrot.slane %v1107_v11, %v7015_v24  ;;  %6553 = vmatprep.mubr.msk.bf16.mxu1 %vm6681_vm4, %v8652_v54  ;;  %v2402_v36 = vcombine.low %v2394_v55, %v2401_v7 }
 0x128   : > { %v929_v0 = vpop.permute.xlu1 %928 }
 0x129   : > { %v1893_v44 = vrot.slane %v1879_v60, %v7015_v24  ;;  %v1894_v6 = vcombine.high %v1886_v63, %v1886_v63  ;;  %v7667_v26 = vsel %vm1061_vm6, %v1051_v53, %v929_v0  ;;  %v885_v30 = vpop.permute.xlu0 %884 }
 0x12a   : > { %v1903_v34 = vrot.slane %v7667_v26, %v7015_v24  ;;  %v1086_v61 = vsel %vm1061_vm6, %v1029_v35, %v885_v30 }
 0x12b   : > { %v1895_v13 = vcombine.high %v1893_v44, %v1893_v44  ;;  %v2727_v9 = vcombine.low %v1886_v63, %v1894_v6  ;;  %v1552_v41 = vcombine.high %v1086_v61, %v1086_v61  ;;  %v1559_v57 = vrot.slane %v1086_v61, %v7015_v24  ;;  %v6659_v63 = vld [vmem:[%s6749_s15 + $0x178] sm:$0xff] }
 0x12c   : > { %v1911_v62 = vcombine.high %v1903_v34, %v1903_v34  ;;  %v887_v12 = vpop.permute.xlu1 %886 }
 0x12d   : > { %v2743_v59 = vcombine.low %v1893_v44, %v1895_v13  ;;  %v1566_v32 = vrot.slane %v1552_v41, %v7015_v24  ;;  %v614_v56 = vpop.permute.xlu0 %613  ;;  %v2741_v20 = vrot.slane %v2727_v9, %v7015_v24  ;;  %v2404_v1 = vcombine.low %v1551_v51, %v1559_v57 }
 0x12e   : > { %v2744_v25 = vcombine.low %v1903_v34, %v1911_v62  ;;  %v1030_v21 = vsel %vm1004_vm5, %v6657_v31, %v614_v56  ;;  %v1567_v5 = vcombine.high %v1559_v57, %v1559_v57  ;;  %v1896_v44 = vcombine.high %v7667_v26, %v7667_v26 }
 0x12f   : > { %v2751_v23 = vrot.slane %v2743_v59, %v7015_v24  ;;  %v1568_v29 = vcombine.high %v1566_v32, %v1566_v32  ;;  %v2418_v47 = vrot.slane %v2404_v1, %v7015_v24  ;;  %v1087_v4 = vsel %vm1061_vm6, %v1030_v21, %v887_v12  ;;  %v4397_v1 = vld [vmem:[%s8644_s2 + $0x8] sm:$0xff] }
 0x130   : > { %v2758_v8 = vrot.slane %v2744_v25, %v7015_v24  ;;  %v616_v14 = vpop.permute.xlu1 %615  ;;  %v1569_v16 = vcombine.high %v1087_v4, %v1087_v4  ;;  %v1576_v2 = vrot.slane %v1087_v4, %v7015_v24  ;;  %v2742_v39 = vcombine.low %v2734_v10, %v2741_v20 }
 0x131   : > { %v658_v33 = vpop.permute.xlu0 %657  ;;  %v2419_v28 = vcombine.low %v2411_v19, %v2418_v47  ;;  %v1031_v48 = vsel %vm1004_vm5, %v6658_v15, %v616_v14  ;;  %v2420_v11 = vcombine.low %v1567_v5, %v1566_v32  ;;  %v4410_v34 = vcombine.high %v4396_v52, %v4396_v52  ;;  %v6661_v5 = vld [vmem:[%s6749_s15 + $0x188] sm:$0xff] }
 0x132   : > { %v2759_v46 = vcombine.low %v2751_v23, %v2758_v8  ;;  %v1583_v3 = vrot.slane %v1569_v16, %v7015_v24  ;;  %v1584_v45 = vcombine.high %v1576_v2, %v1576_v2  ;;  %v2421_v42 = vcombine.low %v1568_v29, %v1576_v2  ;;  %v4398_v23 = vld [vmem:[%s8644_s2 + $0x10] sm:$0xff]  ;;  %v6660_v29 = vld [vmem:[%s6749_s15 + $0xe0] sm:$0xff] }
 0x133   : > { %v2956_v18 = vpack.c.bf16 %v2419_v28, %v2402_v36  ;;  %v1052_v58 = vsel %vm1004_vm5, %v6659_v63, %v658_v33  ;;  %v2428_v9 = vrot.slane %v2420_v11, %v7015_v24  ;;  %v1910_v57 = vrot.slane %v1896_v44, %v7015_v24 }
 0x134   : > { %v889_v27 = vpop.permute.xlu1 %888  ;;  %v2966_v38 = vpack.c.bf16 %v2759_v46, %v2742_v39  ;;  %v2437_v60 = vcombine.low %v1584_v45, %v1583_v3  ;;  %v1585_v53 = vcombine.high %v1583_v3, %v1583_v3  ;;  %v2435_v30 = vrot.slane %v2421_v42, %v7015_v24 }
 0x135   : > { %v1088_v49 = vsel %vm1061_vm6, %v1031_v48, %v889_v27  ;;  %v931_v35 = vpop.permute.xlu0 %930  ;;  %6514 = vmatmul.mubr.msk.bf16.gmra.mxu0 %vm2983_vm7, %v2956_v18  ;;  %v7716_v51 = vrot.slane %v4396_v52, %v7015_v24  ;;  %v7719_v32 = vrot.slane %v4410_v34, %v7015_v24  ;;  %v1912_v31 = vcombine.high %v1910_v57, %v1910_v57  ;;  %v4399_v27 = vld [vmem:[%s8644_s2 + $0x18] sm:$0xff] }
 0x136   : > { %v7696_v0 = vrot.slane %v1088_v49, %v7015_v24  ;;  %v1109_v17 = vsel %vm1061_vm6, %v1052_v58, %v931_v35  ;;  %6554 = vmatmul.mubr.msk.bf16.gmra.mxu1 %vm2983_vm7, %v2966_v38  ;;  %6517 = vmatprep.mubr.msk.bf16.mxu0 %vm6681_vm4, %v8652_v54  ;;  %v2445_v26 = vrot.slane %v2437_v60, %v7015_v24 }
 0x137   : > { %v1913_v6 = vcombine.high %v1109_v17, %v1109_v17  ;;  %6557 = vmatprep.mubr.msk.bf16.mxu1 %vm6681_vm4, %v8652_v54  ;;  %v1920_v61 = vrot.slane %v1109_v17, %v7015_v24  ;;  %v2436_v59 = vcombine.low %v2428_v9, %v2435_v30  ;;  %v7728_v55 = vcombine.high %v7716_v51, %v7716_v51 }
 0x138   : > { %v2438_v40 = vcombine.low %v1585_v53, %v7696_v0  ;;  %v662_v37 = vpop.permute.xlu1 %661  ;;  %v1586_v19 = vcombine.high %v1088_v49, %v1088_v49  ;;  %v4427_v39 = vcombine.high %v4397_v1, %v4397_v1  ;;  %v4444_v3 = vcombine.high %v4398_v23, %v4398_v23 }
 0x139   : > { %v660_v13 = vpop.permute.xlu0 %659  ;;  %v1927_v62 = vrot.slane %v1913_v6, %v7015_v24  ;;  %v1928_v56 = vcombine.high %v1920_v61, %v1920_v61  ;;  %v1054_v16 = vsel %vm1004_vm5, %v6661_v5, %v662_v37  ;;  %v2760_v45 = vcombine.low %v1910_v57, %v1912_v31 }
 0x13a   : > { %v2452_v41 = vrot.slane %v2438_v40, %v7015_v24  ;;  %v1053_v10 = vsel %vm1004_vm5, %v7220_v22, %v660_v13  ;;  %v7739_v22 = vcombine.high %v7719_v32, %v7719_v32  ;;  %v1600_v18 = vrot.slane %v1586_v19, %v7015_v24 }
 0x13b   : > { %v1929_v21 = vcombine.high %v1927_v62, %v1927_v62  ;;  %v2761_v14 = vcombine.low %v1920_v61, %v1928_v56  ;;  %v1601_v38 = vcombine.high %v7696_v0, %v7696_v0  ;;  %v7758_v63 = vrot.slane %v4397_v1, %v7015_v24 }
 0x13c   : > { %v2453_v12 = vcombine.low %v2445_v26, %v2452_v41  ;;  %v933_v7 = vpop.permute.xlu1 %932  ;;  %v7762_v52 = vrot.slane %v4427_v39, %v7015_v24  ;;  %v7765_v53 = vrot.slane %v4398_v23, %v7015_v24  ;;  %v4461_v6 = vcombine.high %v4399_v27, %v4399_v27 }
 0x13d   : > { %v620_v20 = vpop.permute.xlu0 %619  ;;  %v1110_v8 = vsel %vm1061_vm6, %v1053_v10, %v933_v7  ;;  %v2777_v42 = vcombine.low %v1927_v62, %v1929_v21  ;;  %8664 = vst [vmem:[#allocation2_spill] sm:$0xff] %v7758_v63  ;;  %v2775_v58 = vrot.slane %v2761_v14, %v7015_v24  ;;  %v2768_v30 = vrot.slane %v2760_v45, %v7015_v24  ;;  %v4400_v14 = vld [vmem:[%s8644_s2 + $0x20] sm:$0xff]  ;;  %v4401_v45 = vld [vmem:[%s8644_s2 + $0x28] sm:$0xff] }
 0x13e   : > { %v2957_v25 = vpack.c.bf16 %v2453_v12, %v2436_v59  ;;  %v1033_v47 = vsel %vm1004_vm5, %v6660_v29, %v620_v20  ;;  %v1936_v15 = vrot.slane %v1110_v8, %v7015_v24  ;;  %v7771_v34 = vrot.slane %v4444_v3, %v7015_v24  ;;  %v6662_v12 = vld [vmem:[%s6749_s15 + $0x190] sm:$0xff] }
 0x13f   : > { %v2785_v40 = vrot.slane %v2777_v42, %v7015_v24  ;;  %v2454_v61 = vcombine.low %v1601_v38, %v1600_v18  ;;  %v1602_v26 = vcombine.high %v1600_v18, %v1600_v18  ;;  %v2776_v57 = vcombine.low %v2768_v30, %v2775_v58  ;;  %v6663_v58 = vld [vmem:[%s6749_s15 + $0x198] sm:$0xff] }
 0x140   : > { %v893_v4 = vpop.permute.xlu1 %892  ;;  %6518 = vmatmul.mubr.msk.bf16.gmra.mxu0 %vm2983_vm7, %v2957_v25  ;;  %v7802_v39 = vcombine.high %v7771_v34, %v7771_v34  ;;  %v4478_v18 = vcombine.high %v4400_v14, %v4400_v14  ;;  %v7822_v30 = vrot.slane %v4400_v14, %v7015_v24 }
 0x141   : > { %v1090_v2 = vsel %vm1061_vm6, %v1033_v47, %v893_v4  ;;  %v935_v33 = vpop.permute.xlu0 %934  ;;  %6521 = vmatprep.mubr.msk.bf16.mxu0 %vm6681_vm4, %v8652_v54  ;;  %v7785_v47 = vcombine.high %v7758_v63, %v7758_v63  ;;  %v7789_v4 = vcombine.high %v7762_v52, %v7762_v52 }
 0x142   : > { %v1610_v46 = vcombine.high %v1090_v2, %v1090_v2  ;;  %v1617_v28 = vrot.slane %v1090_v2, %v7015_v24  ;;  %v1111_v36 = vsel %vm1061_vm6, %v1054_v16, %v935_v33  ;;  %v7798_v33 = vcombine.high %v7765_v53, %v7765_v53  ;;  %8667 = vst [vmem:[#allocation5_spill] sm:$0xff] %v7822_v30 }
 0x143   : > { %v1944_v48 = vrot.slane %v1111_v36, %v7015_v24  ;;  %v1937_v0 = vcombine.high %v1111_v36, %v1111_v36  ;;  %8665 = vst [vmem:[#allocation3_spill] sm:$0xff] %v7785_v47  ;;  %8666 = vst [vmem:[#allocation4_spill] sm:$0xff] %v7789_v4 }
 0x144   : > { %v1624_v11 = vrot.slane %v1610_v46, %v7015_v24  ;;  %v618_v60 = vpop.permute.xlu1 %617  ;;  %v1625_v17 = vcombine.high %v1617_v28, %v1617_v28  ;;  %v2462_v46 = vrot.slane %v2454_v61, %v7015_v24 }
 0x145   : > { %v2778_v49 = vcombine.low %v1936_v15, %v1944_v48  ;;  %v664_v35 = vpop.permute.xlu0 %663  ;;  %v1032_v9 = vsel %vm1004_vm5, %v7217_v50, %v618_v60  ;;  %v1951_v25 = vrot.slane %v1937_v0, %v7015_v24  ;;  %v1952_v21 = vcombine.high %v1944_v48, %v1944_v48 }
 0x146   : > { %v1626_v44 = vcombine.high %v1624_v11, %v1624_v11  ;;  %v1055_v7 = vsel %vm1004_vm5, %v6662_v12, %v664_v35  ;;  %v2471_v20 = vcombine.low %v1617_v28, %v1625_v17  ;;  %v7813_v15 = vrot.slane %v4399_v27, %v7015_v24 }
 0x147   : > { %v2792_v37 = vrot.slane %v2778_v49, %v7015_v24  ;;  %v1953_v3 = vcombine.high %v1951_v25, %v1951_v25  ;;  %v2794_v42 = vcombine.low %v1952_v21, %v1951_v25  ;;  %v7816_v48 = vrot.slane %v4461_v6, %v7015_v24 }
 0x148   : > { %v2472_v13 = vcombine.low %v1624_v11, %v1626_v44  ;;  %v891_v41 = vpop.permute.xlu1 %890  ;;  %v2479_v28 = vrot.slane %v2471_v20, %v7015_v24  ;;  %v4495_v27 = vcombine.high %v4401_v45, %v4401_v45  ;;  %v6665_v20 = vld [vmem:[%s6749_s15 + $0xe8] sm:$0xff] }
 0x149   : > { %v2793_v62 = vcombine.low %v2785_v40, %v2792_v37  ;;  %v1089_v59 = vsel %vm1061_vm6, %v1032_v9, %v891_v41  ;;  %v937_v56 = vpop.permute.xlu0 %936  ;;  %v7831_v9 = vcombine.high %v7816_v48, %v7816_v48  ;;  %v7837_v41 = vrot.slane %v4401_v45, %v7015_v24 }
 0x14a   : > { %v1609_v1 = vrot.slane %v1089_v59, %v7015_v24  ;;  %v1112_v31 = vsel %vm1061_vm6, %v1055_v7, %v937_v56  ;;  %v2486_v19 = vrot.slane %v2472_v13, %v7015_v24  ;;  %v7827_v13 = vcombine.high %v7813_v15, %v7813_v15  ;;  %v6664_v7 = vld [vmem:[%s6749_s15 + $0xf0] sm:$0xff] }
 0x14b   : > { %v1954_v10 = vcombine.high %v1112_v31, %v1112_v31  ;;  %v1961_v50 = vrot.slane %v1112_v31, %v7015_v24  ;;  %v2967_v23 = vpack.c.bf16 %v2793_v62, %v2776_v57  ;;  %8668 = vst [vmem:[#allocation6_spill] sm:$0xff] %v7837_v41  ;;  %v2802_v57 = vrot.slane %v2794_v42, %v7015_v24 }
 0x14c   : > { %v2455_v8 = vcombine.low %v1602_v26, %v1609_v1  ;;  %v622_v29 = vpop.permute.xlu1 %621  ;;  %v2487_v38 = vcombine.low %v2479_v28, %v2486_v19  ;;  %v7834_v26 = vrot.slane %v4478_v18, %v7015_v24 }
 0x14d   : > { %v1968_v5 = vrot.slane %v1954_v10, %v7015_v24  ;;  %v1969_v16 = vcombine.high %v1961_v50, %v1961_v50  ;;  %6558 = vmatmul.mubr.msk.bf16.gmra.mxu1 %vm2983_vm7, %v2967_v23  ;;  %v666_v2 = vpop.permute.xlu0 %665  ;;  %v2795_v60 = vcombine.low %v1953_v3, %v1961_v50  ;;  %v1034_v25 = vsel %vm1004_vm5, %v6665_v20, %v622_v29 }
 0x14e   : > { %v2469_v36 = vrot.slane %v2455_v8, %v7015_v24  ;;  %6561 = vmatprep.mubr.msk.bf16.mxu1 %vm6681_vm4, %v8652_v54  ;;  %v1056_v49 = vsel %vm1004_vm5, %v6663_v58, %v666_v2  ;;  %v7856_v29 = vcombine.high %v7822_v30, %v7822_v30 }
 0x14f   : > { %v2811_v17 = vcombine.low %v1969_v16, %v1968_v5  ;;  %v1970_v6 = vcombine.high %v1968_v5, %v1968_v5  ;;  %v2809_v62 = vrot.slane %v2795_v60, %v7015_v24  ;;  %v7860_v5 = vcombine.high %v7834_v26, %v7834_v26 }
 0x150   : > { %v2470_v11 = vcombine.low %v2462_v46, %v2469_v36  ;;  %v939_v35 = vpop.permute.xlu1 %938  ;;  %v7863_v16 = vrot.slane %v4495_v27, %v7015_v24 }
 0x151   : > { %v1113_v44 = vsel %vm1061_vm6, %v1056_v49, %v939_v35  ;;  %v624_v0 = vpop.permute.xlu0 %623  ;;  %v2819_v50 = vrot.slane %v2811_v17, %v7015_v24  ;;  %v2810_v2 = vcombine.low %v2802_v57, %v2809_v62  ;;  %v6666_v49 = vld [vmem:[%s6749_s15 + $0x1a0] sm:$0xff] }
 0x152   : > { %v1971_v40 = vcombine.high %v1113_v44, %v1113_v44  ;;  %v1978_v37 = vrot.slane %v1113_v44, %v7015_v24  ;;  %v2958_v61 = vpack.c.bf16 %v2487_v38, %v2470_v11  ;;  %v1035_v59 = vsel %vm1004_vm5, %v6664_v7, %v624_v0 }
 0x153   : > { %v7869_v11 = vcombine.high %v7837_v41, %v7837_v41 }
 0x154   : > { %v2812_v12 = vcombine.low %v1970_v6, %v1978_v37  ;;  %v897_v56 = vpop.permute.xlu1 %896  ;;  %6522 = vmatmul.mubr.msk.bf16.gmra.mxu0 %vm2983_vm7, %v2958_v61  ;;  %v1985_v1 = vrot.slane %v1971_v40, %v7015_v24  ;;  %v1986_v31 = vcombine.high %v1978_v37, %v1978_v37  ;;  %v7877_v6 = vcombine.high %v7863_v16, %v7863_v16 }
 0x155   : > { %v1092_v21 = vsel %vm1061_vm6, %v1035_v59, %v897_v56  ;;  %v895_v10 = vpop.permute.xlu0 %894  ;;  %6525 = vmatprep.mubr.msk.bf16.mxu0 %vm6681_vm4, %v8652_v54 }
 0x156   : > { %v2826_v23 = vrot.slane %v2812_v12, %v7015_v24  ;;  %v1644_v19 = vcombine.high %v1092_v21, %v1092_v21  ;;  %v1651_v8 = vrot.slane %v1092_v21, %v7015_v24  ;;  %v1091_v14 = vsel %vm1061_vm6, %v1034_v25, %v895_v10 }
 0x157   : > { %v2828_v45 = vcombine.low %v1986_v31, %v1985_v1  ;;  %v1627_v42 = vcombine.high %v1091_v14, %v1091_v14  ;;  %v1634_v18 = vrot.slane %v1091_v14, %v7015_v24  ;;  %v1987_v37 = vcombine.high %v1985_v1, %v1985_v1 }
 0x158   : > { %v2827_v46 = vcombine.low %v2819_v50, %v2826_v23  ;;  %v1658_v28 = vrot.slane %v1644_v19, %v7015_v24  ;;  %v1659_v36 = vcombine.high %v1651_v8, %v1651_v8  ;;  %v941_v3 = vpop.permute.xlu1 %940  ;;  %v6667_v19 = vld [vmem:[%s6749_s15 + $0x1a8] sm:$0xff] }
 0x159   : > { %v668_v38 = vpop.permute.xlu0 %667  ;;  %v1641_v44 = vrot.slane %v1627_v42, %v7015_v24  ;;  %v1642_v0 = vcombine.high %v1634_v18, %v1634_v18  ;;  %v2836_v12 = vrot.slane %v2828_v45, %v7015_v24 }
 0x15a   : > { %v1660_v60 = vcombine.high %v1658_v28, %v1658_v28  ;;  %v2505_v58 = vcombine.low %v1651_v8, %v1659_v36  ;;  %v1057_v35 = vsel %vm1004_vm5, %v6666_v49, %v668_v38  ;;  %v2968_v17 = vpack.c.bf16 %v2827_v46, %v2810_v2 }
 0x15b   : > { %v1114_v27 = vsel %vm1061_vm6, %v1057_v35, %v941_v3  ;;  %v1643_v59 = vcombine.high %v1641_v44, %v1641_v44  ;;  %v2488_v56 = vcombine.low %v1634_v18, %v1642_v0 }
 0x15c   : > { %v2506_v40 = vcombine.low %v1658_v28, %v1660_v60  ;;  %v1988_v61 = vcombine.high %v1114_v27, %v1114_v27  ;;  %v1995_v57 = vrot.slane %v1114_v27, %v7015_v24  ;;  %6562 = vmatmul.mubr.msk.bf16.gmra.mxu1 %vm2983_vm7, %v2968_v17  ;;  %v943_v62 = vpop.permute.xlu1 %942  ;;  %v2513_v7 = vrot.slane %v2505_v58, %v7015_v24 }
 0x15d   : > { %v670_v20 = vpop.permute.xlu0 %669  ;;  %v3097_v25 = vpop.f32.mrf.mxu0  ;;  %6565 = vmatprep.mubr.msk.bf16.mxu1 %vm6681_vm4, %v8652_v54  ;;  %v2489_v50 = vcombine.low %v1641_v44, %v1643_v59  ;;  %v2496_v23 = vrot.slane %v2488_v56, %v7015_v24 }
 0x15e   : > { %v2520_v1 = vrot.slane %v2506_v40, %v7015_v24  ;;  %v2002_v31 = vrot.slane %v1988_v61, %v7015_v24  ;;  %v2003_v21 = vcombine.high %v1995_v57, %v1995_v57  ;;  %v2829_v10 = vcombine.low %v1987_v37, %v1995_v57 }
 0x15f   : > { %v1058_v8 = vsel %vm1004_vm5, %v6667_v19, %v670_v20  ;;  %v3346_v14 = vcombine.high %v3097_v25, %v3097_v25  ;;  %v6475_v2 = vpop.f32.mrf.mxu0  ;;  %v2503_v45 = vrot.slane %v2489_v50, %v7015_v24  ;;  %v3353_v35 = vrot.slane %v3097_v25, %v7015_v24  ;;  %v6668_v25 = vld [vmem:[%s6749_s15 + $0x1b0] sm:$0xff] }
 0x160   : > { %v2521_v46 = vcombine.low %v2513_v7, %v2520_v1  ;;  %v2843_v28 = vrot.slane %v2829_v10, %v7015_v24  ;;  %v2845_v36 = vcombine.low %v2003_v21, %v2002_v31  ;;  %v1115_v3 = vsel %vm1061_vm6, %v1058_v8, %v943_v62  ;;  %v945_v61 = vpop.permute.xlu1 %944 }
 0x161   : > { %v2004_v42 = vcombine.high %v2002_v31, %v2002_v31  ;;  %v2005_v18 = vcombine.high %v1115_v3, %v1115_v3  ;;  %v2012_v38 = vrot.slane %v1115_v3, %v7015_v24  ;;  %v3100_v60 = vpop.f32.mrf.mxu0  ;;  %v3360_v17 = vrot.slane %v3346_v14, %v7015_v24  ;;  %v672_v44 = vpop.permute.xlu0 %671 }
 0x162   : > { %v7894_v58 = vcombine.low %v2836_v12, %v2843_v28  ;;  %v2853_v49 = vrot.slane %v2845_v36, %v7015_v24  ;;  %v2504_v0 = vcombine.low %v2496_v23, %v2503_v45  ;;  %v3361_v62 = vcombine.high %v3353_v35, %v3353_v35 }
 0x163   : > { %v2019_v27 = vrot.slane %v2005_v18, %v7015_v24  ;;  %v2020_v40 = vcombine.high %v2012_v38, %v2012_v38  ;;  %v2846_v37 = vcombine.low %v2004_v42, %v2012_v38  ;;  %v6476_v57 = vpop.f32.mrf.mxu0  ;;  %v3362_v7 = vcombine.high %v3360_v17, %v3360_v17 }
 0x164   : > { %v4544_v12 = vadd.f32 %v7716_v51, %v3353_v35  ;;  %v4546_v59 = vadd.f32 %v7719_v32, %v3360_v17  ;;  %v1059_v1 = vsel %vm1004_vm5, %v6668_v25, %v672_v44  ;;  %v4545_v10 = vadd.f32 %v7728_v55, %v3361_v62  ;;  %v947_v62 = vpop.permute.xlu1 %946 }
 0x165   : > { %v2860_v56 = vrot.slane %v2846_v37, %v7015_v24  ;;  %v2862_v20 = vcombine.low %v2020_v40, %v2019_v27  ;;  %v2021_v31 = vcombine.high %v2019_v27, %v2019_v27  ;;  %v3105_v21 = vpop.f32.mrf.mxu0  ;;  %v4547_v50 = vadd.f32 %v7739_v22, %v3362_v7  ;;  %v674_v27 = vpop.permute.xlu0 %673 }
 0x166   : > { %v1116_v23 = vsel %vm1061_vm6, %v1059_v1, %v945_v61  ;;  %v3363_v19 = vcombine.high %v3100_v60, %v3100_v60  ;;  %v4944_v3 = vcombine.low %v4544_v12, %v4545_v10  ;;  %v3370_v42 = vrot.slane %v3100_v60, %v7015_v24 }
 0x167   : > { %v2861_v8 = vcombine.low %v2853_v49, %v2860_v56  ;;  %v2870_v14 = vrot.slane %v2862_v20, %v7015_v24  ;;  %v2022_v2 = vcombine.high %v1116_v23, %v1116_v23  ;;  %v2029_v28 = vrot.slane %v1116_v23, %v7015_v24  ;;  %v6479_v36 = vpop.f32.mrf.mxu0 }
 0x168   : > { %v4945_v45 = vcombine.low %v4546_v59, %v4547_v50  ;;  %v3377_v18 = vrot.slane %v3363_v19, %v7015_v24  ;;  %v2959_v44 = vpack.c.bf16 %v2521_v46, %v2504_v0  ;;  %v4952_v49 = vrot.slane %v4944_v3, %v7015_v24 }
 0x169   : > { %v2036_v38 = vrot.slane %v2022_v2, %v7015_v24  ;;  %v2037_v35 = vcombine.high %v2029_v28, %v2029_v28  ;;  %v2863_v17 = vcombine.low %v2021_v31, %v2029_v28  ;;  %v3108_v40 = vpop.f32.mrf.mxu0  ;;  %v3378_v61 = vcombine.high %v3370_v42, %v3370_v42 }
 0x16a   : > { %v4959_v37 = vrot.slane %v4945_v45, %v7015_v24  ;;  %v3379_v57 = vcombine.high %v3377_v18, %v3377_v18  ;;  %v4548_v60 = vadd.f32 %v7758_v63, %v3370_v42  ;;  %v4550_v59 = vadd.f32 %v7762_v52, %v3377_v18  ;;  %6526 = vmatmul.mubr.msk.bf16.gmra.mxu0 %vm2983_vm7, %v2959_v44 }
 0x16b   : > { %v2877_v7 = vrot.slane %v2863_v17, %v7015_v24  ;;  %v2879_v12 = vcombine.low %v2037_v35, %v2036_v38  ;;  %v6480_v56 = vpop.f32.mrf.mxu0  ;;  %v4549_v0 = vadd.f32 %v7785_v47, %v3378_v61  ;;  %v1060_v25 = vsel %vm1004_vm5, %v7481_v43, %v674_v27 }
 0x16c   : > { %v4960_v46 = vcombine.low %v4952_v49, %v4959_v37  ;;  %v4551_v20 = vadd.f32 %v7789_v4, %v3379_v57  ;;  %v1117_v10 = vsel %vm1061_vm6, %v1060_v25, %v947_v62  ;;  %v2038_v50 = vcombine.high %v2036_v38, %v2036_v38 }
 0x16d   : > { %v7923_v1 = vcombine.low %v2870_v14, %v2877_v7  ;;  %v2887_v31 = vrot.slane %v2879_v12, %v7015_v24  ;;  %v3113_v23 = vpop.f32.mrf.mxu0  ;;  %v4961_v2 = vcombine.low %v4548_v60, %v4549_v0  ;;  %v2045_v36 = vrot.slane %v1117_v10, %v7015_v24 }
 0x16e   : > { %v7928_v19 = vsel %vm5872_vm8, %v4960_v46, -inf  ;;  %v4962_v28 = vcombine.low %v4550_v59, %v4551_v20  ;;  %v3380_v3 = vcombine.high %v3105_v21, %v3105_v21  ;;  %v3387_v45 = vrot.slane %v3105_v21, %v7015_v24 }
 0x16f   : > { %v3397_v42 = vcombine.high %v3108_v40, %v3108_v40  ;;  %v3404_v43 = vrot.slane %v3108_v40, %v7015_v24  ;;  %v6483_v14 = vpop.f32.mrf.mxu0  ;;  %v4969_v18 = vrot.slane %v4961_v2, %v7015_v24  ;;  %v2880_v38 = vcombine.low %v2038_v50, %v2045_v36 }
 0x170   : > { %v4976_v35 = vrot.slane %v4962_v28, %v7015_v24  ;;  %v2969_v17 = vpack.c.bf16 %v2861_v8, %v7894_v58  ;;  %v3394_v44 = vrot.slane %v3380_v3, %v7015_v24  ;;  %v3395_v27 = vcombine.high %v3387_v45, %v3387_v45 }
 0x171   : > { %v4552_v49 = vadd.f32 %v7765_v53, %v3387_v45  ;;  %v3411_v37 = vrot.slane %v3397_v42, %v7015_v24  ;;  %v3116_v61 = vpop.f32.mrf.mxu0  ;;  %v2894_v57 = vrot.slane %v2880_v38, %v7015_v24  ;;  %v3412_v40 = vcombine.high %v3404_v43, %v3404_v43 }
 0x172   : > { %v4977_v21 = vcombine.low %v4969_v18, %v4976_v35  ;;  %v4556_v62 = vadd.f32 %v7813_v15, %v3404_v43  ;;  %6566 = vmatmul.mubr.msk.bf16.gmra.mxu1 %vm2983_vm7, %v2969_v17  ;;  %v3396_v7 = vcombine.high %v3394_v44, %v3394_v44  ;;  %v4553_v12 = vadd.f32 %v7798_v33, %v3395_v27 }
 0x173   : > { %v4554_v58 = vadd.f32 %v7771_v34, %v3394_v44  ;;  %v3413_v8 = vcombine.high %v3411_v37, %v3411_v37  ;;  %6569 = vmatprep.mubr.msk.bf16.mxu1 %vm6681_vm4, %v8652_v54  ;;  %v6484_v60 = vpop.f32.mrf.mxu0  ;;  %v2895_v56 = vcombine.low %v2887_v31, %v2894_v57  ;;  %v4557_v46 = vadd.f32 %v7827_v13, %v3412_v40 }
 0x174   : > { %v5874_v59 = vsel %vm5872_vm8, %v4977_v21, -inf  ;;  %v4558_v0 = vadd.f32 %v7816_v48, %v3411_v37  ;;  %v4555_v25 = vadd.f32 %v7802_v39, %v3396_v7  ;;  %v4978_v10 = vcombine.low %v4552_v49, %v4553_v12 }
 0x175   : > { %v5875_v20 = vmax.f32 %v7928_v19, %v5874_v59  ;;  %v4559_v50 = vadd.f32 %v7831_v9, %v3413_v8  ;;  %v4995_v2 = vcombine.low %v4556_v62, %v4557_v46  ;;  %v3414_v28 = vcombine.high %v3113_v23, %v3113_v23  ;;  %v3121_v45 = vpop.f32.mrf.mxu0 }
 0x176   : > { %v3421_v36 = vrot.slane %v3113_v23, %v7015_v24  ;;  %v3431_v3 = vcombine.high %v3116_v61, %v3116_v61  ;;  %v4979_v42 = vcombine.low %v4554_v58, %v4555_v25  ;;  %v4986_v31 = vrot.slane %v4978_v10, %v7015_v24 }
 0x177   : > { %v4996_v43 = vcombine.low %v4558_v0, %v4559_v50  ;;  %v3438_v14 = vrot.slane %v3116_v61, %v7015_v24  ;;  %v5003_v18 = vrot.slane %v4995_v2, %v7015_v24  ;;  %v3428_v19 = vrot.slane %v3414_v28, %v7015_v24  ;;  %v6487_v17 = vpop.f32.mrf.mxu0 }
 0x178   : > { %v3429_v35 = vcombine.high %v3421_v36, %v3421_v36  ;;  %v4560_v38 = vadd.f32 %v7822_v30, %v3421_v36  ;;  %v4993_v44 = vrot.slane %v4979_v42, %v7015_v24  ;;  %v3445_v27 = vrot.slane %v3431_v3, %v7015_v24 }
 0x179   : > { %v5010_v23 = vrot.slane %v4996_v43, %v7015_v24  ;;  %v3446_v49 = vcombine.high %v3438_v14, %v3438_v14  ;;  %v3430_v37 = vcombine.high %v3428_v19, %v3428_v19  ;;  %v4562_v61 = vadd.f32 %v7834_v26, %v3428_v19  ;;  %v3124_v40 = vpop.f32.mrf.mxu0 }
 0x17a   : > { %v4561_v21 = vadd.f32 %v7856_v29, %v3429_v35  ;;  %v4564_v57 = vadd.f32 %v7837_v41, %v3438_v14  ;;  %v4994_v62 = vcombine.low %v4986_v31, %v4993_v44  ;;  %v3447_v12 = vcombine.high %v3445_v27, %v3445_v27  ;;  %v7976_v31 = vld.sshfl [vmem:[%s8644_s2 + $0x30] sm:$0x3 pattern:$0x76325410] }
 0x17b   : > { %v5011_v7 = vcombine.low %v5003_v18, %v5010_v23  ;;  %v4565_v58 = vadd.f32 %v7869_v11, %v3446_v49  ;;  %v4563_v8 = vadd.f32 %v7860_v5, %v3430_v37  ;;  %v4566_v59 = vadd.f32 %v7863_v16, %v3445_v27  ;;  %v6488_v0 = vpop.f32.mrf.mxu0 }
 0x17c   : > { %v5012_v60 = vcombine.low %v4560_v38, %v4561_v21  ;;  %v2970_v46 = vpack.c.bf16 %v2895_v56, %v7923_v1  ;;  %v5876_v25 = vsel %vm5872_vm8, %v4994_v62, -inf  ;;  %v4567_v50 = vadd.f32 %v7877_v6, %v3447_v12 }
 0x17d   : > { %v5878_v10 = vsel %vm5872_vm8, %v5011_v7, -inf  ;;  %v5029_v2 = vcombine.low %v4564_v57, %v4565_v58  ;;  %v5877_v28 = vmax.f32 %v5875_v20, %v5876_v25  ;;  %v5013_v36 = vcombine.low %v4562_v61, %v4563_v8 }
 0x17e   : > { %v5020_v3 = vrot.slane %v5012_v60, %v7015_v24  ;;  %6570 = vmatmul.mubr.msk.bf16.gmra.mxu1 %vm2983_vm7, %v2970_v46  ;;  %v3448_v42 = vcombine.high %v3121_v45, %v3121_v45  ;;  %v5030_v1 = vcombine.low %v4566_v59, %v4567_v50  ;;  %v3455_v43 = vrot.slane %v3121_v45, %v7015_v24 }
 0x17f   : > { %v5037_v56 = vrot.slane %v5029_v2, %v7015_v24  ;;  %v3465_v14 = vcombine.high %v3124_v40, %v3124_v40  ;;  %6577 = vmatprep.mubr.msk.bf16.mxu1 %vm6681_vm4, %v8652_v54  ;;  %v5879_v20 = vmax.f32 %v5877_v28, %v5878_v10  ;;  %v5027_v18 = vrot.slane %v5013_v36, %v7015_v24 }
 0x180   : > { %v3462_v19 = vrot.slane %v3448_v42, %v7015_v24  ;;  %v3472_v35 = vrot.slane %v3124_v40, %v7015_v24  ;;  %v5044_v38 = vrot.slane %v5030_v1, %v7015_v24  ;;  %v3463_v17 = vcombine.high %v3455_v43, %v3455_v43 }
 0x181   : > { %v4568_v44 = vadd.f32 %v7976_v31, %v3455_v43  ;;  %v3479_v23 = vrot.slane %v3465_v14, %v7015_v24  ;;  %v5028_v27 = vcombine.low %v5020_v3, %v5027_v18 }
 0x182   : > { %v3464_v45 = vcombine.high %v3462_v19, %v3462_v19  ;;  %v4570_v49 = vadd.f32 %v7728_v55, %v3462_v19  ;;  %v3480_v37 = vcombine.high %v3472_v35, %v3472_v35  ;;  %v5045_v21 = vcombine.low %v5037_v56, %v5044_v38  ;;  %v3129_v62 = vpop.f32.mrf.mxu0 }
 0x183   : > { %v4569_v61 = vadd.f32 %v7716_v51, %v3463_v17  ;;  %v5052_v57 = vrot.slane %v4568_v44, %v7015_v24  ;;  %v5880_v40 = vsel %vm5872_vm8, %v5028_v27, -inf  ;;  %v3481_v7 = vcombine.high %v3479_v23, %v3479_v23 }
 0x184   : > { %v4571_v12 = vadd.f32 %v7719_v32, %v3464_v45  ;;  %v4572_v58 = vadd.f32 %v7739_v22, %v3472_v35  ;;  %v5881_v60 = vmax.f32 %v5879_v20, %v5880_v40  ;;  %v5882_v59 = vsel %vm5872_vm8, %v5045_v21, -inf  ;;  %v6491_v0 = vpop.f32.mrf.mxu0 }
 0x185   : > { %v5053_v8 = vcombine.low %v4569_v61, %v4570_v49  ;;  %v4573_v46 = vadd.f32 %v7758_v63, %v3480_v37  ;;  %v4574_v25 = vadd.f32 %v7785_v47, %v3479_v23  ;;  %v3482_v50 = vcombine.high %v3129_v62, %v3129_v62 }
 0x186   : > { %v5054_v10 = vcombine.low %v4571_v12, %v4572_v58  ;;  %v3489_v2 = vrot.slane %v3129_v62, %v7015_v24  ;;  %v5883_v36 = vmax.f32 %v5881_v60, %v5882_v59  ;;  %v5885_v3 = vsel %vm5884_vm9, %v5052_v57, -inf  ;;  %v3132_v42 = vpop.f32.mrf.mxu0 }
 0x187   : > { %v5061_v28 = vrot.slane %v5053_v8, %v7015_v24  ;;  %v3496_v56 = vrot.slane %v3482_v50, %v7015_v24  ;;  %v4575_v14 = vadd.f32 %v7762_v52, %v3481_v7  ;;  %v5070_v18 = vcombine.low %v4573_v46, %v4574_v25 }
 0x188   : > { %v5068_v1 = vrot.slane %v5054_v10, %v7015_v24  ;;  %v3497_v43 = vcombine.high %v3489_v2, %v3489_v2  ;;  %v5886_v20 = vmax.f32 %v5883_v36, %v5885_v3  ;;  %v4576_v19 = vadd.f32 %v7789_v4, %v3489_v2  ;;  %v6492_v38 = vpop.f32.mrf.mxu0 }
 0x189   : > { %v3506_v35 = vrot.slane %v3132_v42, %v7015_v24  ;;  %v3209_v17 = vpop.f32.mrf.mxu1  ;;  %v3498_v23 = vcombine.high %v3496_v56, %v3496_v56  ;;  %v4578_v45 = vadd.f32 %v7798_v33, %v3496_v56  ;;  %v5078_v57 = vrot.slane %v5070_v18, %v7015_v24 }
 0x18a   : > { %v5069_v44 = vcombine.low %v5061_v28, %v5068_v1  ;;  %v4577_v27 = vadd.f32 %v7765_v53, %v3497_v43  ;;  %v5071_v49 = vcombine.low %v4575_v14, %v4576_v19  ;;  %v3499_v7 = vcombine.high %v3132_v42, %v3132_v42 }
 0x18b   : > { %v6531_v37 = vpop.f32.mrf.mxu1  ;;  %v4579_v21 = vadd.f32 %v7771_v34, %v3498_v23  ;;  %v4580_v61 = vadd.f32 %v7802_v39, %v3506_v35  ;;  %v3514_v50 = vcombine.high %v3506_v35, %v3506_v35  ;;  %v5887_v36 = vrot.slane %v5886_v20, 4 }
 0x18c   : > { %v5085_v62 = vrot.slane %v5071_v49, %v7015_v24  ;;  %v5087_v40 = vcombine.low %v4577_v27, %v4578_v45  ;;  %v5893_v0 = vsel %vm5872_vm8, %v5069_v44, -inf  ;;  %v3513_v10 = vrot.slane %v3499_v7, %v7015_v24 }
 0x18d   : > { %v8011_v12 = vpop.f32.mrf.mxu1  ;;  %v5088_v58 = vcombine.low %v4579_v21, %v4580_v61  ;;  %v4581_v43 = vadd.f32 %v7813_v15, %v3514_v50  ;;  %v5888_v38 = vmax.f32 %v5886_v20, %v5887_v36  ;;  %v6625_v61 = vld [vmem:[%s8645_s3 + $0x8] sm:$0xff]  }
 0x18e   : > { %v5086_v8 = vcombine.low %v5078_v57, %v5085_v62  ;;  %v5095_v59 = vrot.slane %v5087_v40, %v7015_v24  ;;  %v3515_v56 = vcombine.high %v3513_v10, %v3513_v10  ;;  %v4582_v14 = vadd.f32 %v7827_v13, %v3513_v10  ;;  %6574 = vmatpush3.bf16.msra.mxu1 %v6625_v61 }
 0x18f   : > { %v6532_v60 = vpop.f32.mrf.mxu1  ;;  %v5102_v46 = vrot.slane %v5088_v58, %v7015_v24  ;;  %v3822_v57 = vcombine.high %v3209_v17, %v3209_v17  ;;  %v5889_v40 = vrot.slane %v5888_v38, 2  ;;  %6575 = vmatprep.subr.bf16.mxu1 %v8652_v54 }
 0x190   : > { %v5894_v25 = vsel %vm5872_vm8, %v5086_v8, -inf  ;;  %v5104_v27 = vcombine.low %v4581_v43, %v4582_v14  ;;  %v4583_v49 = vadd.f32 %v7816_v48, %v3515_v56  ;;  %v3829_v8 = vrot.slane %v3209_v17, %v7015_v24 }
 0x191   : > { %v5895_v2 = vmax.f32 %v5893_v0, %v5894_v25  ;;  %v5103_v28 = vcombine.low %v5095_v59, %v5102_v46  ;;  %v3839_v14 = vcombine.high %v8011_v12, %v8011_v12 }
 0x192   : > { %v3137_v3 = vpop.f32.mrf.mxu0  ;;  %v5112_v46 = vrot.slane %v5104_v27, %v7015_v24 }
 0x193   : > { %v5896_v42 = vsel %vm5872_vm8, %v5103_v28, -inf  ;;  %v3516_v1 = vcombine.high %v3137_v3, %v3137_v3  ;;  %v3523_v44 = vrot.slane %v3137_v3, %v7015_v24  ;;  %v3836_v28 = vrot.slane %v3822_v57, %v7015_v24 }
 0x194   : > { %v5897_v18 = vmax.f32 %v5895_v2, %v5896_v42  ;;  %v6495_v19 = vpop.f32.mrf.mxu0  ;;  %v5890_v2 = vmax.f32 %v5888_v38, %v5889_v40  ;;  %v3837_v3 = vcombine.high %v3829_v8, %v3829_v8 }
 0x195   : > { %v3530_v35 = vrot.slane %v3516_v1, %v7015_v24  ;;  %v3531_v45 = vcombine.high %v3523_v44, %v3523_v44  ;;  %v4584_v37 = vadd.f32 %v7831_v9, %v3523_v44  ;;  %v3838_v27 = vcombine.high %v3836_v28, %v3836_v28 }
 0x196   : > { %v3140_v23 = vpop.f32.mrf.mxu0 }
 0x197   : > { %v3532_v62 = vcombine.high %v3530_v35, %v3530_v35  ;;  %v4585_v20 = vadd.f32 %v7822_v30, %v3531_v45  ;;  %v4586_v7 = vadd.f32 %v7856_v29, %v3530_v35  ;;  %v5105_v58 = vcombine.low %v4583_v49, %v4584_v37 }
 0x198   : > { %v6496_v21 = vpop.f32.mrf.mxu0  ;;  %v3540_v60 = vrot.slane %v3140_v23, %v7015_v24  ;;  %v3533_v56 = vcombine.high %v3140_v23, %v3140_v23  ;;  %v5891_v35 = vrot.slane %v5890_v2, 1  ;;  %v4657_v49 = vadd.f32 %v7827_v13, %v3837_v3 }
 0x199   : > { %v5119_v0 = vrot.slane %v5105_v58, %v7015_v24  ;;  %v4587_v25 = vadd.f32 %v7834_v26, %v3532_v62  ;;  %v5121_v17 = vcombine.low %v4585_v20, %v4586_v7  ;;  %v3846_v37 = vrot.slane %v8011_v12, %v7015_v24 }
 0x19a   : > { %v4588_v10 = vadd.f32 %v7860_v5, %v3540_v60  ;;  %v3547_v21 = vrot.slane %v3533_v56, %v7015_v24  ;;  %v3548_v23 = vcombine.high %v3540_v60, %v3540_v60  ;;  %v4656_v62 = vadd.f32 %v7813_v15, %v3829_v8 }
 0x19b   : > { %v5120_v36 = vcombine.low %v5112_v46, %v5119_v0  ;;  %v5129_v45 = vrot.slane %v5121_v17, %v7015_v24  ;;  %v5892_v40 = vmax.f32 %v5890_v2, %v5891_v35  ;;  %v4659_v20 = vadd.f32 %v7831_v9, %v3838_v27 }
 0x19c   : > { %v8032_v59 = vpop.f32.mrf.mxu1  ;;  %v5122_v43 = vcombine.low %v4587_v25, %v4588_v10  ;;  %v3853_v7 = vrot.slane %v3839_v14, %v7015_v24  ;;  %v4658_v46 = vadd.f32 %v7816_v48, %v3836_v28  ;;  %v5431_v12 = vcombine.low %v4656_v62, %v4657_v49 }
 0x19d   : > { %v5898_v1 = vsel %vm5872_vm8, %v5120_v36, -inf  ;;  %v3854_v60 = vcombine.high %v3846_v37, %v3846_v37  ;;  %v4589_v25 = vadd.f32 %v7837_v41, %v3548_v23  ;;  %v4590_v8 = vadd.f32 %v7869_v11, %v3547_v21 }
 0x19e   : > { %v6535_v50 = vpop.f32.mrf.mxu1  ;;  %v5899_v19 = vmax.f32 %v5897_v18, %v5898_v1  ;;  %v5136_v38 = vrot.slane %v5122_v43, %v7015_v24  ;;  %v8064_v2 = vmax.f32 %v5892_v40, 0.0  ;;  %v5432_v36 = vcombine.low %v4658_v46, %v4659_v20 }
 0x19f   : > { %v3855_v17 = vcombine.high %v3853_v7, %v3853_v7  ;;  %v3549_v3 = vcombine.high %v3547_v21, %v3547_v21  ;;  %v8067_v28 = vadd.f32 %v7822_v30, %v3846_v37  ;;  %v8073_v1 = vrot.slane %v5431_v12, %v7015_v24 }
 0x1a0   : > { %v3220_v42 = vpop.f32.mrf.mxu1  ;;  %v5137_v61 = vcombine.low %v5129_v45, %v5136_v38  ;;  %v8076_v56 = vadd.f32 %v7856_v29, %v3854_v60  ;;  %v5138_v43 = vcombine.low %v4589_v25, %v4590_v8  ;;  %v6034_v38 = vpack.c.bf16 %v8064_v2, %v8064_v2 }
 0x1a1   : > { %v3873_v57 = vcombine.high %v3220_v42, %v3220_v42  ;;  %v8051_v18 = vrot.slane %v3220_v42, %v7015_v24  ;;  %v8070_v42 = vadd.f32 %v7834_v26, %v3853_v7  ;;  %v8084_v49 = vrot.slane %v5432_v36, %v7015_v24 }
 0x1a2   : > { %v6536_v44 = vpop.f32.mrf.mxu1  ;;  %v5900_v58 = vsel %vm5872_vm8, %v5137_v61, -inf  ;;  %v8087_v37 = vadd.f32 %v7860_v5, %v3855_v17  ;;  %v4591_v21 = vadd.f32 %v7863_v16, %v3549_v3 }
 0x1a3   : > { %8669 = vst [vmem:[#allocation7_spill] sm:$0xff] %v8051_v18  ;;  %v8057_v0 = vmax.f32 %v5899_v19, %v5900_v58  ;;  %v3887_v10 = vrot.slane %v3873_v57, %v7015_v24  ;;  %v3888_v50 = vcombine.high %v8051_v18, %v8051_v18  ;;  %v5146_v58 = vrot.slane %v5138_v43, %v7015_v24 }
 0x1a5   : > { %v3889_v14 = vcombine.high %v3887_v10, %v3887_v10  ;;  %v4669_v44 = vadd.f32 %v7716_v51, %v3888_v50  ;;  %v4670_v35 = vadd.f32 %v7728_v55, %v3887_v10 }
 0x1a7   : > { %v4671_v12 = vadd.f32 %v7719_v32, %v3889_v14  ;;  %v5489_v8 = vcombine.low %v4669_v44, %v4670_v35 }
 0x1ad   : > { %v3145_v19 = vpop.f32.mrf.mxu0 }
 0x1ae   : > { %v3550_v27 = vcombine.high %v3145_v19, %v3145_v19  ;;  %v3557_v45 = vrot.slane %v3145_v19, %v7015_v24  ;;  %v3225_v61 = vpop.f32.mrf.mxu1 }
 0x1af   : > { %v6499_v23 = vpop.f32.mrf.mxu0  ;;  %v3890_v20 = vcombine.high %v3225_v61, %v3225_v61  ;;  %v3897_v46 = vrot.slane %v3225_v61, %v7015_v24 }
 0x1b0   : > { %v3564_v57 = vrot.slane %v3550_v27, %v7015_v24  ;;  %v3565_v62 = vcombine.high %v3557_v45, %v3557_v45  ;;  %v4592_v40 = vadd.f32 %v7877_v6, %v3557_v45  ;;  %v6539_v25 = vpop.f32.mrf.mxu1 }
 0x1b1   : > { %v3148_v60 = vpop.f32.mrf.mxu0  ;;  %v3904_v17 = vrot.slane %v3890_v20, %v7015_v24  ;;  %v3905_v3 = vcombine.high %v3897_v46, %v3897_v46  ;;  %v4672_v19 = vadd.f32 %v7739_v22, %v3897_v46  ;;  %v5497_v25 = vrot.slane %v5489_v8, %v7015_v24 }
 0x1b2   : > { %v3566_v10 = vcombine.high %v3564_v57, %v3564_v57  ;;  %v4593_v50 = vadd.f32 %v7976_v31, %v3565_v62  ;;  %v5139_v36 = vcombine.low %v4591_v21, %v4592_v40  ;;  %v3567_v27 = vcombine.high %v3148_v60, %v3148_v60  ;;  %v3228_v23 = vpop.f32.mrf.mxu1 }
 0x1b3   : > { %v6500_v45 = vpop.f32.mrf.mxu0  ;;  %v3574_v44 = vrot.slane %v3148_v60, %v7015_v24  ;;  %v4594_v35 = vadd.f32 %v7716_v51, %v3564_v57  ;;  %v4673_v21 = vadd.f32 %v7758_v63, %v3905_v3  ;;  %v4674_v62 = vadd.f32 %v7785_v47, %v3904_v17 }
 0x1b4   : > { %v4595_v43 = vadd.f32 %v7728_v55, %v3566_v10  ;;  %v5153_v61 = vrot.slane %v5139_v36, %v7015_v24  ;;  %v5161_v14 = vrot.slane %v4593_v50, %v7015_v24  ;;  %v5490_v40 = vcombine.low %v4671_v12, %v4672_v19  ;;  %v6540_v20 = vpop.f32.mrf.mxu1 }
 0x1b5   : > { %v3581_v36 = vrot.slane %v3567_v27, %v7015_v24  ;;  %v3906_v50 = vcombine.high %v3904_v17, %v3904_v17  ;;  %v3582_v7 = vcombine.high %v3574_v44, %v3574_v44  ;;  %v5506_v54 = vcombine.low %v4673_v21, %v4674_v62 }
 0x1b6   : > { %v5154_v10 = vcombine.low %v5146_v58, %v5153_v61  ;;  %v5162_v45 = vcombine.low %v4594_v35, %v4595_v43  ;;  %v5504_v60 = vrot.slane %v5490_v40, %v7015_v24  ;;  %v5904_v3 = vsel %vm5884_vm9, %v5161_v14, -inf }
 0x1b7   : > { %v3583_v12 = vcombine.high %v3581_v36, %v3581_v36  ;;  %v4596_v46 = vadd.f32 %v7719_v32, %v3574_v44  ;;  %v4597_v58 = vadd.f32 %v7739_v22, %v3582_v7  ;;  %v4598_v8 = vadd.f32 %v7758_v63, %v3581_v36 }
 0x1b8   : > { %v5902_v57 = vsel %vm5872_vm8, %v5154_v10, -inf  ;;  %v5505_v20 = vcombine.low %v5497_v25, %v5504_v60  ;;  %v3907_v27 = vcombine.high %v3228_v23, %v3228_v23  ;;  %v3914_v43 = vrot.slane %v3228_v23, %v7015_v24 }
 0x1b9   : > { %v5903_v19 = vmax.f32 %v8057_v0, %v5902_v57  ;;  %v4599_v17 = vadd.f32 %v7785_v47, %v3583_v12  ;;  %v5170_v61 = vrot.slane %v5162_v45, %v7015_v24  ;;  %v5163_v14 = vcombine.low %v4596_v46, %v4597_v58 }
 0x1ba   : > { %v4675_v21 = vadd.f32 %v7762_v52, %v3906_v50  ;;  %v3153_v62 = vpop.f32.mrf.mxu0  ;;  %v3921_v40 = vrot.slane %v3907_v27, %v7015_v24  ;;  %v3922_v44 = vcombine.high %v3914_v43, %v3914_v43  ;;  %v4676_v7 = vadd.f32 %v7789_v4, %v3914_v43 }
 0x1bb   : > { %v5905_v35 = vmax.f32 %v5903_v19, %v5904_v3  ;;  %v5179_v0 = vcombine.low %v4598_v8, %v4599_v17  ;;  %v5177_v10 = vrot.slane %v5163_v14, %v7015_v24  ;;  %v3584_v36 = vcombine.high %v3153_v62, %v3153_v62 }
 0x1bc   : > { %v3591_v60 = vrot.slane %v3153_v62, %v7015_v24  ;;  %v6503_v23 = vpop.f32.mrf.mxu0  ;;  %v8129_v46 = vunpack.c.l.b16 %v6034_v38  ;;  %v5514_v50 = vrot.slane %v5506_v54, %v7015_v24  ;;  %v8135_v57 = vsel %vm5872_vm8, %v5505_v20, -inf }
 0x1bd   : > { %v5906_v25 = vrot.slane %v5905_v35, 4  ;;  %v5178_v12 = vcombine.low %v5170_v61, %v5177_v10  ;;  %v5507_v19 = vcombine.low %v4675_v21, %v4676_v7  ;;  %v3598_v58 = vrot.slane %v3584_v36, %v7015_v24 }
 0x1be   : > { %v3156_v8 = vpop.f32.mrf.mxu0  ;;  %v5187_v27 = vrot.slane %v5179_v0, %v7015_v24  ;;  %v8140_v38 = vadd.f32 %v7765_v53, %v3922_v44  ;;  %v3599_v43 = vcombine.high %v3591_v60, %v3591_v60  ;;  %v4678_v54 = vadd.f32 %v7798_v33, %v3921_v40 }
 0x1bf   : > { %v5907_v3 = vmax.f32 %v5905_v35, %v5906_v25  ;;  %v3233_v17 = vpop.f32.mrf.mxu1  ;;  %v3601_v14 = vcombine.high %v3156_v8, %v3156_v8  ;;  %v5521_v20 = vrot.slane %v5507_v19, %v7015_v24  ;;  %v3600_v23 = vcombine.high %v3598_v58, %v3598_v58 }
 0x1c0   : > { %v6504_v35 = vpop.f32.mrf.mxu0  ;;  %v4600_v21 = vadd.f32 %v7762_v52, %v3591_v60  ;;  %v4601_v7 = vadd.f32 %v7789_v4, %v3599_v43  ;;  %v4602_v25 = vadd.f32 %v7765_v53, %v3598_v58  ;;  %v3608_v0 = vrot.slane %v3156_v8, %v7015_v24 }
 0x1c1   : > { %v5908_v62 = vrot.slane %v5907_v3, 2  ;;  %v6543_v61 = vpop.f32.mrf.mxu1  ;;  %v5522_v10 = vcombine.low %v5514_v50, %v5521_v20  ;;  %v4603_v36 = vadd.f32 %v7798_v33, %v3600_v23  ;;  %v3615_v45 = vrot.slane %v3601_v14, %v7015_v24 }
 0x1c2   : > { %v3923_v47 = vcombine.high %v3921_v40, %v3921_v40  ;;  %v5180_v19 = vcombine.low %v4600_v21, %v4601_v7  ;;  %v3616_v18 = vcombine.high %v3608_v0, %v3608_v0  ;;  %v3924_v35 = vcombine.high %v3233_v17, %v3233_v17 }
 0x1c3   : > { %v5909_v44 = vmax.f32 %v5907_v3, %v5908_v62  ;;  %v3236_v63 = vpop.f32.mrf.mxu1  ;;  %v8151_v60 = vsel %vm5872_vm8, %v5522_v10, -inf  ;;  %v5196_v43 = vcombine.low %v4602_v25, %v4603_v36  ;;  %v3617_v4 = vcombine.high %v3615_v45, %v3615_v45 }
 0x1c4   : > { %v5971_v3 = vmax.f32 %v8135_v57, %v8151_v60  ;;  %v5194_v50 = vrot.slane %v5180_v19, %v7015_v24  ;;  %v4604_v8 = vadd.f32 %v7771_v34, %v3608_v0  ;;  %v4605_v14 = vadd.f32 %v7802_v39, %v3616_v18  ;;  %v6626_v57 = vld [vmem:[%s8645_s3] sm:$0xff]  }
 0x1c5   : > { %v5910_v61 = vrot.slane %v5909_v44, 1  ;;  %v6544_v58 = vpop.f32.mrf.mxu1  ;;  %v5912_v62 = vsel %vm5872_vm8, %v5178_v12, -inf  ;;  %v5523_v20 = vcombine.low %v8140_v38, %v4678_v54  ;;  %v3931_v23 = vrot.slane %v3233_v17, %v7015_v24  ;;  %6576 = vmatpush3.bf16.msra.mxu1 %v6626_v57 }
 0x1c6   : > { %v5195_v21 = vcombine.low %v5187_v27, %v5194_v50  ;;  %v5204_v7 = vrot.slane %v5196_v43, %v7015_v24  ;;  %v5197_v25 = vcombine.low %v4604_v8, %v4605_v14  ;;  %v3938_v10 = vrot.slane %v3924_v35, %v7015_v24 }
 0x1c7   : > { %v5911_v40 = vmax.f32 %v5909_v44, %v5910_v61  ;;  %v4607_v0 = vadd.f32 %v7827_v13, %v3617_v4  ;;  %v3939_v18 = vcombine.high %v3931_v23, %v3931_v23  ;;  %v4679_v44 = vadd.f32 %v7771_v34, %v3923_v47 }
 0x1c8   : > { %v4680_v12 = vadd.f32 %v7802_v39, %v3931_v23  ;;  %v5913_v38 = vsel %vm5872_vm8, %v5195_v21, -inf  ;;  %v5211_v17 = vrot.slane %v5197_v25, %v7015_v24  ;;  %v3940_v27 = vcombine.high %v3938_v10, %v3938_v10 }
 0x1c9   : > { %v4682_v54 = vadd.f32 %v7827_v13, %v3938_v10  ;;  %v8172_v36 = vmax.f32 %v5911_v40, 0.0  ;;  %v5914_v19 = vmax.f32 %v5912_v62, %v5913_v38  ;;  %v4606_v35 = vadd.f32 %v7813_v15, %v3615_v45 }
 0x1ca   : > { %v4681_v4 = vadd.f32 %v7813_v15, %v3939_v18  ;;  %v3161_v61 = vpop.f32.mrf.mxu0  ;;  %v8670_v60 = vmov 0.0   ;;  %v5212_v47 = vcombine.low %v5204_v7, %v5211_v17  ;;  %v5524_v43 = vcombine.low %v4679_v44, %v4680_v12 }
 0x1cb   : > { %6581 = vmatprep.subr.bf16.mxu1 %v8670_v60  ;;  %v3941_v58 = vcombine.high %v3236_v63, %v3236_v63  ;;  %v3948_v50 = vrot.slane %v3236_v63, %v7015_v24  ;;  %v8180_v8 = vrot.slane %v8032_v59, %v7015_v24  ;;  %v5213_v14 = vcombine.low %v4606_v35, %v4607_v0 }
 0x1cc   : > { %v4683_v40 = vadd.f32 %v7816_v48, %v3940_v27  ;;  %v3618_v62 = vcombine.high %v3161_v61, %v3161_v61  ;;  %v6507_v23 = vpop.f32.mrf.mxu0  ;;  %v5531_v45 = vrot.slane %v5523_v20, %v7015_v24  ;;  %v5915_v21 = vsel %vm5872_vm8, %v5212_v47, -inf }
 0x1cd   : > { %v5538_v25 = vrot.slane %v5524_v43, %v7015_v24  ;;  %v5540_v7 = vcombine.low %v4681_v4, %v4682_v54  ;;  %v8671_v63 = vcombine.high %v8032_v59, %v8032_v59  ;;  %v8192_v57 = vmax.f32 %v5914_v19, %v5915_v21 }
 0x1ce   : > { %v4684_v0 = vadd.f32 %v7831_v9, %v3948_v50  ;;  %v3625_v18 = vrot.slane %v3161_v61, %v7015_v24  ;;  %v3164_v44 = vpop.f32.mrf.mxu0  ;;  %v6035_v20 = vpack.c.bf16 %v8172_v36, %v8172_v36  ;;  %v3955_v38 = vrot.slane %v3941_v58, %v7015_v24 }
 0x1cf   : > { %v8190_v10 = vrot.slane %v8671_v63, %v7015_v24  ;;  %v5539_v12 = vcombine.low %v5531_v45, %v5538_v25  ;;  %v3956_v17 = vcombine.high %v3948_v50, %v3948_v50  ;;  %v5221_v27 = vrot.slane %v5213_v14, %v7015_v24 }
 0x1d0   : > { %v5541_v54 = vcombine.low %v4683_v40, %v4684_v0  ;;  %v3632_v59 = vrot.slane %v3618_v62, %v7015_v24  ;;  %v3633_v35 = vcombine.high %v3625_v18, %v3625_v18  ;;  %v6508_v19 = vpop.f32.mrf.mxu0  ;;  %v5548_v4 = vrot.slane %v5540_v7, %v7015_v24 }
 0x1d1   : > { %v5972_v47 = vsel %vm5872_vm8, %v5539_v12, -inf  ;;  %v4608_v61 = vadd.f32 %v7816_v48, %v3625_v18  ;;  %v3642_v43 = vrot.slane %v3164_v44, %v7015_v24  ;;  %v6062_v40 = vunpack.c.l.b16 %v6035_v20 }
 0x1d2   : > { %v8205_v23 = vmax.f32 %v5971_v3, %v5972_v47  ;;  %v5555_v58 = vrot.slane %v5541_v54, %v7015_v24  ;;  %v3634_v50 = vcombine.high %v3632_v59, %v3632_v59  ;;  %v4609_v14 = vadd.f32 %v7831_v9, %v3633_v35 }
 0x1d3   : > { %v4685_v62 = vadd.f32 %v7822_v30, %v3956_v17  ;;  %v4686_v45 = vadd.f32 %v7856_v29, %v3955_v38  ;;  %v3650_v21 = vcombine.high %v3642_v43, %v3642_v43  ;;  %v4610_v7 = vadd.f32 %v7822_v30, %v3632_v59 }
 0x1d4   : > { %v5556_v25 = vcombine.low %v5548_v4, %v5555_v58  ;;  %v4611_v63 = vadd.f32 %v7856_v29, %v3634_v50  ;;  %v5214_v0 = vcombine.low %v4608_v61, %v4609_v14  ;;  %v3957_v3 = vcombine.high %v3955_v38, %v3955_v38 }
 0x1d5   : > { %v3241_v18 = vpop.f32.mrf.mxu1  ;;  %v4612_v12 = vadd.f32 %v7834_v26, %v3642_v43  ;;  %v4613_v54 = vadd.f32 %v7860_v5, %v3650_v21  ;;  %v5557_v58 = vcombine.low %v4685_v62, %v4686_v45  ;;  %v3635_v14 = vcombine.high %v3164_v44, %v3164_v44 }
 0x1d6   : > { %v3958_v19 = vcombine.high %v3241_v18, %v3241_v18  ;;  %v5974_v20 = vsel %vm5872_vm8, %v5556_v25, -inf  ;;  %v5228_v17 = vrot.slane %v5214_v0, %v7015_v24  ;;  %v5230_v35 = vcombine.low %v4610_v7, %v4611_v63 }
 0x1d7   : > { %v3965_v47 = vrot.slane %v3241_v18, %v7015_v24  ;;  %v6547_v4 = vpop.f32.mrf.mxu1  ;;  %v5975_v59 = vmax.f32 %v8205_v23, %v5974_v20  ;;  %v5231_v50 = vcombine.low %v4612_v12, %v4613_v54  ;;  %v4687_v7 = vadd.f32 %v7834_v26, %v3957_v3 }
 0x1d8   : > { %v3972_v61 = vrot.slane %v3958_v19, %v7015_v24  ;;  %v5229_v38 = vcombine.low %v5221_v27, %v5228_v17  ;;  %v5238_v43 = vrot.slane %v5230_v35, %v7015_v24  ;;  %v5565_v54 = vrot.slane %v5557_v58, %v7015_v24 }
 0x1d9   : > { %v3973_v21 = vcombine.high %v3965_v47, %v3965_v47  ;;  %v3244_v60 = vpop.f32.mrf.mxu1  ;;  %v5245_v25 = vrot.slane %v5231_v50, %v7015_v24  ;;  %v4688_v63 = vadd.f32 %v7860_v5, %v3965_v47  ;;  %v3649_v19 = vrot.slane %v3635_v14, %v7015_v24 }
 0x1da   : > { %v3974_v30 = vcombine.high %v3972_v61, %v3972_v61  ;;  %v5917_v62 = vsel %vm5872_vm8, %v5229_v38, -inf  ;;  %v3975_v45 = vcombine.high %v3244_v60, %v3244_v60  ;;  %v4690_v44 = vadd.f32 %v7869_v11, %v3972_v61 }
 0x1db   : > { %v4689_v23 = vadd.f32 %v7837_v41, %v3973_v21  ;;  %v6548_v0 = vpop.f32.mrf.mxu1  ;;  %v5918_v27 = vmax.f32 %v8192_v57, %v5917_v62  ;;  %v5246_v18 = vcombine.low %v5238_v43, %v5245_v25  ;;  %v5558_v12 = vcombine.low %v4687_v7, %v4688_v63 }
 0x1dc   : > { %v3982_v3 = vrot.slane %v3244_v60, %v7015_v24  ;;  %v3989_v20 = vrot.slane %v3975_v45, %v7015_v24  ;;  %v4691_v47 = vadd.f32 %v7863_v16, %v3974_v30  ;;  %v8237_v57 = vsel %vm6069_vm10, %v6062_v40, %v8129_v46 }
 0x1dd   : > { %v5919_v17 = vsel %vm5872_vm8, %v5246_v18, -inf  ;;  %v5572_v35 = vrot.slane %v5558_v12, %v7015_v24  ;;  %v5447_v4 = vcombine.low %v8073_v1, %v8084_v49  ;;  %v3871_v58 = vcombine.high %v8180_v8, %v8180_v8 }
 0x1de   : > { %v8243_v50 = vmax.f32 %v5918_v27, %v5919_v17  ;;  %v3990_v60 = vcombine.high %v3982_v3, %v3982_v3  ;;  %v5574_v38 = vcombine.low %v4689_v23, %v4690_v44  ;;  %v4692_v43 = vadd.f32 %v7877_v6, %v3982_v3 }
 0x1df   : > { %v5573_v61 = vcombine.low %v5565_v54, %v5572_v35  ;;  %v8249_v30 = vsel %vm6069_vm10, %v8172_v36, %v8064_v2  ;;  %v8673_v46 = vcombine.low %v8070_v42, %v8087_v37  ;;  %v3872_v49 = vcombine.high %v8190_v10, %v8190_v10 }
 0x1e0   : > { %8672 = vst [vmem:[#allocation8_spill] sm:$0xff] %v8249_v30  ;;  %v3651_v40 = vcombine.high %v3649_v19, %v3649_v19  ;;  %v3991_v21 = vcombine.high %v3989_v20, %v3989_v20  ;;  %v4693_v25 = vadd.f32 %v7976_v31, %v3990_v60  ;;  %v5575_v7 = vcombine.low %v4691_v47, %v4692_v43 }
 0x1e1   : > { %v8255_v1 = vrot.slane %v8673_v46, %v7015_v24  ;;  %v5976_v14 = vsel %vm5872_vm8, %v5573_v61, -inf  ;;  %v8674_v2 = vcombine.low %v8067_v28, %v8076_v56  ;;  %v4665_v42 = vadd.f32 %v7869_v11, %v3871_v58 }
 0x1e2   : > { %v5977_v37 = vmax.f32 %v5975_v59, %v5976_v14  ;;  %v8269_v63 = vsel %vm5872_vm8, %v5447_v4, -inf  ;;  %v5582_v62 = vrot.slane %v5574_v38, %v7015_v24  ;;  %v5589_v23 = vrot.slane %v5575_v7, %v7015_v24 }
 0x1e3   : > { %v8265_v36 = vrot.slane %v8674_v2, %v7015_v24  ;;  %v4664_v0 = vadd.f32 %v7837_v41, %v8180_v8  ;;  %v4666_v28 = vadd.f32 %v7863_v16, %v8190_v10  ;;  %v4615_v56 = vadd.f32 %v7869_v11, %v3651_v40 }
 0x1e4   : > { %v4667_v59 = vadd.f32 %v7877_v6, %v3872_v49  ;;  %v4695_v27 = vadd.f32 %v7728_v55, %v3991_v21  ;;  %v5590_v18 = vcombine.low %v5582_v62, %v5589_v23  ;;  %v5597_v44 = vrot.slane %v4693_v25, %v7015_v24 }
 0x1e5   : > { %v3169_v12 = vpop.f32.mrf.mxu0  ;;  %v5465_v54 = vcombine.low %v4664_v0, %v4665_v42  ;;  %v4614_v3 = vadd.f32 %v7837_v41, %v3649_v19  ;;  %v4694_v47 = vadd.f32 %v7716_v51, %v3989_v20 }
 0x1e6   : > { %v3652_v17 = vcombine.high %v3169_v12, %v3169_v12  ;;  %v3659_v35 = vrot.slane %v3169_v12, %v7015_v24  ;;  %v3249_v8 = vpop.f32.mrf.mxu1  ;;  %v5978_v10 = vsel %vm5872_vm8, %v5590_v18, -inf  ;;  %v5980_v19 = vsel %vm5884_vm9, %v5597_v44, -inf }
 0x1e7   : > { %v6511_v4 = vpop.f32.mrf.mxu0  ;;  %v3992_v58 = vcombine.high %v3249_v8, %v3249_v8  ;;  %v3999_v60 = vrot.slane %v3249_v8, %v7015_v24  ;;  %v5247_v61 = vcombine.low %v4614_v3, %v4615_v56  ;;  %v5979_v38 = vmax.f32 %v5977_v37, %v5978_v10  ;;  %v8675_v8 = vld [vmem:[#allocation7_spill] sm:$0xff] }
 0x1e8   : > { %v3666_v43 = vrot.slane %v3652_v17, %v7015_v24  ;;  %v3667_v46 = vcombine.high %v3659_v35, %v3659_v35  ;;  %v6551_v49 = vpop.f32.mrf.mxu1  ;;  %v5598_v40 = vcombine.low %v4694_v47, %v4695_v27  ;;  %v4616_v2 = vadd.f32 %v7863_v16, %v3659_v35 }
 0x1e9   : > { %v4006_v14 = vrot.slane %v3992_v58, %v7015_v24  ;;  %v4007_v21 = vcombine.high %v3999_v60, %v3999_v60  ;;  %v3172_v25 = vpop.f32.mrf.mxu0  ;;  %v8291_v20 = vmax.f32 %v5979_v38, %v5980_v19  ;;  %v4696_v23 = vadd.f32 %v7719_v32, %v3999_v60  ;;  %v8676_v19 = vld [vmem:[#allocation3_spill] sm:$0xff] }
 0x1ea   : > { %v3668_v7 = vcombine.high %v3666_v43, %v3666_v43  ;;  %v4617_v42 = vadd.f32 %v7877_v6, %v3667_v46  ;;  %v3252_v62 = vpop.f32.mrf.mxu1  ;;  %v4618_v37 = vadd.f32 %v7976_v31, %v3666_v43  ;;  %v3669_v56 = vcombine.high %v3172_v25, %v3172_v25 }
 0x1eb   : > { %v4697_v0 = vadd.f32 %v7739_v22, %v4007_v21  ;;  %v6512_v27 = vpop.f32.mrf.mxu0  ;;  %v5466_v18 = vcombine.low %v4666_v28, %v4667_v59  ;;  %v4008_v12 = vcombine.high %v4006_v14, %v4006_v14  ;;  %v3676_v3 = vrot.slane %v3172_v25, %v7015_v24 }
 0x1ec   : > { %v5248_v44 = vcombine.low %v4616_v2, %v4617_v42  ;;  %v6552_v17 = vpop.f32.mrf.mxu1  ;;  %v8301_v35 = vadd.f32 %v7976_v31, %v8675_v8  ;;  %v3683_v10 = vrot.slane %v3669_v56, %v7015_v24  ;;  %v4619_v4 = vadd.f32 %v7716_v51, %v3668_v7 }
 0x1ed   : > { %v5599_v47 = vcombine.low %v4696_v23, %v4697_v0  ;;  %v8306_v58 = vrot.slane %v5465_v54, %v7015_v24  ;;  %v5255_v60 = vrot.slane %v5247_v61, %v7015_v24  ;;  %v3684_v59 = vcombine.high %v3676_v3, %v3676_v3 }
 0x1ee   : > { %v5262_v28 = vrot.slane %v5248_v44, %v7015_v24  ;;  %v5606_v38 = vrot.slane %v5598_v40, %v7015_v24  ;;  %v5270_v43 = vrot.slane %v4618_v37, %v7015_v24  ;;  %v4620_v46 = vadd.f32 %v7728_v55, %v3676_v3  ;;  %v8677_v37 = vld [vmem:[#allocation2_spill] sm:$0xff] }
 0x1ef   : > { %v5613_v31 = vrot.slane %v5599_v47, %v7015_v24  ;;  %v4699_v21 = vadd.f32 %v8676_v19, %v4008_v12  ;;  %v4621_v25 = vadd.f32 %v7719_v32, %v3684_v59  ;;  %v4622_v54 = vadd.f32 %v7739_v22, %v3683_v10 }
 0x1f0   : > { %v5263_v49 = vcombine.low %v5255_v60, %v5262_v28  ;;  %v8318_v61 = vrot.slane %v5466_v18, %v7015_v24  ;;  %v5271_v2 = vcombine.low %v4619_v4, %v4620_v46  ;;  %v4009_v42 = vcombine.high %v3252_v62, %v3252_v62 }
 0x1f1   : > { %v5614_v7 = vcombine.low %v5606_v38, %v5613_v31  ;;  %v4698_v23 = vadd.f32 %v8677_v37, %v4006_v14  ;;  %v5272_v0 = vcombine.low %v4621_v25, %v4622_v54  ;;  %v4016_v56 = vrot.slane %v3252_v62, %v7015_v24  ;;  %v8678_v31 = vld [vmem:[#allocation4_spill] sm:$0xff] }
 0x1f2   : > { %v5921_v40 = vsel %vm5872_vm8, %v5263_v49, -inf  ;;  %v5982_v27 = vrot.slane %v8291_v20, 4  ;;  %v5923_v12 = vsel %vm5884_vm9, %v5270_v43, -inf  ;;  %v4023_v3 = vrot.slane %v4009_v42, %v7015_v24 }
 0x1f3   : > { %v5922_v44 = vmax.f32 %v8243_v50, %v5921_v40  ;;  %v5615_v18 = vcombine.low %v4698_v23, %v4699_v21  ;;  %v5279_v17 = vrot.slane %v5271_v2, %v7015_v24  ;;  %v5286_v8 = vrot.slane %v5272_v0, %v7015_v24 }
 0x1f4   : > { %v4024_v47 = vcombine.high %v4016_v56, %v4016_v56  ;;  %v3685_v60 = vcombine.high %v3683_v10, %v3683_v10  ;;  %v4025_v14 = vcombine.high %v4023_v3, %v4023_v3  ;;  %v4700_v28 = vadd.f32 %v7762_v52, %v4016_v56 }
 0x1f5   : > { %v5924_v4 = vmax.f32 %v5922_v44, %v5923_v12  ;;  %v3177_v62 = vpop.f32.mrf.mxu0  ;;  %v5287_v38 = vcombine.low %v5279_v17, %v5286_v8  ;;  %v8338_v42 = vmax.f32 %v8291_v20, %v5982_v27 }
 0x1f6   : > { %v3257_v59 = vpop.f32.mrf.mxu1  ;;  %v4701_v50 = vadd.f32 %v8678_v31, %v4024_v47  ;;  %v3686_v46 = vcombine.high %v3177_v62, %v3177_v62  ;;  %v3693_v43 = vrot.slane %v3177_v62, %v7015_v24  ;;  %v4703_v44 = vadd.f32 %v7798_v33, %v4025_v14 }
 0x1f7   : > { %v6515_v25 = vpop.f32.mrf.mxu0  ;;  %v4026_v54 = vcombine.high %v3257_v59, %v3257_v59  ;;  %v4033_v10 = vrot.slane %v3257_v59, %v7015_v24  ;;  %v5925_v56 = vrot.slane %v5924_v4, 4  ;;  %v4623_v12 = vadd.f32 %v8677_v37, %v3685_v60 }
 0x1f8   : > { %v6555_v2 = vpop.f32.mrf.mxu1  ;;  %v5616_v40 = vcombine.low %v4700_v28, %v4701_v50  ;;  %v3700_v23 = vrot.slane %v3686_v46, %v7015_v24  ;;  %v3701_v0 = vcombine.high %v3693_v43, %v3693_v43  ;;  %v4624_v17 = vadd.f32 %v8676_v19, %v3693_v43 }
 0x1f9   : > { %v3180_v8 = vpop.f32.mrf.mxu0  ;;  %v5623_v62 = vrot.slane %v5615_v18, %v7015_v24  ;;  %v4702_v28 = vadd.f32 %v7765_v53, %v4023_v3  ;;  %v4040_v46 = vrot.slane %v4026_v54, %v7015_v24  ;;  %v4041_v14 = vcombine.high %v4033_v10, %v4033_v10 }
 0x1fa   : > { %v3260_v47 = vpop.f32.mrf.mxu1  ;;  %v5630_v59 = vrot.slane %v5616_v40, %v7015_v24  ;;  %v4625_v20 = vadd.f32 %v7762_v52, %v3701_v0  ;;  %v4626_v27 = vadd.f32 %v8678_v31, %v3700_v23  ;;  %v5288_v50 = vcombine.low %v4623_v12, %v4624_v17 }
 0x1fb   : > { %v6516_v25 = vpop.f32.mrf.mxu0  ;;  %v5988_v43 = vsel %vm5872_vm8, %v5614_v7, -inf  ;;  %v3702_v21 = vcombine.high %v3700_v23, %v3700_v23  ;;  %v5926_v18 = vmax.f32 %v5924_v4, %v5925_v56  ;;  %v5632_v45 = vcombine.low %v4702_v28, %v4703_v44 }
 0x1fc   : > { %v6556_v60 = vpop.f32.mrf.mxu1  ;;  %v5631_v2 = vcombine.low %v5623_v62, %v5630_v59  ;;  %v5289_v49 = vcombine.low %v4625_v20, %v4626_v27  ;;  %v4704_v40 = vadd.f32 %v7771_v34, %v4033_v10  ;;  %v4705_v0 = vadd.f32 %v7802_v39, %v4041_v14 }
 0x1fd   : > { %v5296_v3 = vrot.slane %v5288_v50, %v7015_v24  ;;  %v3703_v12 = vcombine.high %v3180_v8, %v3180_v8  ;;  %v4042_v25 = vcombine.high %v4040_v46, %v4040_v46  ;;  %v3710_v7 = vrot.slane %v3180_v8, %v7015_v24 }
 0x1fe   : > { %v5989_v30 = vsel %vm5872_vm8, %v5631_v2, -inf  ;;  %v5303_v54 = vrot.slane %v5289_v49, %v7015_v24  ;;  %v5633_v60 = vcombine.low %v4704_v40, %v4705_v0  ;;  %v5931_v4 = vsel %vm5872_vm8, %v5287_v38, -inf }
 0x1ff   : > { %v5990_v17 = vmax.f32 %v5988_v43, %v5989_v30  ;;  %v3717_v10 = vrot.slane %v3703_v12, %v7015_v24  ;;  %v4627_v44 = vadd.f32 %v7765_v53, %v3702_v21  ;;  %v5640_v62 = vrot.slane %v5632_v45, %v7015_v24 }
 0x200   : > { %v3185_v23 = vpop.f32.mrf.mxu0  ;;  %v5304_v56 = vcombine.low %v5296_v3, %v5303_v54  ;;  %v5647_v59 = vrot.slane %v5633_v60, %v7015_v24  ;;  %v3718_v20 = vcombine.high %v3710_v7, %v3710_v7  ;;  %v4628_v49 = vadd.f32 %v7798_v33, %v3710_v7 }
 0x201   : > { %v5927_v27 = vrot.slane %v5926_v18, 2  ;;  %v4706_v8 = vadd.f32 %v7813_v15, %v4040_v46  ;;  %v4630_v38 = vadd.f32 %v7802_v39, %v3717_v10  ;;  %v4707_v14 = vadd.f32 %v7827_v13, %v4042_v25 }
 0x202   : > { %v6519_v30 = vpop.f32.mrf.mxu0  ;;  %v5932_v28 = vsel %vm5872_vm8, %v5304_v56, -inf  ;;  %v5648_v43 = vcombine.low %v5640_v62, %v5647_v59  ;;  %v4629_v21 = vadd.f32 %v7771_v34, %v3718_v20  ;;  %v5305_v2 = vcombine.low %v4627_v44, %v4628_v49 }
 0x203   : > { %v5933_v50 = vmax.f32 %v5931_v4, %v5932_v28  ;;  %v4043_v40 = vcombine.high %v3260_v47, %v3260_v47  ;;  %v4050_v0 = vrot.slane %v3260_v47, %v7015_v24  ;;  %v3720_v3 = vcombine.high %v3185_v23, %v3185_v23 }
 0x204   : > { %v3188_v45 = vpop.f32.mrf.mxu0  ;;  %v5991_v54 = vsel %vm5872_vm8, %v5648_v43, -inf  ;;  %v3719_v12 = vcombine.high %v3717_v10, %v3717_v10  ;;  %v5306_v60 = vcombine.low %v4629_v21, %v4630_v38  ;;  %v3727_v46 = vrot.slane %v3185_v23, %v7015_v24 }
 0x205   : > { %v5928_v56 = vmax.f32 %v5926_v18, %v5927_v27  ;;  %v8371_v4 = vmax.f32 %v5990_v17, %v5991_v54  ;;  %v4057_v25 = vrot.slane %v4043_v40, %v7015_v24  ;;  %v4058_v62 = vcombine.high %v4050_v0, %v4050_v0 }
 0x206   : > { %v6520_v7 = vpop.f32.mrf.mxu0  ;;  %v5649_v59 = vcombine.low %v4706_v8, %v4707_v14  ;;  %v5313_v44 = vrot.slane %v5305_v2, %v7015_v24  ;;  %v5320_v20 = vrot.slane %v5306_v60, %v7015_v24  ;;  %v3734_v47 = vrot.slane %v3720_v3, %v7015_v24 }
 0x207   : > { %v4059_v49 = vcombine.high %v4057_v25, %v4057_v25  ;;  %v4708_v10 = vadd.f32 %v7816_v48, %v4050_v0  ;;  %v4709_v30 = vadd.f32 %v7831_v9, %v4058_v62  ;;  %v3735_v23 = vcombine.high %v3727_v46, %v3727_v46 }
 0x208   : > { %v5321_v28 = vcombine.low %v5313_v44, %v5320_v20  ;;  %v3736_v18 = vcombine.high %v3734_v47, %v3734_v47  ;;  %v4631_v17 = vadd.f32 %v7813_v15, %v3719_v12  ;;  %v4632_v27 = vadd.f32 %v7827_v13, %v3727_v46  ;;  %v8679_v20 = vld [vmem:[#allocation5_spill] sm:$0xff] }
 0x209   : > { %v5929_v38 = vrot.slane %v5928_v56, 1  ;;  %v5650_v8 = vcombine.low %v4708_v10, %v4709_v30  ;;  %v4633_v14 = vadd.f32 %v7816_v48, %v3735_v23  ;;  %v4634_v43 = vadd.f32 %v7831_v9, %v3734_v47 }
 0x20a   : > { %v5934_v21 = vsel %vm5872_vm8, %v5321_v28, -inf  ;;  %v5322_v2 = vcombine.low %v4631_v17, %v4632_v27  ;;  %v3737_v40 = vcombine.high %v3188_v45, %v3188_v45  ;;  %v3744_v0 = vrot.slane %v3188_v45, %v7015_v24 }
 0x20b   : > { %v5657_v3 = vrot.slane %v5649_v59, %v7015_v24  ;;  %v8386_v54 = vmax.f32 %v5933_v50, %v5934_v21  ;;  %v5664_v12 = vrot.slane %v5650_v8, %v7015_v24  ;;  %v5323_v60 = vcombine.low %v4633_v14, %v4634_v43 }
 0x20c   : > { %v4711_v7 = vadd.f32 %v7856_v29, %v4059_v49  ;;  %v3751_v62 = vrot.slane %v3737_v40, %v7015_v24  ;;  %v3752_v44 = vcombine.high %v3744_v0, %v3744_v0  ;;  %v4635_v47 = vadd.f32 %v8679_v20, %v3736_v18 }
 0x20d   : > { %v3265_v46 = vpop.f32.mrf.mxu1  ;;  %v5665_v10 = vcombine.low %v5657_v3, %v5664_v12  ;;  %v5330_v30 = vrot.slane %v5322_v2, %v7015_v24  ;;  %v5337_v45 = vrot.slane %v5323_v60, %v7015_v24  ;;  %v4636_v59 = vadd.f32 %v7856_v29, %v3744_v0 }
 0x20e   : > { %v4710_v23 = vadd.f32 %v8679_v20, %v4057_v25  ;;  %v4637_v28 = vadd.f32 %v7834_v26, %v3752_v44  ;;  %v4638_v17 = vadd.f32 %v7860_v5, %v3751_v62  ;;  %v4060_v49 = vcombine.high %v3265_v46, %v3265_v46 }
 0x20f   : > { %v6559_v50 = vpop.f32.mrf.mxu1  ;;  %v5993_v27 = vsel %vm5872_vm8, %v5665_v10, -inf  ;;  %v5338_v8 = vcombine.low %v5330_v30, %v5337_v45  ;;  %v5339_v14 = vcombine.low %v4635_v47, %v4636_v59  ;;  %v4067_v18 = vrot.slane %v3265_v46, %v7015_v24 }
 0x210   : > { %v5994_v21 = vmax.f32 %v8371_v4, %v5993_v27  ;;  %v5340_v2 = vcombine.low %v4637_v28, %v4638_v17  ;;  %v4074_v40 = vrot.slane %v4060_v49, %v7015_v24  ;;  %v5930_v3 = vmax.f32 %v5928_v56, %v5929_v38 }
 0x211   : > { %v3268_v43 = vpop.f32.mrf.mxu1  ;;  %v5666_v25 = vcombine.low %v4710_v23, %v4711_v7  ;;  %v3753_v12 = vcombine.high %v3751_v62, %v3751_v62  ;;  %v4075_v60 = vcombine.high %v4067_v18, %v4067_v18  ;;  %v5936_v50 = vsel %vm5872_vm8, %v5338_v8, -inf }
 0x212   : > { %v4077_v0 = vcombine.high %v3268_v43, %v3268_v43  ;;  %v5347_v10 = vrot.slane %v5339_v14, %v7015_v24  ;;  %v5354_v47 = vrot.slane %v5340_v2, %v7015_v24  ;;  %v4076_v30 = vcombine.high %v4074_v40, %v4074_v40 }
 0x213   : > { %v6560_v44 = vpop.f32.mrf.mxu1  ;;  %v4712_v45 = vadd.f32 %v7834_v26, %v4067_v18  ;;  %v4713_v4 = vadd.f32 %v7860_v5, %v4075_v60  ;;  %v4084_v59 = vrot.slane %v3268_v43, %v7015_v24  ;;  %v4714_v56 = vadd.f32 %v7837_v41, %v4074_v40 }
 0x214   : > { %v3193_v46 = vpop.f32.mrf.mxu0  ;;  %v4715_v38 = vadd.f32 %v7869_v11, %v4076_v30  ;;  %v8411_v7 = vrot.slane %v4077_v0, %v7015_v24  ;;  %v8414_v17 = vmax.f32 %v5930_v3, 0.0  ;;  %v5674_v49 = vrot.slane %v5666_v25, %v7015_v24  ;;  %v8425_v3 = vld.sshfl [vmem:[%s8644_s2 + $0x30] sm:$0x3 pattern:$0x76325410] }
 0x215   : > { %v3754_v28 = vcombine.high %v3193_v46, %v3193_v46  ;;  %v3761_v62 = vrot.slane %v3193_v46, %v7015_v24  ;;  %v5667_v27 = vcombine.low %v4712_v45, %v4713_v4  ;;  %v4092_v8 = vcombine.high %v4084_v59, %v4084_v59 }
 0x216   : > { %v6523_v23 = vpop.f32.mrf.mxu0  ;;  %v5937_v14 = vmax.f32 %v8386_v54, %v5936_v50  ;;  %v5355_v18 = vcombine.low %v5347_v10, %v5354_v47  ;;  %v5683_v43 = vcombine.low %v4714_v56, %v4715_v38  ;;  %v4716_v0 = vadd.f32 %v7863_v16, %v4084_v59 }
 0x217   : > { %v3768_v2 = vrot.slane %v3754_v28, %v7015_v24  ;;  %v5681_v60 = vrot.slane %v5667_v27, %v7015_v24  ;;  %v4717_v44 = vadd.f32 %v7877_v6, %v4092_v8  ;;  %v3769_v30 = vcombine.high %v3761_v62, %v3761_v62 }
 0x218   : > { %v3196_v40 = vpop.f32.mrf.mxu0  ;;  %v4718_v54 = vadd.f32 %v8425_v3, %v8411_v7  ;;  %v4639_v50 = vadd.f32 %v7837_v41, %v3753_v12  ;;  %v4640_v10 = vadd.f32 %v7869_v11, %v3761_v62  ;;  %v5691_v28 = vrot.slane %v5683_v43, %v7015_v24 }
 0x219   : > { %v3770_v25 = vcombine.high %v3768_v2, %v3768_v2  ;;  %v5682_v46 = vcombine.low %v5674_v49, %v5681_v60  ;;  %v5684_v45 = vcombine.low %v4716_v0, %v4717_v44  ;;  %v4641_v4 = vadd.f32 %v7863_v16, %v3769_v30 }
 0x21a   : > { %v6524_v47 = vpop.f32.mrf.mxu0  ;;  %v4642_v59 = vadd.f32 %v7877_v6, %v3768_v2  ;;  %v5356_v38 = vcombine.low %v4639_v50, %v4640_v10  ;;  %v3771_v23 = vcombine.high %v3196_v40, %v3196_v40  ;;  %v3778_v62 = vrot.slane %v3196_v40, %v7015_v24 }
 0x21b   : > { %v4643_v56 = vadd.f32 %v8425_v3, %v3770_v25  ;;  %v5995_v8 = vsel %vm5872_vm8, %v5682_v46, -inf  ;;  %v5698_v12 = vrot.slane %v5684_v45, %v7015_v24  ;;  %v5938_v49 = vsel %vm5872_vm8, %v5355_v18, -inf }
 0x21c   : > { %v3273_v27 = vpop.f32.mrf.mxu1  ;;  %v5357_v41 = vcombine.low %v4641_v4, %v4642_v59  ;;  %v5996_v60 = vmax.f32 %v5994_v21, %v5995_v8  ;;  %v5706_v0 = vrot.slane %v4718_v54, %v7015_v24  ;;  %v3785_v2 = vrot.slane %v3771_v23, %v7015_v24 }
 0x21d   : > { %v5699_v44 = vcombine.low %v5691_v28, %v5698_v12  ;;  %v5364_v30 = vrot.slane %v5356_v38, %v7015_v24  ;;  %v3786_v50 = vcombine.high %v3778_v62, %v3778_v62  ;;  %v4093_v10 = vcombine.high %v8411_v7, %v8411_v7 }
 0x21e   : > { %v6563_v43 = vpop.f32.mrf.mxu1  ;;  %v5371_v25 = vrot.slane %v5357_v41, %v7015_v24  ;;  %v5379_v47 = vrot.slane %v4643_v56, %v7015_v24  ;;  %v3787_v40 = vcombine.high %v3785_v2, %v3785_v2  ;;  %v4094_v46 = vcombine.high %v3273_v27, %v3273_v27 }
 0x21f   : > { %v5939_v21 = vmax.f32 %v5937_v14, %v5938_v49  ;;  %v5997_v54 = vsel %vm5872_vm8, %v5699_v44, -inf  ;;  %v4101_v4 = vrot.slane %v3273_v27, %v7015_v24  ;;  %v5999_v28 = vsel %vm5884_vm9, %v5706_v0, -inf }
 0x220   : > { %v3276_v18 = vpop.f32.mrf.mxu1  ;;  %v5372_v45 = vcombine.low %v5364_v30, %v5371_v25  ;;  %v5998_v59 = vmax.f32 %v5996_v60, %v5997_v54  ;;  %v4647_v41 = vadd.f32 %v7739_v22, %v3787_v40  ;;  %v4108_v38 = vrot.slane %v4094_v46, %v7015_v24 }
 0x221   : > { %v4645_v56 = vadd.f32 %v7728_v55, %v3786_v50  ;;  %v4646_v8 = vadd.f32 %v7719_v32, %v3785_v2  ;;  %v4109_v14 = vcombine.high %v4101_v4, %v4101_v4  ;;  %v5942_v49 = vsel %vm5884_vm9, %v5379_v47, -inf }
 0x222   : > { %v6564_v23 = vpop.f32.mrf.mxu1  ;;  %v5940_v7 = vsel %vm5872_vm8, %v5372_v45, -inf  ;;  %v4644_v27 = vadd.f32 %v7716_v51, %v3778_v62  ;;  %v4720_v60 = vadd.f32 %v7728_v55, %v4101_v4  ;;  %v6000_v0 = vmax.f32 %v5998_v59, %v5999_v28 }
 0x223   : > { %v5941_v12 = vmax.f32 %v5939_v21, %v5940_v7  ;;  %v5381_v43 = vcombine.low %v4646_v8, %v4647_v41  ;;  %v4721_v44 = vadd.f32 %v7719_v32, %v4109_v14  ;;  %v4722_v30 = vadd.f32 %v7739_v22, %v4108_v38 }
 0x224   : > { %v8680_v25 = vcombine.low %v8265_v36, %v8255_v1  ;;  %v6036_v2 = vpack.c.bf16 %v8414_v17, %v8414_v17  ;;  %v4111_v40 = vcombine.high %v3276_v18, %v3276_v18  ;;  %v5380_v62 = vcombine.low %v4644_v27, %v4645_v56 }
 0x225   : > { %v5943_v47 = vmax.f32 %v5941_v12, %v5942_v49  ;;  %v4110_v46 = vcombine.high %v4108_v38, %v4108_v38  ;;  %v4719_v55 = vadd.f32 %v7716_v51, %v4093_v10  ;;  %v4118_v21 = vrot.slane %v3276_v18, %v7015_v24 }
 0x226   : > { %v8463_v50 = vsel %vm5872_vm8, %v8680_v25, -inf  ;;  %v8681_v32 = vcombine.low %v8306_v58, %v8318_v61  ;;  %v8682_v1 = vrot.slane %v8301_v35, %v7015_v24  ;;  %v5984_v54 = vrot.slane %v8338_v42, 2 }
 0x227   : > { %v5944_v45 = vrot.slane %v5943_v47, 4  ;;  %v6001_v4 = vrot.slane %v6000_v0, 4  ;;  %v5395_v51 = vrot.slane %v5381_v43, %v7015_v24  ;;  %v5707_v10 = vcombine.low %v4719_v55, %v4720_v60 }
 0x228   : > { %v8473_v22 = vsel %vm5872_vm8, %v8681_v32, -inf  ;;  %v8479_v36 = vsel %vm5884_vm9, %v8682_v1, -inf  ;;  %v5708_v18 = vcombine.low %v4721_v44, %v4722_v30  ;;  %v6063_v59 = vunpack.c.l.b16 %v6036_v2 }
 0x229   : > { %v5945_v28 = vmax.f32 %v5943_v47, %v5944_v45  ;;  %v4125_v58 = vrot.slane %v4111_v40, %v7015_v24  ;;  %v5388_v61 = vrot.slane %v5380_v62, %v7015_v24  ;;  %v4126_v41 = vcombine.high %v4118_v21, %v4118_v21 }
 0x22a   : > { %v4723_v35 = vadd.f32 %v8677_v37, %v4110_v46  ;;  %v4724_v38 = vadd.f32 %v8676_v19, %v4118_v21  ;;  %v3201_v23 = vpop.f32.mrf.mxu0  ;;  %v8488_v7 = vmax.f32 %v8338_v42, %v5984_v54  ;;  %v8491_v12 = vmax.f32 %v6000_v0, %v6001_v4 }
 0x22b   : > { %v5946_v56 = vrot.slane %v5945_v28, 2  ;;  %v3788_v8 = vcombine.high %v3201_v23, %v3201_v23  ;;  %v3795_v14 = vrot.slane %v3201_v23, %v7015_v24  ;;  %v5396_v49 = vcombine.low %v5388_v61, %v5395_v51 }
 0x22c   : > { %v8494_v27 = vrot.slane %v5707_v10, %v7015_v24  ;;  %v8497_v60 = vrot.slane %v5708_v18, %v7015_v24  ;;  %v6527_v43 = vpop.f32.mrf.mxu0  ;;  %v4127_v30 = vcombine.high %v4125_v58, %v4125_v58  ;;  %v4725_v2 = vadd.f32 %v7762_v52, %v4126_v41 }
 0x22d   : > { %v5947_v44 = vmax.f32 %v5945_v28, %v5946_v56  ;;  %v3802_v25 = vrot.slane %v3788_v8, %v7015_v24  ;;  %v3803_v42 = vcombine.high %v3795_v14, %v3795_v14  ;;  %v4726_v47 = vadd.f32 %v8678_v31, %v4125_v58 }
 0x22e   : > { %v5724_v40 = vcombine.low %v4723_v35, %v4724_v38  ;;  %v3204_v0 = vpop.f32.mrf.mxu0  ;;  %v8504_v62 = vsel %vm6071_vm11, %v6063_v59, %v8237_v57  ;;  %v4648_v21 = vadd.f32 %v8677_v37, %v3795_v14  ;;  %v8509_v1 = vsel %vm5872_vm8, %v5396_v49, -inf }
 0x22f   : > { %v5948_v46 = vrot.slane %v5947_v44, 1  ;;  %v3804_v55 = vcombine.high %v3802_v25, %v3802_v25  ;;  %v4649_v32 = vadd.f32 %v8676_v19, %v3803_v42  ;;  %v5723_v54 = vcombine.low %v8494_v27, %v8497_v60 }
 0x230   : > { %v3805_v45 = vcombine.high %v3204_v0, %v3204_v0  ;;  %v3812_v4 = vrot.slane %v3204_v0, %v7015_v24  ;;  %v6528_v51 = vpop.f32.mrf.mxu0  ;;  %v4650_v10 = vadd.f32 %v7762_v52, %v3802_v25  ;;  %v6003_v37 = vrot.slane %v8491_v12, 2 }
 0x231   : > { %v4651_v57 = vadd.f32 %v8678_v31, %v3804_v55  ;;  %v5397_v18 = vcombine.low %v4648_v21, %v4649_v32  ;;  %v5725_v28 = vcombine.low %v4725_v2, %v4726_v47  ;;  %v4727_v61 = vadd.f32 %v7765_v53, %v4127_v30 }
 0x232   : > { %v3281_v59 = vpop.f32.mrf.mxu1  ;;  %v3819_v19 = vrot.slane %v3805_v45, %v7015_v24  ;;  %v3820_v58 = vcombine.high %v3812_v4, %v3812_v4  ;;  %v8520_v41 = vrot.slane %v5724_v40, %v7015_v24  ;;  %v5949_v56 = vmax.f32 %v5947_v44, %v5948_v46 }
 0x233   : > { %v5398_v35 = vcombine.low %v4650_v10, %v4651_v57  ;;  %v4128_v38 = vcombine.high %v3281_v59, %v3281_v59  ;;  %v4652_v31 = vadd.f32 %v7765_v53, %v3812_v4  ;;  %v4135_v14 = vrot.slane %v3281_v59, %v7015_v24 }
 0x234   : > { %v6567_v23 = vpop.f32.mrf.mxu1  ;;  %v3821_v52 = vcombine.high %v3819_v19, %v3819_v19  ;;  %v4653_v8 = vadd.f32 %v7798_v33, %v3820_v58  ;;  %v5405_v49 = vrot.slane %v5397_v18, %v7015_v24  ;;  %v4654_v60 = vadd.f32 %v7771_v34, %v3819_v19 }
 0x235   : > { %v5412_v27 = vrot.slane %v5398_v35, %v7015_v24  ;;  %v4142_v43 = vrot.slane %v4128_v38, %v7015_v24  ;;  %v4143_v44 = vcombine.high %v4135_v14, %v4135_v14  ;;  %v4728_v2 = vadd.f32 %v7798_v33, %v4135_v14 }
 0x236   : > { %v3284_v30 = vpop.f32.mrf.mxu1  ;;  %v4655_v25 = vadd.f32 %v7802_v39, %v3821_v52  ;;  %v5414_v42 = vcombine.low %v4652_v31, %v4653_v8  ;;  %v5739_v55 = vrot.slane %v5725_v28, %v7015_v24  ;;  %v8534_v45 = vmax.f32 %v5949_v56, 0.0 }
 0x237   : > { %v5413_v53 = vcombine.low %v5405_v49, %v5412_v27  ;;  %v4144_v47 = vcombine.high %v4142_v43, %v4142_v43  ;;  %v4730_v40 = vadd.f32 %v7802_v39, %v4142_v43  ;;  %v4145_v0 = vcombine.high %v3284_v30, %v3284_v30 }
 0x238   : > { %v6568_v46 = vpop.f32.mrf.mxu1  ;;  %v5415_v21 = vcombine.low %v4654_v60, %v4655_v25  ;;  %v4729_v32 = vadd.f32 %v7771_v34, %v4143_v44  ;;  %v5422_v4 = vrot.slane %v5414_v42, %v7015_v24  ;;  %v5741_v51 = vcombine.low %v4727_v61, %v4728_v2 }
 0x239   : > { %v4152_v10 = vrot.slane %v3284_v30, %v7015_v24  ;;  %v4159_v33 = vrot.slane %v4145_v0, %v7015_v24  ;;  %v5951_v57 = vsel %vm5872_vm8, %v5413_v53, -inf  ;;  %v4731_v59 = vadd.f32 %v7813_v15, %v4144_v47 }
 0x23a   : > { %v5429_v39 = vrot.slane %v5415_v21, %v7015_v24  ;;  %v5742_v18 = vcombine.low %v4729_v32, %v4730_v40  ;;  %v6007_v61 = vsel %vm5872_vm8, %v5723_v54, -inf  ;;  %v6037_v23 = vpack.c.bf16 %v8534_v45, %v8534_v45 }
 0x23b   : > { %v4160_v28 = vcombine.high %v4152_v10, %v4152_v10  ;;  %v4161_v19 = vcombine.high %v4159_v33, %v4159_v33  ;;  %v4732_v34 = vadd.f32 %v7827_v13, %v4152_v10  ;;  %v4734_v58 = vadd.f32 %v7831_v9, %v4159_v33  ;;  %v8683_v10 = vld [vmem:[#allocation6_spill] sm:$0xff] }
 0x23c   : > { %v5430_v35 = vcombine.low %v5422_v4, %v5429_v39  ;;  %v5756_v38 = vrot.slane %v5742_v18, %v7015_v24  ;;  %v5740_v56 = vcombine.low %v8520_v41, %v5739_v55  ;;  %v5952_v52 = vmax.f32 %v8509_v1, %v5951_v57 }
 0x23d   : > { %v5749_v15 = vrot.slane %v5741_v51, %v7015_v24  ;;  %v4733_v31 = vadd.f32 %v7816_v48, %v4160_v28  ;;  %v4735_v14 = vadd.f32 %v8679_v20, %v4161_v19  ;;  %v5758_v60 = vcombine.low %v4731_v59, %v4732_v34  ;;  %v8684_v59 = vld [vmem:[#allocation8_spill] sm:$0xff] }
 0x23e   : > { %v3289_v13 = vpop.f32.mrf.mxu1  ;;  %v5953_v9 = vsel %vm5872_vm8, %v5430_v35, -inf  ;;  %v6064_v42 = vunpack.c.l.b16 %v6037_v23  ;;  %v6008_v48 = vsel %vm5872_vm8, %v5740_v56, -inf  ;;  %v6004_v20 = vmax.f32 %v8491_v12, %v6003_v37 }
 0x23f   : > { %v4162_v8 = vcombine.high %v3289_v13, %v3289_v13  ;;  %v4169_v54 = vrot.slane %v3289_v13, %v7015_v24  ;;  %v5954_v49 = vmax.f32 %v5952_v52, %v5953_v9  ;;  %v5757_v27 = vcombine.low %v5749_v15, %v5756_v38 }
 0x240   : > { %v5759_v43 = vcombine.low %v4733_v31, %v4734_v58  ;;  %v6571_v30 = vpop.f32.mrf.mxu1  ;;  %v5766_v55 = vrot.slane %v5758_v60, %v7015_v24  ;;  %v6074_v12 = vsel %vm6073_vm12, %v6064_v42, %v8504_v62  ;;  %v6155_v28 = vsel %vm6071_vm11, %v8414_v17, %v8684_v59  ;;  %v6627_v59 = vld [vmem:[%s8647_s5 + $0x8] sm:$0xff]  }
 0x241   : > { %v4176_v41 = vrot.slane %v4162_v8, %v7015_v24  ;;  %v4177_v1 = vcombine.high %v4169_v54, %v4169_v54  ;;  %v4736_v25 = vadd.f32 %v7856_v29, %v4169_v54  ;;  %v5956_v44 = vmax.f32 %v5954_v49, %v8269_v63 }
 0x242   : > { %v5773_v2 = vrot.slane %v5759_v43, %v7015_v24  ;;  %v3292_v53 = vpop.f32.mrf.mxu1  ;;  %v6010_v4 = vsel %vm5872_vm8, %v5757_v27, -inf  ;;  %v6009_v58 = vmax.f32 %v6007_v61, %v6008_v48  ;;  %v6156_v23 = vsel %vm6073_vm12, %v8534_v45, %v6155_v28 }
 0x243   : > { %v4178_v47 = vcombine.high %v4176_v41, %v4176_v41  ;;  %v4737_v40 = vadd.f32 %v7834_v26, %v4177_v1  ;;  %v4738_v0 = vadd.f32 %v7860_v5, %v4176_v41  ;;  %v5775_v46 = vcombine.low %v4735_v14, %v4736_v25 }
 0x244   : > { %v5958_v29 = vmax.f32 %v5956_v44, %v8463_v50  ;;  %v4179_v21 = vcombine.high %v3292_v53, %v3292_v53  ;;  %v4186_v63 = vrot.slane %v3292_v53, %v7015_v24  ;;  %v6572_v32 = vpop.f32.mrf.mxu1  ;;  %v5774_v5 = vcombine.low %v5766_v55, %v5773_v2 }
 0x245   : > { %v5776_v51 = vcombine.low %v4737_v40, %v4738_v0  ;;  %v4739_v33 = vadd.f32 %v8683_v10, %v4178_v47  ;;  %v5783_v57 = vrot.slane %v5775_v46, %v7015_v24  ;;  %v6011_v17 = vmax.f32 %v6009_v58, %v6010_v4 }
 0x246   : > { %v5960_v26 = vmax.f32 %v5958_v29, %v8473_v22  ;;  %v4193_v37 = vrot.slane %v4179_v21, %v7015_v24  ;;  %v4194_v50 = vcombine.high %v4186_v63, %v4186_v63  ;;  %v4740_v18 = vadd.f32 %v7869_v11, %v4186_v63 }
 0x247   : > { %v5790_v39 = vrot.slane %v5776_v51, %v7015_v24  ;;  %v6012_v56 = vsel %vm5872_vm8, %v5774_v5, -inf  ;;  %v6005_v31 = vrot.slane %v6004_v20, 1 }
 0x248   : > { %v5962_v19 = vmax.f32 %v5960_v26, %v8479_v36  ;;  %v4195_v34 = vcombine.high %v4193_v37, %v4193_v37  ;;  %v4741_v62 = vadd.f32 %v7863_v16, %v4194_v50  ;;  %v4742_v22 = vadd.f32 %v7877_v6, %v4193_v37 }
 0x249   : > { %v5791_v35 = vcombine.low %v5783_v57, %v5790_v39  ;;  %v5792_v38 = vcombine.low %v4739_v33, %v4740_v18  ;;  %v5986_v36 = vrot.slane %v8488_v7, 1  ;;  %v6013_v9 = vmax.f32 %v6011_v17, %v6012_v56 }
 0x24a   : > { %v4743_v11 = vadd.f32 %v8425_v3, %v4195_v34  ;;  %v5793_v52 = vcombine.low %v4741_v62, %v4742_v22  ;;  %v5963_v15 = vrot.slane %v5962_v19, 4  ;;  %v6006_v60 = vmax.f32 %v6004_v20, %v6005_v31 }
 0x24b   : > { %v6014_v16 = vsel %vm5872_vm8, %v5791_v35, -inf  ;;  %v5800_v6 = vrot.slane %v5792_v38, %v7015_v24  ;;  %v5987_v3 = vmax.f32 %v8488_v7, %v5986_v36  ;;  %v8685_v18 = vmov 0.0  }
 0x24c   : > { %v5807_v61 = vrot.slane %v5793_v52, %v7015_v24  ;;  %v5964_v13 = vmax.f32 %v5962_v19, %v5963_v15  ;;  %v5815_v45 = vrot.slane %v4743_v11, %v7015_v24  ;;  %v6015_v14 = vmax.f32 %v6013_v9, %v6014_v16  ;;  %v6628_v19 = vld [vmem:[%s8647_s5] sm:$0xff]   ;;  %v6629_v9 = vld [vmem:[%s8649_s7 + $0x8] sm:$0xff]  }
 0x24d   : > { %v6031_v25 = vmax.f32 %v5987_v3, 0.0  ;;  %v6032_v48 = vmax.f32 %v6006_v60, 0.0 }
 0x24e   : > { %v5808_v8 = vcombine.low %v5800_v6, %v5807_v61  ;;  %v5965_v54 = vrot.slane %v5964_v13, 2  ;;  %v6018_v30 = vsel %vm5884_vm9, %v5815_v45, -inf  ;;  %v6630_v45 = vld [vmem:[%s8649_s7] sm:$0xff]  }
 0x24f   : > { %v6039_v53 = vpack.c.bf16 %v6031_v25, %v6031_v25  ;;  %v6040_v47 = vpack.c.bf16 %v6032_v48, %v6032_v48 }
 0x250   : > { %v6016_v49 = vsel %vm5872_vm8, %v5808_v8, -inf  ;;  %v5966_v27 = vmax.f32 %v5964_v13, %v5965_v54  ;;  %v6422_v13 = vld [vmem:[%s8648_s6] ss:$0 sm:$0xff] }
 0x251   : > { %v6017_v43 = vmax.f32 %v6015_v14, %v6016_v49  ;;  %v6066_v21 = vunpack.c.l.b16 %v6039_v53  ;;  %v6067_v63 = vunpack.c.l.b16 %v6040_v47  ;;  %v6427_v53 = vld [vmem:[%s8650_s8] ss:$0 sm:$0xff] }
 0x252   : > { %v5967_v41 = vrot.slane %v5966_v27, 1 }
 0x253   : > { %v6019_v1 = vmax.f32 %v6017_v43, %v6018_v30 }
 0x254   : > { %v5968_v42 = vmax.f32 %v5966_v27, %v5967_v41 }
 0x255   : > { %v6020_v44 = vrot.slane %v6019_v1, 4 }
 0x256   : > { %v6030_v2 = vmax.f32 %v5968_v42, 0.0 }
 0x257   : > { %v6021_v24 = vmax.f32 %v6019_v1, %v6020_v44 }
 0x258   : > { %v6038_v7 = vpack.c.bf16 %v6030_v2, %v6030_v2  ;;  %v6157_v40 = vsel %vm6075_vm13, %v6030_v2, %v6156_v23 }
 0x259   : > { %v6022_v20 = vrot.slane %v6021_v24, 2  ;;  %v6158_v0 = vsel %vm6077_vm14, %v6031_v25, %v6157_v40 }
 0x25a   : > { %v6065_v46 = vunpack.c.l.b16 %v6038_v7  ;;  %v6159_v29 = vsel %vm6079_vm15, %v6032_v48, %v6158_v0 }
 0x25b   : > { %v6023_v55 = vmax.f32 %v6021_v24, %v6022_v20 }
 0x25c   : > { %v6076_v32 = vsel %vm6075_vm13, %v6065_v46, %v6074_v12  ;;  %v6417_v12 = vld [vmem:[%s8646_s4] ss:$0 sm:$0xff] }
 0x25d   : > { %v6024_v4 = vrot.slane %v6023_v55, 1  ;;  %v6078_v51 = vsel %vm6077_vm14, %v6066_v21, %v6076_v32 }
 0x25e   : > { %v6080_v10 = vsel %vm6079_vm15, %v6067_v63, %v6078_v51 }
 0x25f   : > { %v6025_v33 = vmax.f32 %v6023_v55, %v6024_v4 }
 0x261   : > { %v6033_v26 = vmax.f32 %v6025_v33, 0.0 }
 0x263   : > { %v6160_v5 = vsel %vm6081_vm0, %v6033_v26, %v6159_v29  ;;  %v6041_v37 = vpack.c.bf16 %v6033_v26, %v6033_v26 }
 0x264   : > { %6161 = vrot.lane.b32.xlu0 %v6160_v5, %s6683_s23 }
 0x265   : > { %v6068_v50 = vunpack.c.l.b16 %v6041_v37 }
 0x267   : > { %v6082_v57 = vsel %vm6081_vm0, %v6068_v50, %v6080_v10 }
 0x268   : > { %v6083_v39 = vpack.c.b16 %v6082_v57, %v6082_v57 }
 0x26a   : > { %6578 = vmatmul.mubr.msk.bf16.vlgmr.msra.gmra.mxu1 %vm5872_vm8, %v6083_v39 }
 0x26b   : > { %6585 = vmatprep.mubr.msk.bf16.mxu1 %vm6681_vm4, %v8685_v18  ;;  %6582 = vmatpush3.bf16.msra.mxu1 %v6627_v59 }
 0x26c   : > { %6583 = vmatprep.subr.bf16.mxu1 %v8685_v18 }
 0x26f   : > { %6584 = vmatpush3.bf16.msra.mxu1 %v6628_v19 }
 0x270   : > { %6589 = vmatprep.subr.bf16.mxu1 %v8685_v18 }
 0x2d6   : > { %v6162_v15 = vpop.permute.xlu0 %6161 }
 0x32a   : > { %v6133_v28 = vpop.f32.mrf.mxu1 }
 0x32b   : > { %v6134_v34 = vadd.f32 %v6417_v12, %v6133_v28 }
 0x32c   : > { %v6579_v62 = vpop.f32.mrf.mxu1 }
 0x32d   : > { %v6139_v22 = vmax.f32 %v6134_v34, 0.0  ;;  %v6421_v38 = vmul.f32 -1.442695, %v6134_v34 }
 0x32e   : > { %v6136_v58 = vpop.f32.mrf.mxu1 }
 0x32f   : > { %6167 = vrot.lane.b32.xlu1 %v6139_v22, %s6683_s23  ;;  %6631 = vpow2.f32 %v6421_v38 }
 0x330   : > { %v6580_v35 = vpop.f32.mrf.mxu1 }
 0x33c   : > { %v6632_v23 = vpop.eup %6631 }
 0x33d   : > { %v6143_v56 = vadd.f32 1.0, %v6632_v23 }
 0x33f   : > { %6633 = vrcp.f32 %v6143_v56 }
 0x34c   : > { %v6634_v11 = vpop.eup %6633 }
 0x34d   : > { %v6165_v52 = vsub.f32 1.0, %v6634_v11  ;;  %v6164_v36 = vmul.f32 %v6634_v11, %v6162_v15 }
 0x3a1   : > { %v6168_v17 = vpop.permute.xlu1 %6167 }
 0x3a2   : > { %v6170_v31 = vmul.f32 %v6168_v17, %v6165_v52 }
 0x3a4   : > { %v6171_v16 = vadd.f32 %v6170_v31, %v6164_v36 }
 0x3a6   : > { %v6172_v6 = vpack.c.bf16 %v6171_v16, %v6171_v16 }
 0x3a8   : > { %6185 = vrot.lane.b32.xlu0 %v6172_v6, %s6684_s11 }
 0x41a   : > { %v6186_v61 = vpop.permute.xlu0 %6185 }
 0x41b   : > { %6586 = vmatmul.mubr.msk.bf16.vlgmr.msra.gmra.mxu1 %vm5872_vm8, %v6186_v61 }
 0x41c   : > { %6593 = vmatprep.mubr.msk.bf16.mxu1 %vm6681_vm4, %v8685_v18  ;;  %6590 = vmatpush3.bf16.msra.mxu1 %v6629_v9 }
 0x41d   : > { %6591 = vmatprep.subr.bf16.mxu1 %v8685_v18 }
 0x420   : > { %6592 = vmatpush3.bf16.msra.mxu1 %v6630_v45 }
 0x4db   : > { %v6236_v8 = vpop.f32.mrf.mxu1 }
 0x4dc   : > { %v6237_v54 = vadd.f32 %v6422_v13, %v6236_v8 }
 0x4dd   : > { %v6587_v14 = vpop.f32.mrf.mxu1 }
 0x4de   : > { %v6242_v3 = vmax.f32 %v6237_v54, 0.0  ;;  %v6426_v60 = vmul.f32 -1.442695, %v6237_v54 }
 0x4df   : > { %v6239_v49 = vpop.f32.mrf.mxu1 }
 0x4e0   : > { %6252 = vrot.lane.b32.xlu1 %v6242_v3, %s6683_s23  ;;  %6635 = vpow2.f32 %v6426_v60  ;;  %s335_s23 = scalar_lea.vmem %s8651_s9, %s6388_s18 }
 0x4e1   : > { %v6588_v27 = vpop.f32.mrf.mxu1 }
 0x4ed   : > { %v6636_v43 = vpop.eup %6635 }
 0x4ee   : > { %v6246_v30 = vadd.f32 1.0, %v6636_v43 }
 0x4f0   : > { %6637 = vrcp.f32 %v6246_v30 }
 0x4fd   : > { %v6638_v41 = vpop.eup %6637 }
 0x4fe   : > { %v6250_v1 = vsub.f32 1.0, %v6638_v41  ;;  %v6249_v42 = vmul.f32 %v6638_v41, %v6171_v16 }
 0x552   : > { %v6253_v25 = vpop.permute.xlu1 %6252 }
 0x553   : > { %v6255_v48 = vmul.f32 %v6253_v25, %v6250_v1 }
 0x555   : > { %v6256_v44 = vadd.f32 %v6255_v48, %v6249_v42 }
 0x557   : > { %v6257_v2 = vpack.c.bf16 %v6256_v44, %v6256_v44 }
 0x559   : > { %6270 = vrot.lane.b32.xlu0 %v6257_v2, %s6684_s11 }
 0x5cb   : > { %v6271_v24 = vpop.permute.xlu0 %6270 }
 0x5cc   : > { %6594 = vmatmul.mubr.msk.bf16.vlgmr.msra.gmra.mxu1 %vm5872_vm8, %v6271_v24 }
 0x68c   : > { %v6321_v7 = vpop.f32.mrf.mxu1 }
 0x68d   : > { %v6322_v47 = vadd.f32 %v6427_v53, %v6321_v7 }
 0x68e   : > { %v6595_v40 = vpop.f32.mrf.mxu1 }
 0x68f   : > { %6327 = vst.msk [vmem:[%s335_s23] sm:$0xff] %vm5872_vm8, %v6322_v47 }
 0x690   : > { %v6324_v20 = vpop.f32.mrf.mxu1 }
 0x692   : > { %v6596_v0 = vpop.f32.mrf.mxu1 }
 0x693 PF: > { %s19_s30 = sadd.s32 1, %s6676_s30  }
 0x694   : > { %p16_p5 = scmp.ge.s32.totalorder %s19_s30, 5  }
 0x696   :  { %18 = sbr.rel (!%p16_p5) target bundleno = 1 (0x1), region = 86 }

// kernel: elmo_layer_embedder_forward.3
= control target key start
LH: loop header
LB: loop body
LE: loop exit
PB: predicated region body
PF: predicated region fallthrough
CT: control target
= control target key end

     0   :  { %v8335_v2 = vmov 0   ;;  %vm166_vm0 = vcmask 523264   ;;  %s8320_s0 = inlined_call_operand.vmem [shape: f32[10,8,64], index: 0, kind: input, shape index: {}]   ;;  %s8321_s1 = inlined_call_operand.vmem [shape: bf16[64,512], index: 1, kind: input, shape index: {}]   ;;  %s8322_s2 = inlined_call_operand.vmem [shape: bf16[64,512], index: 2, kind: input, shape index: {}]   ;;  %s8323_s3 = inlined_call_operand.vmem [shape: f32[1,512], index: 3, kind: input, shape index: {}]   ;;  %s8324_s4 = inlined_call_operand.vmem [shape: bf16[128,64], index: 4, kind: input, shape index: {}]   ;;  %s8325_s5 = inlined_call_operand.vmem [shape: bf16[128,512], index: 5, kind: input, shape index: {}]   ;;  %s8326_s6 = inlined_call_operand.vmem [shape: f32[1,512], index: 6, kind: input, shape index: {}]   ;;  %s8327_s7 = inlined_call_operand.vmem [shape: bf16[128,64], index: 7, kind: input, shape index: {}]   ;;  %s8328_s8 = inlined_call_operand.hbm [shape: f32[10,8,64], index: 8, kind: output, shape index: {0}]   ;;  %s8329_s9 = inlined_call_operand.vmem [shape: f32[10,8,64], index: 9, kind: output, shape index: {1}]  }
   0x1   :  { %v4908_v0 = vld [vmem:[%s8321_s1 + $0x64] ss:$16 sps:$4 sm:$0xff]   ;;  %v4910_v1 = vld [vmem:[%s8321_s1 + $0x6c] ss:$16 sps:$4 sm:$0xff]   ;;  %214 = vmatprep.mubr.bf16.mxu0 %v8335_v2  ;;  %297 = vmatprep.mubr.bf16.mxu1 %v8335_v2  ;;  %v4912_v3 = vld [vmem:[%s8321_s1 + $0x60] ss:$16 sps:$4 sm:$0xff]  }
   0x2   :  { %190 = vmatprep.subr.bf16.mxu0 %v4908_v0  ;;  %v4913_v4 = vld [vmem:[%s8321_s1 + $0x68] ss:$16 sps:$4 sm:$0xff]   ;;  %273 = vmatprep.subr.bf16.mxu1 %v4910_v1  ;;  %v4914_v5 = vld [vmem:[%s8321_s1 + $0x44] ss:$16 sps:$4 sm:$0xff]   ;;  %v4916_v6 = vld [vmem:[%s8321_s1 + $0x4c] ss:$16 sps:$4 sm:$0xff]  }
   0x3   :  { %191 = vmatpush1.bf16.msra.mxu0 %v4912_v3  ;;  %274 = vmatpush1.bf16.msra.mxu1 %v4913_v4  ;;  %v4918_v7 = vld [vmem:[%s8321_s1 + $0x40] ss:$16 sps:$4 sm:$0xff]   ;;  %v4919_v8 = vld [vmem:[%s8321_s1 + $0x48] ss:$16 sps:$4 sm:$0xff]   ;;  %v4920_v9 = vld [vmem:[%s8321_s1 + $0x24] ss:$16 sps:$4 sm:$0xff]  }
   0x4   :  { %192 = vmatprep.subr.bf16.mxu0 %v4914_v5  ;;  %275 = vmatprep.subr.bf16.mxu1 %v4916_v6  ;;  %v4922_v10 = vld [vmem:[%s8321_s1 + $0x2c] ss:$16 sps:$4 sm:$0xff]   ;;  %v4924_v11 = vld [vmem:[%s8321_s1 + $0x20] ss:$16 sps:$4 sm:$0xff]   ;;  %v4925_v12 = vld [vmem:[%s8321_s1 + $0x28] ss:$16 sps:$4 sm:$0xff]  }
   0x5   :  { %v4926_v13 = vld [vmem:[%s8321_s1 + $0x4] ss:$16 sps:$4 sm:$0xff]   ;;  %v4928_v14 = vld [vmem:[%s8321_s1 + $0xc] ss:$16 sps:$4 sm:$0xff]   ;;  %v4930_v15 = vld [vmem:[%s8321_s1] ss:$16 sps:$4 sm:$0xff]  }
   0x6   :  { %v4931_v16 = vld [vmem:[%s8321_s1 + $0x8] ss:$16 sps:$4 sm:$0xff]   ;;  %v33_v17 = vld [vmem:[%s8320_s0] sm:$0xff]  ;;  %v35_v23 = vld [vmem:[%s8320_s0 + $0x10] sm:$0xff] }
   0x7   :  { %193 = vmatpush1.bf16.msra.mxu0 %v4918_v7  ;;  %276 = vmatpush1.bf16.msra.mxu1 %v4919_v8  ;;  %v34_v18 = vld [vmem:[%s8320_s0 + $0x8] sm:$0xff]  ;;  %v5670_v19 = vld [vmem:[%s8322_s2 + $0x64] ss:$16 sps:$4 sm:$0xff]   ;;  %v5675_v21 = vld [vmem:[%s8322_s2 + $0x60] ss:$16 sps:$4 sm:$0xff]  }
   0x8   :  { %194 = vmatprep.subr.bf16.mxu0 %v4920_v9  ;;  %277 = vmatprep.subr.bf16.mxu1 %v4922_v10  ;;  %v43_v20 = vpack.c.bf16 %v34_v18, %v33_v17  ;;  %v5681_v22 = vld [vmem:[%s8322_s2 + $0x44] ss:$16 sps:$4 sm:$0xff]   ;;  %v36_v24 = vld [vmem:[%s8320_s0 + $0x18] sm:$0xff]  ;;  %v5699_v26 = vld [vmem:[%s8322_s2 + $0x40] ss:$16 sps:$4 sm:$0xff]  }
   0x9   :  { %v5692_v25 = vld [vmem:[%s8322_s2 + $0x6c] ss:$16 sps:$4 sm:$0xff]   ;;  %v5704_v27 = vld [vmem:[%s8322_s2 + $0x68] ss:$16 sps:$4 sm:$0xff]   ;;  %v5718_v29 = vld [vmem:[%s8322_s2 + $0x24] ss:$16 sps:$4 sm:$0xff]   ;;  %v44_v30 = vpack.c.bf16 %v36_v24, %v35_v23 }
   0xa   :  { %v5711_v28 = vld [vmem:[%s8322_s2 + $0x4c] ss:$16 sps:$4 sm:$0xff]   ;;  %v5724_v31 = vld [vmem:[%s8322_s2 + $0x20] ss:$16 sps:$4 sm:$0xff]   ;;  %v5732_v32 = vld [vmem:[%s8322_s2 + $0x48] ss:$16 sps:$4 sm:$0xff]  }
   0xb   :  { %195 = vmatpush1.bf16.msra.mxu0 %v4924_v11  ;;  %278 = vmatpush1.bf16.msra.mxu1 %v4925_v12  ;;  %v5737_v33 = vld [vmem:[%s8322_s2 + $0x4] ss:$16 sps:$4 sm:$0xff]   ;;  %v5742_v34 = vld [vmem:[%s8322_s2 + $0x2c] ss:$16 sps:$4 sm:$0xff]   ;;  %v5756_v37 = vld [vmem:[%s8322_s2] ss:$16 sps:$4 sm:$0xff]  }
   0xc   :  { %196 = vmatprep.subr.bf16.mxu0 %v4926_v13  ;;  %279 = vmatprep.subr.bf16.mxu1 %v4928_v14  ;;  %v37_v35 = vld [vmem:[%s8320_s0 + $0x20] sm:$0xff]  ;;  %v38_v36 = vld [vmem:[%s8320_s0 + $0x28] sm:$0xff]  ;;  %v39_v42 = vld [vmem:[%s8320_s0 + $0x30] sm:$0xff] }
   0xd   :  { %v5761_v38 = vld [vmem:[%s8322_s2 + $0x28] ss:$16 sps:$4 sm:$0xff]   ;;  %v5768_v39 = vld [vmem:[%s8322_s2 + $0xc] ss:$16 sps:$4 sm:$0xff]   ;;  %v45_v40 = vpack.c.bf16 %v38_v36, %v37_v35  ;;  %v41_v45 = vld [vmem:[%s8320_s0 + $0x40] sm:$0xff] }
   0xe   :  { %v5777_v41 = vld [vmem:[%s8322_s2 + $0x8] ss:$16 sps:$4 sm:$0xff]  }
   0xf   :  { %197 = vmatpush1.bf16.msra.mxu0 %v4930_v15  ;;  %280 = vmatpush1.bf16.msra.mxu1 %v4931_v16  ;;  %v40_v43 = vld [vmem:[%s8320_s0 + $0x38] sm:$0xff]  ;;  %v42_v46 = vld [vmem:[%s8320_s0 + $0x48] sm:$0xff] }
  0x10   :  { %564 = vmatprep.subr.bf16.mxu0 %v5670_v19  ;;  %605 = vmatprep.subr.bf16.mxu1 %v5692_v25  ;;  %v46_v44 = vpack.c.bf16 %v40_v43, %v39_v42 }
  0x12   :  { %4114 = vmatmul.mubr.msk.bf16.vlgmr.msra.gmra.mxu0 %vm166_vm0, %v43_v20  ;;  %4119 = vmatmul.mubr.msk.bf16.vlgmr.msra.gmra.mxu1 %vm166_vm0, %v43_v20 }
  0x13   :  { %565 = vmatpush1.bf16.msra.mxu0 %v5675_v21  ;;  %224 = vmatprep.mubr.bf16.mxu0 %v8335_v2 }
  0x14   :  { %307 = vmatprep.mubr.bf16.mxu1 %v8335_v2  ;;  %566 = vmatprep.subr.bf16.mxu0 %v5681_v22 }
  0x15   :  { %606 = vmatpush1.bf16.msra.mxu1 %v5704_v27 }
  0x16   :  { %607 = vmatprep.subr.bf16.mxu1 %v5711_v28 }
  0x17   :  { %567 = vmatpush1.bf16.msra.mxu0 %v5699_v26 }
  0x18   :  { %568 = vmatprep.subr.bf16.mxu0 %v5718_v29 }
  0x19   :  { %608 = vmatpush1.bf16.msra.mxu1 %v5732_v32 }
  0x1a   :  { %4115 = vmatmul.mubr.msk.bf16.gmra.mxu0 %vm166_vm0, %v44_v30  ;;  %4120 = vmatmul.mubr.msk.bf16.gmra.mxu1 %vm166_vm0, %v44_v30 }
  0x1b   :  { %234 = vmatprep.mubr.bf16.mxu0 %v8335_v2  ;;  %317 = vmatprep.mubr.bf16.mxu1 %v8335_v2 }
  0x1c   :  { %569 = vmatpush1.bf16.msra.mxu0 %v5724_v31  ;;  %609 = vmatprep.subr.bf16.mxu1 %v5742_v34 }
  0x1d   :  { %570 = vmatprep.subr.bf16.mxu0 %v5737_v33  ;;  %610 = vmatpush1.bf16.msra.mxu1 %v5761_v38 }
  0x1e   :  { %611 = vmatprep.subr.bf16.mxu1 %v5768_v39 }
  0x20   :  { %571 = vmatpush1.bf16.msra.mxu0 %v5756_v37 }
  0x21   :  { %612 = vmatpush1.bf16.msra.mxu1 %v5777_v41 }
  0x22   :  { %4116 = vmatmul.mubr.msk.bf16.gmra.mxu0 %vm166_vm0, %v45_v40  ;;  %4121 = vmatmul.mubr.msk.bf16.gmra.mxu1 %vm166_vm0, %v45_v40 }
  0x23   :  { %244 = vmatprep.mubr.bf16.mxu0 %v8335_v2  ;;  %327 = vmatprep.mubr.bf16.mxu1 %v8335_v2 }
  0x2a   :  { %4117 = vmatmul.mubr.msk.bf16.gmra.mxu0 %vm166_vm0, %v46_v44  ;;  %4122 = vmatmul.mubr.msk.bf16.gmra.mxu1 %vm166_vm0, %v46_v44 }
  0x2b   :  { %254 = vmatprep.mubr.bf16.mxu0 %v8335_v2  ;;  %337 = vmatprep.mubr.bf16.mxu1 %v8335_v2 }
  0x2c   :  { %15 = vsyncpa [#allocation4], 0  ;;  %v47_v47 = vpack.c.bf16 %v42_v46, %v41_v45  ;;  %v5813_v48 = vld [vmem:[%s8324_s4 + $0x38] sm:$0xff]   ;;  %v8332_v49 = vmov 0.0   ;;  %v5821_v50 = vld [vmem:[%s8324_s4 + $0x30] sm:$0xff]   ;;  %vm5556_vm1 = vmmov 0   ;;  %v66_v5 = vlaneseq }
  0x2d   :  { %8493 = vst [vmem:[#allocation6_spill] sm:$0xff] %v5813_v48  ;;  %4501 = vmatprep.subr.bf16.mxu0 %v8332_v49  ;;  %8494 = vst [vmem:[#allocation7_spill] sm:$0xff] %v5821_v50  ;;  %v5828_v51 = vld [vmem:[%s8324_s4 + $0x28] sm:$0xff]   ;;  %v5835_v52 = vld [vmem:[%s8324_s4 + $0x20] sm:$0xff]  }
  0x2e   :  { %8495 = vst [vmem:[#allocation8_spill] sm:$0xff] %v5828_v51  ;;  %8496 = vst [vmem:[#allocation9_spill] sm:$0xff] %v5835_v52  ;;  %v5841_v53 = vld [vmem:[%s8324_s4 + $0x18] sm:$0xff]   ;;  %v5850_v54 = vld [vmem:[%s8324_s4 + $0x10] sm:$0xff]   ;;  %v5945_v8 = vshrl.u32 %v66_v5, 7 }
  0x2f   :  { %8497 = vst [vmem:[#allocation10_spill] sm:$0xff] %v5841_v53  ;;  %8498 = vst [vmem:[#allocation11_spill] sm:$0xff] %v5850_v54  ;;  %v5857_v55 = vld [vmem:[%s8324_s4 + $0x8] sm:$0xff]   ;;  %v5864_v56 = vld [vmem:[%s8324_s4] sm:$0xff]  }
  0x30   :  { %8499 = vst [vmem:[#allocation12_spill] sm:$0xff] %v5857_v55  ;;  %8500 = vst [vmem:[#allocation13_spill] sm:$0xff] %v5864_v56  ;;  %v5871_v57 = vld [vmem:[%s8325_s5 + $0xec] ss:$16 sps:$4 sm:$0xff]   ;;  %v5876_v58 = vld [vmem:[%s8325_s5 + $0xe4] ss:$16 sps:$4 sm:$0xff]  }
  0x31   :  { %8501 = vst [vmem:[#allocation14_spill] sm:$0xff] %v5871_v57  ;;  %v5881_v59 = vld [vmem:[%s8325_s5 + $0xe0] ss:$16 sps:$4 sm:$0xff]   ;;  %942 = vmatprep.subr.bf16.mxu1 %v5876_v58  ;;  %v5888_v60 = vld [vmem:[%s8325_s5 + $0xc4] ss:$16 sps:$4 sm:$0xff]   ;;  %v8330_v10 = vsub.s32 2, %v5945_v8  ;;  %vm4185_vm2 = vmpackc.low %vm166_vm0, %vm166_vm0 }
  0x32   :  { %4118 = vmatmul.mubr.msk.bf16.gmra.mxu0 %vm166_vm0, %v47_v47  ;;  %4123 = vmatmul.mubr.msk.bf16.gmra.mxu1 %vm166_vm0, %v47_v47  ;;  %v5895_v61 = vld [vmem:[%s8325_s5 + $0xc0] ss:$16 sps:$4 sm:$0xff]   ;;  %v5900_v62 = vld [vmem:[%s8325_s5 + $0xa4] ss:$16 sps:$4 sm:$0xff]   ;;  %v8331_v12 = vsub.s32 0, %v5945_v8  ;;  %v8334_v30 = vsub.s32 1, %v5945_v8 }
  0x33   :  { %588 = vmatprep.mubr.bf16.mxu0 %v8335_v2  ;;  %629 = vmatprep.mubr.bf16.mxu1 %v8335_v2  ;;  %v5907_v63 = vld [vmem:[%s8325_s5 + $0xa0] ss:$16 sps:$4 sm:$0xff]   ;;  %v5912_v0 = vld [vmem:[%s8325_s5 + $0x84] ss:$16 sps:$4 sm:$0xff]   ;;  %v8337_v35 = vsub.s32 3, %v5945_v8 }
  0x34   :  { %v5919_v1 = vld [vmem:[%s8325_s5 + $0x80] ss:$16 sps:$4 sm:$0xff]   ;;  %v5924_v3 = vld [vmem:[%s8325_s5 + $0x64] ss:$16 sps:$4 sm:$0xff]  }
  0x35   :  { %v5931_v4 = vld [vmem:[%s8325_s5 + $0x60] ss:$16 sps:$4 sm:$0xff]   ;;  %v5936_v6 = vld [vmem:[%s8325_s5 + $0x44] ss:$16 sps:$4 sm:$0xff]  }
  0x36   :  { %v5943_v7 = vld [vmem:[%s8325_s5 + $0x40] ss:$16 sps:$4 sm:$0xff]   ;;  %v5950_v9 = vld [vmem:[%s8325_s5 + $0x24] ss:$16 sps:$4 sm:$0xff]  }
  0x37   :  { %8502 = vst [vmem:[#allocation15_spill] sm:$0xff] %v5950_v9  ;;  %v5958_v11 = vld [vmem:[%s8325_s5 + $0x20] ss:$16 sps:$4 sm:$0xff]  }
  0x38   :  { %8503 = vst [vmem:[#allocation16_spill] sm:$0xff] %v5958_v11  ;;  %v64_v13 = vld [vmem:[%s8323_s3] sm:$0xf] }
  0x39   :  { %v5971_v16 = vrot.slane %v64_v13, %v8330_v10  ;;  %v5979_v20 = vrot.slane %v64_v13, %v8331_v12  ;;  %v5995_v46 = vrot.slane %v64_v13, %v8334_v30  ;;  %v5999_v47 = vrot.slane %v64_v13, %v8337_v35 }
  0x3a   :  { %589 = vmatmul.mubr.bf16.vlgmr.msra.gmra.mxu0 %v8335_v2  ;;  %630 = vmatmul.mubr.bf16.vlgmr.msra.gmra.mxu1 %v8335_v2 }
  0x3b   :  { %974 = vmatprep.mubr.bf16.mxu1 %v8335_v2  ;;  %4502 = vmatpush3.bf16.msra.mxu0 %v5813_v48  ;;  %8506 = vst [vmem:[#allocation19_spill] sm:$0xff] %v5995_v46  ;;  %8507 = vst [vmem:[#allocation20_spill] sm:$0xff] %v5999_v47 }
  0x3c   :  { %4503 = vmatprep.subr.bf16.mxu0 %v8332_v49  ;;  %4517 = vmatprep.mubr.msk.bf16.mxu0 %vm5556_vm1, %v8332_v49 }
  0x3d   :  { %943 = vmatpush1.bf16.msra.mxu1 %v5881_v59 }
  0x3e   :  { %944 = vmatprep.subr.bf16.mxu1 %v5888_v60 }
  0x3f   :  { %4504 = vmatpush3.bf16.msra.mxu0 %v5821_v50 }
  0x40   :  { %4505 = vmatprep.subr.bf16.mxu0 %v8332_v49 }
  0x41   :  { %945 = vmatpush1.bf16.msra.mxu1 %v5895_v61 }
  0x42   :  { %946 = vmatprep.subr.bf16.mxu1 %v5900_v62 }
  0x43   :  { %4506 = vmatpush3.bf16.msra.mxu0 %v5828_v51 }
  0x44   :  { %4507 = vmatprep.subr.bf16.mxu0 %v8332_v49 }
  0x45   :  { %947 = vmatpush1.bf16.msra.mxu1 %v5907_v63 }
  0x46   :  { %948 = vmatprep.subr.bf16.mxu1 %v5912_v0 }
  0x47   :  { %4508 = vmatpush3.bf16.msra.mxu0 %v5835_v52 }
  0x48   :  { %4509 = vmatprep.subr.bf16.mxu0 %v8332_v49 }
  0x49   :  { %949 = vmatpush1.bf16.msra.mxu1 %v5919_v1 }
  0x4a   :  { %950 = vmatprep.subr.bf16.mxu1 %v5924_v3 }
  0x4b   :  { %4510 = vmatpush3.bf16.msra.mxu0 %v5841_v53 }
  0x4c   :  { %4511 = vmatprep.subr.bf16.mxu0 %v8332_v49 }
  0x4d   :  { %951 = vmatpush1.bf16.msra.mxu1 %v5931_v4 }
  0x4e   :  { %952 = vmatprep.subr.bf16.mxu1 %v5936_v6 }
  0x4f   :  { %4512 = vmatpush3.bf16.msra.mxu0 %v5850_v54 }
  0x50   :  { %4513 = vmatprep.subr.bf16.mxu0 %v8332_v49 }
  0x51   :  { %953 = vmatpush1.bf16.msra.mxu1 %v5943_v7 }
  0x52   :  { %954 = vmatprep.subr.bf16.mxu1 %v5950_v9 }
  0x53   :  { %4514 = vmatpush3.bf16.msra.mxu0 %v5857_v55 }
  0x54   :  { %4515 = vmatprep.subr.bf16.mxu0 %v8332_v49 }
  0x55   :  { %955 = vmatpush1.bf16.msra.mxu1 %v5958_v11 }
  0x57   :  { %4516 = vmatpush3.bf16.msra.mxu0 %v5864_v56 }
  0x58   :  { %983 = vmatprep.subr.bf16.mxu0 %v5871_v57 }
  0xd2   :  { %v5964_v14 = vpop.f32.mrf.mxu0  ;;  %v5966_v15 = vpop.f32.mrf.mxu1 }
  0xd4   :  { %v5973_v17 = vpop.f32.mrf.mxu0  ;;  %v5975_v18 = vpop.f32.mrf.mxu1 }
  0xd6   :  { %v220_v23 = vpop.f32.mrf.mxu0  ;;  %v303_v24 = vpop.f32.mrf.mxu1 }
  0xd7   :  { %v5984_v36 = vadd.f32 %v220_v23, %v5979_v20  ;;  %v5987_v40 = vadd.f32 %v303_v24, %v5971_v16 }
  0xd8   :  { %v5989_v42 = vpop.f32.mrf.mxu0  ;;  %v5991_v43 = vpop.f32.mrf.mxu1 }
  0xd9   :  { %8504 = vst [vmem:[#allocation17_spill] sm:$0xff] %v5987_v40  ;;  %8505 = vst [vmem:[#allocation18_spill] sm:$0xff] %v5991_v43 }
  0xda   :  { %v226_v44 = vpop.f32.mrf.mxu0  ;;  %v309_v45 = vpop.f32.mrf.mxu1 }
  0xdb   :  { %v6002_v5 = vadd.f32 %v226_v44, %v5979_v20  ;;  %v6005_v23 = vadd.f32 %v309_v45, %v5971_v16 }
  0xdc   :  { %v228_v24 = vpop.f32.mrf.mxu0  ;;  %v311_v10 = vpop.f32.mrf.mxu1 }
  0xdd   :  { %8508 = vst [vmem:[#allocation21_spill] sm:$0xff] %v6002_v5  ;;  %8509 = vst [vmem:[#allocation22_spill] sm:$0xff] %v6005_v23  ;;  %v6008_v12 = vadd.f32 %v228_v24, %v5995_v46  ;;  %v6011_v49 = vadd.f32 %v311_v10, %v5999_v47 }
  0xde   :  { %v230_v30 = vpop.f32.mrf.mxu0  ;;  %v313_v2 = vpop.f32.mrf.mxu1 }
  0xdf   :  { %8510 = vst [vmem:[#allocation23_spill] sm:$0xff] %v6008_v12  ;;  %8511 = vst [vmem:[#allocation24_spill] sm:$0xff] %v6011_v49  ;;  %v6014_v40 = vadd.f32 %v230_v30, %v5979_v20  ;;  %v6017_v13 = vadd.f32 %v313_v2, %v5971_v16 }
  0xe0   :  { %v6019_v44 = vpop.f32.mrf.mxu0  ;;  %v6021_v45 = vpop.f32.mrf.mxu1 }
  0xe1   :  { %8512 = vst [vmem:[#allocation25_spill] sm:$0xff] %v6014_v40  ;;  %8513 = vst [vmem:[#allocation26_spill] sm:$0xff] %v6017_v13 }
  0xe2   :  { %8514 = vst [vmem:[#allocation27_spill] sm:$0xff] %v6019_v44  ;;  %8515 = vst [vmem:[#allocation28_spill] sm:$0xff] %v6021_v45  ;;  %v236_v35 = vpop.f32.mrf.mxu0  ;;  %v319_v23 = vpop.f32.mrf.mxu1 }
  0xe3   :  { %v6024_v24 = vadd.f32 %v236_v35, %v5979_v20  ;;  %v6027_v10 = vadd.f32 %v319_v23, %v5971_v16 }
  0xe4   :  { %v238_v49 = vpop.f32.mrf.mxu0  ;;  %v321_v12 = vpop.f32.mrf.mxu1 }
  0xe5   :  { %8516 = vst [vmem:[#allocation29_spill] sm:$0xff] %v6024_v24  ;;  %8517 = vst [vmem:[#allocation30_spill] sm:$0xff] %v6027_v10  ;;  %v6030_v30 = vadd.f32 %v238_v49, %v5995_v46  ;;  %v6033_v2 = vadd.f32 %v321_v12, %v5999_v47 }
  0xe6   :  { %v240_v13 = vpop.f32.mrf.mxu0  ;;  %v323_v40 = vpop.f32.mrf.mxu1 }
  0xe7   :  { %8518 = vst [vmem:[#allocation31_spill] sm:$0xff] %v6030_v30  ;;  %8519 = vst [vmem:[#allocation32_spill] sm:$0xff] %v6033_v2  ;;  %v6036_v45 = vadd.f32 %v240_v13, %v5979_v20  ;;  %v6039_v44 = vadd.f32 %v323_v40, %v5971_v16 }
  0xe8   :  { %v6041_v35 = vpop.f32.mrf.mxu0  ;;  %v6043_v23 = vpop.f32.mrf.mxu1 }
  0xe9   :  { %8520 = vst [vmem:[#allocation33_spill] sm:$0xff] %v6036_v45  ;;  %8521 = vst [vmem:[#allocation34_spill] sm:$0xff] %v6039_v44 }
  0xea   :  { %8522 = vst [vmem:[#allocation35_spill] sm:$0xff] %v6041_v35  ;;  %8523 = vst [vmem:[#allocation36_spill] sm:$0xff] %v6043_v23  ;;  %v246_v10 = vpop.f32.mrf.mxu0  ;;  %v329_v24 = vpop.f32.mrf.mxu1 }
  0xeb   :  { %v6046_v49 = vadd.f32 %v246_v10, %v5979_v20  ;;  %v6049_v12 = vadd.f32 %v329_v24, %v5971_v16 }
  0xec   :  { %v248_v2 = vpop.f32.mrf.mxu0  ;;  %v331_v30 = vpop.f32.mrf.mxu1 }
  0xed   :  { %8524 = vst [vmem:[#allocation37_spill] sm:$0xff] %v6046_v49  ;;  %8525 = vst [vmem:[#allocation38_spill] sm:$0xff] %v6049_v12  ;;  %v6052_v13 = vadd.f32 %v248_v2, %v5995_v46  ;;  %v6055_v40 = vadd.f32 %v331_v30, %v5999_v47 }
  0xee   :  { %v250_v44 = vpop.f32.mrf.mxu0  ;;  %v333_v45 = vpop.f32.mrf.mxu1 }
  0xef   :  { %8526 = vst [vmem:[#allocation39_spill] sm:$0xff] %v6052_v13  ;;  %8527 = vst [vmem:[#allocation40_spill] sm:$0xff] %v6055_v40  ;;  %v6058_v23 = vadd.f32 %v250_v44, %v5979_v20  ;;  %v6061_v35 = vadd.f32 %v333_v45, %v5971_v16 }
  0xf0   :  { %v6063_v10 = vpop.f32.mrf.mxu0  ;;  %v6065_v24 = vpop.f32.mrf.mxu1 }
  0xf1   :  { %8528 = vst [vmem:[#allocation41_spill] sm:$0xff] %v6058_v23  ;;  %8529 = vst [vmem:[#allocation42_spill] sm:$0xff] %v6061_v35 }
  0xf2   :  { %8530 = vst [vmem:[#allocation43_spill] sm:$0xff] %v6063_v10  ;;  %8531 = vst [vmem:[#allocation44_spill] sm:$0xff] %v6065_v24  ;;  %v256_v12 = vpop.f32.mrf.mxu0  ;;  %v339_v49 = vpop.f32.mrf.mxu1 }
  0xf3   :  { %v6068_v2 = vadd.f32 %v256_v12, %v5979_v20  ;;  %v6071_v30 = vadd.f32 %v339_v49, %v5971_v16 }
  0xf4   :  { %v258_v40 = vpop.f32.mrf.mxu0  ;;  %v341_v13 = vpop.f32.mrf.mxu1 }
  0xf5   :  { %8532 = vst [vmem:[#allocation45_spill] sm:$0xff] %v6068_v2  ;;  %8533 = vst [vmem:[#allocation46_spill] sm:$0xff] %v6071_v30  ;;  %v6074_v44 = vadd.f32 %v258_v40, %v5995_v46  ;;  %v6077_v45 = vadd.f32 %v341_v13, %v5999_v47  ;;  %v217_v30 = vadd.f32 %v5964_v14, %v5979_v20 }
  0xf6   :  { %v260_v35 = vpop.f32.mrf.mxu0  ;;  %v343_v23 = vpop.f32.mrf.mxu1  ;;  %v219_v13 = vadd.f32 %v5973_v17, %v5995_v46  ;;  %v302_v14 = vadd.f32 %v5975_v18, %v5999_v47 }
  0xf7   :  { %8534 = vst [vmem:[#allocation47_spill] sm:$0xff] %v6074_v44  ;;  %8535 = vst [vmem:[#allocation48_spill] sm:$0xff] %v6077_v45  ;;  %v6080_v24 = vadd.f32 %v260_v35, %v5979_v20  ;;  %v6083_v10 = vadd.f32 %v343_v23, %v5971_v16  ;;  %v300_v20 = vadd.f32 %v5966_v15, %v5971_v16 }
  0xf8   :  { %v6085_v12 = vpop.f32.mrf.mxu0  ;;  %v6087_v49 = vpop.f32.mrf.mxu1 }
  0xf9   :  { %8536 = vst [vmem:[#allocation49_spill] sm:$0xff] %v6080_v24  ;;  %8537 = vst [vmem:[#allocation50_spill] sm:$0xff] %v6083_v10 }
  0xfa   :  { %8538 = vst [vmem:[#allocation51_spill] sm:$0xff] %v6085_v12  ;;  %8539 = vst [vmem:[#allocation52_spill] sm:$0xff] %v6087_v49  ;;  %v590_v40 = vpop.f32.mrf.mxu0  ;;  %v631_v44 = vpop.f32.mrf.mxu1 }
  0xfb   :  { %v638_v45 = vadd.f32 %v590_v40, %v217_v30  ;;  %v640_v17 = vadd.f32 %v631_v44, %v300_v20  ;;  %v6105_v44 = vld [vmem:[%s8325_s5 + $0xe8] ss:$16 sps:$4 sm:$0xff]   ;;  %v8540_v20 = vmov 0  }
  0xfc   :  { %v592_v2 = vpop.f32.mrf.mxu0  ;;  %v633_v5 = vpop.f32.mrf.mxu1 }
  0xfd   :  { %v4140_v35 = vmul.f32 -1.442695, %v638_v45  ;;  %v639_v24 = vadd.f32 %v592_v2, %v219_v13  ;;  %v641_v49 = vadd.f32 %v633_v5, %v302_v14  ;;  %v6116_v14 = vld [vmem:[%s8325_s5 + $0xc8] ss:$16 sps:$4 sm:$0xff]  }
  0xfe   :  { %v594_v43 = vpop.f32.mrf.mxu0  ;;  %v635_v23 = vpop.f32.mrf.mxu1 }
  0xff   :  { %5020 = vpow2.f32 %v4140_v35  ;;  %v4141_v10 = vmul.f32 -1.442695, %v639_v24  ;;  %v4142_v40 = vmul.f32 -1.442695, %v641_v49  ;;  %v6110_v23 = vld [vmem:[%s8325_s5 + $0xcc] ss:$16 sps:$4 sm:$0xff]  }
 0x100   :  { %v595_v12 = vpop.f32.mrf.mxu0  ;;  %v636_v11 = vpop.f32.mrf.mxu1 }
 0x101   :  { %5022 = vpow2.f32 %v4141_v10 }
 0x102   :  { %5024 = vtanh.f32 %v640_v17  ;;  %v6123_v17 = vld [vmem:[%s8325_s5 + $0xac] ss:$16 sps:$4 sm:$0xff]  }
 0x10c   :  { %v5021_v30 = vpop.eup %5020 }
 0x10d   :  { %v645_v9 = vadd.f32 1.0, %v5021_v30  ;;  %v6129_v30 = vld [vmem:[%s8325_s5 + $0xa8] ss:$16 sps:$4 sm:$0xff]  }
 0x10e   :  { %v5023_v45 = vpop.eup %5022 }
 0x10f   :  { %5026 = vrcp.f32 %v645_v9  ;;  %v651_v43 = vadd.f32 1.0, %v5023_v45  ;;  %v5025_v24 = vpop.eup %5024  ;;  %v6141_v45 = vld [vmem:[%s8325_s5 + $0x88] ss:$16 sps:$4 sm:$0xff]  }
 0x110   :  { %5028 = vpow2.f32 %v4142_v40  ;;  %v6135_v40 = vld [vmem:[%s8325_s5 + $0x8c] ss:$16 sps:$4 sm:$0xff]  }
 0x111   :  { %5030 = vrcp.f32 %v651_v43  ;;  %v6147_v43 = vld [vmem:[%s8325_s5 + $0x6c] ss:$16 sps:$4 sm:$0xff]  }
 0x11c   :  { %v5027_v11 = vpop.eup %5026 }
 0x11d   :  { %v5029_v10 = vpop.eup %5028  ;;  %v662_v18 = vmul.f32 %v5027_v11, %v5025_v24  ;;  %v6153_v24 = vld [vmem:[%s8325_s5 + $0x68] ss:$16 sps:$4 sm:$0xff]   ;;  %v6159_v11 = vld [vmem:[%s8325_s5 + $0x4c] ss:$16 sps:$4 sm:$0xff]  }
 0x11e   :  { %v5031_v2 = vpop.eup %5030  ;;  %v658_v13 = vadd.f32 1.0, %v5029_v10  ;;  %v6165_v10 = vld [vmem:[%s8325_s5 + $0x48] ss:$16 sps:$4 sm:$0xff]  }
 0x11f   :  { %v661_v12 = vmul.f32 0.0, %v5031_v2  ;;  %v6171_v2 = vld [vmem:[%s8325_s5 + $0x2c] ss:$16 sps:$4 sm:$0xff]  }
 0x120   :  { %5032 = vrcp.f32 %v658_v13  ;;  %v6189_v13 = vld [vmem:[%s8325_s5 + $0x4] ss:$16 sps:$4 sm:$0xff]  }
 0x121   :  { %v6097_v35 = vadd.f32 %v662_v18, %v661_v12  ;;  %v6177_v12 = vld [vmem:[%s8325_s5 + $0x28] ss:$16 sps:$4 sm:$0xff]   ;;  %v6184_v18 = vld [vmem:[%s8325_s5 + $0xc] ss:$16 sps:$4 sm:$0xff]   ;;  %956 = vmatprep.subr.bf16.mxu1 %v6189_v13 }
 0x122   :  { %8541 = vst [vmem:[#allocation53_spill] sm:$0xff] %v6177_v12  ;;  %8542 = vst [vmem:[#allocation54_spill] sm:$0xff] %v6184_v18 }
 0x123   :  { %v8342_v15 = vclamps-f32 %v6097_v35, 3.0 }
 0x125   :  { %5034 = vtanh.f32 %v8342_v15 }
 0x12d   :  { %v5033_v16 = vpop.eup %5032 }
 0x132   :  { %v5035_v9 = vpop.eup %5034 }
 0x133   :  { %v667_v5 = vmul.f32 %v5035_v9, %v5033_v16  ;;  %v6194_v16 = vld [vmem:[%s8325_s5 + $0x8] ss:$16 sps:$4 sm:$0xff]   ;;  %v6200_v9 = vld [vmem:[%s8325_s5] ss:$16 sps:$4 sm:$0xff]  }
 0x134   :  { %8543 = vst [vmem:[#allocation55_spill] sm:$0xff] %v6194_v16  ;;  %957 = vmatpush1.bf16.msra.mxu1 %v6200_v9 }
 0x135   :  { %v668_v49 = vpack.c.bf16 %v667_v5, %v667_v5  ;;  %v8544_v5 = vmov 0.0  }
 0x136   :  { %4521 = vmatprep.subr.bf16.mxu1 %v8544_v5 }
 0x137   :  { %4518 = vmatmul.mubr.bf16.vlgmr.msra.gmra.mxu0 %v668_v49 }
 0x138   :  { %984 = vmatpush1.bf16.msra.mxu0 %v6105_v44  ;;  %1015 = vmatprep.mubr.bf16.mxu0 %v8540_v20 }
 0x139   :  { %985 = vmatprep.subr.bf16.mxu0 %v6110_v23 }
 0x13c   :  { %986 = vmatpush1.bf16.msra.mxu0 %v6116_v14 }
 0x13d   :  { %987 = vmatprep.subr.bf16.mxu0 %v6123_v17 }
 0x140   :  { %988 = vmatpush1.bf16.msra.mxu0 %v6129_v30 }
 0x141   :  { %989 = vmatprep.subr.bf16.mxu0 %v6135_v40 }
 0x144   :  { %990 = vmatpush1.bf16.msra.mxu0 %v6141_v45 }
 0x145   :  { %991 = vmatprep.subr.bf16.mxu0 %v6147_v43 }
 0x148   :  { %992 = vmatpush1.bf16.msra.mxu0 %v6153_v24 }
 0x149   :  { %993 = vmatprep.subr.bf16.mxu0 %v6159_v11 }
 0x14c   :  { %994 = vmatpush1.bf16.msra.mxu0 %v6165_v10 }
 0x14d   :  { %995 = vmatprep.subr.bf16.mxu0 %v6171_v2 }
 0x150   :  { %996 = vmatpush1.bf16.msra.mxu0 %v6177_v12 }
 0x151   :  { %997 = vmatprep.subr.bf16.mxu0 %v6184_v18 }
 0x154   :  { %998 = vmatpush1.bf16.msra.mxu0 %v6194_v16 }
 0x155   :  { %1161 = vmatprep.subr.bf16.mxu0 %v5670_v19 }
 0x1f7   :  { %v751_v49 = vpop.f32.mrf.mxu0 }
 0x1f8   :  { %v6207_v15 = vclamps-f32 %v751_v49, 3.0  ;;  %v8552_v49 = vsub.s32 0, %v5945_v8 }
 0x1f9   :  { %v4519_v12 = vpop.f32.mrf.mxu0 }
 0x1fa   :  { %v6213_v18 = vpack.c.bf16 %v6207_v15, %v6207_v15  ;;  %1141 = vst.msk [vmem:[#allocation3] sm:$0xff] %vm166_vm0, %v6207_v15  ;;  %v6301_v12 = vld [vmem:[%s8327_s7] sm:$0xff]  }
 0x1fb   :  { %v754_v16 = vpop.f32.mrf.mxu0  ;;  %8551 = vst [vmem:[#allocation62_spill] sm:$0xff] %v6301_v12 }
 0x1fc   :  { %4187 = vmatmul.mubr.msk.bf16.vlgmr.msra.gmra.mxu1 %vm4185_vm2, %v6213_v18  ;;  %4190 = vmatmul.mubr.msk.bf16.vlgmr.msra.gmra.mxu0 %vm4185_vm2, %v6213_v18  ;;  %v452_v16 = vld [vmem:[%s8326_s6] sm:$0xf]  ;;  %s5557_s6 = smov 64  }
 0x1fd   :  { %1162 = vmatpush1.bf16.msra.mxu0 %v5675_v21  ;;  %v4520_v19 = vpop.f32.mrf.mxu0  ;;  %1185 = vmatprep.mubr.bf16.mxu0 %v8540_v20  ;;  %v6253_v21 = vld [vmem:[%s8327_s7 + $0x38] sm:$0xff]  }
 0x1fe   :  { %1163 = vmatprep.subr.bf16.mxu0 %v5681_v22  ;;  %4537 = vmatprep.mubr.msk.bf16.mxu1 %vm5556_vm1, %v8544_v5  ;;  %v6260_v22 = vld [vmem:[%s8327_s7 + $0x30] sm:$0xff]   ;;  %v6311_v19 = vrot.slane %v452_v16, %v8552_v49 }
 0x1ff   :  { %4522 = vmatpush3.bf16.msra.mxu1 %v6253_v21  ;;  %8545 = vst [vmem:[#allocation56_spill] sm:$0xff] %v6260_v22 }
 0x200   :  { %4523 = vmatprep.subr.bf16.mxu1 %v8544_v5  ;;  %8553 = vst [vmem:[#allocation63_spill] sm:$0xff] %v6311_v19 }
 0x201   :  { %1164 = vmatpush1.bf16.msra.mxu0 %v5699_v26  ;;  %v6267_v26 = vld [vmem:[%s8327_s7 + $0x28] sm:$0xff]  }
 0x202   :  { %1165 = vmatprep.subr.bf16.mxu0 %v5718_v29  ;;  %8546 = vst [vmem:[#allocation57_spill] sm:$0xff] %v6267_v26  ;;  %v6274_v29 = vld [vmem:[%s8327_s7 + $0x20] sm:$0xff]  }
 0x203   :  { %4524 = vmatpush3.bf16.msra.mxu1 %v6260_v22  ;;  %8547 = vst [vmem:[#allocation58_spill] sm:$0xff] %v6274_v29 }
 0x204   :  { %4525 = vmatprep.subr.bf16.mxu1 %v8544_v5 }
 0x205   :  { %1166 = vmatpush1.bf16.msra.mxu0 %v5724_v31  ;;  %v6280_v31 = vld [vmem:[%s8327_s7 + $0x18] sm:$0xff]  }
 0x206   :  { %1167 = vmatprep.subr.bf16.mxu0 %v5737_v33  ;;  %8548 = vst [vmem:[#allocation59_spill] sm:$0xff] %v6280_v31  ;;  %v6287_v33 = vld [vmem:[%s8327_s7 + $0x10] sm:$0xff]  }
 0x207   :  { %4526 = vmatpush3.bf16.msra.mxu1 %v6267_v26  ;;  %8549 = vst [vmem:[#allocation60_spill] sm:$0xff] %v6287_v33 }
 0x208   :  { %4527 = vmatprep.subr.bf16.mxu1 %v8544_v5 }
 0x209   :  { %1168 = vmatpush1.bf16.msra.mxu0 %v5756_v37  ;;  %v6294_v37 = vld [vmem:[%s8327_s7 + $0x8] sm:$0xff]  }
 0x20a   :  { %4541 = vmatprep.subr.bf16.mxu0 %v8544_v5  ;;  %8550 = vst [vmem:[#allocation61_spill] sm:$0xff] %v6294_v37 }
 0x20b   :  { %4528 = vmatpush3.bf16.msra.mxu1 %v6274_v29  ;;  %v8557_v29 = vsub.s32 2, %v5945_v8 }
 0x20c   :  { %4204 = vmatmul.mubr.msk.bf16.vlgmr.msra.gmra.mxu0 %vm166_vm0, %v6213_v18  ;;  %4529 = vmatprep.subr.bf16.mxu1 %v8544_v5 }
 0x20d   :  { %4542 = vmatpush3.bf16.msra.mxu0 %v5813_v48  ;;  %4557 = vmatprep.mubr.msk.bf16.mxu0 %vm5556_vm1, %v8544_v5  ;;  %v8555_v48 = vsub.s32 3, %v5945_v8  ;;  %v6325_v26 = vrot.slane %v452_v16, %v8557_v29 }
 0x20e   :  { %4543 = vmatprep.subr.bf16.mxu0 %v8544_v5 }
 0x20f   :  { %4530 = vmatpush3.bf16.msra.mxu1 %v6280_v31  ;;  %8558 = vst [vmem:[#allocation65_spill] sm:$0xff] %v6325_v26 }
 0x210   :  { %4531 = vmatprep.subr.bf16.mxu1 %v8544_v5 }
 0x211   :  { %4544 = vmatpush3.bf16.msra.mxu0 %v5821_v50 }
 0x212   :  { %4545 = vmatprep.subr.bf16.mxu0 %v8544_v5 }
 0x213   :  { %4532 = vmatpush3.bf16.msra.mxu1 %v6287_v33 }
 0x214   :  { %4533 = vmatprep.subr.bf16.mxu1 %v8544_v5 }
 0x215   :  { %4546 = vmatpush3.bf16.msra.mxu0 %v5828_v51 }
 0x216   :  { %4547 = vmatprep.subr.bf16.mxu0 %v8544_v5 }
 0x217   :  { %4534 = vmatpush3.bf16.msra.mxu1 %v6294_v37 }
 0x218   :  { %4535 = vmatprep.subr.bf16.mxu1 %v8544_v5 }
 0x219   :  { %4548 = vmatpush3.bf16.msra.mxu0 %v5835_v52 }
 0x21a   :  { %4549 = vmatprep.subr.bf16.mxu0 %v8544_v5 }
 0x21b   :  { %4536 = vmatpush3.bf16.msra.mxu1 %v6301_v12 }
 0x21c   :  { %1202 = vmatprep.subr.bf16.mxu1 %v5692_v25 }
 0x21d   :  { %4550 = vmatpush3.bf16.msra.mxu0 %v5841_v53 }
 0x21e   :  { %4551 = vmatprep.subr.bf16.mxu0 %v8544_v5 }
 0x221   :  { %4552 = vmatpush3.bf16.msra.mxu0 %v5850_v54 }
 0x222   :  { %4553 = vmatprep.subr.bf16.mxu0 %v8544_v5 }
 0x225   :  { %4554 = vmatpush3.bf16.msra.mxu0 %v5857_v55 }
 0x226   :  { %4555 = vmatprep.subr.bf16.mxu0 %v8544_v5 }
 0x229   :  { %4556 = vmatpush3.bf16.msra.mxu0 %v5864_v56 }
 0x22a   :  { %1355 = vmatprep.subr.bf16.mxu0 %v5871_v57  ;;  %v8554_v57 = vsub.s32 1, %v5945_v8 }
 0x22c   :  { %v6315_v56 = vrot.slane %v452_v16, %v8554_v57  ;;  %v6321_v57 = vrot.slane %v452_v16, %v8555_v48 }
 0x22e   :  { %8556 = vst [vmem:[#allocation64_spill] sm:$0xff] %v6321_v57 }
 0x2bc   :  { %v976_v55 = vpop.f32.mrf.mxu1  ;;  %v1017_v54 = vpop.f32.mrf.mxu0 }
 0x2bd   :  { %v977_v53 = vadd.f32 %v976_v55, %v6311_v19 }
 0x2be   :  { %v978_v52 = vpop.f32.mrf.mxu1  ;;  %v1019_v12 = vpop.f32.mrf.mxu0 }
 0x2bf   :  { %v4191_v37 = vmul.f32 -1.442695, %v977_v53  ;;  %v979_v25 = vadd.f32 %v978_v52, %v6315_v56  ;;  %v1020_v55 = vadd.f32 %v1019_v12, %v6321_v57  ;;  %v1018_v53 = vadd.f32 %v1017_v54, %v6325_v26 }
 0x2c0   :  { %v980_v51 = vpop.f32.mrf.mxu1  ;;  %v1021_v33 = vpop.f32.mrf.mxu0 }
 0x2c1   :  { %5036 = vpow2.f32 %v4191_v37  ;;  %v4192_v50 = vmul.f32 -1.442695, %v979_v25  ;;  %v223_v51 = vadd.f32 %v5989_v42, %v5995_v46 }
 0x2c2   :  { %v981_v31 = vpop.f32.mrf.mxu1  ;;  %v1022_v49 = vpop.f32.mrf.mxu0 }
 0x2c3   :  { %5038 = vpow2.f32 %v4192_v50  ;;  %v4193_v50 = vmul.f32 -1.442695, %v1020_v55 }
 0x2c4   :  { %5040 = vtanh.f32 %v1018_v53 }
 0x2cc   :  { %v1187_v52 = vpop.f32.mrf.mxu0 }
 0x2cd   :  { %v1235_v31 = vadd.f32 %v1187_v52, %v5984_v36 }
 0x2ce   :  { %v5037_v33 = vpop.eup %5036  ;;  %v1189_v37 = vpop.f32.mrf.mxu0 }
 0x2cf   :  { %v1027_v25 = vadd.f32 1.0, %v5037_v33  ;;  %v1236_v48 = vadd.f32 %v1189_v37, %v223_v51 }
 0x2d0   :  { %v5039_v49 = vpop.eup %5038  ;;  %v1191_v8 = vpop.f32.mrf.mxu0 }
 0x2d1   :  { %5042 = vrcp.f32 %v1027_v25  ;;  %v1033_v29 = vadd.f32 1.0, %v5039_v49  ;;  %v5041_v54 = vpop.eup %5040  ;;  %v8561_v49 = vld [vmem:[#allocation18_spill] sm:$0xff] }
 0x2d2   :  { %5044 = vpow2.f32 %v4193_v50  ;;  %v1192_v12 = vpop.f32.mrf.mxu0  ;;  %v306_v8 = vadd.f32 %v8561_v49, %v5999_v47 }
 0x2d3   :  { %5046 = vrcp.f32 %v1033_v29 }
 0x2de   :  { %v5043_v16 = vpop.eup %5042 }
 0x2df   :  { %v5045_v26 = vpop.eup %5044  ;;  %v1044_v46 = vmul.f32 %v5043_v16, %v5041_v54 }
 0x2e0   :  { %v5047_v57 = vpop.eup %5046  ;;  %v1040_v36 = vadd.f32 1.0, %v5045_v26 }
 0x2e1   :  { %v1043_v42 = vmul.f32 0.0, %v5047_v57 }
 0x2e2   :  { %5048 = vrcp.f32 %v1040_v36 }
 0x2e3   :  { %v6332_v52 = vadd.f32 %v1044_v46, %v1043_v42 }
 0x2e5   :  { %v8377_v55 = vclamps-f32 %v6332_v52, 3.0 }
 0x2e7   :  { %5050 = vtanh.f32 %v8377_v55 }
 0x2ef   :  { %v5049_v53 = vpop.eup %5048 }
 0x2f4   :  { %v5051_v51 = vpop.eup %5050 }
 0x2f5   :  { %v1049_v33 = vmul.f32 %v5051_v51, %v5049_v53 }
 0x2f7   :  { %v1050_v50 = vpack.c.bf16 %v1049_v33, %v1049_v33 }
 0x2f9   :  { %4538 = vmatmul.mubr.bf16.vlgmr.msra.gmra.mxu1 %v1050_v50  ;;  %v8563_v50 = vclamps-f32 %v6097_v35, 3.0  ;;  %v8564_v35 = vld [vmem:[#allocation53_spill] sm:$0xff] }
 0x2fa   :  { %1203 = vmatpush1.bf16.msra.mxu1 %v5704_v27  ;;  %1226 = vmatprep.mubr.bf16.mxu1 %v8540_v20  ;;  %v8559_v27 = vld [vmem:[#allocation15_spill] sm:$0xff] }
 0x2fb   :  { %1204 = vmatprep.subr.bf16.mxu1 %v5711_v28  ;;  %v8560_v28 = vld [vmem:[#allocation16_spill] sm:$0xff] }
 0x2fe   :  { %1205 = vmatpush1.bf16.msra.mxu1 %v5732_v32  ;;  %v4207_v32 = vmul.f32 -1.442695, %v1236_v48 }
 0x2ff   :  { %1206 = vmatprep.subr.bf16.mxu1 %v5742_v34  ;;  %v4206_v34 = vmul.f32 -1.442695, %v1235_v31 }
 0x300   :  { %5052 = vpow2.f32 %v4207_v32 }
 0x301   :  { %5054 = vpow2.f32 %v4206_v34 }
 0x302   :  { %1207 = vmatpush1.bf16.msra.mxu1 %v5761_v38 }
 0x303   :  { %1208 = vmatprep.subr.bf16.mxu1 %v5768_v39 }
 0x306   :  { %1209 = vmatpush1.bf16.msra.mxu1 %v5777_v41 }
 0x307   :  { %1314 = vmatprep.subr.bf16.mxu1 %v5876_v58 }
 0x309   :  { %4205 = vmatmul.mubr.msk.bf16.vlgmr.msra.gmra.mxu1 %vm166_vm0, %v6213_v18 }
 0x30a   :  { %1315 = vmatpush1.bf16.msra.mxu1 %v5881_v59  ;;  %1346 = vmatprep.mubr.bf16.mxu1 %v8540_v20 }
 0x30b   :  { %1316 = vmatprep.subr.bf16.mxu1 %v5888_v60 }
 0x30d   :  { %v5053_v57 = vpop.eup %5052 }
 0x30e   :  { %1317 = vmatpush1.bf16.msra.mxu1 %v5895_v61  ;;  %v5055_v37 = vpop.eup %5054  ;;  %v1248_v31 = vadd.f32 1.0, %v5053_v57 }
 0x30f   :  { %1318 = vmatprep.subr.bf16.mxu1 %v5900_v62  ;;  %v1242_v25 = vadd.f32 1.0, %v5055_v37 }
 0x310   :  { %5056 = vrcp.f32 %v1248_v31  ;;  %v8565_v31 = vld [vmem:[#allocation54_spill] sm:$0xff] }
 0x311   :  { %5058 = vrcp.f32 %v1242_v25  ;;  %v8566_v25 = vld [vmem:[#allocation55_spill] sm:$0xff] }
 0x312   :  { %1319 = vmatpush1.bf16.msra.mxu1 %v5907_v63 }
 0x313   :  { %1320 = vmatprep.subr.bf16.mxu1 %v5912_v0 }
 0x316   :  { %1321 = vmatpush1.bf16.msra.mxu1 %v5919_v1 }
 0x317   :  { %1322 = vmatprep.subr.bf16.mxu1 %v5924_v3 }
 0x31a   :  { %1323 = vmatpush1.bf16.msra.mxu1 %v5931_v4 }
 0x31b   :  { %1324 = vmatprep.subr.bf16.mxu1 %v5936_v6 }
 0x31d   :  { %v5057_v53 = vpop.eup %5056 }
 0x31e   :  { %1325 = vmatpush1.bf16.msra.mxu1 %v5943_v7  ;;  %v5059_v51 = vpop.eup %5058  ;;  %v1258_v32 = vmul.f32 %v5057_v53, %v8563_v50  ;;  %v6419_v53 = vld [vmem:[%s8322_s2 + $0x44] ss:$16 sps:$4 sm:$0xff]   ;;  %v6443_v50 = vld [vmem:[%s8322_s2 + $0x20] ss:$16 sps:$4 sm:$0xff]  }
 0x31f   :  { %1326 = vmatprep.subr.bf16.mxu1 %v8559_v27  ;;  %8568 = vst [vmem:[#allocation16_spill] sm:$0xff] %v6443_v50 }
 0x322   :  { %1327 = vmatpush1.bf16.msra.mxu1 %v8560_v28 }
 0x323   :  { %1328 = vmatprep.subr.bf16.mxu1 %v6189_v13 }
 0x326   :  { %1329 = vmatpush1.bf16.msra.mxu1 %v6200_v9 }
 0x327   :  { %4561 = vmatprep.subr.bf16.mxu1 %v8544_v5 }
 0x3b9   :  { %v1133_v38 = vpop.f32.mrf.mxu1 }
 0x3ba   :  { %v4203_v39 = vclamps-f32 %v1133_v38, 3.0 }
 0x3bb   :  { %v4539_v41 = vpop.f32.mrf.mxu1 }
 0x3bc   :  { %v1142_v46 = vadd.f32 %v4203_v39, %v6207_v15  ;;  %1309 = vrot.lane.b32.xlu0 %v4203_v39, %s5557_s6  ;;  %v8562_v15 = vld [vmem:[#allocation17_spill] sm:$0xff] }
 0x3bd   :  { %v1136_v18 = vpop.f32.mrf.mxu1 }
 0x3be   :  { %1143 = vst.msk [vmem:[%s8329_s9] sm:$0xff] %vm166_vm0, %v1142_v46 }
 0x3bf   :  { %v4540_v26 = vpop.f32.mrf.mxu1 }
 0x3c9   :  { %v1228_v48 = vpop.f32.mrf.mxu1 }
 0x3ca   :  { %v1237_v29 = vadd.f32 %v1228_v48, %v8562_v15  ;;  %v6400_v48 = vld [vmem:[%s8322_s2 + $0x64] ss:$16 sps:$4 sm:$0xff]  }
 0x3cb   :  { %v1230_v12 = vpop.f32.mrf.mxu1 }
 0x3cc   :  { %5060 = vtanh.f32 %v1237_v29  ;;  %v1238_v54 = vadd.f32 %v1230_v12, %v306_v8 }
 0x3cd   :  { %v1232_v16 = vpop.f32.mrf.mxu1 }
 0x3ce   :  { %v4208_v42 = vmul.f32 -1.442695, %v1238_v54 }
 0x3cf   :  { %v1233_v36 = vpop.f32.mrf.mxu1 }
 0x3d0   :  { %5062 = vpow2.f32 %v4208_v42  ;;  %v6412_v36 = vld [vmem:[%s8322_s2 + $0x60] ss:$16 sps:$4 sm:$0xff]  }
 0x3d9   :  { %v5061_v33 = vpop.eup %5060 }
 0x3da   :  { %v1259_v34 = vmul.f32 %v5061_v33, %v5059_v51  ;;  %v6429_v51 = vld [vmem:[%s8322_s2 + $0x40] ss:$16 sps:$4 sm:$0xff]   ;;  %v6435_v33 = vld [vmem:[%s8322_s2 + $0x24] ss:$16 sps:$4 sm:$0xff]  }
 0x3db   :  { %8567 = vst [vmem:[#allocation15_spill] sm:$0xff] %v6435_v33 }
 0x3dc   :  { %v6376_v38 = vadd.f32 %v1259_v34, %v1258_v32  ;;  %v6449_v32 = vld [vmem:[%s8322_s2 + $0x4] ss:$16 sps:$4 sm:$0xff]   ;;  %v8570_v34 = vld [vmem:[#allocation57_spill] sm:$0xff] }
 0x3dd   :  { %v5063_v39 = vpop.eup %5062  ;;  %8569 = vst [vmem:[#allocation18_spill] sm:$0xff] %v6449_v32 }
 0x3de   :  { %v8376_v41 = vclamps-f32 %v6376_v38, 3.0  ;;  %v1255_v46 = vadd.f32 1.0, %v5063_v39  ;;  %v6457_v39 = vld [vmem:[%s8322_s2] ss:$16 sps:$4 sm:$0xff]  }
 0x3df   :  { %8571 = vst [vmem:[#allocation17_spill] sm:$0xff] %v6457_v39 }
 0x3e0   :  { %5064 = vtanh.f32 %v8376_v41 }
 0x3e1   :  { %5066 = vrcp.f32 %v1255_v46 }
 0x3ed   :  { %v5065_v18 = vpop.eup %5064 }
 0x3ee   :  { %v5067_v26 = vpop.eup %5066 }
 0x3ef   :  { %v1264_v57 = vmul.f32 %v5067_v26, %v5065_v18  ;;  %v8572_v18 = vld [vmem:[#allocation58_spill] sm:$0xff] }
 0x3f0   :  { %v8573_v26 = vld [vmem:[#allocation6_spill] sm:$0xff] }
 0x3f1   :  { %v1265_v37 = vpack.c.bf16 %v1264_v57, %v1264_v57  ;;  %v8574_v57 = vld [vmem:[#allocation59_spill] sm:$0xff] }
 0x3f3   :  { %4558 = vmatmul.mubr.bf16.vlgmr.msra.gmra.mxu0 %v1265_v37  ;;  %v8575_v37 = vld [vmem:[#allocation7_spill] sm:$0xff] }
 0x3f4   :  { %1356 = vmatpush1.bf16.msra.mxu0 %v6105_v44  ;;  %1387 = vmatprep.mubr.bf16.mxu0 %v8540_v20 }
 0x3f5   :  { %1357 = vmatprep.subr.bf16.mxu0 %v6110_v23 }
 0x3f8   :  { %1358 = vmatpush1.bf16.msra.mxu0 %v6116_v14 }
 0x3f9   :  { %1359 = vmatprep.subr.bf16.mxu0 %v6123_v17 }
 0x3fc   :  { %1360 = vmatpush1.bf16.msra.mxu0 %v6129_v30 }
 0x3fd   :  { %1361 = vmatprep.subr.bf16.mxu0 %v6135_v40 }
 0x400   :  { %1362 = vmatpush1.bf16.msra.mxu0 %v6141_v45 }
 0x401   :  { %1363 = vmatprep.subr.bf16.mxu0 %v6147_v43 }
 0x404   :  { %1364 = vmatpush1.bf16.msra.mxu0 %v6153_v24 }
 0x405   :  { %1365 = vmatprep.subr.bf16.mxu0 %v6159_v11 }
 0x408   :  { %1366 = vmatpush1.bf16.msra.mxu0 %v6165_v10 }
 0x409   :  { %1367 = vmatprep.subr.bf16.mxu0 %v6171_v2 }
 0x40c   :  { %1368 = vmatpush1.bf16.msra.mxu0 %v8564_v35 }
 0x40d   :  { %1369 = vmatprep.subr.bf16.mxu0 %v8565_v31 }
 0x410   :  { %1370 = vmatpush1.bf16.msra.mxu0 %v8566_v25 }
 0x411   :  { %1487 = vmatprep.subr.bf16.mxu0 %v6400_v48 }
 0x42e   :  { %v1310_v15 = vpop.permute.xlu0 %1309 }
 0x4b3   :  { %v1300_v49 = vpop.f32.mrf.mxu0 }
 0x4b4   :  { %v6403_v8 = vclamps-f32 %v1300_v49, 3.0  ;;  %v8576_v49 = vld [vmem:[#allocation60_spill] sm:$0xff] }
 0x4b5   :  { %v4559_v29 = vpop.f32.mrf.mxu0 }
 0x4b6   :  { %1466 = vst.msk [vmem:[#allocation3 + $0x8] sm:$0xff] %vm166_vm0, %v6403_v8  ;;  %v1312_v12 = vsel %vm166_vm0, %v6403_v8, %v1310_v15  ;;  %v6462_v46 = vpack.c.bf16 %v6403_v8, %v6403_v8  ;;  %v8577_v15 = vld [vmem:[#allocation8_spill] sm:$0xff]  ;;  %v8578_v29 = vld [vmem:[#allocation61_spill] sm:$0xff] }
 0x4b7   :  { %v1303_v54 = vpop.f32.mrf.mxu0  ;;  %v1313_v16 = vpack.c.bf16 %v1312_v12, %v1312_v12  ;;  %v8579_v12 = vld [vmem:[#allocation9_spill] sm:$0xff] }
 0x4b8   :  { %v8580_v54 = vld [vmem:[#allocation62_spill] sm:$0xff] }
 0x4b9   :  { %v4560_v42 = vpop.f32.mrf.mxu0  ;;  %1347 = vmatmul.mubr.bf16.vlgmr.msra.gmra.mxu1 %v1313_v16  ;;  %1388 = vmatmul.mubr.bf16.vlgmr.msra.gmra.mxu0 %v1313_v16  ;;  %v6489_v16 = vld [vmem:[%s8322_s2 + $0x6c] ss:$16 sps:$4 sm:$0xff]  }
 0x4ba   :  { %1488 = vmatpush1.bf16.msra.mxu0 %v6412_v36  ;;  %1511 = vmatprep.mubr.bf16.mxu0 %v8540_v20  ;;  %8581 = vst [vmem:[#allocation53_spill] sm:$0xff] %v6489_v16  ;;  %v8582_v42 = vld [vmem:[#allocation10_spill] sm:$0xff] }
 0x4bb   :  { %1489 = vmatprep.subr.bf16.mxu0 %v6419_v53  ;;  %4562 = vmatpush3.bf16.msra.mxu1 %v6253_v21 }
 0x4bc   :  { %4563 = vmatprep.subr.bf16.mxu1 %v8544_v5  ;;  %4577 = vmatprep.mubr.msk.bf16.mxu1 %vm5556_vm1, %v8544_v5 }
 0x4be   :  { %1490 = vmatpush1.bf16.msra.mxu0 %v6429_v51 }
 0x4bf   :  { %1491 = vmatprep.subr.bf16.mxu0 %v6435_v33  ;;  %4564 = vmatpush3.bf16.msra.mxu1 %v6260_v22 }
 0x4c0   :  { %4565 = vmatprep.subr.bf16.mxu1 %v8544_v5 }
 0x4c2   :  { %1492 = vmatpush1.bf16.msra.mxu0 %v6443_v50  ;;  %v8589_v50 = vld [vmem:[#allocation21_spill] sm:$0xff] }
 0x4c3   :  { %1493 = vmatprep.subr.bf16.mxu0 %v6449_v32  ;;  %4566 = vmatpush3.bf16.msra.mxu1 %v8570_v34  ;;  %v8588_v34 = vld [vmem:[#allocation65_spill] sm:$0xff] }
 0x4c4   :  { %4567 = vmatprep.subr.bf16.mxu1 %v8544_v5 }
 0x4c6   :  { %1494 = vmatpush1.bf16.msra.mxu0 %v6457_v39  ;;  %v8587_v39 = vld [vmem:[#allocation64_spill] sm:$0xff] }
 0x4c7   :  { %4568 = vmatpush3.bf16.msra.mxu1 %v8572_v18  ;;  %4581 = vmatprep.subr.bf16.mxu0 %v8544_v5 }
 0x4c8   :  { %4569 = vmatprep.subr.bf16.mxu1 %v8544_v5 }
 0x4c9   :  { %4217 = vmatmul.mubr.msk.bf16.vlgmr.msra.gmra.mxu0 %vm166_vm0, %v6462_v46 }
 0x4ca   :  { %4582 = vmatpush3.bf16.msra.mxu0 %v8573_v26  ;;  %4597 = vmatprep.mubr.msk.bf16.mxu0 %vm5556_vm1, %v8544_v5  ;;  %v8583_v26 = vld [vmem:[#allocation11_spill] sm:$0xff] }
 0x4cb   :  { %4570 = vmatpush3.bf16.msra.mxu1 %v8574_v57  ;;  %4583 = vmatprep.subr.bf16.mxu0 %v8544_v5 }
 0x4cc   :  { %4571 = vmatprep.subr.bf16.mxu1 %v8544_v5 }
 0x4ce   :  { %4584 = vmatpush3.bf16.msra.mxu0 %v8575_v37  ;;  %v8584_v37 = vld [vmem:[#allocation12_spill] sm:$0xff] }
 0x4cf   :  { %4572 = vmatpush3.bf16.msra.mxu1 %v8576_v49  ;;  %4585 = vmatprep.subr.bf16.mxu0 %v8544_v5 }
 0x4d0   :  { %4573 = vmatprep.subr.bf16.mxu1 %v8544_v5 }
 0x4d2   :  { %4586 = vmatpush3.bf16.msra.mxu0 %v8577_v15  ;;  %v8585_v15 = vld [vmem:[#allocation13_spill] sm:$0xff] }
 0x4d3   :  { %4574 = vmatpush3.bf16.msra.mxu1 %v8578_v29  ;;  %4587 = vmatprep.subr.bf16.mxu0 %v8544_v5 }
 0x4d4   :  { %4575 = vmatprep.subr.bf16.mxu1 %v8544_v5 }
 0x4d6   :  { %4588 = vmatpush3.bf16.msra.mxu0 %v8579_v12  ;;  %v8586_v12 = vld [vmem:[#allocation14_spill] sm:$0xff] }
 0x4d7   :  { %4576 = vmatpush3.bf16.msra.mxu1 %v8580_v54  ;;  %4589 = vmatprep.subr.bf16.mxu0 %v8544_v5 }
 0x4d8   :  { %1528 = vmatprep.subr.bf16.mxu1 %v6489_v16 }
 0x4da   :  { %4590 = vmatpush3.bf16.msra.mxu0 %v8582_v42 }
 0x4db   :  { %4591 = vmatprep.subr.bf16.mxu0 %v8544_v5 }
 0x4de   :  { %4592 = vmatpush3.bf16.msra.mxu0 %v8583_v26 }
 0x4df   :  { %4593 = vmatprep.subr.bf16.mxu0 %v8544_v5 }
 0x4e2   :  { %4594 = vmatpush3.bf16.msra.mxu0 %v8584_v37 }
 0x4e3   :  { %4595 = vmatprep.subr.bf16.mxu0 %v8544_v5 }
 0x4e6   :  { %4596 = vmatpush3.bf16.msra.mxu0 %v8585_v15 }
 0x4e7   :  { %1681 = vmatprep.subr.bf16.mxu0 %v8586_v12 }
 0x579   :  { %v1348_v41 = vpop.f32.mrf.mxu1  ;;  %v1389_v55 = vpop.f32.mrf.mxu0 }
 0x57a   :  { %v1349_v47 = vadd.f32 %v1348_v41, %v6311_v19  ;;  %v1390_v12 = vadd.f32 %v1389_v55, %v8588_v34 }
 0x57b   :  { %v1350_v16 = vpop.f32.mrf.mxu1  ;;  %v1391_v42 = vpop.f32.mrf.mxu0 }
 0x57c   :  { %v4211_v54 = vmul.f32 -1.442695, %v1349_v47  ;;  %v1351_v29 = vadd.f32 %v1350_v16, %v6315_v56  ;;  %v1392_v15 = vadd.f32 %v1391_v42, %v8587_v39  ;;  %v8590_v16 = vld [vmem:[#allocation23_spill] sm:$0xff] }
 0x57d   :  { %v1352_v26 = vpop.f32.mrf.mxu1  ;;  %v1393_v49 = vpop.f32.mrf.mxu0 }
 0x57e   :  { %5068 = vpow2.f32 %v4211_v54  ;;  %v4212_v57 = vmul.f32 -1.442695, %v1351_v29  ;;  %v4213_v19 = vmul.f32 -1.442695, %v1392_v15 }
 0x57f   :  { %v1353_v37 = vpop.f32.mrf.mxu1  ;;  %v1394_v18 = vpop.f32.mrf.mxu0 }
 0x580   :  { %5070 = vpow2.f32 %v4212_v57 }
 0x581   :  { %5072 = vtanh.f32 %v1390_v12 }
 0x589   :  { %v1513_v32 = vpop.f32.mrf.mxu0 }
 0x58a   :  { %v6505_v22 = vadd.f32 %v1513_v32, %v8589_v50  ;;  %v8591_v32 = vclamps-f32 %v6332_v52, 3.0  ;;  %v6525_v52 = vld [vmem:[%s8322_s2 + $0x4c] ss:$16 sps:$4 sm:$0xff]  }
 0x58b   :  { %v5069_v41 = vpop.eup %5068  ;;  %v1515_v47 = vpop.f32.mrf.mxu0 }
 0x58c   :  { %v1399_v33 = vadd.f32 1.0, %v5069_v41  ;;  %v1562_v26 = vadd.f32 %v1515_v47, %v8590_v16 }
 0x58d   :  { %v5071_v49 = vpop.eup %5070  ;;  %v1517_v29 = vpop.f32.mrf.mxu0 }
 0x58e   :  { %5074 = vrcp.f32 %v1399_v33  ;;  %v1405_v18 = vadd.f32 1.0, %v5071_v49  ;;  %v5073_v54 = vpop.eup %5072  ;;  %v6518_v49 = vld [vmem:[%s8322_s2 + $0x68] ss:$16 sps:$4 sm:$0xff]   ;;  %v6537_v29 = vld [vmem:[%s8322_s2 + $0x2c] ss:$16 sps:$4 sm:$0xff]  }
 0x58f   :  { %5076 = vpow2.f32 %v4213_v19  ;;  %v1518_v57 = vpop.f32.mrf.mxu0 }
 0x590   :  { %5078 = vrcp.f32 %v1405_v18  ;;  %v6543_v18 = vld [vmem:[%s8322_s2 + $0x28] ss:$16 sps:$4 sm:$0xff]   ;;  %v6549_v57 = vld [vmem:[%s8322_s2 + $0xc] ss:$16 sps:$4 sm:$0xff]  }
 0x59b   :  { %v5075_v55 = vpop.eup %5074 }
 0x59c   :  { %v5077_v42 = vpop.eup %5076  ;;  %v1416_v50 = vmul.f32 %v5075_v55, %v5073_v54  ;;  %v6555_v54 = vld [vmem:[%s8322_s2 + $0x8] ss:$16 sps:$4 sm:$0xff]  }
 0x59d   :  { %v5079_v37 = vpop.eup %5078  ;;  %v1412_v34 = vadd.f32 1.0, %v5077_v42 }
 0x59e   :  { %v1415_v15 = vmul.f32 %v5079_v37, %v8591_v32  ;;  %v8594_v32 = vclamps-f32 %v6376_v38, 3.0  ;;  %v8599_v38 = vld [vmem:[#allocation57_spill] sm:$0xff] }
 0x59f   :  { %5080 = vrcp.f32 %v1412_v34  ;;  %v6531_v34 = vld [vmem:[%s8322_s2 + $0x48] ss:$16 sps:$4 sm:$0xff]  }
 0x5a0   :  { %v6510_v41 = vadd.f32 %v1416_v50, %v1415_v15 }
 0x5a2   :  { %v4214_v47 = vclamps-f32 %v6510_v41, 3.0  ;;  %v6742_v41 = vld [vmem:[%s8325_s5 + $0xe4] ss:$16 sps:$4 sm:$0xff]  }
 0x5a4   :  { %5082 = vtanh.f32 %v4214_v47 }
 0x5ac   :  { %v5081_v19 = vpop.eup %5080 }
 0x5b1   :  { %v5083_v33 = vpop.eup %5082 }
 0x5b2   :  { %v1421_v12 = vmul.f32 %v5083_v33, %v5081_v19 }
 0x5b4   :  { %v1422_v16 = vpack.c.bf16 %v1421_v12, %v1421_v12 }
 0x5b6   :  { %4578 = vmatmul.mubr.bf16.vlgmr.msra.gmra.mxu1 %v1422_v16 }
 0x5b7   :  { %1529 = vmatpush1.bf16.msra.mxu1 %v6518_v49  ;;  %1552 = vmatprep.mubr.bf16.mxu1 %v8540_v20 }
 0x5b8   :  { %1530 = vmatprep.subr.bf16.mxu1 %v6525_v52 }
 0x5bb   :  { %1531 = vmatpush1.bf16.msra.mxu1 %v6531_v34 }
 0x5bc   :  { %1532 = vmatprep.subr.bf16.mxu1 %v6537_v29 }
 0x5bf   :  { %1533 = vmatpush1.bf16.msra.mxu1 %v6543_v18 }
 0x5c0   :  { %1534 = vmatprep.subr.bf16.mxu1 %v6549_v57 }
 0x5c3   :  { %1535 = vmatpush1.bf16.msra.mxu1 %v6555_v54 }
 0x5c4   :  { %1640 = vmatprep.subr.bf16.mxu1 %v5876_v58  ;;  %v4220_v58 = vmul.f32 -1.442695, %v1562_v26 }
 0x5c6   :  { %4218 = vmatmul.mubr.msk.bf16.vlgmr.msra.gmra.mxu1 %vm166_vm0, %v6462_v46  ;;  %5084 = vpow2.f32 %v4220_v58 }
 0x5c7   :  { %1641 = vmatpush1.bf16.msra.mxu1 %v5881_v59  ;;  %1672 = vmatprep.mubr.bf16.mxu1 %v8540_v20  ;;  %v4219_v59 = vmul.f32 -1.442695, %v6505_v22 }
 0x5c8   :  { %1642 = vmatprep.subr.bf16.mxu1 %v5888_v60 }
 0x5c9   :  { %5086 = vpow2.f32 %v4219_v59 }
 0x5cb   :  { %1643 = vmatpush1.bf16.msra.mxu1 %v5895_v61 }
 0x5cc   :  { %1644 = vmatprep.subr.bf16.mxu1 %v5900_v62 }
 0x5cf   :  { %1645 = vmatpush1.bf16.msra.mxu1 %v5907_v63 }
 0x5d0   :  { %1646 = vmatprep.subr.bf16.mxu1 %v5912_v0 }
 0x5d3   :  { %1647 = vmatpush1.bf16.msra.mxu1 %v5919_v1 }
 0x5d4   :  { %1648 = vmatprep.subr.bf16.mxu1 %v5924_v3  ;;  %v5085_v3 = vpop.eup %5084 }
 0x5d7   :  { %1649 = vmatpush1.bf16.msra.mxu1 %v5931_v4  ;;  %v5087_v4 = vpop.eup %5086 }
 0x5d8   :  { %1650 = vmatprep.subr.bf16.mxu1 %v5936_v6  ;;  %v1574_v6 = vadd.f32 1.0, %v5085_v3  ;;  %v6665_v3 = vld [vmem:[%s8324_s4 + $0x28] sm:$0xff]  }
 0x5d9   :  { %8605 = vst [vmem:[#allocation55_spill] sm:$0xff] %v6665_v3 }
 0x5da   :  { %5088 = vrcp.f32 %v1574_v6  ;;  %v6674_v6 = vld [vmem:[%s8324_s4 + $0x20] sm:$0xff]  }
 0x5db   :  { %1651 = vmatpush1.bf16.msra.mxu1 %v5943_v7  ;;  %v1568_v7 = vadd.f32 1.0, %v5087_v4  ;;  %v8606_v4 = vld [vmem:[#allocation61_spill] sm:$0xff]  ;;  %8607 = vst [vmem:[#allocation6_spill] sm:$0xff] %v6674_v6 }
 0x5dc   :  { %1652 = vmatprep.subr.bf16.mxu1 %v8559_v27 }
 0x5dd   :  { %5090 = vrcp.f32 %v1568_v7  ;;  %v8608_v7 = vld [vmem:[#allocation62_spill] sm:$0xff] }
 0x5df   :  { %1653 = vmatpush1.bf16.msra.mxu1 %v8560_v28  ;;  %v8593_v28 = vld [vmem:[#allocation24_spill] sm:$0xff] }
 0x5e0   :  { %1654 = vmatprep.subr.bf16.mxu1 %v6189_v13 }
 0x5e3   :  { %1655 = vmatpush1.bf16.msra.mxu1 %v6200_v9  ;;  %v8592_v9 = vld [vmem:[#allocation22_spill] sm:$0xff] }
 0x5e4   :  { %4601 = vmatprep.subr.bf16.mxu1 %v8544_v5 }
 0x5e7   :  { %v5089_v42 = vpop.eup %5088 }
 0x5e8   :  { %v1584_v15 = vmul.f32 %v5089_v42, %v8594_v32 }
 0x5ea   :  { %v5091_v37 = vpop.eup %5090 }
 0x676   :  { %v1457_v60 = vpop.f32.mrf.mxu1 }
 0x677   :  { %v4215_v61 = vclamps-f32 %v1457_v60, 3.0 }
 0x678   :  { %v4579_v62 = vpop.f32.mrf.mxu1 }
 0x679   :  { %v1467_v63 = vadd.f32 %v4215_v61, %v6403_v8  ;;  %1635 = vrot.lane.b32.xlu0 %v4215_v61, %s5557_s6 }
 0x67a   :  { %v1460_v0 = vpop.f32.mrf.mxu1 }
 0x67b   :  { %4216 = vst.msk [vmem:[%s8329_s9 + $0x8] sm:$0xff] %vm166_vm0, %v1467_v63  ;;  %v8602_v63 = vld [vmem:[#allocation59_spill] sm:$0xff]  ;;  %v6656_v0 = vld [vmem:[%s8324_s4 + $0x30] sm:$0xff]  }
 0x67c   :  { %v4580_v1 = vpop.f32.mrf.mxu1  ;;  %8603 = vst [vmem:[#allocation54_spill] sm:$0xff] %v6656_v0 }
 0x67d   :  { %v8604_v1 = vld [vmem:[#allocation60_spill] sm:$0xff] }
 0x686   :  { %v1554_v13 = vpop.f32.mrf.mxu1 }
 0x687   :  { %v1563_v22 = vadd.f32 %v1554_v13, %v8592_v9  ;;  %v8609_v13 = vld [vmem:[#allocation53_spill] sm:$0xff]  ;;  %v6683_v9 = vld [vmem:[%s8324_s4 + $0x18] sm:$0xff]  }
 0x688   :  { %v1556_v27 = vpop.f32.mrf.mxu1  ;;  %8610 = vst [vmem:[#allocation7_spill] sm:$0xff] %v6683_v9 }
 0x689   :  { %5092 = vtanh.f32 %v1563_v22  ;;  %v1564_v8 = vadd.f32 %v1556_v27, %v8593_v28  ;;  %v6690_v22 = vld [vmem:[%s8324_s4 + $0x10] sm:$0xff]   ;;  %v6697_v27 = vld [vmem:[%s8324_s4 + $0x8] sm:$0xff]   ;;  %v6704_v28 = vld [vmem:[%s8324_s4] sm:$0xff]  }
 0x68a   :  { %v1558_v46 = vpop.f32.mrf.mxu1  ;;  %8611 = vst [vmem:[#allocation8_spill] sm:$0xff] %v6690_v22  ;;  %8612 = vst [vmem:[#allocation9_spill] sm:$0xff] %v6697_v27 }
 0x68b   :  { %v4221_v26 = vmul.f32 -1.442695, %v1564_v8  ;;  %8613 = vst [vmem:[#allocation10_spill] sm:$0xff] %v6704_v28  ;;  %v6710_v8 = vld [vmem:[%s8325_s5 + $0xec] ss:$16 sps:$4 sm:$0xff]  }
 0x68c   :  { %v1559_v55 = vpop.f32.mrf.mxu1  ;;  %8614 = vst [vmem:[#allocation11_spill] sm:$0xff] %v6710_v8 }
 0x68d   :  { %5094 = vpow2.f32 %v4221_v26  ;;  %v8615_v55 = vld [vmem:[#allocation63_spill] sm:$0xff] }
 0x696   :  { %v5093_v50 = vpop.eup %5092 }
 0x697   :  { %v1585_v19 = vmul.f32 %v5093_v50, %v5091_v37 }
 0x699   :  { %v6589_v33 = vadd.f32 %v1585_v19, %v1584_v15 }
 0x69a   :  { %v5095_v12 = vpop.eup %5094 }
 0x69b   :  { %v8394_v16 = vclamps-f32 %v6589_v33, 3.0  ;;  %v1581_v58 = vadd.f32 1.0, %v5095_v12 }
 0x69d   :  { %5096 = vtanh.f32 %v8394_v16  ;;  %v8626_v16 = vld [vmem:[#allocation28_spill] sm:$0xff] }
 0x69e   :  { %5098 = vrcp.f32 %v1581_v58 }
 0x6aa   :  { %v5097_v59 = vpop.eup %5096 }
 0x6ab   :  { %v5099_v60 = vpop.eup %5098 }
 0x6ac   :  { %v1590_v61 = vmul.f32 %v5099_v60, %v5097_v59 }
 0x6ae   :  { %v1591_v62 = vpack.c.bf16 %v1590_v61, %v1590_v61 }
 0x6b0   :  { %4598 = vmatmul.mubr.bf16.vlgmr.msra.gmra.mxu0 %v1591_v62  ;;  %v8616_v62 = vld [vmem:[#allocation65_spill] sm:$0xff] }
 0x6b1   :  { %1682 = vmatpush1.bf16.msra.mxu0 %v6105_v44  ;;  %1713 = vmatprep.mubr.bf16.mxu0 %v8540_v20 }
 0x6b2   :  { %1683 = vmatprep.subr.bf16.mxu0 %v6110_v23 }
 0x6b5   :  { %1684 = vmatpush1.bf16.msra.mxu0 %v6116_v14 }
 0x6b6   :  { %1685 = vmatprep.subr.bf16.mxu0 %v6123_v17 }
 0x6b9   :  { %1686 = vmatpush1.bf16.msra.mxu0 %v6129_v30 }
 0x6ba   :  { %1687 = vmatprep.subr.bf16.mxu0 %v6135_v40 }
 0x6bd   :  { %1688 = vmatpush1.bf16.msra.mxu0 %v6141_v45 }
 0x6be   :  { %1689 = vmatprep.subr.bf16.mxu0 %v6147_v43 }
 0x6c1   :  { %1690 = vmatpush1.bf16.msra.mxu0 %v6153_v24  ;;  %v8595_v24 = vld [vmem:[#allocation15_spill] sm:$0xff] }
 0x6c2   :  { %1691 = vmatprep.subr.bf16.mxu0 %v6159_v11  ;;  %v8596_v11 = vld [vmem:[#allocation56_spill] sm:$0xff] }
 0x6c5   :  { %1692 = vmatpush1.bf16.msra.mxu0 %v6165_v10  ;;  %v8597_v10 = vld [vmem:[#allocation16_spill] sm:$0xff] }
 0x6c6   :  { %1693 = vmatprep.subr.bf16.mxu0 %v6171_v2  ;;  %v8598_v2 = vld [vmem:[#allocation18_spill] sm:$0xff] }
 0x6c9   :  { %1694 = vmatpush1.bf16.msra.mxu0 %v8564_v35 }
 0x6ca   :  { %1695 = vmatprep.subr.bf16.mxu0 %v8565_v31  ;;  %v8601_v31 = vld [vmem:[#allocation58_spill] sm:$0xff] }
 0x6cd   :  { %1696 = vmatpush1.bf16.msra.mxu0 %v8566_v25  ;;  %v6645_v25 = vld [vmem:[%s8324_s4 + $0x38] sm:$0xff]  }
 0x6ce   :  { %1813 = vmatprep.subr.bf16.mxu0 %v6400_v48 }
 0x6eb   :  { %v1636_v14 = vpop.permute.xlu0 %1635 }
 0x770   :  { %v1626_v44 = vpop.f32.mrf.mxu0 }
 0x771   :  { %v6611_v23 = vclamps-f32 %v1626_v44, 3.0 }
 0x772   :  { %v4599_v17 = vpop.f32.mrf.mxu0 }
 0x773   :  { %1792 = vst.msk [vmem:[#allocation3 + $0x10] sm:$0xff] %vm166_vm0, %v6611_v23  ;;  %v1638_v30 = vsel %vm166_vm0, %v6611_v23, %v1636_v14  ;;  %v6635_v35 = vpack.c.bf16 %v6611_v23, %v6611_v23  ;;  %v8617_v17 = vld [vmem:[#allocation19_spill] sm:$0xff] }
 0x774   :  { %v1629_v40 = vpop.f32.mrf.mxu0  ;;  %v1639_v45 = vpack.c.bf16 %v1638_v30, %v1638_v30  ;;  %v8618_v30 = vld [vmem:[#allocation27_spill] sm:$0xff] }
 0x775   :  { %v233_v40 = vadd.f32 %v8618_v30, %v8617_v17  ;;  %v6757_v30 = vld [vmem:[%s8325_s5 + $0xc4] ss:$16 sps:$4 sm:$0xff]  }
 0x776   :  { %v4600_v43 = vpop.f32.mrf.mxu0  ;;  %1673 = vmatmul.mubr.bf16.vlgmr.msra.gmra.mxu1 %v1639_v45  ;;  %1714 = vmatmul.mubr.bf16.vlgmr.msra.gmra.mxu0 %v1639_v45  ;;  %v8619_v45 = vld [vmem:[#allocation25_spill] sm:$0xff] }
 0x777   :  { %1814 = vmatpush1.bf16.msra.mxu0 %v6412_v36  ;;  %1837 = vmatprep.mubr.bf16.mxu0 %v8540_v20 }
 0x778   :  { %1815 = vmatprep.subr.bf16.mxu0 %v6419_v53  ;;  %4602 = vmatpush3.bf16.msra.mxu1 %v6253_v21  ;;  %v8600_v21 = vld [vmem:[#allocation17_spill] sm:$0xff] }
 0x779   :  { %4603 = vmatprep.subr.bf16.mxu1 %v8544_v5  ;;  %4617 = vmatprep.mubr.msk.bf16.mxu1 %vm5556_vm1, %v8544_v5 }
 0x77b   :  { %1816 = vmatpush1.bf16.msra.mxu0 %v6429_v51 }
 0x77c   :  { %1817 = vmatprep.subr.bf16.mxu0 %v8595_v24  ;;  %4604 = vmatpush3.bf16.msra.mxu1 %v8596_v11 }
 0x77d   :  { %4605 = vmatprep.subr.bf16.mxu1 %v8544_v5 }
 0x77f   :  { %1818 = vmatpush1.bf16.msra.mxu0 %v8597_v10 }
 0x780   :  { %1819 = vmatprep.subr.bf16.mxu0 %v8598_v2  ;;  %4606 = vmatpush3.bf16.msra.mxu1 %v8599_v38 }
 0x781   :  { %4607 = vmatprep.subr.bf16.mxu1 %v8544_v5 }
 0x783   :  { %1820 = vmatpush1.bf16.msra.mxu0 %v8600_v21 }
 0x784   :  { %4608 = vmatpush3.bf16.msra.mxu1 %v8601_v31  ;;  %4621 = vmatprep.subr.bf16.mxu0 %v8544_v5 }
 0x785   :  { %4609 = vmatprep.subr.bf16.mxu1 %v8544_v5 }
 0x786   :  { %4230 = vmatmul.mubr.msk.bf16.vlgmr.msra.gmra.mxu0 %vm166_vm0, %v6635_v35 }
 0x787   :  { %4622 = vmatpush3.bf16.msra.mxu0 %v6645_v25  ;;  %4637 = vmatprep.mubr.msk.bf16.mxu0 %vm5556_vm1, %v8544_v5 }
 0x788   :  { %4610 = vmatpush3.bf16.msra.mxu1 %v8602_v63  ;;  %4623 = vmatprep.subr.bf16.mxu0 %v8544_v5 }
 0x789   :  { %4611 = vmatprep.subr.bf16.mxu1 %v8544_v5 }
 0x78b   :  { %4624 = vmatpush3.bf16.msra.mxu0 %v6656_v0 }
 0x78c   :  { %4612 = vmatpush3.bf16.msra.mxu1 %v8604_v1  ;;  %4625 = vmatprep.subr.bf16.mxu0 %v8544_v5 }
 0x78d   :  { %4613 = vmatprep.subr.bf16.mxu1 %v8544_v5 }
 0x78f   :  { %4626 = vmatpush3.bf16.msra.mxu0 %v6665_v3 }
 0x790   :  { %4614 = vmatpush3.bf16.msra.mxu1 %v8606_v4  ;;  %4627 = vmatprep.subr.bf16.mxu0 %v8544_v5 }
 0x791   :  { %4615 = vmatprep.subr.bf16.mxu1 %v8544_v5 }
 0x793   :  { %4628 = vmatpush3.bf16.msra.mxu0 %v6674_v6 }
 0x794   :  { %4616 = vmatpush3.bf16.msra.mxu1 %v8608_v7  ;;  %4629 = vmatprep.subr.bf16.mxu0 %v8544_v5 }
 0x795   :  { %1854 = vmatprep.subr.bf16.mxu1 %v8609_v13 }
 0x797   :  { %4630 = vmatpush3.bf16.msra.mxu0 %v6683_v9 }
 0x798   :  { %4631 = vmatprep.subr.bf16.mxu0 %v8544_v5 }
 0x79b   :  { %4632 = vmatpush3.bf16.msra.mxu0 %v6690_v22 }
 0x79c   :  { %4633 = vmatprep.subr.bf16.mxu0 %v8544_v5 }
 0x79f   :  { %4634 = vmatpush3.bf16.msra.mxu0 %v6697_v27 }
 0x7a0   :  { %4635 = vmatprep.subr.bf16.mxu0 %v8544_v5 }
 0x7a3   :  { %4636 = vmatpush3.bf16.msra.mxu0 %v6704_v28 }
 0x7a4   :  { %2007 = vmatprep.subr.bf16.mxu0 %v6710_v8 }
 0x836   :  { %v1674_v46 = vpop.f32.mrf.mxu1  ;;  %v1715_v26 = vpop.f32.mrf.mxu0 }
 0x837   :  { %v1675_v42 = vadd.f32 %v1674_v46, %v8615_v55  ;;  %v1716_v44 = vadd.f32 %v1715_v26, %v8616_v62 }
 0x838   :  { %v1676_v37 = vpop.f32.mrf.mxu1  ;;  %v1717_v50 = vpop.f32.mrf.mxu0 }
 0x839   :  { %v4224_v32 = vmul.f32 -1.442695, %v1675_v42  ;;  %v1677_v15 = vadd.f32 %v1676_v37, %v6315_v56  ;;  %v1718_v61 = vadd.f32 %v1717_v50, %v8587_v39 }
 0x83a   :  { %v1678_v19 = vpop.f32.mrf.mxu1  ;;  %v1719_v12 = vpop.f32.mrf.mxu0 }
 0x83b   :  { %5100 = vpow2.f32 %v4224_v32  ;;  %v4225_v58 = vmul.f32 -1.442695, %v1677_v15  ;;  %v4226_v38 = vmul.f32 -1.442695, %v1718_v61 }
 0x83c   :  { %v1679_v59 = vpop.f32.mrf.mxu1  ;;  %v1720_v60 = vpop.f32.mrf.mxu0 }
 0x83d   :  { %5102 = vpow2.f32 %v4225_v58 }
 0x83e   :  { %5104 = vtanh.f32 %v1716_v44 }
 0x846   :  { %v1839_v14 = vpop.f32.mrf.mxu0 }
 0x847   :  { %v6720_v43 = vadd.f32 %v1839_v14, %v8619_v45  ;;  %v6775_v45 = vld [vmem:[%s8325_s5 + $0xa0] ss:$16 sps:$4 sm:$0xff]  }
 0x848   :  { %v5101_v11 = vpop.eup %5100  ;;  %v1841_v31 = vpop.f32.mrf.mxu0 }
 0x849   :  { %v1725_v63 = vadd.f32 1.0, %v5101_v11  ;;  %v6722_v1 = vadd.f32 %v1841_v31, %v233_v40  ;;  %v6769_v40 = vld [vmem:[%s8325_s5 + $0xa4] ss:$16 sps:$4 sm:$0xff]  }
 0x84a   :  { %v5103_v4 = vpop.eup %5102  ;;  %v1843_v7 = vpop.f32.mrf.mxu0  ;;  %v6781_v11 = vld [vmem:[%s8325_s5 + $0x84] ss:$16 sps:$4 sm:$0xff]  }
 0x84b   :  { %5106 = vrcp.f32 %v1725_v63  ;;  %v1731_v46 = vadd.f32 1.0, %v5103_v4  ;;  %v5105_v42 = vpop.eup %5104  ;;  %v6793_v31 = vld [vmem:[%s8325_s5 + $0x64] ss:$16 sps:$4 sm:$0xff]   ;;  %v6799_v63 = vld [vmem:[%s8325_s5 + $0x60] ss:$16 sps:$4 sm:$0xff]  }
 0x84c   :  { %5108 = vpow2.f32 %v4226_v38  ;;  %v1844_v26 = vpop.f32.mrf.mxu0  ;;  %v6787_v38 = vld [vmem:[%s8325_s5 + $0x80] ss:$16 sps:$4 sm:$0xff]   ;;  %v6805_v4 = vld [vmem:[%s8325_s5 + $0x44] ss:$16 sps:$4 sm:$0xff]  }
 0x84d   :  { %5110 = vrcp.f32 %v1731_v46  ;;  %v6811_v7 = vld [vmem:[%s8325_s5 + $0x40] ss:$16 sps:$4 sm:$0xff]   ;;  %v6817_v46 = vld [vmem:[%s8325_s5 + $0x24] ss:$16 sps:$4 sm:$0xff]  }
 0x84e   :  { %8620 = vst [vmem:[#allocation12_spill] sm:$0xff] %v6811_v7  ;;  %8621 = vst [vmem:[#allocation13_spill] sm:$0xff] %v6817_v46  ;;  %v6823_v26 = vld [vmem:[%s8325_s5 + $0x20] ss:$16 sps:$4 sm:$0xff]  }
 0x84f   :  { %8622 = vst [vmem:[#allocation14_spill] sm:$0xff] %v6823_v26 }
 0x858   :  { %v5107_v37 = vpop.eup %5106 }
 0x859   :  { %v5109_v50 = vpop.eup %5108  ;;  %v1742_v15 = vmul.f32 %v5107_v37, %v5105_v42  ;;  %v6829_v42 = vld [vmem:[%s8325_s5 + $0x4] ss:$16 sps:$4 sm:$0xff]   ;;  %v6835_v37 = vld [vmem:[%s8325_s5] ss:$16 sps:$4 sm:$0xff]  }
 0x85a   :  { %v5111_v32 = vpop.eup %5110  ;;  %v1738_v12 = vadd.f32 1.0, %v5109_v50  ;;  %8623 = vst [vmem:[#allocation21_spill] sm:$0xff] %v6829_v42  ;;  %8624 = vst [vmem:[#allocation23_spill] sm:$0xff] %v6835_v37  ;;  %v4233_v50 = vmul.f32 -1.442695, %v6722_v1 }
 0x85b   :  { %v1741_v19 = vmul.f32 %v5111_v32, %v4214_v47  ;;  %v6750_v47 = vld [vmem:[%s8325_s5 + $0xe0] ss:$16 sps:$4 sm:$0xff]   ;;  %v4232_v32 = vmul.f32 -1.442695, %v6720_v43 }
 0x85c   :  { %5112 = vrcp.f32 %v1738_v12 }
 0x85d   :  { %v6726_v58 = vadd.f32 %v1742_v15, %v1741_v19 }
 0x85f   :  { %v8393_v59 = vclamps-f32 %v6726_v58, 3.0 }
 0x861   :  { %5114 = vtanh.f32 %v8393_v59 }
 0x862   :  { %5116 = vpow2.f32 %v4233_v50 }
 0x863   :  { %5118 = vpow2.f32 %v4232_v32  ;;  %v8625_v32 = vld [vmem:[#allocation20_spill] sm:$0xff] }
 0x869   :  { %v5113_v60 = vpop.eup %5112 }
 0x86e   :  { %v5115_v61 = vpop.eup %5114 }
 0x86f   :  { %v1747_v44 = vmul.f32 %v5115_v61, %v5113_v60 }
 0x871   :  { %v1748_v14 = vpack.c.bf16 %v1747_v44, %v1747_v44 }
 0x873   :  { %4618 = vmatmul.mubr.bf16.vlgmr.msra.gmra.mxu1 %v1748_v14  ;;  %v5117_v14 = vpop.eup %5116 }
 0x874   :  { %1855 = vmatpush1.bf16.msra.mxu1 %v6518_v49  ;;  %1878 = vmatprep.mubr.bf16.mxu1 %v8540_v20  ;;  %v5119_v1 = vpop.eup %5118  ;;  %v1900_v59 = vadd.f32 1.0, %v5117_v14  ;;  %v8628_v14 = vclamps-f32 %v6589_v33, 3.0  ;;  %v6860_v33 = vld [vmem:[%s8325_s5 + $0xe8] ss:$16 sps:$4 sm:$0xff]  }
 0x875   :  { %1856 = vmatprep.subr.bf16.mxu1 %v6525_v52  ;;  %v1894_v43 = vadd.f32 1.0, %v5119_v1 }
 0x876   :  { %5120 = vrcp.f32 %v1900_v59 }
 0x877   :  { %5122 = vrcp.f32 %v1894_v43 }
 0x878   :  { %1857 = vmatpush1.bf16.msra.mxu1 %v6531_v34 }
 0x879   :  { %1858 = vmatprep.subr.bf16.mxu1 %v6537_v29 }
 0x87c   :  { %1859 = vmatpush1.bf16.msra.mxu1 %v6543_v18 }
 0x87d   :  { %1860 = vmatprep.subr.bf16.mxu1 %v6549_v57 }
 0x880   :  { %1861 = vmatpush1.bf16.msra.mxu1 %v6555_v54 }
 0x881   :  { %1966 = vmatprep.subr.bf16.mxu1 %v6742_v41 }
 0x883   :  { %4231 = vmatmul.mubr.msk.bf16.vlgmr.msra.gmra.mxu1 %vm166_vm0, %v6635_v35  ;;  %v6763_v35 = vld [vmem:[%s8325_s5 + $0xc0] ss:$16 sps:$4 sm:$0xff]  }
 0x884   :  { %1967 = vmatpush1.bf16.msra.mxu1 %v6750_v47  ;;  %1998 = vmatprep.mubr.bf16.mxu1 %v8540_v20 }
 0x885   :  { %1968 = vmatprep.subr.bf16.mxu1 %v6757_v30 }
 0x888   :  { %1969 = vmatpush1.bf16.msra.mxu1 %v6763_v35 }
 0x889   :  { %1970 = vmatprep.subr.bf16.mxu1 %v6769_v40 }
 0x88c   :  { %1971 = vmatpush1.bf16.msra.mxu1 %v6775_v45 }
 0x88d   :  { %1972 = vmatprep.subr.bf16.mxu1 %v6781_v11 }
 0x890   :  { %1973 = vmatpush1.bf16.msra.mxu1 %v6787_v38 }
 0x891   :  { %1974 = vmatprep.subr.bf16.mxu1 %v6793_v31 }
 0x894   :  { %1975 = vmatpush1.bf16.msra.mxu1 %v6799_v63 }
 0x895   :  { %1976 = vmatprep.subr.bf16.mxu1 %v6805_v4 }
 0x898   :  { %1977 = vmatpush1.bf16.msra.mxu1 %v6811_v7 }
 0x899   :  { %1978 = vmatprep.subr.bf16.mxu1 %v6817_v46 }
 0x89c   :  { %1979 = vmatpush1.bf16.msra.mxu1 %v6823_v26 }
 0x89d   :  { %1980 = vmatprep.subr.bf16.mxu1 %v6829_v42 }
 0x8a0   :  { %1981 = vmatpush1.bf16.msra.mxu1 %v6835_v37 }
 0x8a1   :  { %4641 = vmatprep.subr.bf16.mxu1 %v8544_v5 }
 0x933   :  { %v1783_v15 = vpop.f32.mrf.mxu1 }
 0x934   :  { %v4228_v19 = vclamps-f32 %v1783_v15, 3.0  ;;  %v316_v15 = vadd.f32 %v8626_v16, %v8625_v32 }
 0x935   :  { %v4619_v12 = vpop.f32.mrf.mxu1 }
 0x936   :  { %v1793_v60 = vadd.f32 %v4228_v19, %v6611_v23  ;;  %1961 = vrot.lane.b32.xlu1 %v4228_v19, %s5557_s6  ;;  %v8627_v12 = vld [vmem:[#allocation26_spill] sm:$0xff] }
 0x937   :  { %v1786_v61 = vpop.f32.mrf.mxu1 }
 0x938   :  { %4229 = vst.msk [vmem:[%s8329_s9 + $0x10] sm:$0xff] %vm166_vm0, %v1793_v60  ;;  %v5121_v60 = vpop.eup %5120 }
 0x939   :  { %v4620_v44 = vpop.f32.mrf.mxu1  ;;  %v1910_v1 = vmul.f32 %v5121_v60, %v8628_v14  ;;  %v6909_v60 = vld [vmem:[%s8325_s5 + $0x68] ss:$16 sps:$4 sm:$0xff]  }
 0x93a   :  { %v5123_v44 = vpop.eup %5122  ;;  %v6921_v14 = vld [vmem:[%s8325_s5 + $0x48] ss:$16 sps:$4 sm:$0xff]  }
 0x943   :  { %v1880_v50 = vpop.f32.mrf.mxu1 }
 0x944   :  { %v1889_v23 = vadd.f32 %v1880_v50, %v8627_v12  ;;  %v6885_v12 = vld [vmem:[%s8325_s5 + $0xa8] ss:$16 sps:$4 sm:$0xff]  }
 0x945   :  { %v1882_v19 = vpop.f32.mrf.mxu1 }
 0x946   :  { %5124 = vtanh.f32 %v1889_v23  ;;  %v1890_v61 = vadd.f32 %v1882_v19, %v316_v15  ;;  %v6879_v15 = vld [vmem:[%s8325_s5 + $0xac] ss:$16 sps:$4 sm:$0xff]   ;;  %v6897_v19 = vld [vmem:[%s8325_s5 + $0x88] ss:$16 sps:$4 sm:$0xff]  }
 0x947   :  { %v1884_v17 = vpop.f32.mrf.mxu1  ;;  %v6891_v23 = vld [vmem:[%s8325_s5 + $0x8c] ss:$16 sps:$4 sm:$0xff]  }
 0x948   :  { %v4234_v37 = vmul.f32 -1.442695, %v1890_v61  ;;  %v6903_v61 = vld [vmem:[%s8325_s5 + $0x6c] ss:$16 sps:$4 sm:$0xff]  }
 0x949   :  { %v1885_v42 = vpop.f32.mrf.mxu1 }
 0x94a   :  { %5126 = vpow2.f32 %v4234_v37 }
 0x953   :  { %v5125_v26 = vpop.eup %5124 }
 0x954   :  { %v1911_v46 = vmul.f32 %v5125_v26, %v5123_v44  ;;  %v6873_v26 = vld [vmem:[%s8325_s5 + $0xc8] ss:$16 sps:$4 sm:$0xff]   ;;  %v6915_v44 = vld [vmem:[%s8325_s5 + $0x4c] ss:$16 sps:$4 sm:$0xff]  }
 0x956   :  { %v6852_v7 = vadd.f32 %v1911_v46, %v1910_v1  ;;  %v6867_v46 = vld [vmem:[%s8325_s5 + $0xcc] ss:$16 sps:$4 sm:$0xff]  }
 0x957   :  { %v5127_v16 = vpop.eup %5126  ;;  %v6927_v1 = vld [vmem:[%s8325_s5 + $0x2c] ss:$16 sps:$4 sm:$0xff]  }
 0x958   :  { %v8405_v59 = vclamps-f32 %v6852_v7, 3.0  ;;  %v1907_v43 = vadd.f32 1.0, %v5127_v16  ;;  %8629 = vst [vmem:[#allocation22_spill] sm:$0xff] %v6927_v1  ;;  %v6933_v16 = vld [vmem:[%s8325_s5 + $0x28] ss:$16 sps:$4 sm:$0xff]  }
 0x959   :  { %8630 = vst [vmem:[#allocation24_spill] sm:$0xff] %v6933_v16 }
 0x95a   :  { %5128 = vtanh.f32 %v8405_v59 }
 0x95b   :  { %5130 = vrcp.f32 %v1907_v43  ;;  %v6939_v43 = vld [vmem:[%s8325_s5 + $0xc] ss:$16 sps:$4 sm:$0xff]  }
 0x95c   :  { %8631 = vst [vmem:[#allocation15_spill] sm:$0xff] %v6939_v43 }
 0x967   :  { %v5129_v17 = vpop.eup %5128 }
 0x968   :  { %v5131_v42 = vpop.eup %5130 }
 0x969   :  { %v1916_v37 = vmul.f32 %v5131_v42, %v5129_v17  ;;  %v6945_v17 = vld [vmem:[%s8325_s5 + $0x8] ss:$16 sps:$4 sm:$0xff]  }
 0x96b   :  { %v1917_v50 = vpack.c.bf16 %v1916_v37, %v1916_v37 }
 0x96d   :  { %4638 = vmatmul.mubr.bf16.vlgmr.msra.gmra.mxu0 %v1917_v50 }
 0x96e   :  { %2008 = vmatpush1.bf16.msra.mxu0 %v6860_v33  ;;  %2039 = vmatprep.mubr.bf16.mxu0 %v8540_v20 }
 0x96f   :  { %2009 = vmatprep.subr.bf16.mxu0 %v6867_v46 }
 0x972   :  { %2010 = vmatpush1.bf16.msra.mxu0 %v6873_v26 }
 0x973   :  { %2011 = vmatprep.subr.bf16.mxu0 %v6879_v15 }
 0x976   :  { %2012 = vmatpush1.bf16.msra.mxu0 %v6885_v12 }
 0x977   :  { %2013 = vmatprep.subr.bf16.mxu0 %v6891_v23 }
 0x97a   :  { %2014 = vmatpush1.bf16.msra.mxu0 %v6897_v19 }
 0x97b   :  { %2015 = vmatprep.subr.bf16.mxu0 %v6903_v61 }
 0x97e   :  { %2016 = vmatpush1.bf16.msra.mxu0 %v6909_v60 }
 0x97f   :  { %2017 = vmatprep.subr.bf16.mxu0 %v6915_v44 }
 0x982   :  { %2018 = vmatpush1.bf16.msra.mxu0 %v6921_v14 }
 0x983   :  { %2019 = vmatprep.subr.bf16.mxu0 %v6927_v1 }
 0x986   :  { %2020 = vmatpush1.bf16.msra.mxu0 %v6933_v16 }
 0x987   :  { %2021 = vmatprep.subr.bf16.mxu0 %v6939_v43 }
 0x98a   :  { %2022 = vmatpush1.bf16.msra.mxu0 %v6945_v17 }
 0x98b   :  { %2139 = vmatprep.subr.bf16.mxu0 %v6400_v48  ;;  %v6961_v48 = vld [vmem:[%s8327_s7 + $0x38] sm:$0xff]  }
 0x9a8   :  { %v1962_v50 = vpop.permute.xlu1 %1961 }
 0xa2d   :  { %v1952_v42 = vpop.f32.mrf.mxu0 }
 0xa2e   :  { %v6949_v37 = vclamps-f32 %v1952_v42, 3.0 }
 0xa2f   :  { %v4639_v59 = vpop.f32.mrf.mxu0 }
 0xa30   :  { %2118 = vst.msk [vmem:[#allocation3 + $0x18] sm:$0xff] %vm166_vm0, %v6949_v37  ;;  %v1964_v32 = vsel %vm166_vm0, %v6949_v37, %v1962_v50 }
 0xa31   :  { %v1955_v43 = vpop.f32.mrf.mxu0  ;;  %v1965_v16 = vpack.c.bf16 %v1964_v32, %v1964_v32  ;;  %v7033_v32 = vld [vmem:[%s8327_s7] sm:$0xff]  }
 0xa32   :  { %8638 = vst [vmem:[#allocation59_spill] sm:$0xff] %v7033_v32 }
 0xa33   :  { %v4640_v1 = vpop.f32.mrf.mxu0  ;;  %1999 = vmatmul.mubr.bf16.vlgmr.msra.gmra.mxu1 %v1965_v16  ;;  %2040 = vmatmul.mubr.bf16.vlgmr.msra.gmra.mxu0 %v1965_v16 }
 0xa34   :  { %2140 = vmatpush1.bf16.msra.mxu0 %v6412_v36  ;;  %2163 = vmatprep.mubr.bf16.mxu0 %v8540_v20  ;;  %v6972_v36 = vld [vmem:[%s8327_s7 + $0x30] sm:$0xff]  }
 0xa35   :  { %2141 = vmatprep.subr.bf16.mxu0 %v6419_v53  ;;  %4642 = vmatpush3.bf16.msra.mxu1 %v6961_v48  ;;  %8632 = vst [vmem:[#allocation56_spill] sm:$0xff] %v6972_v36  ;;  %v6981_v53 = vld [vmem:[%s8327_s7 + $0x28] sm:$0xff]  }
 0xa36   :  { %4643 = vmatprep.subr.bf16.mxu1 %v8544_v5  ;;  %4657 = vmatprep.mubr.msk.bf16.mxu1 %vm5556_vm1, %v8544_v5  ;;  %8633 = vst [vmem:[#allocation16_spill] sm:$0xff] %v6981_v53 }
 0xa38   :  { %2142 = vmatpush1.bf16.msra.mxu0 %v6429_v51  ;;  %v6988_v51 = vpack.c.bf16 %v6949_v37, %v6949_v37 }
 0xa39   :  { %2143 = vmatprep.subr.bf16.mxu0 %v8595_v24  ;;  %4644 = vmatpush3.bf16.msra.mxu1 %v6972_v36  ;;  %v6993_v24 = vld [vmem:[%s8327_s7 + $0x20] sm:$0xff]  }
 0xa3a   :  { %4645 = vmatprep.subr.bf16.mxu1 %v8544_v5  ;;  %8634 = vst [vmem:[#allocation18_spill] sm:$0xff] %v6993_v24 }
 0xa3c   :  { %2144 = vmatpush1.bf16.msra.mxu0 %v8597_v10  ;;  %v7006_v10 = vld [vmem:[%s8327_s7 + $0x18] sm:$0xff]  }
 0xa3d   :  { %2145 = vmatprep.subr.bf16.mxu0 %v8598_v2  ;;  %4646 = vmatpush3.bf16.msra.mxu1 %v6981_v53  ;;  %8635 = vst [vmem:[#allocation57_spill] sm:$0xff] %v7006_v10  ;;  %v7015_v2 = vld [vmem:[%s8327_s7 + $0x10] sm:$0xff]  }
 0xa3e   :  { %4647 = vmatprep.subr.bf16.mxu1 %v8544_v5  ;;  %8636 = vst [vmem:[#allocation17_spill] sm:$0xff] %v7015_v2 }
 0xa40   :  { %2146 = vmatpush1.bf16.msra.mxu0 %v8600_v21  ;;  %v7024_v21 = vld [vmem:[%s8327_s7 + $0x8] sm:$0xff]  }
 0xa41   :  { %4648 = vmatpush3.bf16.msra.mxu1 %v6993_v24  ;;  %4661 = vmatprep.subr.bf16.mxu0 %v8544_v5  ;;  %8637 = vst [vmem:[#allocation58_spill] sm:$0xff] %v7024_v21 }
 0xa42   :  { %4649 = vmatprep.subr.bf16.mxu1 %v8544_v5 }
 0xa43   :  { %4243 = vmatmul.mubr.msk.bf16.vlgmr.msra.gmra.mxu0 %vm166_vm0, %v6988_v51 }
 0xa44   :  { %4662 = vmatpush3.bf16.msra.mxu0 %v6645_v25  ;;  %4677 = vmatprep.mubr.msk.bf16.mxu0 %vm5556_vm1, %v8544_v5 }
 0xa45   :  { %4650 = vmatpush3.bf16.msra.mxu1 %v7006_v10  ;;  %4663 = vmatprep.subr.bf16.mxu0 %v8544_v5  ;;  %v8640_v10 = vld [vmem:[#allocation31_spill] sm:$0xff] }
 0xa46   :  { %4651 = vmatprep.subr.bf16.mxu1 %v8544_v5 }
 0xa48   :  { %4664 = vmatpush3.bf16.msra.mxu0 %v6656_v0 }
 0xa49   :  { %4652 = vmatpush3.bf16.msra.mxu1 %v7015_v2  ;;  %4665 = vmatprep.subr.bf16.mxu0 %v8544_v5 }
 0xa4a   :  { %4653 = vmatprep.subr.bf16.mxu1 %v8544_v5 }
 0xa4c   :  { %4666 = vmatpush3.bf16.msra.mxu0 %v6665_v3  ;;  %v8639_v3 = vld [vmem:[#allocation29_spill] sm:$0xff] }
 0xa4d   :  { %4654 = vmatpush3.bf16.msra.mxu1 %v7024_v21  ;;  %4667 = vmatprep.subr.bf16.mxu0 %v8544_v5 }
 0xa4e   :  { %4655 = vmatprep.subr.bf16.mxu1 %v8544_v5 }
 0xa50   :  { %4668 = vmatpush3.bf16.msra.mxu0 %v6674_v6 }
 0xa51   :  { %4656 = vmatpush3.bf16.msra.mxu1 %v7033_v32  ;;  %4669 = vmatprep.subr.bf16.mxu0 %v8544_v5 }
 0xa52   :  { %2180 = vmatprep.subr.bf16.mxu1 %v8609_v13 }
 0xa54   :  { %4670 = vmatpush3.bf16.msra.mxu0 %v6683_v9 }
 0xa55   :  { %4671 = vmatprep.subr.bf16.mxu0 %v8544_v5 }
 0xa58   :  { %4672 = vmatpush3.bf16.msra.mxu0 %v6690_v22 }
 0xa59   :  { %4673 = vmatprep.subr.bf16.mxu0 %v8544_v5 }
 0xa5c   :  { %4674 = vmatpush3.bf16.msra.mxu0 %v6697_v27 }
 0xa5d   :  { %4675 = vmatprep.subr.bf16.mxu0 %v8544_v5 }
 0xa60   :  { %4676 = vmatpush3.bf16.msra.mxu0 %v6704_v28 }
 0xa61   :  { %2333 = vmatprep.subr.bf16.mxu0 %v6710_v8 }
 0xaf3   :  { %v2000_v59 = vpop.f32.mrf.mxu1  ;;  %v2041_v1 = vpop.f32.mrf.mxu0 }
 0xaf4   :  { %v2001_v13 = vadd.f32 %v2000_v59, %v8615_v55  ;;  %v2042_v8 = vadd.f32 %v2041_v1, %v8616_v62 }
 0xaf5   :  { %v2002_v16 = vpop.f32.mrf.mxu1  ;;  %v2043_v43 = vpop.f32.mrf.mxu0 }
 0xaf6   :  { %v4237_v42 = vmul.f32 -1.442695, %v2001_v13  ;;  %v2003_v50 = vadd.f32 %v2002_v16, %v6315_v56  ;;  %v2044_v28 = vadd.f32 %v2043_v43, %v8587_v39 }
 0xaf7   :  { %v2004_v22 = vpop.f32.mrf.mxu1  ;;  %v2045_v9 = vpop.f32.mrf.mxu0 }
 0xaf8   :  { %5132 = vpow2.f32 %v4237_v42  ;;  %v4238_v32 = vmul.f32 -1.442695, %v2003_v50  ;;  %v4239_v55 = vmul.f32 -1.442695, %v2044_v28 }
 0xaf9   :  { %v2005_v27 = vpop.f32.mrf.mxu1  ;;  %v2046_v6 = vpop.f32.mrf.mxu0 }
 0xafa   :  { %5134 = vpow2.f32 %v4238_v32 }
 0xafb   :  { %5136 = vtanh.f32 %v2042_v8 }
 0xb03   :  { %v2165_v21 = vpop.f32.mrf.mxu0 }
 0xb04   :  { %v2213_v2 = vadd.f32 %v2165_v21, %v8639_v3  ;;  %v8641_v3 = vclamps-f32 %v6726_v58, 3.0 }
 0xb05   :  { %v5133_v59 = vpop.eup %5132  ;;  %v2167_v0 = vpop.f32.mrf.mxu0 }
 0xb06   :  { %v2051_v13 = vadd.f32 1.0, %v5133_v59  ;;  %v2214_v16 = vadd.f32 %v2167_v0, %v8640_v10 }
 0xb07   :  { %v5135_v22 = vpop.eup %5134  ;;  %v2169_v9 = vpop.f32.mrf.mxu0 }
 0xb08   :  { %5138 = vrcp.f32 %v2051_v13  ;;  %v2057_v27 = vadd.f32 1.0, %v5135_v22  ;;  %v5137_v32 = vpop.eup %5136 }
 0xb09   :  { %5140 = vpow2.f32 %v4239_v55  ;;  %v2170_v6 = vpop.f32.mrf.mxu0 }
 0xb0a   :  { %5142 = vrcp.f32 %v2057_v27 }
 0xb15   :  { %v5139_v43 = vpop.eup %5138 }
 0xb16   :  { %v5141_v1 = vpop.eup %5140  ;;  %v2068_v50 = vmul.f32 %v5139_v43, %v5137_v32 }
 0xb17   :  { %v5143_v42 = vpop.eup %5142  ;;  %v2064_v21 = vadd.f32 1.0, %v5141_v1 }
 0xb18   :  { %v2067_v28 = vmul.f32 %v5143_v42, %v8641_v3  ;;  %v8647_v42 = vld [vmem:[#allocation30_spill] sm:$0xff] }
 0xb19   :  { %5144 = vrcp.f32 %v2064_v21 }
 0xb1a   :  { %v7054_v59 = vadd.f32 %v2068_v50, %v2067_v28 }
 0xb1c   :  { %v8430_v0 = vclamps-f32 %v7054_v59, 3.0 }
 0xb1e   :  { %5146 = vtanh.f32 %v8430_v0 }
 0xb26   :  { %v5145_v8 = vpop.eup %5144 }
 0xb2b   :  { %v5147_v55 = vpop.eup %5146 }
 0xb2c   :  { %v2073_v10 = vmul.f32 %v5147_v55, %v5145_v8 }
 0xb2e   :  { %v2074_v13 = vpack.c.bf16 %v2073_v10, %v2073_v10 }
 0xb30   :  { %4658 = vmatmul.mubr.bf16.vlgmr.msra.gmra.mxu1 %v2074_v13 }
 0xb31   :  { %2181 = vmatpush1.bf16.msra.mxu1 %v6518_v49  ;;  %2204 = vmatprep.mubr.bf16.mxu1 %v8540_v20  ;;  %v8642_v49 = vld [vmem:[#allocation12_spill] sm:$0xff] }
 0xb32   :  { %2182 = vmatprep.subr.bf16.mxu1 %v6525_v52  ;;  %v8643_v52 = vld [vmem:[#allocation13_spill] sm:$0xff] }
 0xb35   :  { %2183 = vmatpush1.bf16.msra.mxu1 %v6531_v34  ;;  %v8644_v34 = vld [vmem:[#allocation14_spill] sm:$0xff] }
 0xb36   :  { %2184 = vmatprep.subr.bf16.mxu1 %v6537_v29  ;;  %v8645_v29 = vld [vmem:[#allocation21_spill] sm:$0xff] }
 0xb39   :  { %2185 = vmatpush1.bf16.msra.mxu1 %v6543_v18  ;;  %v8646_v18 = vld [vmem:[#allocation23_spill] sm:$0xff] }
 0xb3a   :  { %2186 = vmatprep.subr.bf16.mxu1 %v6549_v57  ;;  %v4246_v57 = vmul.f32 -1.442695, %v2214_v16 }
 0xb3c   :  { %5148 = vpow2.f32 %v4246_v57 }
 0xb3d   :  { %2187 = vmatpush1.bf16.msra.mxu1 %v6555_v54  ;;  %v4245_v54 = vmul.f32 -1.442695, %v2213_v2 }
 0xb3e   :  { %2292 = vmatprep.subr.bf16.mxu1 %v6742_v41 }
 0xb3f   :  { %5150 = vpow2.f32 %v4245_v54  ;;  %v8649_v54 = vclamps-f32 %v6852_v7, 3.0  ;;  %v8650_v7 = vld [vmem:[#allocation22_spill] sm:$0xff] }
 0xb40   :  { %4244 = vmatmul.mubr.msk.bf16.vlgmr.msra.gmra.mxu1 %vm166_vm0, %v6988_v51 }
 0xb41   :  { %2293 = vmatpush1.bf16.msra.mxu1 %v6750_v47  ;;  %2324 = vmatprep.mubr.bf16.mxu1 %v8540_v20 }
 0xb42   :  { %2294 = vmatprep.subr.bf16.mxu1 %v6757_v30 }
 0xb45   :  { %2295 = vmatpush1.bf16.msra.mxu1 %v6763_v35 }
 0xb46   :  { %2296 = vmatprep.subr.bf16.mxu1 %v6769_v40 }
 0xb49   :  { %2297 = vmatpush1.bf16.msra.mxu1 %v6775_v45  ;;  %v5149_v32 = vpop.eup %5148 }
 0xb4a   :  { %2298 = vmatprep.subr.bf16.mxu1 %v6781_v11  ;;  %v2226_v16 = vadd.f32 1.0, %v5149_v32 }
 0xb4c   :  { %v5151_v43 = vpop.eup %5150  ;;  %5152 = vrcp.f32 %v2226_v16 }
 0xb4d   :  { %2299 = vmatpush1.bf16.msra.mxu1 %v6787_v38  ;;  %v2220_v2 = vadd.f32 1.0, %v5151_v43 }
 0xb4e   :  { %2300 = vmatprep.subr.bf16.mxu1 %v6793_v31 }
 0xb4f   :  { %5154 = vrcp.f32 %v2220_v2 }
 0xb51   :  { %2301 = vmatpush1.bf16.msra.mxu1 %v6799_v63 }
 0xb52   :  { %2302 = vmatprep.subr.bf16.mxu1 %v6805_v4 }
 0xb55   :  { %2303 = vmatpush1.bf16.msra.mxu1 %v8642_v49 }
 0xb56   :  { %2304 = vmatprep.subr.bf16.mxu1 %v8643_v52 }
 0xb59   :  { %2305 = vmatpush1.bf16.msra.mxu1 %v8644_v34  ;;  %v5153_v10 = vpop.eup %5152 }
 0xb5a   :  { %2306 = vmatprep.subr.bf16.mxu1 %v8645_v29 }
 0xb5c   :  { %v5155_v13 = vpop.eup %5154 }
 0xb5d   :  { %2307 = vmatpush1.bf16.msra.mxu1 %v8646_v18 }
 0xb5e   :  { %4681 = vmatprep.subr.bf16.mxu1 %v8544_v5 }
 0xbf0   :  { %v2109_v58 = vpop.f32.mrf.mxu1 }
 0xbf1   :  { %v4241_v51 = vclamps-f32 %v2109_v58, 3.0  ;;  %v2236_v58 = vmul.f32 %v5153_v10, %v8649_v54  ;;  %v7140_v54 = vld [vmem:[%s8322_s2 + $0x44] ss:$16 sps:$4 sm:$0xff]  }
 0xbf2   :  { %v4659_v22 = vpop.f32.mrf.mxu1 }
 0xbf3   :  { %v2119_v9 = vadd.f32 %v4241_v51, %v6949_v37  ;;  %2287 = vrot.lane.b32.xlu1 %v4241_v51, %s5557_s6  ;;  %v8648_v37 = vld [vmem:[#allocation32_spill] sm:$0xff] }
 0xbf4   :  { %v2112_v27 = vpop.f32.mrf.mxu1 }
 0xbf5   :  { %4242 = vst.msk [vmem:[%s8329_s9 + $0x18] sm:$0xff] %vm166_vm0, %v2119_v9 }
 0xbf6   :  { %v4660_v6 = vpop.f32.mrf.mxu1 }
 0xc00   :  { %v2206_v1 = vpop.f32.mrf.mxu1 }
 0xc01   :  { %v2215_v50 = vadd.f32 %v2206_v1, %v8647_v42  ;;  %v8651_v1 = vld [vmem:[#allocation24_spill] sm:$0xff]  ;;  %v8652_v42 = vld [vmem:[#allocation15_spill] sm:$0xff] }
 0xc02   :  { %v2208_v3 = vpop.f32.mrf.mxu1 }
 0xc03   :  { %5156 = vtanh.f32 %v2215_v50  ;;  %v2216_v28 = vadd.f32 %v2208_v3, %v8648_v37  ;;  %v7121_v50 = vld [vmem:[%s8322_s2 + $0x64] ss:$16 sps:$4 sm:$0xff]  }
 0xc04   :  { %v2210_v21 = vpop.f32.mrf.mxu1 }
 0xc05   :  { %v4247_v8 = vmul.f32 -1.442695, %v2216_v28 }
 0xc06   :  { %v2211_v55 = vpop.f32.mrf.mxu1 }
 0xc07   :  { %5158 = vpow2.f32 %v4247_v8 }
 0xc10   :  { %v5157_v57 = vpop.eup %5156 }
 0xc11   :  { %v2237_v51 = vmul.f32 %v5157_v57, %v5155_v13  ;;  %v7133_v57 = vld [vmem:[%s8322_s2 + $0x60] ss:$16 sps:$4 sm:$0xff]  }
 0xc13   :  { %v7097_v22 = vadd.f32 %v2237_v51, %v2236_v58  ;;  %v7150_v58 = vld [vmem:[%s8322_s2 + $0x40] ss:$16 sps:$4 sm:$0xff]   ;;  %v7156_v51 = vld [vmem:[%s8322_s2 + $0x24] ss:$16 sps:$4 sm:$0xff]  }
 0xc14   :  { %v5159_v9 = vpop.eup %5158  ;;  %8653 = vst [vmem:[#allocation60_spill] sm:$0xff] %v7156_v51 }
 0xc15   :  { %v8429_v27 = vclamps-f32 %v7097_v22, 3.0  ;;  %v2233_v6 = vadd.f32 1.0, %v5159_v9  ;;  %v7164_v9 = vld [vmem:[%s8322_s2 + $0x20] ss:$16 sps:$4 sm:$0xff]  }
 0xc16   :  { %8654 = vst [vmem:[#allocation61_spill] sm:$0xff] %v7164_v9 }
 0xc17   :  { %5160 = vtanh.f32 %v8429_v27 }
 0xc18   :  { %5162 = vrcp.f32 %v2233_v6  ;;  %v7170_v6 = vld [vmem:[%s8322_s2 + $0x4] ss:$16 sps:$4 sm:$0xff]  }
 0xc19   :  { %8655 = vst [vmem:[#allocation62_spill] sm:$0xff] %v7170_v6 }
 0xc24   :  { %v5161_v32 = vpop.eup %5160 }
 0xc25   :  { %v5163_v43 = vpop.eup %5162 }
 0xc26   :  { %v2242_v16 = vmul.f32 %v5163_v43, %v5161_v32  ;;  %v7178_v32 = vld [vmem:[%s8322_s2] ss:$16 sps:$4 sm:$0xff]  }
 0xc27   :  { %8656 = vst [vmem:[#allocation53_spill] sm:$0xff] %v7178_v32 }
 0xc28   :  { %v2243_v2 = vpack.c.bf16 %v2242_v16, %v2242_v16  ;;  %v8657_v16 = vld [vmem:[#allocation57_spill] sm:$0xff] }
 0xc2a   :  { %4678 = vmatmul.mubr.bf16.vlgmr.msra.gmra.mxu0 %v2243_v2  ;;  %v8658_v2 = vld [vmem:[#allocation54_spill] sm:$0xff] }
 0xc2b   :  { %2334 = vmatpush1.bf16.msra.mxu0 %v6860_v33  ;;  %2365 = vmatprep.mubr.bf16.mxu0 %v8540_v20 }
 0xc2c   :  { %2335 = vmatprep.subr.bf16.mxu0 %v6867_v46 }
 0xc2f   :  { %2336 = vmatpush1.bf16.msra.mxu0 %v6873_v26 }
 0xc30   :  { %2337 = vmatprep.subr.bf16.mxu0 %v6879_v15 }
 0xc33   :  { %2338 = vmatpush1.bf16.msra.mxu0 %v6885_v12 }
 0xc34   :  { %2339 = vmatprep.subr.bf16.mxu0 %v6891_v23 }
 0xc37   :  { %2340 = vmatpush1.bf16.msra.mxu0 %v6897_v19 }
 0xc38   :  { %2341 = vmatprep.subr.bf16.mxu0 %v6903_v61 }
 0xc3b   :  { %2342 = vmatpush1.bf16.msra.mxu0 %v6909_v60 }
 0xc3c   :  { %2343 = vmatprep.subr.bf16.mxu0 %v6915_v44 }
 0xc3f   :  { %2344 = vmatpush1.bf16.msra.mxu0 %v6921_v14 }
 0xc40   :  { %2345 = vmatprep.subr.bf16.mxu0 %v8650_v7 }
 0xc43   :  { %2346 = vmatpush1.bf16.msra.mxu0 %v8651_v1 }
 0xc44   :  { %2347 = vmatprep.subr.bf16.mxu0 %v8652_v42 }
 0xc47   :  { %2348 = vmatpush1.bf16.msra.mxu0 %v6945_v17 }
 0xc48   :  { %2465 = vmatprep.subr.bf16.mxu0 %v7121_v50 }
 0xc65   :  { %v2288_v28 = vpop.permute.xlu1 %2287 }
 0xcea   :  { %v2278_v3 = vpop.f32.mrf.mxu0 }
 0xceb   :  { %v7124_v37 = vclamps-f32 %v2278_v3, 3.0  ;;  %v8659_v3 = vld [vmem:[#allocation17_spill] sm:$0xff] }
 0xcec   :  { %v4679_v21 = vpop.f32.mrf.mxu0 }
 0xced   :  { %2444 = vst.msk [vmem:[#allocation3 + $0x20] sm:$0xff] %vm166_vm0, %v7124_v37  ;;  %v2290_v8 = vsel %vm166_vm0, %v7124_v37, %v2288_v28  ;;  %v7183_v43 = vpack.c.bf16 %v7124_v37, %v7124_v37  ;;  %v8660_v28 = vld [vmem:[#allocation55_spill] sm:$0xff]  ;;  %v8662_v21 = vld [vmem:[#allocation6_spill] sm:$0xff] }
 0xcee   :  { %v2281_v55 = vpop.f32.mrf.mxu0  ;;  %v2291_v10 = vpack.c.bf16 %v2290_v8, %v2290_v8  ;;  %v8663_v8 = vld [vmem:[#allocation59_spill] sm:$0xff] }
 0xcef   :  { %v7210_v55 = vld [vmem:[%s8322_s2 + $0x6c] ss:$16 sps:$4 sm:$0xff]  }
 0xcf0   :  { %v4680_v13 = vpop.f32.mrf.mxu0  ;;  %2325 = vmatmul.mubr.bf16.vlgmr.msra.gmra.mxu1 %v2291_v10  ;;  %2366 = vmatmul.mubr.bf16.vlgmr.msra.gmra.mxu0 %v2291_v10  ;;  %8664 = vst [vmem:[#allocation27_spill] sm:$0xff] %v7210_v55  ;;  %v8665_v10 = vld [vmem:[#allocation7_spill] sm:$0xff] }
 0xcf1   :  { %2466 = vmatpush1.bf16.msra.mxu0 %v7133_v57  ;;  %2489 = vmatprep.mubr.bf16.mxu0 %v8540_v20  ;;  %v8666_v13 = vld [vmem:[#allocation8_spill] sm:$0xff] }
 0xcf2   :  { %2467 = vmatprep.subr.bf16.mxu0 %v7140_v54  ;;  %4682 = vmatpush3.bf16.msra.mxu1 %v6961_v48 }
 0xcf3   :  { %4683 = vmatprep.subr.bf16.mxu1 %v8544_v5  ;;  %4697 = vmatprep.mubr.msk.bf16.mxu1 %vm5556_vm1, %v8544_v5 }
 0xcf5   :  { %2468 = vmatpush1.bf16.msra.mxu0 %v7150_v58 }
 0xcf6   :  { %2469 = vmatprep.subr.bf16.mxu0 %v7156_v51  ;;  %4684 = vmatpush3.bf16.msra.mxu1 %v6972_v36  ;;  %v8672_v36 = vld [vmem:[#allocation35_spill] sm:$0xff] }
 0xcf7   :  { %4685 = vmatprep.subr.bf16.mxu1 %v8544_v5 }
 0xcf9   :  { %2470 = vmatpush1.bf16.msra.mxu0 %v7164_v9  ;;  %v8671_v9 = vld [vmem:[#allocation19_spill] sm:$0xff] }
 0xcfa   :  { %2471 = vmatprep.subr.bf16.mxu0 %v7170_v6  ;;  %4686 = vmatpush3.bf16.msra.mxu1 %v6981_v53 }
 0xcfb   :  { %4687 = vmatprep.subr.bf16.mxu1 %v8544_v5 }
 0xcfd   :  { %2472 = vmatpush1.bf16.msra.mxu0 %v7178_v32 }
 0xcfe   :  { %4688 = vmatpush3.bf16.msra.mxu1 %v6993_v24  ;;  %4701 = vmatprep.subr.bf16.mxu0 %v8544_v5 }
 0xcff   :  { %4689 = vmatprep.subr.bf16.mxu1 %v8544_v5 }
 0xd00   :  { %4256 = vmatmul.mubr.msk.bf16.vlgmr.msra.gmra.mxu0 %vm166_vm0, %v7183_v43 }
 0xd01   :  { %4702 = vmatpush3.bf16.msra.mxu0 %v6645_v25  ;;  %4717 = vmatprep.mubr.msk.bf16.mxu0 %vm5556_vm1, %v8544_v5  ;;  %v8661_v25 = vld [vmem:[#allocation58_spill] sm:$0xff] }
 0xd02   :  { %4690 = vmatpush3.bf16.msra.mxu1 %v8657_v16  ;;  %4703 = vmatprep.subr.bf16.mxu0 %v8544_v5 }
 0xd03   :  { %4691 = vmatprep.subr.bf16.mxu1 %v8544_v5 }
 0xd05   :  { %4704 = vmatpush3.bf16.msra.mxu0 %v8658_v2  ;;  %v8667_v2 = vld [vmem:[#allocation9_spill] sm:$0xff] }
 0xd06   :  { %4692 = vmatpush3.bf16.msra.mxu1 %v8659_v3  ;;  %4705 = vmatprep.subr.bf16.mxu0 %v8544_v5 }
 0xd07   :  { %4693 = vmatprep.subr.bf16.mxu1 %v8544_v5 }
 0xd09   :  { %4706 = vmatpush3.bf16.msra.mxu0 %v8660_v28  ;;  %v8668_v28 = vld [vmem:[#allocation10_spill] sm:$0xff] }
 0xd0a   :  { %4694 = vmatpush3.bf16.msra.mxu1 %v8661_v25  ;;  %4707 = vmatprep.subr.bf16.mxu0 %v8544_v5 }
 0xd0b   :  { %4695 = vmatprep.subr.bf16.mxu1 %v8544_v5 }
 0xd0d   :  { %4708 = vmatpush3.bf16.msra.mxu0 %v8662_v21  ;;  %v8669_v21 = vld [vmem:[#allocation11_spill] sm:$0xff] }
 0xd0e   :  { %4696 = vmatpush3.bf16.msra.mxu1 %v8663_v8  ;;  %4709 = vmatprep.subr.bf16.mxu0 %v8544_v5  ;;  %v8670_v8 = vld [vmem:[#allocation63_spill] sm:$0xff] }
 0xd0f   :  { %2506 = vmatprep.subr.bf16.mxu1 %v7210_v55 }
 0xd11   :  { %4710 = vmatpush3.bf16.msra.mxu0 %v8665_v10 }
 0xd12   :  { %4711 = vmatprep.subr.bf16.mxu0 %v8544_v5 }
 0xd15   :  { %4712 = vmatpush3.bf16.msra.mxu0 %v8666_v13 }
 0xd16   :  { %4713 = vmatprep.subr.bf16.mxu0 %v8544_v5 }
 0xd19   :  { %4714 = vmatpush3.bf16.msra.mxu0 %v8667_v2 }
 0xd1a   :  { %4715 = vmatprep.subr.bf16.mxu0 %v8544_v5 }
 0xd1d   :  { %4716 = vmatpush3.bf16.msra.mxu0 %v8668_v28 }
 0xd1e   :  { %2659 = vmatprep.subr.bf16.mxu0 %v8669_v21 }
 0xdb0   :  { %v2326_v27 = vpop.f32.mrf.mxu1  ;;  %v2367_v0 = vpop.f32.mrf.mxu0 }
 0xdb1   :  { %v2327_v55 = vadd.f32 %v2326_v27, %v8670_v8  ;;  %v2368_v21 = vadd.f32 %v2367_v0, %v8616_v62  ;;  %v243_v27 = vadd.f32 %v8672_v36, %v8671_v9  ;;  %v8673_v8 = vld [vmem:[#allocation33_spill] sm:$0xff] }
 0xdb2   :  { %v2328_v25 = vpop.f32.mrf.mxu1  ;;  %v2369_v10 = vpop.f32.mrf.mxu0 }
 0xdb3   :  { %v4250_v3 = vmul.f32 -1.442695, %v2327_v55  ;;  %v2329_v16 = vadd.f32 %v2328_v25, %v6315_v56  ;;  %v2370_v28 = vadd.f32 %v2369_v10, %v8587_v39 }
 0xdb4   :  { %v2330_v13 = vpop.f32.mrf.mxu1  ;;  %v2371_v24 = vpop.f32.mrf.mxu0 }
 0xdb5   :  { %5164 = vpow2.f32 %v4250_v3  ;;  %v4251_v32 = vmul.f32 -1.442695, %v2329_v16  ;;  %v4252_v25 = vmul.f32 -1.442695, %v2370_v28 }
 0xdb6   :  { %v2331_v2 = vpop.f32.mrf.mxu1  ;;  %v2372_v53 = vpop.f32.mrf.mxu0 }
 0xdb7   :  { %5166 = vpow2.f32 %v4251_v32 }
 0xdb8   :  { %5168 = vtanh.f32 %v2368_v21 }
 0xdc0   :  { %v2491_v6 = vpop.f32.mrf.mxu0 }
 0xdc1   :  { %v7228_v51 = vadd.f32 %v2491_v6, %v8673_v8  ;;  %v8674_v6 = vclamps-f32 %v7054_v59, 3.0  ;;  %v7253_v59 = vld [vmem:[%s8322_s2 + $0x48] ss:$16 sps:$4 sm:$0xff]  }
 0xdc2   :  { %v5165_v55 = vpop.eup %5164  ;;  %v2493_v13 = vpop.f32.mrf.mxu0 }
 0xdc3   :  { %v2377_v24 = vadd.f32 1.0, %v5165_v55  ;;  %v2540_v3 = vadd.f32 %v2493_v13, %v243_v27 }
 0xdc4   :  { %v5167_v16 = vpop.eup %5166  ;;  %v2495_v53 = vpop.f32.mrf.mxu0 }
 0xdc5   :  { %5170 = vrcp.f32 %v2377_v24  ;;  %v2383_v32 = vadd.f32 1.0, %v5167_v16  ;;  %v5169_v0 = vpop.eup %5168  ;;  %v7240_v24 = vld [vmem:[%s8322_s2 + $0x68] ss:$16 sps:$4 sm:$0xff]   ;;  %v7271_v53 = vld [vmem:[%s8322_s2 + $0xc] ss:$16 sps:$4 sm:$0xff]  }
 0xdc6   :  { %5172 = vpow2.f32 %v4252_v25  ;;  %v2496_v10 = vpop.f32.mrf.mxu0  ;;  %v7265_v16 = vld [vmem:[%s8322_s2 + $0x28] ss:$16 sps:$4 sm:$0xff]  }
 0xdc7   :  { %5174 = vrcp.f32 %v2383_v32  ;;  %v7277_v32 = vld [vmem:[%s8322_s2 + $0x8] ss:$16 sps:$4 sm:$0xff]  }
 0xdd2   :  { %v5171_v2 = vpop.eup %5170 }
 0xdd3   :  { %v5173_v62 = vpop.eup %5172  ;;  %v2394_v9 = vmul.f32 %v5171_v2, %v5169_v0 }
 0xdd4   :  { %v5175_v36 = vpop.eup %5174  ;;  %v2390_v28 = vadd.f32 1.0, %v5173_v62  ;;  %v7247_v62 = vld [vmem:[%s8322_s2 + $0x4c] ss:$16 sps:$4 sm:$0xff]  }
 0xdd5   :  { %v2393_v8 = vmul.f32 %v5175_v36, %v8674_v6 }
 0xdd6   :  { %5176 = vrcp.f32 %v2390_v28  ;;  %v8678_v28 = vclamps-f32 %v7097_v22, 3.0  ;;  %v8683_v22 = vld [vmem:[#allocation16_spill] sm:$0xff] }
 0xdd7   :  { %v7232_v39 = vadd.f32 %v2394_v9, %v2393_v8  ;;  %v7259_v9 = vld [vmem:[%s8322_s2 + $0x2c] ss:$16 sps:$4 sm:$0xff]  }
 0xdd9   :  { %v4253_v27 = vclamps-f32 %v7232_v39, 3.0  ;;  %v7464_v39 = vld [vmem:[%s8325_s5 + $0xe4] ss:$16 sps:$4 sm:$0xff]  }
 0xddb   :  { %5178 = vtanh.f32 %v4253_v27 }
 0xde3   :  { %v5177_v21 = vpop.eup %5176 }
 0xde8   :  { %v5179_v55 = vpop.eup %5178 }
 0xde9   :  { %v2399_v25 = vmul.f32 %v5179_v55, %v5177_v21 }
 0xdeb   :  { %v2400_v13 = vpack.c.bf16 %v2399_v25, %v2399_v25 }
 0xded   :  { %4698 = vmatmul.mubr.bf16.vlgmr.msra.gmra.mxu1 %v2400_v13 }
 0xdee   :  { %2507 = vmatpush1.bf16.msra.mxu1 %v7240_v24  ;;  %2530 = vmatprep.mubr.bf16.mxu1 %v8540_v20 }
 0xdef   :  { %2508 = vmatprep.subr.bf16.mxu1 %v7247_v62 }
 0xdf2   :  { %2509 = vmatpush1.bf16.msra.mxu1 %v7253_v59 }
 0xdf3   :  { %2510 = vmatprep.subr.bf16.mxu1 %v7259_v9 }
 0xdf6   :  { %2511 = vmatpush1.bf16.msra.mxu1 %v7265_v16 }
 0xdf7   :  { %2512 = vmatprep.subr.bf16.mxu1 %v7271_v53 }
 0xdfa   :  { %2513 = vmatpush1.bf16.msra.mxu1 %v7277_v32 }
 0xdfb   :  { %2618 = vmatprep.subr.bf16.mxu1 %v6742_v41  ;;  %v4259_v41 = vmul.f32 -1.442695, %v2540_v3 }
 0xdfd   :  { %4257 = vmatmul.mubr.msk.bf16.vlgmr.msra.gmra.mxu1 %vm166_vm0, %v7183_v43  ;;  %5180 = vpow2.f32 %v4259_v41 }
 0xdfe   :  { %2619 = vmatpush1.bf16.msra.mxu1 %v6750_v47  ;;  %2650 = vmatprep.mubr.bf16.mxu1 %v8540_v20  ;;  %v4258_v47 = vmul.f32 -1.442695, %v7228_v51  ;;  %v8677_v51 = vld [vmem:[#allocation34_spill] sm:$0xff] }
 0xdff   :  { %2620 = vmatprep.subr.bf16.mxu1 %v6757_v30 }
 0xe00   :  { %5182 = vpow2.f32 %v4258_v47 }
 0xe02   :  { %2621 = vmatpush1.bf16.msra.mxu1 %v6763_v35 }
 0xe03   :  { %2622 = vmatprep.subr.bf16.mxu1 %v6769_v40 }
 0xe06   :  { %2623 = vmatpush1.bf16.msra.mxu1 %v6775_v45 }
 0xe07   :  { %2624 = vmatprep.subr.bf16.mxu1 %v6781_v11 }
 0xe0a   :  { %2625 = vmatpush1.bf16.msra.mxu1 %v6787_v38 }
 0xe0b   :  { %2626 = vmatprep.subr.bf16.mxu1 %v6793_v31  ;;  %v5181_v31 = vpop.eup %5180 }
 0xe0e   :  { %2627 = vmatpush1.bf16.msra.mxu1 %v6799_v63  ;;  %v5183_v63 = vpop.eup %5182 }
 0xe0f   :  { %2628 = vmatprep.subr.bf16.mxu1 %v6805_v4  ;;  %v2552_v4 = vadd.f32 1.0, %v5181_v31  ;;  %v8688_v31 = vld [vmem:[#allocation17_spill] sm:$0xff] }
 0xe11   :  { %5184 = vrcp.f32 %v2552_v4  ;;  %v8690_v4 = vld [vmem:[#allocation58_spill] sm:$0xff] }
 0xe12   :  { %2629 = vmatpush1.bf16.msra.mxu1 %v8642_v49  ;;  %v2546_v49 = vadd.f32 1.0, %v5183_v63  ;;  %v7388_v63 = vld [vmem:[%s8324_s4 + $0x28] sm:$0xff]  }
 0xe13   :  { %2630 = vmatprep.subr.bf16.mxu1 %v8643_v52  ;;  %8689 = vst [vmem:[#allocation28_spill] sm:$0xff] %v7388_v63 }
 0xe14   :  { %5186 = vrcp.f32 %v2546_v49  ;;  %v7397_v49 = vld [vmem:[%s8324_s4 + $0x20] sm:$0xff]  }
 0xe15   :  { %8691 = vst [vmem:[#allocation26_spill] sm:$0xff] %v7397_v49 }
 0xe16   :  { %2631 = vmatpush1.bf16.msra.mxu1 %v8644_v34  ;;  %v8675_v34 = vld [vmem:[#allocation20_spill] sm:$0xff] }
 0xe17   :  { %2632 = vmatprep.subr.bf16.mxu1 %v8645_v29  ;;  %v8676_v29 = vld [vmem:[#allocation36_spill] sm:$0xff] }
 0xe1a   :  { %2633 = vmatpush1.bf16.msra.mxu1 %v8646_v18  ;;  %v326_v18 = vadd.f32 %v8676_v29, %v8675_v34  ;;  %v8693_v29 = vld [vmem:[#allocation27_spill] sm:$0xff] }
 0xe1b   :  { %4721 = vmatprep.subr.bf16.mxu1 %v8544_v5 }
 0xe1e   :  { %v5185_v36 = vpop.eup %5184 }
 0xe1f   :  { %v2562_v21 = vmul.f32 %v5185_v36, %v8678_v28 }
 0xe21   :  { %v5187_v6 = vpop.eup %5186 }
 0xead   :  { %v2435_v30 = vpop.f32.mrf.mxu1 }
 0xeae   :  { %v4254_v35 = vclamps-f32 %v2435_v30, 3.0 }
 0xeaf   :  { %v4699_v40 = vpop.f32.mrf.mxu1 }
 0xeb0   :  { %v2445_v45 = vadd.f32 %v4254_v35, %v7124_v37  ;;  %2613 = vrot.lane.b32.xlu0 %v4254_v35, %s5557_s6 }
 0xeb1   :  { %v2438_v11 = vpop.f32.mrf.mxu1 }
 0xeb2   :  { %4255 = vst.msk [vmem:[%s8329_s9 + $0x20] sm:$0xff] %vm166_vm0, %v2445_v45  ;;  %v8686_v11 = vld [vmem:[#allocation57_spill] sm:$0xff] }
 0xeb3   :  { %v4700_v38 = vpop.f32.mrf.mxu1 }
 0xeb4   :  { %v7379_v38 = vld [vmem:[%s8324_s4 + $0x30] sm:$0xff]  }
 0xeb5   :  { %8687 = vst [vmem:[#allocation25_spill] sm:$0xff] %v7379_v38 }
 0xebd   :  { %v2532_v52 = vpop.f32.mrf.mxu1 }
 0xebe   :  { %v2541_v37 = vadd.f32 %v2532_v52, %v8677_v51  ;;  %v8692_v52 = vld [vmem:[#allocation59_spill] sm:$0xff]  ;;  %v7413_v51 = vld [vmem:[%s8324_s4 + $0x10] sm:$0xff]  }
 0xebf   :  { %v2534_v43 = vpop.f32.mrf.mxu1  ;;  %8695 = vst [vmem:[#allocation31_spill] sm:$0xff] %v7413_v51 }
 0xec0   :  { %5188 = vtanh.f32 %v2541_v37  ;;  %v2542_v3 = vadd.f32 %v2534_v43, %v326_v18  ;;  %v7406_v18 = vld [vmem:[%s8324_s4 + $0x18] sm:$0xff]   ;;  %v7420_v37 = vld [vmem:[%s8324_s4 + $0x8] sm:$0xff]   ;;  %v7427_v43 = vld [vmem:[%s8324_s4] sm:$0xff]  }
 0xec1   :  { %v2536_v10 = vpop.f32.mrf.mxu1  ;;  %8694 = vst [vmem:[#allocation29_spill] sm:$0xff] %v7406_v18  ;;  %8696 = vst [vmem:[#allocation12_spill] sm:$0xff] %v7420_v37 }
 0xec2   :  { %v4260_v0 = vmul.f32 -1.442695, %v2542_v3  ;;  %8697 = vst [vmem:[#allocation13_spill] sm:$0xff] %v7427_v43  ;;  %v7433_v3 = vld [vmem:[%s8325_s5 + $0xec] ss:$16 sps:$4 sm:$0xff]  }
 0xec3   :  { %v2537_v2 = vpop.f32.mrf.mxu1  ;;  %8698 = vst [vmem:[#allocation14_spill] sm:$0xff] %v7433_v3 }
 0xec4   :  { %5190 = vpow2.f32 %v4260_v0  ;;  %v8699_v2 = vld [vmem:[#allocation63_spill] sm:$0xff] }
 0xecd   :  { %v5189_v8 = vpop.eup %5188 }
 0xece   :  { %v2563_v55 = vmul.f32 %v5189_v8, %v5187_v6 }
 0xed0   :  { %v7312_v25 = vadd.f32 %v2563_v55, %v2562_v21 }
 0xed1   :  { %v5191_v13 = vpop.eup %5190 }
 0xed2   :  { %v8447_v41 = vclamps-f32 %v7312_v25, 3.0  ;;  %v2559_v47 = vadd.f32 1.0, %v5191_v13 }
 0xed4   :  { %5192 = vtanh.f32 %v8447_v41 }
 0xed5   :  { %5194 = vrcp.f32 %v2559_v47 }
 0xee1   :  { %v5193_v30 = vpop.eup %5192 }
 0xee2   :  { %v5195_v35 = vpop.eup %5194 }
 0xee3   :  { %v2568_v40 = vmul.f32 %v5195_v35, %v5193_v30 }
 0xee5   :  { %v2569_v45 = vpack.c.bf16 %v2568_v40, %v2568_v40  ;;  %v8700_v40 = vld [vmem:[#allocation64_spill] sm:$0xff] }
 0xee7   :  { %4718 = vmatmul.mubr.bf16.vlgmr.msra.gmra.mxu0 %v2569_v45 }
 0xee8   :  { %2660 = vmatpush1.bf16.msra.mxu0 %v6860_v33  ;;  %2691 = vmatprep.mubr.bf16.mxu0 %v8540_v20 }
 0xee9   :  { %2661 = vmatprep.subr.bf16.mxu0 %v6867_v46 }
 0xeec   :  { %2662 = vmatpush1.bf16.msra.mxu0 %v6873_v26 }
 0xeed   :  { %2663 = vmatprep.subr.bf16.mxu0 %v6879_v15 }
 0xef0   :  { %2664 = vmatpush1.bf16.msra.mxu0 %v6885_v12 }
 0xef1   :  { %2665 = vmatprep.subr.bf16.mxu0 %v6891_v23 }
 0xef4   :  { %2666 = vmatpush1.bf16.msra.mxu0 %v6897_v19 }
 0xef5   :  { %2667 = vmatprep.subr.bf16.mxu0 %v6903_v61 }
 0xef8   :  { %2668 = vmatpush1.bf16.msra.mxu0 %v6909_v60  ;;  %v8679_v60 = vld [vmem:[#allocation60_spill] sm:$0xff] }
 0xef9   :  { %2669 = vmatprep.subr.bf16.mxu0 %v6915_v44  ;;  %v8680_v44 = vld [vmem:[#allocation56_spill] sm:$0xff] }
 0xefc   :  { %2670 = vmatpush1.bf16.msra.mxu0 %v6921_v14  ;;  %v8681_v14 = vld [vmem:[#allocation61_spill] sm:$0xff] }
 0xefd   :  { %2671 = vmatprep.subr.bf16.mxu0 %v8650_v7 }
 0xf00   :  { %2672 = vmatpush1.bf16.msra.mxu0 %v8651_v1  ;;  %v8685_v1 = vld [vmem:[#allocation18_spill] sm:$0xff] }
 0xf01   :  { %2673 = vmatprep.subr.bf16.mxu0 %v8652_v42  ;;  %v7368_v42 = vld [vmem:[%s8324_s4 + $0x38] sm:$0xff]  }
 0xf04   :  { %2674 = vmatpush1.bf16.msra.mxu0 %v6945_v17  ;;  %v8682_v17 = vld [vmem:[#allocation62_spill] sm:$0xff] }
 0xf05   :  { %2791 = vmatprep.subr.bf16.mxu0 %v7121_v50 }
 0xf22   :  { %v2614_v26 = vpop.permute.xlu0 %2613 }
 0xfa7   :  { %v2604_v33 = vpop.f32.mrf.mxu0 }
 0xfa8   :  { %v7334_v46 = vclamps-f32 %v2604_v33, 3.0  ;;  %v8701_v33 = vld [vmem:[#allocation65_spill] sm:$0xff] }
 0xfa9   :  { %v4719_v15 = vpop.f32.mrf.mxu0 }
 0xfaa   :  { %2770 = vst.msk [vmem:[#allocation3 + $0x28] sm:$0xff] %vm166_vm0, %v7334_v46  ;;  %v2616_v12 = vsel %vm166_vm0, %v7334_v46, %v2614_v26  ;;  %v7358_v7 = vpack.c.bf16 %v7334_v46, %v7334_v46 }
 0xfab   :  { %v2607_v23 = vpop.f32.mrf.mxu0  ;;  %v2617_v19 = vpack.c.bf16 %v2616_v12, %v2616_v12  ;;  %v8702_v12 = vld [vmem:[#allocation37_spill] sm:$0xff] }
 0xfad   :  { %v4720_v61 = vpop.f32.mrf.mxu0  ;;  %2651 = vmatmul.mubr.bf16.vlgmr.msra.gmra.mxu1 %v2617_v19  ;;  %2692 = vmatmul.mubr.bf16.vlgmr.msra.gmra.mxu0 %v2617_v19 }
 0xfae   :  { %2792 = vmatpush1.bf16.msra.mxu0 %v7133_v57  ;;  %2815 = vmatprep.mubr.bf16.mxu0 %v8540_v20 }
 0xfaf   :  { %2793 = vmatprep.subr.bf16.mxu0 %v7140_v54  ;;  %4722 = vmatpush3.bf16.msra.mxu1 %v6961_v48  ;;  %v8684_v48 = vld [vmem:[#allocation53_spill] sm:$0xff] }
 0xfb0   :  { %4723 = vmatprep.subr.bf16.mxu1 %v8544_v5  ;;  %4737 = vmatprep.mubr.msk.bf16.mxu1 %vm5556_vm1, %v8544_v5 }
 0xfb2   :  { %2794 = vmatpush1.bf16.msra.mxu0 %v7150_v58 }
 0xfb3   :  { %2795 = vmatprep.subr.bf16.mxu0 %v8679_v60  ;;  %4724 = vmatpush3.bf16.msra.mxu1 %v8680_v44 }
 0xfb4   :  { %4725 = vmatprep.subr.bf16.mxu1 %v8544_v5 }
 0xfb6   :  { %2796 = vmatpush1.bf16.msra.mxu0 %v8681_v14 }
 0xfb7   :  { %2797 = vmatprep.subr.bf16.mxu0 %v8682_v17  ;;  %4726 = vmatpush3.bf16.msra.mxu1 %v8683_v22 }
 0xfb8   :  { %4727 = vmatprep.subr.bf16.mxu1 %v8544_v5 }
 0xfba   :  { %2798 = vmatpush1.bf16.msra.mxu0 %v8684_v48 }
 0xfbb   :  { %4728 = vmatpush3.bf16.msra.mxu1 %v8685_v1  ;;  %4741 = vmatprep.subr.bf16.mxu0 %v8544_v5  ;;  %v8703_v1 = vld [vmem:[#allocation39_spill] sm:$0xff] }
 0xfbc   :  { %4729 = vmatprep.subr.bf16.mxu1 %v8544_v5 }
 0xfbd   :  { %4269 = vmatmul.mubr.msk.bf16.vlgmr.msra.gmra.mxu0 %vm166_vm0, %v7358_v7 }
 0xfbe   :  { %4742 = vmatpush3.bf16.msra.mxu0 %v7368_v42  ;;  %4757 = vmatprep.mubr.msk.bf16.mxu0 %vm5556_vm1, %v8544_v5 }
 0xfbf   :  { %4730 = vmatpush3.bf16.msra.mxu1 %v8686_v11  ;;  %4743 = vmatprep.subr.bf16.mxu0 %v8544_v5 }
 0xfc0   :  { %4731 = vmatprep.subr.bf16.mxu1 %v8544_v5 }
 0xfc2   :  { %4744 = vmatpush3.bf16.msra.mxu0 %v7379_v38 }
 0xfc3   :  { %4732 = vmatpush3.bf16.msra.mxu1 %v8688_v31  ;;  %4745 = vmatprep.subr.bf16.mxu0 %v8544_v5 }
 0xfc4   :  { %4733 = vmatprep.subr.bf16.mxu1 %v8544_v5 }
 0xfc6   :  { %4746 = vmatpush3.bf16.msra.mxu0 %v7388_v63 }
 0xfc7   :  { %4734 = vmatpush3.bf16.msra.mxu1 %v8690_v4  ;;  %4747 = vmatprep.subr.bf16.mxu0 %v8544_v5 }
 0xfc8   :  { %4735 = vmatprep.subr.bf16.mxu1 %v8544_v5 }
 0xfca   :  { %4748 = vmatpush3.bf16.msra.mxu0 %v7397_v49 }
 0xfcb   :  { %4736 = vmatpush3.bf16.msra.mxu1 %v8692_v52  ;;  %4749 = vmatprep.subr.bf16.mxu0 %v8544_v5 }
 0xfcc   :  { %2832 = vmatprep.subr.bf16.mxu1 %v8693_v29 }
 0xfce   :  { %4750 = vmatpush3.bf16.msra.mxu0 %v7406_v18 }
 0xfcf   :  { %4751 = vmatprep.subr.bf16.mxu0 %v8544_v5 }
 0xfd2   :  { %4752 = vmatpush3.bf16.msra.mxu0 %v7413_v51 }
 0xfd3   :  { %4753 = vmatprep.subr.bf16.mxu0 %v8544_v5 }
 0xfd6   :  { %4754 = vmatpush3.bf16.msra.mxu0 %v7420_v37 }
 0xfd7   :  { %4755 = vmatprep.subr.bf16.mxu0 %v8544_v5 }
 0xfda   :  { %4756 = vmatpush3.bf16.msra.mxu0 %v7427_v43 }
 0xfdb   :  { %2985 = vmatprep.subr.bf16.mxu0 %v7433_v3 }
0x106d   :  { %v2652_v10 = vpop.f32.mrf.mxu1  ;;  %v2693_v0 = vpop.f32.mrf.mxu0 }
0x106e   :  { %v2653_v36 = vadd.f32 %v2652_v10, %v8699_v2  ;;  %v2694_v26 = vadd.f32 %v2693_v0, %v8701_v33 }
0x106f   :  { %v2654_v6 = vpop.f32.mrf.mxu1  ;;  %v2695_v8 = vpop.f32.mrf.mxu0 }
0x1070   :  { %v4263_v28 = vmul.f32 -1.442695, %v2653_v36  ;;  %v2655_v21 = vadd.f32 %v2654_v6, %v6315_v56  ;;  %v2696_v45 = vadd.f32 %v2695_v8, %v8700_v40 }
0x1071   :  { %v2656_v55 = vpop.f32.mrf.mxu1  ;;  %v2697_v13 = vpop.f32.mrf.mxu0 }
0x1072   :  { %5196 = vpow2.f32 %v4263_v28  ;;  %v4264_v47 = vmul.f32 -1.442695, %v2655_v21  ;;  %v4265_v61 = vmul.f32 -1.442695, %v2696_v45 }
0x1073   :  { %v2657_v30 = vpop.f32.mrf.mxu1  ;;  %v2698_v35 = vpop.f32.mrf.mxu0 }
0x1074   :  { %5198 = vpow2.f32 %v4264_v47 }
0x1075   :  { %5200 = vtanh.f32 %v2694_v26 }
0x107d   :  { %v2817_v15 = vpop.f32.mrf.mxu0 }
0x107e   :  { %v7441_v23 = vadd.f32 %v2817_v15, %v8702_v12  ;;  %v7479_v15 = vld [vmem:[%s8325_s5 + $0xc4] ss:$16 sps:$4 sm:$0xff]  }
0x107f   :  { %v5197_v19 = vpop.eup %5196  ;;  %v2819_v44 = vpop.f32.mrf.mxu0  ;;  %v7491_v12 = vld [vmem:[%s8325_s5 + $0xa4] ss:$16 sps:$4 sm:$0xff]  }
0x1080   :  { %v2703_v22 = vadd.f32 1.0, %v5197_v19  ;;  %v7444_v11 = vadd.f32 %v2819_v44, %v8703_v1  ;;  %v7497_v19 = vld [vmem:[%s8325_s5 + $0xa0] ss:$16 sps:$4 sm:$0xff]  }
0x1081   :  { %v5199_v31 = vpop.eup %5198  ;;  %v2821_v4 = vpop.f32.mrf.mxu0  ;;  %v7509_v44 = vld [vmem:[%s8325_s5 + $0x80] ss:$16 sps:$4 sm:$0xff]  }
0x1082   :  { %5202 = vrcp.f32 %v2703_v22  ;;  %v2709_v52 = vadd.f32 1.0, %v5199_v31  ;;  %v5201_v0 = vpop.eup %5200  ;;  %v7515_v22 = vld [vmem:[%s8325_s5 + $0x64] ss:$16 sps:$4 sm:$0xff]   ;;  %v7521_v1 = vld [vmem:[%s8325_s5 + $0x60] ss:$16 sps:$4 sm:$0xff]  }
0x1083   :  { %5204 = vpow2.f32 %v4265_v61  ;;  %v2822_v10 = vpop.f32.mrf.mxu0  ;;  %v7503_v61 = vld [vmem:[%s8325_s5 + $0x84] ss:$16 sps:$4 sm:$0xff]   ;;  %v7533_v4 = vld [vmem:[%s8325_s5 + $0x40] ss:$16 sps:$4 sm:$0xff]  }
0x1084   :  { %5206 = vrcp.f32 %v2709_v52  ;;  %v7527_v31 = vld [vmem:[%s8325_s5 + $0x44] ss:$16 sps:$4 sm:$0xff]   ;;  %v7545_v10 = vld [vmem:[%s8325_s5 + $0x20] ss:$16 sps:$4 sm:$0xff]  }
0x1085   :  { %v7539_v52 = vld [vmem:[%s8325_s5 + $0x24] ss:$16 sps:$4 sm:$0xff]   ;;  %8704 = vst [vmem:[#allocation21_spill] sm:$0xff] %v7545_v10 }
0x108f   :  { %v5203_v36 = vpop.eup %5202 }
0x1090   :  { %v5205_v6 = vpop.eup %5204  ;;  %v2720_v28 = vmul.f32 %v5203_v36, %v5201_v0  ;;  %v7551_v0 = vld [vmem:[%s8325_s5 + $0x4] ss:$16 sps:$4 sm:$0xff]   ;;  %v7557_v36 = vld [vmem:[%s8325_s5] ss:$16 sps:$4 sm:$0xff]  }
0x1091   :  { %v5207_v8 = vpop.eup %5206  ;;  %v2716_v55 = vadd.f32 1.0, %v5205_v6  ;;  %8705 = vst [vmem:[#allocation23_spill] sm:$0xff] %v7551_v0  ;;  %8706 = vst [vmem:[#allocation30_spill] sm:$0xff] %v7557_v36  ;;  %v4272_v6 = vmul.f32 -1.442695, %v7444_v11 }
0x1092   :  { %v2719_v21 = vmul.f32 %v5207_v8, %v4253_v27  ;;  %v7472_v27 = vld [vmem:[%s8325_s5 + $0xe0] ss:$16 sps:$4 sm:$0xff]   ;;  %v4271_v8 = vmul.f32 -1.442695, %v7441_v23 }
0x1093   :  { %5208 = vrcp.f32 %v2716_v55 }
0x1094   :  { %v7448_v13 = vadd.f32 %v2720_v28, %v2719_v21 }
0x1096   :  { %v8446_v47 = vclamps-f32 %v7448_v13, 3.0 }
0x1098   :  { %5210 = vtanh.f32 %v8446_v47 }
0x1099   :  { %5212 = vpow2.f32 %v4272_v6 }
0x109a   :  { %5214 = vpow2.f32 %v4271_v8  ;;  %v8707_v8 = vld [vmem:[#allocation38_spill] sm:$0xff] }
0x10a0   :  { %v5209_v30 = vpop.eup %5208 }
0x10a5   :  { %v5211_v35 = vpop.eup %5210 }
0x10a6   :  { %v2725_v45 = vmul.f32 %v5211_v35, %v5209_v30 }
0x10a8   :  { %v2726_v26 = vpack.c.bf16 %v2725_v45, %v2725_v45 }
0x10aa   :  { %4738 = vmatmul.mubr.bf16.vlgmr.msra.gmra.mxu1 %v2726_v26  ;;  %v5213_v26 = vpop.eup %5212 }
0x10ab   :  { %2833 = vmatpush1.bf16.msra.mxu1 %v7240_v24  ;;  %2856 = vmatprep.mubr.bf16.mxu1 %v8540_v20  ;;  %v5215_v11 = vpop.eup %5214  ;;  %v2878_v47 = vadd.f32 1.0, %v5213_v26 }
0x10ac   :  { %2834 = vmatprep.subr.bf16.mxu1 %v7247_v62  ;;  %v2872_v23 = vadd.f32 1.0, %v5215_v11 }
0x10ad   :  { %5216 = vrcp.f32 %v2878_v47 }
0x10ae   :  { %5218 = vrcp.f32 %v2872_v23 }
0x10af   :  { %2835 = vmatpush1.bf16.msra.mxu1 %v7253_v59 }
0x10b0   :  { %2836 = vmatprep.subr.bf16.mxu1 %v7259_v9 }
0x10b3   :  { %2837 = vmatpush1.bf16.msra.mxu1 %v7265_v16 }
0x10b4   :  { %2838 = vmatprep.subr.bf16.mxu1 %v7271_v53 }
0x10b7   :  { %2839 = vmatpush1.bf16.msra.mxu1 %v7277_v32 }
0x10b8   :  { %2944 = vmatprep.subr.bf16.mxu1 %v7464_v39 }
0x10ba   :  { %4270 = vmatmul.mubr.msk.bf16.vlgmr.msra.gmra.mxu1 %vm166_vm0, %v7358_v7  ;;  %v7485_v7 = vld [vmem:[%s8325_s5 + $0xc0] ss:$16 sps:$4 sm:$0xff]  }
0x10bb   :  { %2945 = vmatpush1.bf16.msra.mxu1 %v7472_v27  ;;  %2976 = vmatprep.mubr.bf16.mxu1 %v8540_v20 }
0x10bc   :  { %2946 = vmatprep.subr.bf16.mxu1 %v7479_v15 }
0x10bf   :  { %2947 = vmatpush1.bf16.msra.mxu1 %v7485_v7 }
0x10c0   :  { %2948 = vmatprep.subr.bf16.mxu1 %v7491_v12 }
0x10c3   :  { %2949 = vmatpush1.bf16.msra.mxu1 %v7497_v19 }
0x10c4   :  { %2950 = vmatprep.subr.bf16.mxu1 %v7503_v61 }
0x10c7   :  { %2951 = vmatpush1.bf16.msra.mxu1 %v7509_v44 }
0x10c8   :  { %2952 = vmatprep.subr.bf16.mxu1 %v7515_v22 }
0x10cb   :  { %2953 = vmatpush1.bf16.msra.mxu1 %v7521_v1 }
0x10cc   :  { %2954 = vmatprep.subr.bf16.mxu1 %v7527_v31 }
0x10cf   :  { %2955 = vmatpush1.bf16.msra.mxu1 %v7533_v4 }
0x10d0   :  { %2956 = vmatprep.subr.bf16.mxu1 %v7539_v52 }
0x10d3   :  { %2957 = vmatpush1.bf16.msra.mxu1 %v7545_v10 }
0x10d4   :  { %2958 = vmatprep.subr.bf16.mxu1 %v7551_v0  ;;  %v8709_v0 = vclamps-f32 %v7312_v25, 3.0  ;;  %v7581_v25 = vld [vmem:[%s8325_s5 + $0xe8] ss:$16 sps:$4 sm:$0xff]  }
0x10d7   :  { %2959 = vmatpush1.bf16.msra.mxu1 %v7557_v36  ;;  %v5217_v36 = vpop.eup %5216 }
0x10d8   :  { %4761 = vmatprep.subr.bf16.mxu1 %v8544_v5  ;;  %v2888_v26 = vmul.f32 %v5217_v36, %v8709_v0  ;;  %v7588_v0 = vld [vmem:[%s8325_s5 + $0xcc] ss:$16 sps:$4 sm:$0xff]   ;;  %v7594_v36 = vld [vmem:[%s8325_s5 + $0xc8] ss:$16 sps:$4 sm:$0xff]  }
0x116a   :  { %v2761_v28 = vpop.f32.mrf.mxu1 }
0x116b   :  { %v4267_v21 = vclamps-f32 %v2761_v28, 3.0 }
0x116c   :  { %v4739_v55 = vpop.f32.mrf.mxu1 }
0x116d   :  { %v2771_v30 = vadd.f32 %v4267_v21, %v7334_v46  ;;  %2939 = vrot.lane.b32.xlu1 %v4267_v21, %s5557_s6  ;;  %v8708_v46 = vld [vmem:[#allocation40_spill] sm:$0xff] }
0x116e   :  { %v2764_v35 = vpop.f32.mrf.mxu1 }
0x116f   :  { %4268 = vst.msk [vmem:[%s8329_s9 + $0x28] sm:$0xff] %vm166_vm0, %v2771_v30  ;;  %v5219_v30 = vpop.eup %5218 }
0x1170   :  { %v4740_v45 = vpop.f32.mrf.mxu1 }
0x117a   :  { %v2858_v6 = vpop.f32.mrf.mxu1 }
0x117b   :  { %v2867_v28 = vadd.f32 %v2858_v6, %v8707_v8 }
0x117c   :  { %v2860_v55 = vpop.f32.mrf.mxu1 }
0x117d   :  { %5220 = vtanh.f32 %v2867_v28  ;;  %v2868_v21 = vadd.f32 %v2860_v55, %v8708_v46  ;;  %v7600_v55 = vld [vmem:[%s8325_s5 + $0xac] ss:$16 sps:$4 sm:$0xff]   ;;  %v7606_v46 = vld [vmem:[%s8325_s5 + $0xa8] ss:$16 sps:$4 sm:$0xff]  }
0x117e   :  { %v2862_v35 = vpop.f32.mrf.mxu1 }
0x117f   :  { %v4273_v41 = vmul.f32 -1.442695, %v2868_v21  ;;  %v7612_v21 = vld [vmem:[%s8325_s5 + $0x8c] ss:$16 sps:$4 sm:$0xff]   ;;  %v7618_v35 = vld [vmem:[%s8325_s5 + $0x88] ss:$16 sps:$4 sm:$0xff]  }
0x1180   :  { %v2863_v34 = vpop.f32.mrf.mxu1 }
0x1181   :  { %5222 = vpow2.f32 %v4273_v41 }
0x118a   :  { %v5221_v45 = vpop.eup %5220 }
0x118b   :  { %v2889_v11 = vmul.f32 %v5221_v45, %v5219_v30  ;;  %v7624_v30 = vld [vmem:[%s8325_s5 + $0x6c] ss:$16 sps:$4 sm:$0xff]   ;;  %v7630_v45 = vld [vmem:[%s8325_s5 + $0x68] ss:$16 sps:$4 sm:$0xff]  }
0x118d   :  { %v7573_v10 = vadd.f32 %v2889_v11, %v2888_v26  ;;  %v7636_v26 = vld [vmem:[%s8325_s5 + $0x4c] ss:$16 sps:$4 sm:$0xff]   ;;  %v7642_v11 = vld [vmem:[%s8325_s5 + $0x48] ss:$16 sps:$4 sm:$0xff]  }
0x118e   :  { %v5223_v47 = vpop.eup %5222  ;;  %8710 = vst [vmem:[#allocation32_spill] sm:$0xff] %v7636_v26  ;;  %8711 = vst [vmem:[#allocation22_spill] sm:$0xff] %v7642_v11 }
0x118f   :  { %v8454_v23 = vclamps-f32 %v7573_v10, 3.0  ;;  %v2885_v6 = vadd.f32 1.0, %v5223_v47  ;;  %v7648_v47 = vld [vmem:[%s8325_s5 + $0x2c] ss:$16 sps:$4 sm:$0xff]  }
0x1190   :  { %8712 = vst [vmem:[#allocation24_spill] sm:$0xff] %v7648_v47 }
0x1191   :  { %5224 = vtanh.f32 %v8454_v23 }
0x1192   :  { %5226 = vrcp.f32 %v2885_v6  ;;  %v7654_v6 = vld [vmem:[%s8325_s5 + $0x28] ss:$16 sps:$4 sm:$0xff]  }
0x1193   :  { %8713 = vst [vmem:[#allocation15_spill] sm:$0xff] %v7654_v6 }
0x119e   :  { %v5225_v8 = vpop.eup %5224 }
0x119f   :  { %v5227_v34 = vpop.eup %5226 }
0x11a0   :  { %v2894_v41 = vmul.f32 %v5227_v34, %v5225_v8  ;;  %v7660_v8 = vld [vmem:[%s8325_s5 + $0xc] ss:$16 sps:$4 sm:$0xff]   ;;  %v7666_v34 = vld [vmem:[%s8325_s5 + $0x8] ss:$16 sps:$4 sm:$0xff]  }
0x11a1   :  { %8714 = vst [vmem:[#allocation54_spill] sm:$0xff] %v7660_v8 }
0x11a2   :  { %v2895_v28 = vpack.c.bf16 %v2894_v41, %v2894_v41 }
0x11a4   :  { %4758 = vmatmul.mubr.bf16.vlgmr.msra.gmra.mxu0 %v2895_v28 }
0x11a5   :  { %2986 = vmatpush1.bf16.msra.mxu0 %v7581_v25  ;;  %3017 = vmatprep.mubr.bf16.mxu0 %v8540_v20 }
0x11a6   :  { %2987 = vmatprep.subr.bf16.mxu0 %v7588_v0 }
0x11a9   :  { %2988 = vmatpush1.bf16.msra.mxu0 %v7594_v36 }
0x11aa   :  { %2989 = vmatprep.subr.bf16.mxu0 %v7600_v55 }
0x11ad   :  { %2990 = vmatpush1.bf16.msra.mxu0 %v7606_v46 }
0x11ae   :  { %2991 = vmatprep.subr.bf16.mxu0 %v7612_v21 }
0x11b1   :  { %2992 = vmatpush1.bf16.msra.mxu0 %v7618_v35 }
0x11b2   :  { %2993 = vmatprep.subr.bf16.mxu0 %v7624_v30 }
0x11b5   :  { %2994 = vmatpush1.bf16.msra.mxu0 %v7630_v45 }
0x11b6   :  { %2995 = vmatprep.subr.bf16.mxu0 %v7636_v26 }
0x11b9   :  { %2996 = vmatpush1.bf16.msra.mxu0 %v7642_v11 }
0x11ba   :  { %2997 = vmatprep.subr.bf16.mxu0 %v7648_v47 }
0x11bd   :  { %2998 = vmatpush1.bf16.msra.mxu0 %v7654_v6 }
0x11be   :  { %2999 = vmatprep.subr.bf16.mxu0 %v7660_v8 }
0x11c1   :  { %3000 = vmatpush1.bf16.msra.mxu0 %v7666_v34 }
0x11c2   :  { %3117 = vmatprep.subr.bf16.mxu0 %v7121_v50  ;;  %v7682_v50 = vld [vmem:[%s8327_s7 + $0x38] sm:$0xff]  }
0x11df   :  { %v2940_v23 = vpop.permute.xlu1 %2939 }
0x1264   :  { %v2930_v41 = vpop.f32.mrf.mxu0 }
0x1265   :  { %v7670_v28 = vclamps-f32 %v2930_v41, 3.0 }
0x1266   :  { %v4759_v6 = vpop.f32.mrf.mxu0 }
0x1267   :  { %3096 = vst.msk [vmem:[#allocation3 + $0x30] sm:$0xff] %vm166_vm0, %v7670_v28  ;;  %v2942_v8 = vsel %vm166_vm0, %v7670_v28, %v2940_v23  ;;  %v7754_v23 = vld [vmem:[%s8327_s7] sm:$0xff]  }
0x1268   :  { %v2933_v47 = vpop.f32.mrf.mxu0  ;;  %v2943_v11 = vpack.c.bf16 %v2942_v8, %v2942_v8  ;;  %8721 = vst [vmem:[#allocation11_spill] sm:$0xff] %v7754_v23 }
0x126a   :  { %v4760_v26 = vpop.f32.mrf.mxu0  ;;  %2977 = vmatmul.mubr.bf16.vlgmr.msra.gmra.mxu1 %v2943_v11  ;;  %3018 = vmatmul.mubr.bf16.vlgmr.msra.gmra.mxu0 %v2943_v11 }
0x126b   :  { %3118 = vmatpush1.bf16.msra.mxu0 %v7133_v57  ;;  %3141 = vmatprep.mubr.bf16.mxu0 %v8540_v20  ;;  %v7693_v57 = vld [vmem:[%s8327_s7 + $0x30] sm:$0xff]  }
0x126c   :  { %3119 = vmatprep.subr.bf16.mxu0 %v7140_v54  ;;  %4762 = vmatpush3.bf16.msra.mxu1 %v7682_v50  ;;  %8715 = vst [vmem:[#allocation55_spill] sm:$0xff] %v7693_v57  ;;  %v7702_v54 = vld [vmem:[%s8327_s7 + $0x28] sm:$0xff]  }
0x126d   :  { %4763 = vmatprep.subr.bf16.mxu1 %v8544_v5  ;;  %4777 = vmatprep.mubr.msk.bf16.mxu1 %vm5556_vm1, %v8544_v5  ;;  %8716 = vst [vmem:[#allocation6_spill] sm:$0xff] %v7702_v54 }
0x126f   :  { %3120 = vmatpush1.bf16.msra.mxu0 %v7150_v58  ;;  %v7709_v58 = vpack.c.bf16 %v7670_v28, %v7670_v28 }
0x1270   :  { %3121 = vmatprep.subr.bf16.mxu0 %v8679_v60  ;;  %4764 = vmatpush3.bf16.msra.mxu1 %v7693_v57  ;;  %v7714_v60 = vld [vmem:[%s8327_s7 + $0x20] sm:$0xff]  }
0x1271   :  { %4765 = vmatprep.subr.bf16.mxu1 %v8544_v5  ;;  %8717 = vst [vmem:[#allocation7_spill] sm:$0xff] %v7714_v60 }
0x1273   :  { %3122 = vmatpush1.bf16.msra.mxu0 %v8681_v14  ;;  %v7727_v14 = vld [vmem:[%s8327_s7 + $0x18] sm:$0xff]  }
0x1274   :  { %3123 = vmatprep.subr.bf16.mxu0 %v8682_v17  ;;  %4766 = vmatpush3.bf16.msra.mxu1 %v7702_v54  ;;  %8718 = vst [vmem:[#allocation8_spill] sm:$0xff] %v7727_v14  ;;  %v7736_v17 = vld [vmem:[%s8327_s7 + $0x10] sm:$0xff]  }
0x1275   :  { %4767 = vmatprep.subr.bf16.mxu1 %v8544_v5  ;;  %8719 = vst [vmem:[#allocation9_spill] sm:$0xff] %v7736_v17 }
0x1277   :  { %3124 = vmatpush1.bf16.msra.mxu0 %v8684_v48  ;;  %v7745_v48 = vld [vmem:[%s8327_s7 + $0x8] sm:$0xff]  }
0x1278   :  { %4768 = vmatpush3.bf16.msra.mxu1 %v7714_v60  ;;  %4781 = vmatprep.subr.bf16.mxu0 %v8544_v5  ;;  %8720 = vst [vmem:[#allocation10_spill] sm:$0xff] %v7745_v48 }
0x1279   :  { %4769 = vmatprep.subr.bf16.mxu1 %v8544_v5 }
0x127a   :  { %4282 = vmatmul.mubr.msk.bf16.vlgmr.msra.gmra.mxu0 %vm166_vm0, %v7709_v58 }
0x127b   :  { %4782 = vmatpush3.bf16.msra.mxu0 %v7368_v42  ;;  %4797 = vmatprep.mubr.msk.bf16.mxu0 %vm5556_vm1, %v8544_v5 }
0x127c   :  { %4770 = vmatpush3.bf16.msra.mxu1 %v7727_v14  ;;  %4783 = vmatprep.subr.bf16.mxu0 %v8544_v5 }
0x127d   :  { %4771 = vmatprep.subr.bf16.mxu1 %v8544_v5 }
0x127f   :  { %4784 = vmatpush3.bf16.msra.mxu0 %v7379_v38 }
0x1280   :  { %4772 = vmatpush3.bf16.msra.mxu1 %v7736_v17  ;;  %4785 = vmatprep.subr.bf16.mxu0 %v8544_v5  ;;  %v8723_v17 = vld [vmem:[#allocation43_spill] sm:$0xff] }
0x1281   :  { %4773 = vmatprep.subr.bf16.mxu1 %v8544_v5 }
0x1283   :  { %4786 = vmatpush3.bf16.msra.mxu0 %v7388_v63  ;;  %v8722_v63 = vld [vmem:[#allocation19_spill] sm:$0xff] }
0x1284   :  { %4774 = vmatpush3.bf16.msra.mxu1 %v7745_v48  ;;  %4787 = vmatprep.subr.bf16.mxu0 %v8544_v5 }
0x1285   :  { %4775 = vmatprep.subr.bf16.mxu1 %v8544_v5 }
0x1287   :  { %4788 = vmatpush3.bf16.msra.mxu0 %v7397_v49 }
0x1288   :  { %4776 = vmatpush3.bf16.msra.mxu1 %v7754_v23  ;;  %4789 = vmatprep.subr.bf16.mxu0 %v8544_v5 }
0x1289   :  { %3158 = vmatprep.subr.bf16.mxu1 %v8693_v29 }
0x128b   :  { %4790 = vmatpush3.bf16.msra.mxu0 %v7406_v18 }
0x128c   :  { %4791 = vmatprep.subr.bf16.mxu0 %v8544_v5 }
0x128f   :  { %4792 = vmatpush3.bf16.msra.mxu0 %v7413_v51 }
0x1290   :  { %4793 = vmatprep.subr.bf16.mxu0 %v8544_v5 }
0x1293   :  { %4794 = vmatpush3.bf16.msra.mxu0 %v7420_v37 }
0x1294   :  { %4795 = vmatprep.subr.bf16.mxu0 %v8544_v5 }
0x1297   :  { %4796 = vmatpush3.bf16.msra.mxu0 %v7427_v43 }
0x1298   :  { %3311 = vmatprep.subr.bf16.mxu0 %v7433_v3 }
0x132a   :  { %v2978_v26 = vpop.f32.mrf.mxu1  ;;  %v3019_v11 = vpop.f32.mrf.mxu0 }
0x132b   :  { %v2979_v29 = vadd.f32 %v2978_v26, %v8699_v2  ;;  %v3020_v3 = vadd.f32 %v3019_v11, %v8701_v33  ;;  %v253_v26 = vadd.f32 %v8723_v17, %v8722_v63  ;;  %v8724_v2 = vld [vmem:[#allocation41_spill] sm:$0xff] }
0x132c   :  { %v2980_v47 = vpop.f32.mrf.mxu1  ;;  %v3021_v6 = vpop.f32.mrf.mxu0 }
0x132d   :  { %v4276_v8 = vmul.f32 -1.442695, %v2979_v29  ;;  %v2981_v41 = vadd.f32 %v2980_v47, %v6315_v56  ;;  %v3022_v43 = vadd.f32 %v3021_v6, %v8700_v40 }
0x132e   :  { %v2982_v51 = vpop.f32.mrf.mxu1  ;;  %v3023_v18 = vpop.f32.mrf.mxu0 }
0x132f   :  { %5228 = vpow2.f32 %v4276_v8  ;;  %v4277_v23 = vmul.f32 -1.442695, %v2981_v41  ;;  %v4278_v14 = vmul.f32 -1.442695, %v3022_v43 }
0x1330   :  { %v2983_v37 = vpop.f32.mrf.mxu1  ;;  %v3024_v49 = vpop.f32.mrf.mxu0 }
0x1331   :  { %5230 = vpow2.f32 %v4277_v23 }
0x1332   :  { %5232 = vtanh.f32 %v3020_v3 }
0x133a   :  { %v3143_v48 = vpop.f32.mrf.mxu0 }
0x133b   :  { %v3191_v38 = vadd.f32 %v3143_v48, %v8724_v2  ;;  %v8725_v2 = vclamps-f32 %v7448_v13, 3.0 }
0x133c   :  { %v5229_v29 = vpop.eup %5228  ;;  %v3145_v47 = vpop.f32.mrf.mxu0 }
0x133d   :  { %v3029_v51 = vadd.f32 1.0, %v5229_v29  ;;  %v3192_v18 = vadd.f32 %v3145_v47, %v253_v26 }
0x133e   :  { %v5231_v8 = vpop.eup %5230  ;;  %v3147_v37 = vpop.f32.mrf.mxu0 }
0x133f   :  { %5234 = vrcp.f32 %v3029_v51  ;;  %v3035_v49 = vadd.f32 1.0, %v5231_v8  ;;  %v5233_v11 = vpop.eup %5232 }
0x1340   :  { %5236 = vpow2.f32 %v4278_v14  ;;  %v3148_v23 = vpop.f32.mrf.mxu0 }
0x1341   :  { %5238 = vrcp.f32 %v3035_v49  ;;  %v8729_v23 = vld [vmem:[#allocation20_spill] sm:$0xff] }
0x134c   :  { %v5235_v6 = vpop.eup %5234 }
0x134d   :  { %v5237_v41 = vpop.eup %5236  ;;  %v3046_v17 = vmul.f32 %v5235_v6, %v5233_v11  ;;  %v8730_v11 = vld [vmem:[#allocation44_spill] sm:$0xff] }
0x134e   :  { %v5239_v33 = vpop.eup %5238  ;;  %v3042_v43 = vadd.f32 1.0, %v5237_v41  ;;  %v336_v6 = vadd.f32 %v8730_v11, %v8729_v23  ;;  %v8731_v41 = vld [vmem:[#allocation42_spill] sm:$0xff]  ;;  %v8736_v11 = vld [vmem:[#allocation15_spill] sm:$0xff] }
0x134f   :  { %v3045_v48 = vmul.f32 %v5239_v33, %v8725_v2  ;;  %v8755_v23 = vld [vmem:[#allocation63_spill] sm:$0xff] }
0x1350   :  { %5240 = vrcp.f32 %v3042_v43 }
0x1351   :  { %v7776_v63 = vadd.f32 %v3046_v17, %v3045_v48 }
0x1353   :  { %v8484_v26 = vclamps-f32 %v7776_v63, 3.0 }
0x1355   :  { %5242 = vtanh.f32 %v8484_v26 }
0x135d   :  { %v5241_v3 = vpop.eup %5240 }
0x1362   :  { %v5243_v14 = vpop.eup %5242 }
0x1363   :  { %v3051_v29 = vmul.f32 %v5243_v14, %v5241_v3 }
0x1365   :  { %v3052_v47 = vpack.c.bf16 %v3051_v29, %v3051_v29 }
0x1367   :  { %4778 = vmatmul.mubr.bf16.vlgmr.msra.gmra.mxu1 %v3052_v47 }
0x1368   :  { %3159 = vmatpush1.bf16.msra.mxu1 %v7240_v24  ;;  %3182 = vmatprep.mubr.bf16.mxu1 %v8540_v20  ;;  %v8726_v24 = vld [vmem:[#allocation21_spill] sm:$0xff] }
0x1369   :  { %3160 = vmatprep.subr.bf16.mxu1 %v7247_v62  ;;  %v8727_v62 = vld [vmem:[#allocation23_spill] sm:$0xff] }
0x136c   :  { %3161 = vmatpush1.bf16.msra.mxu1 %v7253_v59  ;;  %v8728_v59 = vld [vmem:[#allocation30_spill] sm:$0xff] }
0x136d   :  { %3162 = vmatprep.subr.bf16.mxu1 %v7259_v9  ;;  %v4285_v9 = vmul.f32 -1.442695, %v3192_v18 }
0x136f   :  { %5244 = vpow2.f32 %v4285_v9  ;;  %v8732_v9 = vclamps-f32 %v7573_v10, 3.0  ;;  %v8733_v10 = vld [vmem:[#allocation32_spill] sm:$0xff] }
0x1370   :  { %3163 = vmatpush1.bf16.msra.mxu1 %v7265_v16  ;;  %v4284_v16 = vmul.f32 -1.442695, %v3191_v38 }
0x1371   :  { %3164 = vmatprep.subr.bf16.mxu1 %v7271_v53 }
0x1372   :  { %5246 = vpow2.f32 %v4284_v16 }
0x1374   :  { %3165 = vmatpush1.bf16.msra.mxu1 %v7277_v32 }
0x1375   :  { %3270 = vmatprep.subr.bf16.mxu1 %v7464_v39 }
0x1377   :  { %4283 = vmatmul.mubr.msk.bf16.vlgmr.msra.gmra.mxu1 %vm166_vm0, %v7709_v58 }
0x1378   :  { %3271 = vmatpush1.bf16.msra.mxu1 %v7472_v27  ;;  %3302 = vmatprep.mubr.bf16.mxu1 %v8540_v20 }
0x1379   :  { %3272 = vmatprep.subr.bf16.mxu1 %v7479_v15 }
0x137c   :  { %3273 = vmatpush1.bf16.msra.mxu1 %v7485_v7  ;;  %v5245_v8 = vpop.eup %5244 }
0x137d   :  { %3274 = vmatprep.subr.bf16.mxu1 %v7491_v12  ;;  %v3204_v18 = vadd.f32 1.0, %v5245_v8 }
0x137f   :  { %v5247_v37 = vpop.eup %5246  ;;  %5248 = vrcp.f32 %v3204_v18 }
0x1380   :  { %3275 = vmatpush1.bf16.msra.mxu1 %v7497_v19  ;;  %v3198_v38 = vadd.f32 1.0, %v5247_v37 }
0x1381   :  { %3276 = vmatprep.subr.bf16.mxu1 %v7503_v61 }
0x1382   :  { %5250 = vrcp.f32 %v3198_v38  ;;  %v8734_v38 = vld [vmem:[#allocation22_spill] sm:$0xff] }
0x1384   :  { %3277 = vmatpush1.bf16.msra.mxu1 %v7509_v44 }
0x1385   :  { %3278 = vmatprep.subr.bf16.mxu1 %v7515_v22 }
0x1388   :  { %3279 = vmatpush1.bf16.msra.mxu1 %v7521_v1 }
0x1389   :  { %3280 = vmatprep.subr.bf16.mxu1 %v7527_v31 }
0x138c   :  { %3281 = vmatpush1.bf16.msra.mxu1 %v7533_v4  ;;  %v5249_v14 = vpop.eup %5248 }
0x138d   :  { %3282 = vmatprep.subr.bf16.mxu1 %v7539_v52  ;;  %v3214_v16 = vmul.f32 %v5249_v14, %v8732_v9  ;;  %v7863_v9 = vld [vmem:[%s8322_s2 + $0x44] ss:$16 sps:$4 sm:$0xff]  }
0x138f   :  { %v5251_v29 = vpop.eup %5250 }
0x1390   :  { %3283 = vmatpush1.bf16.msra.mxu1 %v8726_v24 }
0x1391   :  { %3284 = vmatprep.subr.bf16.mxu1 %v8727_v62 }
0x1394   :  { %3285 = vmatpush1.bf16.msra.mxu1 %v8728_v59 }
0x1395   :  { %4801 = vmatprep.subr.bf16.mxu1 %v8544_v5 }
0x1427   :  { %v3087_v53 = vpop.f32.mrf.mxu1 }
0x1428   :  { %v4280_v32 = vclamps-f32 %v3087_v53, 3.0 }
0x1429   :  { %v4779_v33 = vpop.f32.mrf.mxu1 }
0x142a   :  { %v3097_v13 = vadd.f32 %v4280_v32, %v7670_v28  ;;  %3265 = vrot.lane.b32.xlu0 %v4280_v32, %s5557_s6 }
0x142b   :  { %v3090_v58 = vpop.f32.mrf.mxu1 }
0x142c   :  { %4281 = vst.msk [vmem:[%s8329_s9 + $0x30] sm:$0xff] %vm166_vm0, %v3097_v13 }
0x142d   :  { %v4780_v51 = vpop.f32.mrf.mxu1 }
0x1437   :  { %v3184_v49 = vpop.f32.mrf.mxu1 }
0x1438   :  { %v3193_v28 = vadd.f32 %v3184_v49, %v8731_v41  ;;  %v8735_v49 = vld [vmem:[#allocation24_spill] sm:$0xff] }
0x1439   :  { %v3186_v17 = vpop.f32.mrf.mxu1  ;;  %v7844_v41 = vld [vmem:[%s8322_s2 + $0x64] ss:$16 sps:$4 sm:$0xff]  }
0x143a   :  { %5252 = vtanh.f32 %v3193_v28  ;;  %v3194_v2 = vadd.f32 %v3186_v17, %v336_v6  ;;  %v8737_v6 = vld [vmem:[#allocation54_spill] sm:$0xff] }
0x143b   :  { %v3188_v48 = vpop.f32.mrf.mxu1 }
0x143c   :  { %v4286_v43 = vmul.f32 -1.442695, %v3194_v2 }
0x143d   :  { %v3189_v3 = vpop.f32.mrf.mxu1 }
0x143e   :  { %5254 = vpow2.f32 %v4286_v43 }
0x1447   :  { %v5253_v47 = vpop.eup %5252 }
0x1448   :  { %v3215_v53 = vmul.f32 %v5253_v47, %v5251_v29  ;;  %v7856_v47 = vld [vmem:[%s8322_s2 + $0x60] ss:$16 sps:$4 sm:$0xff]  }
0x144a   :  { %v7820_v32 = vadd.f32 %v3215_v53, %v3214_v16  ;;  %v7873_v16 = vld [vmem:[%s8322_s2 + $0x40] ss:$16 sps:$4 sm:$0xff]   ;;  %v7879_v53 = vld [vmem:[%s8322_s2 + $0x24] ss:$16 sps:$4 sm:$0xff]  }
0x144b   :  { %v5255_v33 = vpop.eup %5254  ;;  %8738 = vst [vmem:[#allocation35_spill] sm:$0xff] %v7879_v53 }
0x144c   :  { %v8483_v13 = vclamps-f32 %v7820_v32, 3.0  ;;  %v3211_v58 = vadd.f32 1.0, %v5255_v33  ;;  %v7887_v33 = vld [vmem:[%s8322_s2 + $0x20] ss:$16 sps:$4 sm:$0xff]  }
0x144d   :  { %8739 = vst [vmem:[#allocation33_spill] sm:$0xff] %v7887_v33 }
0x144e   :  { %5256 = vtanh.f32 %v8483_v13 }
0x144f   :  { %5258 = vrcp.f32 %v3211_v58  ;;  %v7893_v58 = vld [vmem:[%s8322_s2 + $0x4] ss:$16 sps:$4 sm:$0xff]  }
0x1450   :  { %8740 = vst [vmem:[#allocation36_spill] sm:$0xff] %v7893_v58 }
0x145b   :  { %v5257_v51 = vpop.eup %5256 }
0x145c   :  { %v5259_v8 = vpop.eup %5258 }
0x145d   :  { %v3220_v37 = vmul.f32 %v5259_v8, %v5257_v51  ;;  %v7901_v51 = vld [vmem:[%s8322_s2] ss:$16 sps:$4 sm:$0xff]  }
0x145e   :  { %8741 = vst [vmem:[#allocation34_spill] sm:$0xff] %v7901_v51 }
0x145f   :  { %v3221_v18 = vpack.c.bf16 %v3220_v37, %v3220_v37  ;;  %v8742_v37 = vld [vmem:[#allocation8_spill] sm:$0xff] }
0x1461   :  { %4798 = vmatmul.mubr.bf16.vlgmr.msra.gmra.mxu0 %v3221_v18  ;;  %v8743_v18 = vld [vmem:[#allocation25_spill] sm:$0xff] }
0x1462   :  { %3312 = vmatpush1.bf16.msra.mxu0 %v7581_v25  ;;  %3343 = vmatprep.mubr.bf16.mxu0 %v8540_v20 }
0x1463   :  { %3313 = vmatprep.subr.bf16.mxu0 %v7588_v0 }
0x1466   :  { %3314 = vmatpush1.bf16.msra.mxu0 %v7594_v36 }
0x1467   :  { %3315 = vmatprep.subr.bf16.mxu0 %v7600_v55 }
0x146a   :  { %3316 = vmatpush1.bf16.msra.mxu0 %v7606_v46 }
0x146b   :  { %3317 = vmatprep.subr.bf16.mxu0 %v7612_v21 }
0x146e   :  { %3318 = vmatpush1.bf16.msra.mxu0 %v7618_v35 }
0x146f   :  { %3319 = vmatprep.subr.bf16.mxu0 %v7624_v30 }
0x1472   :  { %3320 = vmatpush1.bf16.msra.mxu0 %v7630_v45 }
0x1473   :  { %3321 = vmatprep.subr.bf16.mxu0 %v8733_v10 }
0x1476   :  { %3322 = vmatpush1.bf16.msra.mxu0 %v8734_v38 }
0x1477   :  { %3323 = vmatprep.subr.bf16.mxu0 %v8735_v49 }
0x147a   :  { %3324 = vmatpush1.bf16.msra.mxu0 %v8736_v11 }
0x147b   :  { %3325 = vmatprep.subr.bf16.mxu0 %v8737_v6 }
0x147e   :  { %3326 = vmatpush1.bf16.msra.mxu0 %v7666_v34 }
0x147f   :  { %3443 = vmatprep.subr.bf16.mxu0 %v7844_v41 }
0x149c   :  { %v3266_v2 = vpop.permute.xlu0 %3265 }
0x1521   :  { %v3256_v28 = vpop.f32.mrf.mxu0 }
0x1522   :  { %v7847_v17 = vclamps-f32 %v3256_v28, 3.0  ;;  %v8744_v28 = vld [vmem:[#allocation9_spill] sm:$0xff] }
0x1523   :  { %v4799_v48 = vpop.f32.mrf.mxu0 }
0x1524   :  { %3422 = vst.msk [vmem:[#allocation3 + $0x38] sm:$0xff] %vm166_vm0, %v7847_v17  ;;  %v3268_v43 = vsel %vm166_vm0, %v7847_v17, %v3266_v2  ;;  %v7906_v8 = vpack.c.bf16 %v7847_v17, %v7847_v17  ;;  %v8745_v2 = vld [vmem:[#allocation28_spill] sm:$0xff]  ;;  %v8747_v48 = vld [vmem:[#allocation26_spill] sm:$0xff] }
0x1525   :  { %v3259_v3 = vpop.f32.mrf.mxu0  ;;  %v3269_v14 = vpack.c.bf16 %v3268_v43, %v3268_v43  ;;  %v8748_v43 = vld [vmem:[#allocation11_spill] sm:$0xff] }
0x1526   :  { %v7933_v3 = vld [vmem:[%s8322_s2 + $0x6c] ss:$16 sps:$4 sm:$0xff]  }
0x1527   :  { %v4800_v29 = vpop.f32.mrf.mxu0  ;;  %3303 = vmatmul.mubr.bf16.vlgmr.msra.gmra.mxu1 %v3269_v14  ;;  %3344 = vmatmul.mubr.bf16.vlgmr.msra.gmra.mxu0 %v3269_v14  ;;  %8749 = vst [vmem:[#allocation60_spill] sm:$0xff] %v7933_v3  ;;  %v8750_v14 = vld [vmem:[#allocation29_spill] sm:$0xff] }
0x1528   :  { %3444 = vmatpush1.bf16.msra.mxu0 %v7856_v47  ;;  %3467 = vmatprep.mubr.bf16.mxu0 %v8540_v20  ;;  %v8751_v29 = vld [vmem:[#allocation31_spill] sm:$0xff] }
0x1529   :  { %3445 = vmatprep.subr.bf16.mxu0 %v7863_v9  ;;  %4802 = vmatpush3.bf16.msra.mxu1 %v7682_v50 }
0x152a   :  { %4803 = vmatprep.subr.bf16.mxu1 %v8544_v5  ;;  %4817 = vmatprep.mubr.msk.bf16.mxu1 %vm5556_vm1, %v8544_v5 }
0x152c   :  { %3446 = vmatpush1.bf16.msra.mxu0 %v7873_v16 }
0x152d   :  { %3447 = vmatprep.subr.bf16.mxu0 %v7879_v53  ;;  %4804 = vmatpush3.bf16.msra.mxu1 %v7693_v57 }
0x152e   :  { %4805 = vmatprep.subr.bf16.mxu1 %v8544_v5 }
0x1530   :  { %3448 = vmatpush1.bf16.msra.mxu0 %v7887_v33  ;;  %v8757_v33 = vld [vmem:[#allocation45_spill] sm:$0xff] }
0x1531   :  { %3449 = vmatprep.subr.bf16.mxu0 %v7893_v58  ;;  %4806 = vmatpush3.bf16.msra.mxu1 %v7702_v54  ;;  %v8756_v54 = vld [vmem:[#allocation65_spill] sm:$0xff] }
0x1532   :  { %4807 = vmatprep.subr.bf16.mxu1 %v8544_v5 }
0x1534   :  { %3450 = vmatpush1.bf16.msra.mxu0 %v7901_v51 }
0x1535   :  { %4808 = vmatpush3.bf16.msra.mxu1 %v7714_v60  ;;  %4821 = vmatprep.subr.bf16.mxu0 %v8544_v5 }
0x1536   :  { %4809 = vmatprep.subr.bf16.mxu1 %v8544_v5 }
0x1537   :  { %4295 = vmatmul.mubr.msk.bf16.vlgmr.msra.gmra.mxu0 %vm166_vm0, %v7906_v8 }
0x1538   :  { %4822 = vmatpush3.bf16.msra.mxu0 %v7368_v42  ;;  %4837 = vmatprep.mubr.msk.bf16.mxu0 %vm5556_vm1, %v8544_v5  ;;  %v8746_v42 = vld [vmem:[#allocation10_spill] sm:$0xff] }
0x1539   :  { %4810 = vmatpush3.bf16.msra.mxu1 %v8742_v37  ;;  %4823 = vmatprep.subr.bf16.mxu0 %v8544_v5 }
0x153a   :  { %4811 = vmatprep.subr.bf16.mxu1 %v8544_v5 }
0x153c   :  { %4824 = vmatpush3.bf16.msra.mxu0 %v8743_v18  ;;  %v8752_v18 = vld [vmem:[#allocation12_spill] sm:$0xff] }
0x153d   :  { %4812 = vmatpush3.bf16.msra.mxu1 %v8744_v28  ;;  %4825 = vmatprep.subr.bf16.mxu0 %v8544_v5 }
0x153e   :  { %4813 = vmatprep.subr.bf16.mxu1 %v8544_v5 }
0x1540   :  { %4826 = vmatpush3.bf16.msra.mxu0 %v8745_v2  ;;  %v8753_v2 = vld [vmem:[#allocation13_spill] sm:$0xff] }
0x1541   :  { %4814 = vmatpush3.bf16.msra.mxu1 %v8746_v42  ;;  %4827 = vmatprep.subr.bf16.mxu0 %v8544_v5 }
0x1542   :  { %4815 = vmatprep.subr.bf16.mxu1 %v8544_v5 }
0x1544   :  { %4828 = vmatpush3.bf16.msra.mxu0 %v8747_v48  ;;  %v8754_v48 = vld [vmem:[#allocation14_spill] sm:$0xff] }
0x1545   :  { %4816 = vmatpush3.bf16.msra.mxu1 %v8748_v43  ;;  %4829 = vmatprep.subr.bf16.mxu0 %v8544_v5 }
0x1546   :  { %3484 = vmatprep.subr.bf16.mxu1 %v7933_v3 }
0x1548   :  { %4830 = vmatpush3.bf16.msra.mxu0 %v8750_v14 }
0x1549   :  { %4831 = vmatprep.subr.bf16.mxu0 %v8544_v5 }
0x154c   :  { %4832 = vmatpush3.bf16.msra.mxu0 %v8751_v29 }
0x154d   :  { %4833 = vmatprep.subr.bf16.mxu0 %v8544_v5 }
0x1550   :  { %4834 = vmatpush3.bf16.msra.mxu0 %v8752_v18 }
0x1551   :  { %4835 = vmatprep.subr.bf16.mxu0 %v8544_v5 }
0x1554   :  { %4836 = vmatpush3.bf16.msra.mxu0 %v8753_v2 }
0x1555   :  { %3637 = vmatprep.subr.bf16.mxu0 %v8754_v48 }
0x15e7   :  { %v3304_v13 = vpop.f32.mrf.mxu1  ;;  %v3345_v26 = vpop.f32.mrf.mxu0 }
0x15e8   :  { %v3305_v3 = vadd.f32 %v3304_v13, %v8755_v23  ;;  %v3346_v48 = vadd.f32 %v3345_v26, %v8756_v54 }
0x15e9   :  { %v3306_v43 = vpop.f32.mrf.mxu1  ;;  %v3347_v14 = vpop.f32.mrf.mxu0 }
0x15ea   :  { %v4289_v42 = vmul.f32 -1.442695, %v3305_v3  ;;  %v3307_v28 = vadd.f32 %v3306_v43, %v6315_v56  ;;  %v3348_v2 = vadd.f32 %v3347_v14, %v8700_v40  ;;  %v8758_v43 = vld [vmem:[#allocation47_spill] sm:$0xff] }
0x15eb   :  { %v3308_v29 = vpop.f32.mrf.mxu1  ;;  %v3349_v37 = vpop.f32.mrf.mxu0 }
0x15ec   :  { %5260 = vpow2.f32 %v4289_v42  ;;  %v4290_v60 = vmul.f32 -1.442695, %v3307_v28  ;;  %v4291_v23 = vmul.f32 -1.442695, %v3348_v2 }
0x15ed   :  { %v3309_v18 = vpop.f32.mrf.mxu1  ;;  %v3350_v51 = vpop.f32.mrf.mxu0 }
0x15ee   :  { %5262 = vpow2.f32 %v4290_v60 }
0x15ef   :  { %5264 = vtanh.f32 %v3346_v48 }
0x15f7   :  { %v3469_v58 = vpop.f32.mrf.mxu0 }
0x15f8   :  { %v7949_v57 = vadd.f32 %v3469_v58, %v8757_v33  ;;  %v8759_v58 = vclamps-f32 %v7776_v63, 3.0  ;;  %v7969_v63 = vld [vmem:[%s8322_s2 + $0x4c] ss:$16 sps:$4 sm:$0xff]  }
0x15f9   :  { %v5261_v13 = vpop.eup %5260  ;;  %v3471_v3 = vpop.f32.mrf.mxu0 }
0x15fa   :  { %v3355_v53 = vadd.f32 1.0, %v5261_v13  ;;  %v3518_v29 = vadd.f32 %v3471_v3, %v8758_v43 }
0x15fb   :  { %v5263_v37 = vpop.eup %5262  ;;  %v3473_v28 = vpop.f32.mrf.mxu0 }
0x15fc   :  { %5266 = vrcp.f32 %v3355_v53  ;;  %v3361_v51 = vadd.f32 1.0, %v5263_v37  ;;  %v5265_v42 = vpop.eup %5264  ;;  %v7962_v37 = vld [vmem:[%s8322_s2 + $0x68] ss:$16 sps:$4 sm:$0xff]   ;;  %v7981_v28 = vld [vmem:[%s8322_s2 + $0x2c] ss:$16 sps:$4 sm:$0xff]  }
0x15fd   :  { %5268 = vpow2.f32 %v4291_v23  ;;  %v3474_v60 = vpop.f32.mrf.mxu0 }
0x15fe   :  { %5270 = vrcp.f32 %v3361_v51  ;;  %v7987_v51 = vld [vmem:[%s8322_s2 + $0x28] ss:$16 sps:$4 sm:$0xff]   ;;  %v7993_v60 = vld [vmem:[%s8322_s2 + $0xc] ss:$16 sps:$4 sm:$0xff]  }
0x1609   :  { %v5267_v26 = vpop.eup %5266 }
0x160a   :  { %v5269_v14 = vpop.eup %5268  ;;  %v3372_v33 = vmul.f32 %v5267_v26, %v5265_v42  ;;  %v7999_v42 = vld [vmem:[%s8322_s2 + $0x8] ss:$16 sps:$4 sm:$0xff]  }
0x160b   :  { %v5271_v18 = vpop.eup %5270  ;;  %v3368_v54 = vadd.f32 1.0, %v5269_v14 }
0x160c   :  { %v3371_v2 = vmul.f32 %v5271_v18, %v8759_v58  ;;  %v8762_v58 = vclamps-f32 %v7820_v32, 3.0  ;;  %v8765_v32 = vld [vmem:[#allocation33_spill] sm:$0xff] }
0x160d   :  { %5272 = vrcp.f32 %v3368_v54  ;;  %v7975_v54 = vld [vmem:[%s8322_s2 + $0x48] ss:$16 sps:$4 sm:$0xff]  }
0x160e   :  { %v7954_v13 = vadd.f32 %v3372_v33, %v3371_v2 }
0x1610   :  { %v4292_v3 = vclamps-f32 %v7954_v13, 3.0  ;;  %v5493_v13 = vld [vmem:[%s8325_s5 + $0xe4] ss:$16 sps:$4 sm:$0xff]  }
0x1612   :  { %5274 = vtanh.f32 %v4292_v3 }
0x161a   :  { %v5273_v23 = vpop.eup %5272 }
0x161f   :  { %v5275_v53 = vpop.eup %5274 }
0x1620   :  { %v3377_v48 = vmul.f32 %v5275_v53, %v5273_v23 }
0x1622   :  { %v3378_v43 = vpack.c.bf16 %v3377_v48, %v3377_v48 }
0x1624   :  { %4818 = vmatmul.mubr.bf16.vlgmr.msra.gmra.mxu1 %v3378_v43 }
0x1625   :  { %3485 = vmatpush1.bf16.msra.mxu1 %v7962_v37  ;;  %3508 = vmatprep.mubr.bf16.mxu1 %v8540_v20 }
0x1626   :  { %3486 = vmatprep.subr.bf16.mxu1 %v7969_v63 }
0x1629   :  { %3487 = vmatpush1.bf16.msra.mxu1 %v7975_v54 }
0x162a   :  { %3488 = vmatprep.subr.bf16.mxu1 %v7981_v28 }
0x162d   :  { %3489 = vmatpush1.bf16.msra.mxu1 %v7987_v51 }
0x162e   :  { %3490 = vmatprep.subr.bf16.mxu1 %v7993_v60 }
0x1631   :  { %3491 = vmatpush1.bf16.msra.mxu1 %v7999_v42 }
0x1632   :  { %3596 = vmatprep.subr.bf16.mxu1 %v7464_v39  ;;  %v4298_v39 = vmul.f32 -1.442695, %v3518_v29 }
0x1634   :  { %4296 = vmatmul.mubr.msk.bf16.vlgmr.msra.gmra.mxu1 %vm166_vm0, %v7906_v8  ;;  %5276 = vpow2.f32 %v4298_v39 }
0x1635   :  { %3597 = vmatpush1.bf16.msra.mxu1 %v7472_v27  ;;  %3628 = vmatprep.mubr.bf16.mxu1 %v8540_v20  ;;  %v4297_v27 = vmul.f32 -1.442695, %v7949_v57  ;;  %v8760_v57 = vld [vmem:[#allocation46_spill] sm:$0xff] }
0x1636   :  { %3598 = vmatprep.subr.bf16.mxu1 %v7479_v15 }
0x1637   :  { %5278 = vpow2.f32 %v4297_v27 }
0x1639   :  { %3599 = vmatpush1.bf16.msra.mxu1 %v7485_v7 }
0x163a   :  { %3600 = vmatprep.subr.bf16.mxu1 %v7491_v12 }
0x163d   :  { %3601 = vmatpush1.bf16.msra.mxu1 %v7497_v19 }
0x163e   :  { %3602 = vmatprep.subr.bf16.mxu1 %v7503_v61 }
0x1641   :  { %3603 = vmatpush1.bf16.msra.mxu1 %v7509_v44 }
0x1642   :  { %3604 = vmatprep.subr.bf16.mxu1 %v7515_v22  ;;  %v5277_v22 = vpop.eup %5276 }
0x1645   :  { %3605 = vmatpush1.bf16.msra.mxu1 %v7521_v1  ;;  %v5279_v1 = vpop.eup %5278 }
0x1646   :  { %3606 = vmatprep.subr.bf16.mxu1 %v7527_v31  ;;  %v3530_v31 = vadd.f32 1.0, %v5277_v22  ;;  %v8774_v22 = vld [vmem:[#allocation60_spill] sm:$0xff] }
0x1648   :  { %5280 = vrcp.f32 %v3530_v31  ;;  %v5489_v31 = vld [vmem:[%s8324_s4 + $0x10] sm:$0xff]  }
0x1649   :  { %3607 = vmatpush1.bf16.msra.mxu1 %v7533_v4  ;;  %v3524_v4 = vadd.f32 1.0, %v5279_v1  ;;  %v5488_v1 = vld [vmem:[%s8324_s4 + $0x18] sm:$0xff]  }
0x164a   :  { %3608 = vmatprep.subr.bf16.mxu1 %v7539_v52 }
0x164b   :  { %5282 = vrcp.f32 %v3524_v4  ;;  %v5490_v4 = vld [vmem:[%s8324_s4 + $0x8] sm:$0xff]  }
0x164d   :  { %3609 = vmatpush1.bf16.msra.mxu1 %v8726_v24 }
0x164e   :  { %3610 = vmatprep.subr.bf16.mxu1 %v8727_v62 }
0x1651   :  { %3611 = vmatpush1.bf16.msra.mxu1 %v8728_v59  ;;  %v8761_v59 = vld [vmem:[#allocation48_spill] sm:$0xff] }
0x1652   :  { %4841 = vmatprep.subr.bf16.mxu1 %v8544_v5 }
0x1655   :  { %v5281_v14 = vpop.eup %5280 }
0x1656   :  { %v3540_v2 = vmul.f32 %v5281_v14, %v8762_v58 }
0x1658   :  { %v5283_v18 = vpop.eup %5282 }
0x16e4   :  { %v3413_v15 = vpop.f32.mrf.mxu1 }
0x16e5   :  { %v4293_v7 = vclamps-f32 %v3413_v15, 3.0 }
0x16e6   :  { %v4819_v12 = vpop.f32.mrf.mxu1 }
0x16e7   :  { %v3423_v19 = vadd.f32 %v4293_v7, %v7847_v17  ;;  %3591 = vrot.lane.b32.xlu1 %v4293_v7, %s5557_s6 }
0x16e8   :  { %v3416_v61 = vpop.f32.mrf.mxu1 }
0x16e9   :  { %4294 = vst.msk [vmem:[%s8329_s9 + $0x38] sm:$0xff] %vm166_vm0, %v3423_v19  ;;  %v8772_v19 = vld [vmem:[#allocation10_spill] sm:$0xff]  ;;  %v5487_v61 = vld [vmem:[%s8324_s4 + $0x20] sm:$0xff]  }
0x16ea   :  { %v4820_v44 = vpop.f32.mrf.mxu1 }
0x16eb   :  { %v8773_v44 = vld [vmem:[#allocation11_spill] sm:$0xff] }
0x16f4   :  { %v3510_v52 = vpop.f32.mrf.mxu1 }
0x16f5   :  { %v3519_v24 = vadd.f32 %v3510_v52, %v8760_v57  ;;  %v5491_v52 = vld [vmem:[%s8324_s4] sm:$0xff]   ;;  %v5492_v57 = vld [vmem:[%s8325_s5 + $0xec] ss:$16 sps:$4 sm:$0xff]  }
0x16f6   :  { %v3512_v62 = vpop.f32.mrf.mxu1 }
0x16f7   :  { %5284 = vtanh.f32 %v3519_v24  ;;  %v3520_v17 = vadd.f32 %v3512_v62, %v8761_v59  ;;  %v8775_v59 = vld [vmem:[#allocation63_spill] sm:$0xff] }
0x16f8   :  { %v3514_v8 = vpop.f32.mrf.mxu1 }
0x16f9   :  { %v4299_v29 = vmul.f32 -1.442695, %v3520_v17 }
0x16fa   :  { %v3515_v26 = vpop.f32.mrf.mxu1 }
0x16fb   :  { %5286 = vpow2.f32 %v4299_v29 }
0x1704   :  { %v5285_v33 = vpop.eup %5284 }
0x1705   :  { %v3541_v23 = vmul.f32 %v5285_v33, %v5283_v18 }
0x1707   :  { %v8033_v53 = vadd.f32 %v3541_v23, %v3540_v2 }
0x1708   :  { %v5287_v48 = vpop.eup %5286 }
0x1709   :  { %v4300_v43 = vclamps-f32 %v8033_v53, 3.0  ;;  %v3537_v39 = vadd.f32 1.0, %v5287_v48  ;;  %v5510_v53 = vld [vmem:[%s8325_s5 + $0xcc] ss:$16 sps:$4 sm:$0xff]  }
0x170b   :  { %5288 = vtanh.f32 %v4300_v43 }
0x170c   :  { %5290 = vrcp.f32 %v3537_v39  ;;  %v8776_v39 = vld [vmem:[#allocation65_spill] sm:$0xff] }
0x1718   :  { %v5289_v27 = vpop.eup %5288 }
0x1719   :  { %v5291_v15 = vpop.eup %5290 }
0x171a   :  { %v3546_v7 = vmul.f32 %v5291_v15, %v5289_v27 }
0x171c   :  { %v3547_v12 = vpack.c.bf16 %v3546_v7, %v3546_v7  ;;  %v8777_v7 = vld [vmem:[#allocation19_spill] sm:$0xff] }
0x171e   :  { %4838 = vmatmul.mubr.bf16.vlgmr.msra.gmra.mxu0 %v3547_v12  ;;  %v8778_v12 = vld [vmem:[#allocation51_spill] sm:$0xff] }
0x171f   :  { %3638 = vmatpush1.bf16.msra.mxu0 %v7581_v25  ;;  %3669 = vmatprep.mubr.bf16.mxu0 %v8540_v20 }
0x1720   :  { %3639 = vmatprep.subr.bf16.mxu0 %v7588_v0 }
0x1723   :  { %3640 = vmatpush1.bf16.msra.mxu0 %v7594_v36 }
0x1724   :  { %3641 = vmatprep.subr.bf16.mxu0 %v7600_v55 }
0x1727   :  { %3642 = vmatpush1.bf16.msra.mxu0 %v7606_v46 }
0x1728   :  { %3643 = vmatprep.subr.bf16.mxu0 %v7612_v21 }
0x172b   :  { %3644 = vmatpush1.bf16.msra.mxu0 %v7618_v35 }
0x172c   :  { %3645 = vmatprep.subr.bf16.mxu0 %v7624_v30 }
0x172f   :  { %3646 = vmatpush1.bf16.msra.mxu0 %v7630_v45  ;;  %v8763_v45 = vld [vmem:[#allocation35_spill] sm:$0xff] }
0x1730   :  { %3647 = vmatprep.subr.bf16.mxu0 %v8733_v10  ;;  %v8766_v10 = vld [vmem:[#allocation36_spill] sm:$0xff] }
0x1733   :  { %3648 = vmatpush1.bf16.msra.mxu0 %v8734_v38  ;;  %v8767_v38 = vld [vmem:[#allocation6_spill] sm:$0xff] }
0x1734   :  { %3649 = vmatprep.subr.bf16.mxu0 %v8735_v49 }
0x1737   :  { %3650 = vmatpush1.bf16.msra.mxu0 %v8736_v11  ;;  %v8769_v11 = vld [vmem:[#allocation7_spill] sm:$0xff] }
0x1738   :  { %3651 = vmatprep.subr.bf16.mxu0 %v8737_v6  ;;  %v5484_v6 = vld [vmem:[%s8324_s4 + $0x38] sm:$0xff]  }
0x173b   :  { %3652 = vmatpush1.bf16.msra.mxu0 %v7666_v34  ;;  %v8764_v34 = vld [vmem:[#allocation55_spill] sm:$0xff] }
0x173c   :  { %3769 = vmatprep.subr.bf16.mxu0 %v7844_v41  ;;  %v8770_v41 = vld [vmem:[#allocation8_spill] sm:$0xff] }
0x1759   :  { %v3592_v36 = vpop.permute.xlu1 %3591 }
0x17de   :  { %v3582_v25 = vpop.f32.mrf.mxu0 }
0x17df   :  { %v8055_v0 = vclamps-f32 %v3582_v25, 3.0  ;;  %v263_v25 = vadd.f32 %v8778_v12, %v8777_v7  ;;  %v8780_v12 = vld [vmem:[#allocation20_spill] sm:$0xff] }
0x17e0   :  { %v4839_v55 = vpop.f32.mrf.mxu0 }
0x17e1   :  { %v3594_v46 = vsel %vm166_vm0, %v8055_v0, %v3592_v36  ;;  %3748 = vst.msk [vmem:[#allocation3 + $0x40] sm:$0xff] %vm166_vm0, %v8055_v0  ;;  %v8079_v49 = vpack.c.bf16 %v8055_v0, %v8055_v0  ;;  %v8779_v36 = vld [vmem:[#allocation49_spill] sm:$0xff] }
0x17e2   :  { %v3595_v21 = vpack.c.bf16 %v3594_v46, %v3594_v46  ;;  %v3585_v35 = vpop.f32.mrf.mxu0 }
0x17e4   :  { %v4840_v30 = vpop.f32.mrf.mxu0  ;;  %3629 = vmatmul.mubr.bf16.vlgmr.msra.gmra.mxu1 %v3595_v21  ;;  %3670 = vmatmul.mubr.bf16.vlgmr.msra.gmra.mxu0 %v3595_v21 }
0x17e5   :  { %3770 = vmatpush1.bf16.msra.mxu0 %v7856_v47  ;;  %3793 = vmatprep.mubr.bf16.mxu0 %v8540_v20  ;;  %v5485_v47 = vld [vmem:[%s8324_s4 + $0x30] sm:$0xff]  }
0x17e6   :  { %3771 = vmatprep.subr.bf16.mxu0 %v7863_v9  ;;  %4842 = vmatpush3.bf16.msra.mxu1 %v7682_v50  ;;  %v8768_v50 = vld [vmem:[#allocation34_spill] sm:$0xff]  ;;  %v8771_v9 = vld [vmem:[#allocation9_spill] sm:$0xff] }
0x17e7   :  { %4843 = vmatprep.subr.bf16.mxu1 %v8544_v5  ;;  %4857 = vmatprep.mubr.msk.bf16.mxu1 %vm5556_vm1, %v8544_v5 }
0x17e9   :  { %3772 = vmatpush1.bf16.msra.mxu0 %v7873_v16  ;;  %v5486_v16 = vld [vmem:[%s8324_s4 + $0x28] sm:$0xff]  }
0x17ea   :  { %3773 = vmatprep.subr.bf16.mxu0 %v8763_v45  ;;  %4844 = vmatpush3.bf16.msra.mxu1 %v8764_v34 }
0x17eb   :  { %4845 = vmatprep.subr.bf16.mxu1 %v8544_v5 }
0x17ed   :  { %3774 = vmatpush1.bf16.msra.mxu0 %v8765_v32 }
0x17ee   :  { %3775 = vmatprep.subr.bf16.mxu0 %v8766_v10  ;;  %4846 = vmatpush3.bf16.msra.mxu1 %v8767_v38 }
0x17ef   :  { %4847 = vmatprep.subr.bf16.mxu1 %v8544_v5 }
0x17f1   :  { %3776 = vmatpush1.bf16.msra.mxu0 %v8768_v50 }
0x17f2   :  { %4848 = vmatpush3.bf16.msra.mxu1 %v8769_v11  ;;  %4861 = vmatprep.subr.bf16.mxu0 %v8544_v5 }
0x17f3   :  { %4849 = vmatprep.subr.bf16.mxu1 %v8544_v5 }
0x17f4   :  { %4308 = vmatmul.mubr.msk.bf16.vlgmr.msra.gmra.mxu0 %vm166_vm0, %v8079_v49 }
0x17f5   :  { %4862 = vmatpush3.bf16.msra.mxu0 %v5484_v6  ;;  %4877 = vmatprep.mubr.msk.bf16.mxu0 %vm5556_vm1, %v8544_v5 }
0x17f6   :  { %4850 = vmatpush3.bf16.msra.mxu1 %v8770_v41  ;;  %4863 = vmatprep.subr.bf16.mxu0 %v8544_v5 }
0x17f7   :  { %4851 = vmatprep.subr.bf16.mxu1 %v8544_v5 }
0x17f9   :  { %4864 = vmatpush3.bf16.msra.mxu0 %v5485_v47 }
0x17fa   :  { %4852 = vmatpush3.bf16.msra.mxu1 %v8771_v9  ;;  %4865 = vmatprep.subr.bf16.mxu0 %v8544_v5 }
0x17fb   :  { %4853 = vmatprep.subr.bf16.mxu1 %v8544_v5 }
0x17fd   :  { %4866 = vmatpush3.bf16.msra.mxu0 %v5486_v16 }
0x17fe   :  { %4854 = vmatpush3.bf16.msra.mxu1 %v8772_v19  ;;  %4867 = vmatprep.subr.bf16.mxu0 %v8544_v5 }
0x17ff   :  { %4855 = vmatprep.subr.bf16.mxu1 %v8544_v5 }
0x1801   :  { %4868 = vmatpush3.bf16.msra.mxu0 %v5487_v61 }
0x1802   :  { %4856 = vmatpush3.bf16.msra.mxu1 %v8773_v44  ;;  %4869 = vmatprep.subr.bf16.mxu0 %v8544_v5 }
0x1803   :  { %3810 = vmatprep.subr.bf16.mxu1 %v8774_v22 }
0x1805   :  { %4870 = vmatpush3.bf16.msra.mxu0 %v5488_v1 }
0x1806   :  { %4871 = vmatprep.subr.bf16.mxu0 %v8544_v5 }
0x1809   :  { %4872 = vmatpush3.bf16.msra.mxu0 %v5489_v31 }
0x180a   :  { %4873 = vmatprep.subr.bf16.mxu0 %v8544_v5 }
0x180d   :  { %4874 = vmatpush3.bf16.msra.mxu0 %v5490_v4  ;;  %v5503_v4 = vld [vmem:[%s8325_s5 + $0x44] ss:$16 sps:$4 sm:$0xff]  }
0x180e   :  { %4875 = vmatprep.subr.bf16.mxu0 %v8544_v5 }
0x1811   :  { %4876 = vmatpush3.bf16.msra.mxu0 %v5491_v52  ;;  %v5504_v52 = vld [vmem:[%s8325_s5 + $0x40] ss:$16 sps:$4 sm:$0xff]  }
0x1812   :  { %3963 = vmatprep.subr.bf16.mxu0 %v5492_v57  ;;  %v5505_v57 = vld [vmem:[%s8325_s5 + $0x24] ss:$16 sps:$4 sm:$0xff]  }
0x18a4   :  { %v3630_v24 = vpop.f32.mrf.mxu1  ;;  %v3671_v62 = vpop.f32.mrf.mxu0 }
0x18a5   :  { %v3631_v17 = vadd.f32 %v3630_v24, %v8775_v59  ;;  %v3672_v27 = vadd.f32 %v3671_v62, %v8776_v39  ;;  %v5506_v24 = vld [vmem:[%s8325_s5 + $0x20] ss:$16 sps:$4 sm:$0xff]   ;;  %v5507_v62 = vld [vmem:[%s8325_s5 + $0x4] ss:$16 sps:$4 sm:$0xff]  }
0x18a6   :  { %v3632_v8 = vpop.f32.mrf.mxu1  ;;  %v3673_v29 = vpop.f32.mrf.mxu0 }
0x18a7   :  { %v4302_v26 = vmul.f32 -1.442695, %v3631_v17  ;;  %v3633_v14 = vadd.f32 %v3632_v8, %v6315_v56  ;;  %v3674_v48 = vadd.f32 %v3673_v29, %v8700_v40  ;;  %v5508_v17 = vld [vmem:[%s8325_s5] ss:$16 sps:$4 sm:$0xff]  }
0x18a8   :  { %v3634_v18 = vpop.f32.mrf.mxu1  ;;  %v3675_v33 = vpop.f32.mrf.mxu0 }
0x18a9   :  { %5292 = vpow2.f32 %v4302_v26  ;;  %v4303_v58 = vmul.f32 -1.442695, %v3633_v14  ;;  %v4304_v21 = vmul.f32 -1.442695, %v3674_v48 }
0x18aa   :  { %v3635_v2 = vpop.f32.mrf.mxu1  ;;  %v3676_v23 = vpop.f32.mrf.mxu0 }
0x18ab   :  { %5294 = vpow2.f32 %v4303_v58 }
0x18ac   :  { %5296 = vtanh.f32 %v3672_v27 }
0x18b4   :  { %v3795_v15 = vpop.f32.mrf.mxu0 }
0x18b5   :  { %v8137_v55 = vadd.f32 %v3795_v15, %v8779_v36 }
0x18b6   :  { %v5293_v46 = vpop.eup %5292  ;;  %v3797_v35 = vpop.f32.mrf.mxu0 }
0x18b7   :  { %v3681_v30 = vadd.f32 1.0, %v5293_v46  ;;  %v8139_v45 = vadd.f32 %v3797_v35, %v263_v25  ;;  %v4310_v29 = vmul.f32 -1.442695, %v8137_v55  ;;  %v8781_v25 = vld [vmem:[#allocation52_spill] sm:$0xff]  ;;  %v8782_v55 = vld [vmem:[#allocation50_spill] sm:$0xff] }
0x18b8   :  { %v5295_v34 = vpop.eup %5294  ;;  %v3799_v32 = vpop.f32.mrf.mxu0  ;;  %v346_v36 = vadd.f32 %v8781_v25, %v8780_v12 }
0x18b9   :  { %5298 = vrcp.f32 %v3681_v30  ;;  %v3687_v10 = vadd.f32 1.0, %v5295_v34  ;;  %v5297_v50 = vpop.eup %5296  ;;  %v4311_v8 = vmul.f32 -1.442695, %v8139_v45 }
0x18ba   :  { %5300 = vpow2.f32 %v4304_v21  ;;  %v3800_v38 = vpop.f32.mrf.mxu0 }
0x18bb   :  { %5302 = vrcp.f32 %v3687_v10 }
0x18c6   :  { %v5299_v11 = vpop.eup %5298 }
0x18c7   :  { %v5301_v6 = vpop.eup %5300  ;;  %v3698_v47 = vmul.f32 %v5299_v11, %v5297_v50 }
0x18c8   :  { %v5303_v41 = vpop.eup %5302  ;;  %v3694_v16 = vadd.f32 1.0, %v5301_v6 }
0x18c9   :  { %v3697_v9 = vmul.f32 %v5303_v41, %v4292_v3  ;;  %v5494_v3 = vld [vmem:[%s8325_s5 + $0xe0] ss:$16 sps:$4 sm:$0xff]  }
0x18ca   :  { %5304 = vrcp.f32 %v3694_v16 }
0x18cb   :  { %v8143_v19 = vadd.f32 %v3698_v47, %v3697_v9 }
0x18cd   :  { %v4305_v61 = vclamps-f32 %v8143_v19, 3.0 }
0x18cf   :  { %5306 = vtanh.f32 %v4305_v61 }
0x18d0   :  { %5308 = vpow2.f32 %v4311_v8 }
0x18d1   :  { %5310 = vpow2.f32 %v4310_v29 }
0x18d7   :  { %v5305_v44 = vpop.eup %5304 }
0x18dc   :  { %v5307_v22 = vpop.eup %5306 }
0x18dd   :  { %v3703_v1 = vmul.f32 %v5307_v22, %v5305_v44  ;;  %v5309_v23 = vpop.eup %5308 }
0x18de   :  { %v5311_v48 = vpop.eup %5310  ;;  %v3856_v27 = vadd.f32 1.0, %v5309_v23  ;;  %v5530_v23 = vld [vmem:[%s8327_s7 + $0x8] sm:$0xff]  }
0x18df   :  { %v3704_v31 = vpack.c.bf16 %v3703_v1, %v3703_v1  ;;  %v3850_v15 = vadd.f32 1.0, %v5311_v48  ;;  %v5509_v1 = vld [vmem:[%s8325_s5 + $0xe8] ss:$16 sps:$4 sm:$0xff]   ;;  %v5531_v48 = vld [vmem:[%s8327_s7] sm:$0xff]  }
0x18e0   :  { %5312 = vrcp.f32 %v3856_v27 }
0x18e1   :  { %4858 = vmatmul.mubr.bf16.vlgmr.msra.gmra.mxu1 %v3704_v31  ;;  %5314 = vrcp.f32 %v3850_v15  ;;  %v5512_v31 = vld [vmem:[%s8325_s5 + $0xac] ss:$16 sps:$4 sm:$0xff]  }
0x18e2   :  { %3811 = vmatpush1.bf16.msra.mxu1 %v7962_v37  ;;  %3834 = vmatprep.mubr.bf16.mxu1 %v8540_v20  ;;  %v5495_v37 = vld [vmem:[%s8325_s5 + $0xc4] ss:$16 sps:$4 sm:$0xff]  }
0x18e3   :  { %3812 = vmatprep.subr.bf16.mxu1 %v7969_v63  ;;  %v5496_v63 = vld [vmem:[%s8325_s5 + $0xc0] ss:$16 sps:$4 sm:$0xff]  }
0x18e6   :  { %3813 = vmatpush1.bf16.msra.mxu1 %v7975_v54  ;;  %v5497_v54 = vld [vmem:[%s8325_s5 + $0xa4] ss:$16 sps:$4 sm:$0xff]  }
0x18e7   :  { %3814 = vmatprep.subr.bf16.mxu1 %v7981_v28  ;;  %v5498_v28 = vld [vmem:[%s8325_s5 + $0xa0] ss:$16 sps:$4 sm:$0xff]  }
0x18ea   :  { %3815 = vmatpush1.bf16.msra.mxu1 %v7987_v51  ;;  %v5499_v51 = vld [vmem:[%s8325_s5 + $0x84] ss:$16 sps:$4 sm:$0xff]  }
0x18eb   :  { %3816 = vmatprep.subr.bf16.mxu1 %v7993_v60  ;;  %v5500_v60 = vld [vmem:[%s8325_s5 + $0x80] ss:$16 sps:$4 sm:$0xff]  }
0x18ed   :  { %v5313_v34 = vpop.eup %5312 }
0x18ee   :  { %3817 = vmatpush1.bf16.msra.mxu1 %v7999_v42  ;;  %v5501_v42 = vld [vmem:[%s8325_s5 + $0x64] ss:$16 sps:$4 sm:$0xff]   ;;  %v5315_v32 = vpop.eup %5314  ;;  %v3866_v38 = vmul.f32 %v5313_v34, %v4300_v43  ;;  %v5511_v43 = vld [vmem:[%s8325_s5 + $0xc8] ss:$16 sps:$4 sm:$0xff]  }
0x18ef   :  { %3922 = vmatprep.subr.bf16.mxu1 %v5493_v13  ;;  %v5513_v13 = vld [vmem:[%s8325_s5 + $0xa8] ss:$16 sps:$4 sm:$0xff]  }
0x18f1   :  { %4309 = vmatmul.mubr.msk.bf16.vlgmr.msra.gmra.mxu1 %vm166_vm0, %v8079_v49  ;;  %v5502_v49 = vld [vmem:[%s8325_s5 + $0x60] ss:$16 sps:$4 sm:$0xff]  }
0x18f2   :  { %3923 = vmatpush1.bf16.msra.mxu1 %v5494_v3  ;;  %3954 = vmatprep.mubr.bf16.mxu1 %v8540_v20  ;;  %v5515_v3 = vld [vmem:[%s8325_s5 + $0x88] ss:$16 sps:$4 sm:$0xff]  }
0x18f3   :  { %3924 = vmatprep.subr.bf16.mxu1 %v5495_v37  ;;  %v5516_v37 = vld [vmem:[%s8325_s5 + $0x6c] ss:$16 sps:$4 sm:$0xff]  }
0x18f6   :  { %3925 = vmatpush1.bf16.msra.mxu1 %v5496_v63  ;;  %v5517_v63 = vld [vmem:[%s8325_s5 + $0x68] ss:$16 sps:$4 sm:$0xff]  }
0x18f7   :  { %3926 = vmatprep.subr.bf16.mxu1 %v5497_v54  ;;  %v5518_v54 = vld [vmem:[%s8325_s5 + $0x4c] ss:$16 sps:$4 sm:$0xff]  }
0x18fa   :  { %3927 = vmatpush1.bf16.msra.mxu1 %v5498_v28  ;;  %v5519_v28 = vld [vmem:[%s8325_s5 + $0x48] ss:$16 sps:$4 sm:$0xff]  }
0x18fb   :  { %3928 = vmatprep.subr.bf16.mxu1 %v5499_v51  ;;  %v5520_v51 = vld [vmem:[%s8325_s5 + $0x2c] ss:$16 sps:$4 sm:$0xff]  }
0x18fe   :  { %3929 = vmatpush1.bf16.msra.mxu1 %v5500_v60  ;;  %v5521_v60 = vld [vmem:[%s8325_s5 + $0x28] ss:$16 sps:$4 sm:$0xff]  }
0x18ff   :  { %3930 = vmatprep.subr.bf16.mxu1 %v5501_v42  ;;  %v5522_v42 = vld [vmem:[%s8325_s5 + $0xc] ss:$16 sps:$4 sm:$0xff]  }
0x1902   :  { %3931 = vmatpush1.bf16.msra.mxu1 %v5502_v49  ;;  %v5523_v49 = vld [vmem:[%s8325_s5 + $0x8] ss:$16 sps:$4 sm:$0xff]  }
0x1903   :  { %3932 = vmatprep.subr.bf16.mxu1 %v5503_v4 }
0x1906   :  { %3933 = vmatpush1.bf16.msra.mxu1 %v5504_v52 }
0x1907   :  { %3934 = vmatprep.subr.bf16.mxu1 %v5505_v57 }
0x190a   :  { %3935 = vmatpush1.bf16.msra.mxu1 %v5506_v24 }
0x190b   :  { %3936 = vmatprep.subr.bf16.mxu1 %v5507_v62 }
0x190e   :  { %3937 = vmatpush1.bf16.msra.mxu1 %v5508_v17 }
0x190f   :  { %4881 = vmatprep.subr.bf16.mxu1 %v8544_v5 }
0x19a1   :  { %v3739_v26 = vpop.f32.mrf.mxu1 }
0x19a2   :  { %v4306_v14 = vclamps-f32 %v3739_v26, 3.0  ;;  %v5524_v26 = vld [vmem:[%s8327_s7 + $0x38] sm:$0xff]  }
0x19a3   :  { %v4859_v18 = vpop.f32.mrf.mxu1 }
0x19a4   :  { %v3749_v33 = vadd.f32 %v4306_v14, %v8055_v0  ;;  %3917 = vrot.lane.b32.xlu0 %v4306_v14, %s5557_s6  ;;  %v5525_v14 = vld [vmem:[%s8327_s7 + $0x30] sm:$0xff]   ;;  %v5526_v18 = vld [vmem:[%s8327_s7 + $0x28] sm:$0xff]  }
0x19a5   :  { %v3742_v58 = vpop.f32.mrf.mxu1 }
0x19a6   :  { %4307 = vst.msk [vmem:[%s8329_s9 + $0x40] sm:$0xff] %vm166_vm0, %v3749_v33  ;;  %v5527_v33 = vld [vmem:[%s8327_s7 + $0x20] sm:$0xff]   ;;  %v5528_v58 = vld [vmem:[%s8327_s7 + $0x18] sm:$0xff]  }
0x19a7   :  { %v4860_v2 = vpop.f32.mrf.mxu1 }
0x19a8   :  { %v5529_v2 = vld [vmem:[%s8327_s7 + $0x10] sm:$0xff]   ;;  %s5558_s7 = smov [#allocation3]  }
0x19a9   :  { %s4083_s18 = sshll.u32 %s5558_s7, 4  ;;  %s4084_s18 = int_to_ptr.vmem [resolvable:$true] %s4083_s18 }
0x19aa   :  { %s5532_s4 = scalar_lea.vmem %s4084_s18, 1280  ;;  %p5537_p1 = scmp.lt.s32.totalorder %s4084_s18, %s4084_s18 }
0x19ab   :  { %p5533_p0 = scmp.ne.s32.totalorder %s4084_s18, %s5532_s4  ;;  %p5538_p2 = scmp.lt.s32.totalorder %s5532_s4, %s5532_s4 }
0x19ad   :  { %p5539_p3 = por %p5538_p2, %p5537_p1 }
0x19af   :  { %p5540_p4 = pnand %p5539_p3, %p5533_p0 }
0x19b1   :  { %v3836_v7 = vpop.f32.mrf.mxu1 }
0x19b2   :  { %v3845_v0 = vadd.f32 %v3836_v7, %v8782_v55 }
0x19b3   :  { %v3838_v46 = vpop.f32.mrf.mxu1 }
0x19b4   :  { %5316 = vtanh.f32 %v3845_v0  ;;  %v3846_v21 = vadd.f32 %v3838_v46, %v346_v36 }
0x19b5   :  { %v3840_v35 = vpop.f32.mrf.mxu1 }
0x19b6   :  { %v4312_v30 = vmul.f32 -1.442695, %v3846_v21 }
0x19b7   :  { %v3841_v45 = vpop.f32.mrf.mxu1 }
0x19b8   :  { %5318 = vpow2.f32 %v4312_v30 }
0x19c1   :  { %v5317_v10 = vpop.eup %5316 }
0x19c2   :  { %v3867_v50 = vmul.f32 %v5317_v10, %v5315_v32 }
0x19c4   :  { %v3868_v11 = vadd.f32 %v3867_v50, %v3866_v38 }
0x19c5   :  { %v5319_v6 = vpop.eup %5318 }
0x19c6   :  { %v4313_v41 = vclamps-f32 %v3868_v11, 3.0  ;;  %v3863_v47 = vadd.f32 1.0, %v5319_v6 }
0x19c8   :  { %5320 = vtanh.f32 %v4313_v41 }
0x19c9   :  { %5322 = vrcp.f32 %v3863_v47 }
0x19d5   :  { %v5321_v9 = vpop.eup %5320 }
0x19d6   :  { %v5323_v16 = vpop.eup %5322 }
0x19d7   :  { %v3872_v44 = vmul.f32 %v5323_v16, %v5321_v9 }
0x19d9   :  { %v3873_v22 = vpack.c.bf16 %v3872_v44, %v3872_v44 }
0x19db   :  { %4878 = vmatmul.mubr.bf16.vlgmr.msra.gmra.mxu0 %v3873_v22 }
0x19dc   :  { %3964 = vmatpush1.bf16.msra.mxu0 %v5509_v1  ;;  %3995 = vmatprep.mubr.bf16.mxu0 %v8540_v20  ;;  %v5514_v20 = vld [vmem:[%s8325_s5 + $0x8c] ss:$16 sps:$4 sm:$0xff]  }
0x19dd   :  { %3965 = vmatprep.subr.bf16.mxu0 %v5510_v53 }
0x19e0   :  { %3966 = vmatpush1.bf16.msra.mxu0 %v5511_v43 }
0x19e1   :  { %3967 = vmatprep.subr.bf16.mxu0 %v5512_v31 }
0x19e4   :  { %3968 = vmatpush1.bf16.msra.mxu0 %v5513_v13 }
0x19e5   :  { %3969 = vmatprep.subr.bf16.mxu0 %v5514_v20 }
0x19e8   :  { %3970 = vmatpush1.bf16.msra.mxu0 %v5515_v3 }
0x19e9   :  { %3971 = vmatprep.subr.bf16.mxu0 %v5516_v37 }
0x19ec   :  { %3972 = vmatpush1.bf16.msra.mxu0 %v5517_v63 }
0x19ed   :  { %3973 = vmatprep.subr.bf16.mxu0 %v5518_v54 }
0x19f0   :  { %3974 = vmatpush1.bf16.msra.mxu0 %v5519_v28 }
0x19f1   :  { %3975 = vmatprep.subr.bf16.mxu0 %v5520_v51 }
0x19f4   :  { %3976 = vmatpush1.bf16.msra.mxu0 %v5521_v60 }
0x19f5   :  { %3977 = vmatprep.subr.bf16.mxu0 %v5522_v42 }
0x19f8   :  { %3978 = vmatpush1.bf16.msra.mxu0 %v5523_v49 }
0x1a16   :  { %v3918_v57 = vpop.permute.xlu0 %3917 }
0x1a9b   :  { %v3908_v4 = vpop.f32.mrf.mxu0 }
0x1a9c   :  { %v8267_v52 = vclamps-f32 %v3908_v4, 3.0 }
0x1a9d   :  { %v4879_v24 = vpop.f32.mrf.mxu0 }
0x1a9e   :  { %v3920_v62 = vsel %vm166_vm0, %v8267_v52, %v3918_v57  ;;  %4074 = vst.msk [vmem:[#allocation3 + $0x48] sm:$0xff] %vm166_vm0, %v8267_v52 }
0x1a9f   :  { %v3921_v17 = vpack.c.bf16 %v3920_v62, %v3920_v62  ;;  %v3911_v8 = vpop.f32.mrf.mxu0 }
0x1aa1   :  { %v4880_v29 = vpop.f32.mrf.mxu0  ;;  %3955 = vmatmul.mubr.bf16.vlgmr.msra.gmra.mxu1 %v3921_v17  ;;  %3996 = vmatmul.mubr.bf16.vlgmr.msra.gmra.mxu0 %v3921_v17 }
0x1aa2   :  { %4882 = vmatpush3.bf16.msra.mxu1 %v5524_v26  ;;  %4897 = vmatprep.mubr.msk.bf16.mxu1 %vm5556_vm1, %v8544_v5 }
0x1aa3   :  { %4883 = vmatprep.subr.bf16.mxu1 %v8544_v5 }
0x1aa6   :  { %4884 = vmatpush3.bf16.msra.mxu1 %v5525_v14 }
0x1aa7   :  { %4885 = vmatprep.subr.bf16.mxu1 %v8544_v5 }
0x1aaa   :  { %4886 = vmatpush3.bf16.msra.mxu1 %v5526_v18 }
0x1aab   :  { %4887 = vmatprep.subr.bf16.mxu1 %v8544_v5 }
0x1aae   :  { %4888 = vmatpush3.bf16.msra.mxu1 %v5527_v33 }
0x1aaf   :  { %4889 = vmatprep.subr.bf16.mxu1 %v8544_v5 }
0x1ab2   :  { %4890 = vmatpush3.bf16.msra.mxu1 %v5528_v58 }
0x1ab3   :  { %4891 = vmatprep.subr.bf16.mxu1 %v8544_v5 }
0x1ab6   :  { %4892 = vmatpush3.bf16.msra.mxu1 %v5529_v2 }
0x1ab7   :  { %4893 = vmatprep.subr.bf16.mxu1 %v8544_v5 }
0x1aba   :  { %4894 = vmatpush3.bf16.msra.mxu1 %v5530_v23 }
0x1abb   :  { %4895 = vmatprep.subr.bf16.mxu1 %v8544_v5 }
0x1abe   :  { %4896 = vmatpush3.bf16.msra.mxu1 %v5531_v48 }
0x1b61   :  { %v3956_v27 = vpop.f32.mrf.mxu1  ;;  %v3997_v15 = vpop.f32.mrf.mxu0 }
0x1b62   :  { %v3957_v7 = vadd.f32 %v3956_v27, %v8775_v59  ;;  %v3998_v45 = vadd.f32 %v3997_v15, %v8776_v39 }
0x1b63   :  { %v3958_v12 = vpop.f32.mrf.mxu1  ;;  %v3999_v25 = vpop.f32.mrf.mxu0 }
0x1b64   :  { %v4315_v36 = vmul.f32 -1.442695, %v3957_v7  ;;  %v3959_v55 = vadd.f32 %v3958_v12, %v6315_v56  ;;  %v4000_v30 = vadd.f32 %v3999_v25, %v8700_v40 }
0x1b65   :  { %v3960_v0 = vpop.f32.mrf.mxu1  ;;  %v4001_v46 = vpop.f32.mrf.mxu0 }
0x1b66   :  { %5324 = vpow2.f32 %v4315_v36  ;;  %v4316_v21 = vmul.f32 -1.442695, %v3959_v55  ;;  %v4317_v32 = vmul.f32 -1.442695, %v4000_v30 }
0x1b67   :  { %v3961_v35 = vpop.f32.mrf.mxu1  ;;  %v4002_v5 = vpop.f32.mrf.mxu0 }
0x1b68   :  { %5326 = vpow2.f32 %v4316_v21 }
0x1b69   :  { %5328 = vtanh.f32 %v3998_v45 }
0x1b73   :  { %v5325_v34 = vpop.eup %5324 }
0x1b74   :  { %v4007_v10 = vadd.f32 1.0, %v5325_v34 }
0x1b75   :  { %v5327_v59 = vpop.eup %5326 }
0x1b76   :  { %5330 = vrcp.f32 %v4007_v10  ;;  %v4013_v38 = vadd.f32 1.0, %v5327_v59  ;;  %v5329_v56 = vpop.eup %5328 }
0x1b77   :  { %5332 = vpow2.f32 %v4317_v32 }
0x1b78   :  { %5334 = vrcp.f32 %v4013_v38 }
0x1b83   :  { %v5331_v50 = vpop.eup %5330 }
0x1b84   :  { %v5333_v11 = vpop.eup %5332  ;;  %v4024_v41 = vmul.f32 %v5331_v50, %v5329_v56 }
0x1b85   :  { %v5335_v6 = vpop.eup %5334  ;;  %v4020_v40 = vadd.f32 1.0, %v5333_v11 }
0x1b86   :  { %v4023_v47 = vmul.f32 %v5335_v6, %v4305_v61 }
0x1b87   :  { %5336 = vrcp.f32 %v4020_v40 }
0x1b88   :  { %v4025_v9 = vadd.f32 %v4024_v41, %v4023_v47 }
0x1b8a   :  { %v4318_v39 = vclamps-f32 %v4025_v9, 3.0 }
0x1b8c   :  { %5338 = vtanh.f32 %v4318_v39 }
0x1b94   :  { %v5337_v16 = vpop.eup %5336 }
0x1b99   :  { %v5339_v44 = vpop.eup %5338 }
0x1b9a   :  { %v4029_v22 = vmul.f32 %v5339_v44, %v5337_v16 }
0x1b9c   :  { %v4030_v1 = vpack.c.bf16 %v4029_v22, %v4029_v22 }
0x1b9e   :  { %4898 = vmatmul.mubr.bf16.vlgmr.msra.gmra.mxu1 %v4030_v1 }
0x1b9f   :  { %5543 = shalt.err (!%p5540_p4)
}
0x1ba0   :  { %s5559_s19 = smov 128   ;;  %s5560_s20 = smov 8  }
0x1ba1   :  { %4089 = dma.vmem_to_hbm [thread:$0]  %s4084_s18, 1280, %s8328_s8, [#allocation4], %s5559_s19, %s5559_s19, %s5560_s20  }
0x1c5e   :  { %v4065_v19 = vpop.f32.mrf.mxu1 }
0x1c5f   :  { %v4319_v61 = vclamps-f32 %v4065_v19, 3.0 }
0x1c60   :  { %v4899_v53 = vpop.f32.mrf.mxu1 }
0x1c61   :  { %v4075_v43 = vadd.f32 %v4319_v61, %v8267_v52 }
0x1c62   :  { %v4068_v31 = vpop.f32.mrf.mxu1 }
0x1c63   :  { %4320 = vst.msk [vmem:[%s8329_s9 + $0x48] sm:$0xff] %vm166_vm0, %v4075_v43 }
0x1c64   :  { %v4900_v13 = vpop.f32.mrf.mxu1 }
0x1c65   :  { %5552 = dma.done.wait [#allocation4], 1280  }
0x1c66   :  { %5553 = vsyncadd [#allocation4], 4294966016 }
0x1c67   :  { %4097 = vsyncpa [#allocation4], 1 }

</bundles_post_ra>
